<compile_context>
chip_gen: v6e
topology: v6e:2x2x1
jax: 0.10.0
libtpu: 0.0.40
codegen_flags: <defaults>
</compile_context>

<pallas_src>
import functools
import math

import jax
import jax.numpy as jnp
from jax import lax
from jax.experimental import pallas as pl
from jax.experimental.pallas import tpu as pltpu

BN_EPS = 1e-5
POOL_OUT = 4          # AdaptiveMaxPool1d(4) in the reference module


def _round_up(n, m):
    return ((n + m - 1) // m) * m


# ----------------------------- Pallas kernel --------------------------------


def _shift_rows(x, k):
    """Value whose row r holds x[(r + k) % R]  (row shift via XLU rotate).

    The circular wrap only lands in the last sample's padding rows, which are
    never consumed by valid outputs.
    """
    if k == 0:
        return x
    return pltpu.roll(x, x.shape[0] - k, axis=0)


def _conv_k3(h, w_ref, t_ref, step):
    """K-tap valid 1-D conv as K accumulating dots on row-shifted values.

    h:      (R, c_in) activation value, per-sample data at row stride `step`.
    w_ref:  (K, c_in, c_out) Ref, eval-mode BN scale folded into the weights.
    t_ref:  (1, c_out) Ref, folded shift (conv_bias - mean)*scale + beta.
    """
    k_taps = w_ref.shape[0]
    acc = jnp.dot(h, w_ref[0], preferred_element_type=jnp.float32)
    for k in range(1, k_taps):
        acc = acc + jnp.dot(_shift_rows(h, k * step), w_ref[k],
                            preferred_element_type=jnp.float32)
    return jnp.maximum(acc + t_ref[...], 0.0)


def _cnn_fused_kernel(x_ref, w1, t1, w2, t2, w3, t3, w4, t4,
                      fw1, fb1, fw2, fb2, fw3, fb3, o_ref,
                      *, bt, srows, bins):
    kc = w1.shape[0]

    # layer1: Conv1d(C_in,16,K)+BN+ReLU.  The im2col was built in the wrapper
    # so this is one (BT*S, K*C_in) x (K*C_in, 16) MXU dot.
    xcol = x_ref[...].reshape(bt * srows, kc)
    h = jnp.maximum(
        jnp.dot(xcol, w1[...], preferred_element_type=jnp.float32) + t1[...],
        0.0)

    # layer2: Conv1d(16,32,3)+BN+ReLU (stride-1 taps).
    h = _conv_k3(h, w2, t2, step=1)

    # MaxPool1d(2,2): keep a stride-2 row layout (valid data on even rows)
    # instead of compacting rows -- no gather/shuffle needed.
    h = jnp.maximum(h, _shift_rows(h, 1))

    # layer3 / layer4: Conv1d(.,.,3)+BN+ReLU with stride-2 taps.
    h = _conv_k3(h, w3, t3, step=2)
    h = _conv_k3(h, w4, t4, step=2)

    # AdaptiveMaxPool1d(4) + flatten, fused with fc1: masked per-bin sublane
    # maxes concatenated bin-major along lanes -> a single (BT, 4*128) LHS.
    c4 = h.shape[-1]
    h3 = h.reshape(bt, srows, c4)
    row = lax.broadcasted_iota(jnp.int32, (1, srows, 1), 1)
    segs = []
    for lo, hi in bins:           # row bounds, already scaled to stride 2
        m = (row % 2 == 0) & (row >= lo) & (row < hi)
        segs.append(jnp.max(jnp.where(m, h3, -jnp.inf), axis=1))   # (BT, c4)
    z = jnp.concatenate(segs, axis=-1)                             # (BT, 4*c4)

    # layer5 (fc1+ReLU, fc2+ReLU) and final fc (output padded to 128 lanes).
    z = jnp.maximum(
        jnp.dot(z, fw1[...], preferred_element_type=jnp.float32) + fb1[...],
        0.0)
    z = jnp.maximum(
        jnp.dot(z, fw2[...], preferred_element_type=jnp.float32) + fb2[...],
        0.0)
    o_ref[...] = (jnp.dot(z, fw3[...], preferred_element_type=jnp.float32)
                  + fb3[...])


# -------------------------------- wrapper ------------------------------------


def _const_spec(arr):
    nd = arr.ndim
    return pl.BlockSpec(arr.shape, lambda b, _nd=nd: (0,) * _nd)


@functools.partial(jax.jit, static_argnames=("block_b",))
def cnn_forward(x, params, block_b=32):
    """Fused forward pass.  x: (B, C_in, L), or 4-D with singleton dims
    (mirrors the module's torch.squeeze, protecting the batch axis)."""
    if x.ndim == 4:
        axes = tuple(i for i in range(1, 4) if x.shape[i] == 1)
        x = jnp.squeeze(x, axis=axes)
    assert x.ndim == 3
    x = jnp.transpose(x, (0, 2, 1)).astype(jnp.float32)      # (B, L, C_in)
    B, L, c_in = x.shape

    w1 = params["w1"]                                         # (K1, C_in, 16)
    k1 = w1.shape[0]
    assert w1.shape[1] == c_in

    # Static layer geometry (matches the torch module).
    l1 = L - k1 + 1                     # layer1 valid conv length
    l2 = l1 - 2                         # layer2 conv
    p2 = l2 // 2                        # MaxPool1d(2, 2)
    l3 = p2 - 2                         # layer3
    l4 = l3 - 2                         # layer4
    assert l1 > 0 and l4 >= POOL_OUT, "input too short for this CNN"

    # Per-sample row slab (8-aligned): the largest row index any valid output
    # ever reads is l1-1, and the circular rolls need a few spare tail rows.
    srows = _round_up(l1 + 4, 8)

    # AdaptiveMaxPool1d(POOL_OUT) bin bounds, expressed in stride-2 row units.
    bins = tuple((2 * math.floor(i * l4 / POOL_OUT),
                  2 * math.ceil((i + 1) * l4 / POOL_OUT))
                 for i in range(POOL_OUT))

    # Batch tiling: BT samples per grid step.  BT=32 keeps the working set a
    # few MiB -- well inside every generation's default scoped-VMEM limit
    # (incl. v7x) -- while the per-layer LHS is already BT*srows >= 1792 rows.
    bt = _round_up(min(block_b, _round_up(B, 8)), 8)
    b_pad = _round_up(B, bt)

    # Layer-1 im2col built outside the kernel (tiny: l1 x K*C_in per sample);
    # removes every masked lane-offset store from the kernel.
    cols = jnp.stack([x[:, k:k + l1, :] for k in range(k1)], axis=2)
    cols = cols.reshape(B, l1, k1 * c_in)
    cols = jnp.pad(cols, ((0, b_pad - B), (0, srows - l1), (0, 0)))

    w1f = w1.reshape(k1 * c_in, w1.shape[2])

    # Final-layer weights padded so the output block is lane-dense (128-wide).
    fw3, fb3 = params["fw3"], params["fb3"]
    n_out = fw3.shape[1]
    out_p = _round_up(n_out, 128)
    fw3p = jnp.pad(fw3, ((0, 0), (0, out_p - n_out)))
    fb3p = jnp.pad(fb3, ((0, 0), (0, out_p - n_out)))

    weights = [w1f, params["t1"], params["w2"], params["t2"],
               params["w3"], params["t3"], params["w4"], params["t4"],
               params["fw1"], params["fb1"], params["fw2"], params["fb2"],
               fw3p, fb3p]

    kern = functools.partial(_cnn_fused_kernel, bt=bt, srows=srows, bins=bins)

    in_specs = [pl.BlockSpec((bt, srows, k1 * c_in), lambda b: (b, 0, 0))]
    in_specs += [_const_spec(w) for w in weights]

    out = pl.pallas_call(
        kern,
        out_shape=jax.ShapeDtypeStruct((b_pad, out_p), jnp.float32),
        grid_spec=pltpu.PrefetchScalarGridSpec(
            num_scalar_prefetch=0,
            grid=(b_pad // bt,),
            in_specs=in_specs,
            out_specs=pl.BlockSpec((bt, out_p), lambda b: (b, 0)),
        ),
        compiler_params=pltpu.CompilerParams(
            dimension_semantics=("parallel",)),
    )(cols, *weights)
    return out[:B, :n_out]


# ------------------------------- parameters ----------------------------------


def init_raw_params(key, in_channels=1, out_channels=10, kernel_size=15):
    """Random parameters in the PyTorch module's native layouts."""
    conv_defs = [("1", kernel_size, in_channels, 16),
                 ("2", 3, 16, 32),
                 ("3", 3, 32, 64),
                 ("4", 3, 64, 128)]
    raw = {}
    keys = iter(jax.random.split(key, 40))
    nrm = lambda shape, s=0.1: s * jax.random.normal(next(keys), shape,
                                                     jnp.float32)
    for name, k, ci, co in conv_defs:
        raw[f"conv{name}_w"] = nrm((co, ci, k))        # torch Conv1d layout
        raw[f"conv{name}_b"] = nrm((co,))
        raw[f"bn{name}_g"] = 1.0 + nrm((co,))
        raw[f"bn{name}_b"] = nrm((co,))
        raw[f"bn{name}_mean"] = nrm((co,))
        raw[f"bn{name}_var"] = 1.0 + 0.5 * jax.random.uniform(
            next(keys), (co,), jnp.float32)
    c4 = conv_defs[-1][-1]
    raw["fc1_w"] = nrm((256, c4 * POOL_OUT))           # torch Linear layout
    raw["fc1_b"] = nrm((256,))
    raw["fc2_w"] = nrm((64, 256))
    raw["fc2_b"] = nrm((64,))
    raw["fc3_w"] = nrm((out_channels, 64))
    raw["fc3_b"] = nrm((out_channels,))
    return raw


def prepare_params(raw):
    """Fold eval-mode BatchNorm (running stats) into the conv weights and
    convert everything to the kernel's layouts."""
    p = {}
    for name in ("1", "2", "3", "4"):
        w = jnp.transpose(raw[f"conv{name}_w"], (2, 1, 0))   # (K, C_in, C_out)
        scale = raw[f"bn{name}_g"] / jnp.sqrt(raw[f"bn{name}_var"] + BN_EPS)
        p["w" + name] = w * scale[None, None, :]
        p["t" + name] = ((raw[f"conv{name}_b"] - raw[f"bn{name}_mean"]) * scale
                         + raw[f"bn{name}_b"]).reshape(1, -1)
    c4 = p["w4"].shape[-1]
    h1 = raw["fc1_w"].shape[0]
    # torch flattens (B, C, 4) with index c*4+l; the kernel's pooled vector is
    # bin-major (lane index l*C + c) -> permute fc1 rows accordingly.
    fw1 = raw["fc1_w"].reshape(h1, c4, POOL_OUT).transpose(2, 1, 0)
    p["fw1"] = fw1.reshape(POOL_OUT * c4, h1)
    p["fb1"] = raw["fc1_b"].reshape(1, -1)
    p["fw2"] = raw["fc2_w"].T
    p["fb2"] = raw["fc2_b"].reshape(1, -1)
    p["fw3"] = raw["fc3_w"].T
    p["fb3"] = raw["fc3_b"].reshape(1, -1)
    return p


# ------------------------- pure-JAX reference (test) -------------------------


def reference_forward(x, raw):
    """Plain-XLA replica of the PyTorch module, used to validate the kernel."""
    if x.ndim == 4:
        x = jnp.squeeze(x, axis=tuple(i for i in range(1, 4)
                                      if x.shape[i] == 1))
    x = x.astype(jnp.float32)
    hp = lax.Precision.HIGHEST

    def conv_bn_relu(h, name):
        y = lax.conv_general_dilated(h, raw[f"conv{name}_w"], (1,), "VALID",
                                     dimension_numbers=("NCH", "OIH", "NCH"),
                                     precision=hp)
        y = y + raw[f"conv{name}_b"][None, :, None]
        scale = raw[f"bn{name}_g"] / jnp.sqrt(raw[f"bn{name}_var"] + BN_EPS)
        y = ((y - raw[f"bn{name}_mean"][None, :, None]) * scale[None, :, None]
             + raw[f"bn{name}_b"][None, :, None])
        return jnp.maximum(y, 0.0)

    h = conv_bn_relu(x, "1")
    h = conv_bn_relu(h, "2")
    b, c, l = h.shape
    h = h[:, :, :(l // 2) * 2].reshape(b, c, l // 2, 2).max(axis=-1)  # MaxPool
    h = conv_bn_relu(h, "3")
    h = conv_bn_relu(h, "4")
    l4 = h.shape[-1]
    bins = [h[:, :, math.floor(i * l4 / POOL_OUT):
                    math.ceil((i + 1) * l4 / POOL_OUT)].max(axis=-1)
            for i in range(POOL_OUT)]                       # AdaptiveMaxPool1d
    h = jnp.stack(bins, axis=-1).reshape(h.shape[0], -1)    # torch .view(B,-1)
    h = jnp.maximum(jnp.dot(h, raw["fc1_w"].T, precision=hp)
                    + raw["fc1_b"], 0.0)
    h = jnp.maximum(jnp.dot(h, raw["fc2_w"].T, precision=hp)
                    + raw["fc2_b"], 0.0)
    return jnp.dot(h, raw["fc3_w"].T, precision=hp) + raw["fc3_b"]


# ----------------------------------- main -------------------------------------

if __name__ == "__main__":
    key = jax.random.PRNGKey(0)
    k_param, k_x = jax.random.split(key)

    raw = init_raw_params(k_param, in_channels=1, out_channels=10,
                          kernel_size=15)
    params = prepare_params(raw)

    x = jax.random.normal(k_x, (2, 1, 64), jnp.float32)      # (B, C_in=1, L=64)

    out = jax.block_until_ready(cnn_forward(x, params))
    assert out.shape == (2, 10), out.shape
    assert bool(jnp.all(jnp.isfinite(out)))

    ref = reference_forward(x, raw)
    max_err = float(jnp.max(jnp.abs(out - ref)))
    assert bool(jnp.allclose(out, ref, rtol=5e-2, atol=5e-2)), max_err

    print("KERNEL_OK")
</pallas_src>

<mosaic_0001>
module attributes {stable_mosaic.version = 11 : i64} {
  func.func @_cnn_fused_kernel(%arg0: i32, %arg1: memref<8x56x15xf32, #tpu.memory_space<vmem>>, %arg2: memref<15x16xf32, #tpu.memory_space<vmem>>, %arg3: memref<1x16xf32, #tpu.memory_space<vmem>>, %arg4: memref<3x16x32xf32, #tpu.memory_space<vmem>>, %arg5: memref<1x32xf32, #tpu.memory_space<vmem>>, %arg6: memref<3x32x64xf32, #tpu.memory_space<vmem>>, %arg7: memref<1x64xf32, #tpu.memory_space<vmem>>, %arg8: memref<3x64x128xf32, #tpu.memory_space<vmem>>, %arg9: memref<1x128xf32, #tpu.memory_space<vmem>>, %arg10: memref<512x256xf32, #tpu.memory_space<vmem>>, %arg11: memref<1x256xf32, #tpu.memory_space<vmem>>, %arg12: memref<256x64xf32, #tpu.memory_space<vmem>>, %arg13: memref<1x64xf32, #tpu.memory_space<vmem>>, %arg14: memref<64x128xf32, #tpu.memory_space<vmem>>, %arg15: memref<1x128xf32, #tpu.memory_space<vmem>>, %arg16: memref<8x128xf32, #tpu.memory_space<vmem>>) attributes {dimension_semantics = [#tpu.dimension_semantics<parallel>], iteration_bounds = array<i64: 1>, scalar_prefetch = 0 : i64, scratch_operands = 0 : i64, tpu.core_type = #tpu.core_type<tc>, window_params = [{transform_indices = @transform_0, window_bounds = array<i64: 8, 56, 15>}, {pipeline_mode = #tpu.pipeline_mode<synchronous>, transform_indices = @transform_1, window_bounds = array<i64: 15, 16>}, {pipeline_mode = #tpu.pipeline_mode<synchronous>, transform_indices = @transform_2, window_bounds = array<i64: 1, 16>}, {pipeline_mode = #tpu.pipeline_mode<synchronous>, transform_indices = @transform_3, window_bounds = array<i64: 3, 16, 32>}, {pipeline_mode = #tpu.pipeline_mode<synchronous>, transform_indices = @transform_4, window_bounds = array<i64: 1, 32>}, {pipeline_mode = #tpu.pipeline_mode<synchronous>, transform_indices = @transform_5, window_bounds = array<i64: 3, 32, 64>}, {pipeline_mode = #tpu.pipeline_mode<synchronous>, transform_indices = @transform_6, window_bounds = array<i64: 1, 64>}, {pipeline_mode = #tpu.pipeline_mode<synchronous>, transform_indices = @transform_7, window_bounds = array<i64: 3, 64, 128>}, {pipeline_mode = #tpu.pipeline_mode<synchronous>, transform_indices = @transform_8, window_bounds = array<i64: 1, 128>}, {pipeline_mode = #tpu.pipeline_mode<synchronous>, transform_indices = @transform_9, window_bounds = array<i64: 512, 256>}, {pipeline_mode = #tpu.pipeline_mode<synchronous>, transform_indices = @transform_10, window_bounds = array<i64: 1, 256>}, {pipeline_mode = #tpu.pipeline_mode<synchronous>, transform_indices = @transform_11, window_bounds = array<i64: 256, 64>}, {pipeline_mode = #tpu.pipeline_mode<synchronous>, transform_indices = @transform_12, window_bounds = array<i64: 1, 64>}, {pipeline_mode = #tpu.pipeline_mode<synchronous>, transform_indices = @transform_13, window_bounds = array<i64: 64, 128>}, {pipeline_mode = #tpu.pipeline_mode<synchronous>, transform_indices = @transform_14, window_bounds = array<i64: 1, 128>}, {transform_indices = @transform_15, window_bounds = array<i64: 8, 128>}]} {
    %c0 = arith.constant 0 : index
    %c0_0 = arith.constant 0 : index
    %c0_1 = arith.constant 0 : index
    %0 = vector.load %arg1[%c0, %c0_0, %c0_1] : memref<8x56x15xf32, #tpu.memory_space<vmem>>, vector<8x56x15xf32>
    %1 = vector.shape_cast %0 : vector<8x56x15xf32> to vector<448x15xf32>
    %c0_2 = arith.constant 0 : index
    %c0_3 = arith.constant 0 : index
    %2 = vector.load %arg2[%c0_2, %c0_3] : memref<15x16xf32, #tpu.memory_space<vmem>>, vector<15x16xf32>
    %cst = arith.constant dense<0.000000e+00> : vector<448x16xf32>
    %3 = tpu.matmul %1, %2, %cst {dimension_numbers = #tpu.dot_dimension_numbers<[1], [0], [0], [1], [0, 0, 1, 1], [], []>} : vector<448x15xf32>, vector<15x16xf32>, vector<448x16xf32> -> vector<448x16xf32>
    %c0_4 = arith.constant 0 : index
    %c0_5 = arith.constant 0 : index
    %4 = vector.load %arg3[%c0_4, %c0_5] : memref<1x16xf32, #tpu.memory_space<vmem>>, vector<1x16xf32>
    %5 = vector.broadcast %4 : vector<1x16xf32> to vector<448x16xf32>
    %6 = arith.addf %3, %5 : vector<448x16xf32>
    %cst_6 = arith.constant 0.000000e+00 : f32
    %7 = vector.broadcast %cst_6 : f32 to vector<448x16xf32>
    %8 = arith.maximumf %6, %7 : vector<448x16xf32>
    %c0_7 = arith.constant 0 : index
    %c0_8 = arith.constant 0 : index
    %c0_9 = arith.constant 0 : index
    %9 = vector.load %arg4[%c0_7, %c0_8, %c0_9] : memref<3x16x32xf32, #tpu.memory_space<vmem>>, vector<1x16x32xf32>
    %10 = vector.shape_cast %9 : vector<1x16x32xf32> to vector<16x32xf32>
    %cst_10 = arith.constant dense<0.000000e+00> : vector<448x32xf32>
    %11 = tpu.matmul %8, %10, %cst_10 {dimension_numbers = #tpu.dot_dimension_numbers<[1], [0], [0], [1], [0, 0, 1, 1], [], []>} : vector<448x16xf32>, vector<16x32xf32>, vector<448x32xf32> -> vector<448x32xf32>
    %c447_i32 = arith.constant 447 : i32
    %12 = tpu.dynamic_rotate %8 by %c447_i32 dim 0 : vector<448x16xf32>, i32 -> vector<448x16xf32>
    %c1 = arith.constant 1 : index
    %c0_11 = arith.constant 0 : index
    %c0_12 = arith.constant 0 : index
    %13 = vector.load %arg4[%c1, %c0_11, %c0_12] : memref<3x16x32xf32, #tpu.memory_space<vmem>>, vector<1x16x32xf32>
    %14 = vector.shape_cast %13 : vector<1x16x32xf32> to vector<16x32xf32>
    %cst_13 = arith.constant dense<0.000000e+00> : vector<448x32xf32>
    %15 = tpu.matmul %12, %14, %cst_13 {dimension_numbers = #tpu.dot_dimension_numbers<[1], [0], [0], [1], [0, 0, 1, 1], [], []>} : vector<448x16xf32>, vector<16x32xf32>, vector<448x32xf32> -> vector<448x32xf32>
    %16 = arith.addf %11, %15 : vector<448x32xf32>
    %c446_i32 = arith.constant 446 : i32
    %17 = tpu.dynamic_rotate %8 by %c446_i32 dim 0 : vector<448x16xf32>, i32 -> vector<448x16xf32>
    %c2 = arith.constant 2 : index
    %c0_14 = arith.constant 0 : index
    %c0_15 = arith.constant 0 : index
    %18 = vector.load %arg4[%c2, %c0_14, %c0_15] : memref<3x16x32xf32, #tpu.memory_space<vmem>>, vector<1x16x32xf32>
    %19 = vector.shape_cast %18 : vector<1x16x32xf32> to vector<16x32xf32>
    %cst_16 = arith.constant dense<0.000000e+00> : vector<448x32xf32>
    %20 = tpu.matmul %17, %19, %cst_16 {dimension_numbers = #tpu.dot_dimension_numbers<[1], [0], [0], [1], [0, 0, 1, 1], [], []>} : vector<448x16xf32>, vector<16x32xf32>, vector<448x32xf32> -> vector<448x32xf32>
    %21 = arith.addf %16, %20 : vector<448x32xf32>
    %c0_17 = arith.constant 0 : index
    %c0_18 = arith.constant 0 : index
    %22 = vector.load %arg5[%c0_17, %c0_18] : memref<1x32xf32, #tpu.memory_space<vmem>>, vector<1x32xf32>
    %23 = vector.broadcast %22 : vector<1x32xf32> to vector<448x32xf32>
    %24 = arith.addf %21, %23 : vector<448x32xf32>
    %cst_19 = arith.constant 0.000000e+00 : f32
    %25 = vector.broadcast %cst_19 : f32 to vector<448x32xf32>
    %26 = arith.maximumf %24, %25 : vector<448x32xf32>
    %c447_i32_20 = arith.constant 447 : i32
    %27 = tpu.dynamic_rotate %26 by %c447_i32_20 dim 0 : vector<448x32xf32>, i32 -> vector<448x32xf32>
    %28 = arith.maximumf %26, %27 : vector<448x32xf32>
    %c0_21 = arith.constant 0 : index
    %c0_22 = arith.constant 0 : index
    %c0_23 = arith.constant 0 : index
    %29 = vector.load %arg6[%c0_21, %c0_22, %c0_23] : memref<3x32x64xf32, #tpu.memory_space<vmem>>, vector<1x32x64xf32>
    %30 = vector.shape_cast %29 : vector<1x32x64xf32> to vector<32x64xf32>
    %cst_24 = arith.constant dense<0.000000e+00> : vector<448x64xf32>
    %31 = tpu.matmul %28, %30, %cst_24 {dimension_numbers = #tpu.dot_dimension_numbers<[1], [0], [0], [1], [0, 0, 1, 1], [], []>} : vector<448x32xf32>, vector<32x64xf32>, vector<448x64xf32> -> vector<448x64xf32>
    %c446_i32_25 = arith.constant 446 : i32
    %32 = tpu.dynamic_rotate %28 by %c446_i32_25 dim 0 : vector<448x32xf32>, i32 -> vector<448x32xf32>
    %c1_26 = arith.constant 1 : index
    %c0_27 = arith.constant 0 : index
    %c0_28 = arith.constant 0 : index
    %33 = vector.load %arg6[%c1_26, %c0_27, %c0_28] : memref<3x32x64xf32, #tpu.memory_space<vmem>>, vector<1x32x64xf32>
    %34 = vector.shape_cast %33 : vector<1x32x64xf32> to vector<32x64xf32>
    %cst_29 = arith.constant dense<0.000000e+00> : vector<448x64xf32>
    %35 = tpu.matmul %32, %34, %cst_29 {dimension_numbers = #tpu.dot_dimension_numbers<[1], [0], [0], [1], [0, 0, 1, 1], [], []>} : vector<448x32xf32>, vector<32x64xf32>, vector<448x64xf32> -> vector<448x64xf32>
    %36 = arith.addf %31, %35 : vector<448x64xf32>
    %c444_i32 = arith.constant 444 : i32
    %37 = tpu.dynamic_rotate %28 by %c444_i32 dim 0 : vector<448x32xf32>, i32 -> vector<448x32xf32>
    %c2_30 = arith.constant 2 : index
    %c0_31 = arith.constant 0 : index
    %c0_32 = arith.constant 0 : index
    %38 = vector.load %arg6[%c2_30, %c0_31, %c0_32] : memref<3x32x64xf32, #tpu.memory_space<vmem>>, vector<1x32x64xf32>
    %39 = vector.shape_cast %38 : vector<1x32x64xf32> to vector<32x64xf32>
    %cst_33 = arith.constant dense<0.000000e+00> : vector<448x64xf32>
    %40 = tpu.matmul %37, %39, %cst_33 {dimension_numbers = #tpu.dot_dimension_numbers<[1], [0], [0], [1], [0, 0, 1, 1], [], []>} : vector<448x32xf32>, vector<32x64xf32>, vector<448x64xf32> -> vector<448x64xf32>
    %41 = arith.addf %36, %40 : vector<448x64xf32>
    %c0_34 = arith.constant 0 : index
    %c0_35 = arith.constant 0 : index
    %42 = vector.load %arg7[%c0_34, %c0_35] : memref<1x64xf32, #tpu.memory_space<vmem>>, vector<1x64xf32>
    %43 = vector.broadcast %42 : vector<1x64xf32> to vector<448x64xf32>
    %44 = arith.addf %41, %43 : vector<448x64xf32>
    %cst_36 = arith.constant 0.000000e+00 : f32
    %45 = vector.broadcast %cst_36 : f32 to vector<448x64xf32>
    %46 = arith.maximumf %44, %45 : vector<448x64xf32>
    %c0_37 = arith.constant 0 : index
    %c0_38 = arith.constant 0 : index
    %c0_39 = arith.constant 0 : index
    %47 = vector.load %arg8[%c0_37, %c0_38, %c0_39] : memref<3x64x128xf32, #tpu.memory_space<vmem>>, vector<1x64x128xf32>
    %48 = vector.shape_cast %47 : vector<1x64x128xf32> to vector<64x128xf32>
    %cst_40 = arith.constant dense<0.000000e+00> : vector<448x128xf32>
    %49 = tpu.matmul %46, %48, %cst_40 {dimension_numbers = #tpu.dot_dimension_numbers<[1], [0], [0], [1], [0, 0, 1, 1], [], []>} : vector<448x64xf32>, vector<64x128xf32>, vector<448x128xf32> -> vector<448x128xf32>
    %c446_i32_41 = arith.constant 446 : i32
    %50 = tpu.dynamic_rotate %46 by %c446_i32_41 dim 0 : vector<448x64xf32>, i32 -> vector<448x64xf32>
    %c1_42 = arith.constant 1 : index
    %c0_43 = arith.constant 0 : index
    %c0_44 = arith.constant 0 : index
    %51 = vector.load %arg8[%c1_42, %c0_43, %c0_44] : memref<3x64x128xf32, #tpu.memory_space<vmem>>, vector<1x64x128xf32>
    %52 = vector.shape_cast %51 : vector<1x64x128xf32> to vector<64x128xf32>
    %cst_45 = arith.constant dense<0.000000e+00> : vector<448x128xf32>
    %53 = tpu.matmul %50, %52, %cst_45 {dimension_numbers = #tpu.dot_dimension_numbers<[1], [0], [0], [1], [0, 0, 1, 1], [], []>} : vector<448x64xf32>, vector<64x128xf32>, vector<448x128xf32> -> vector<448x128xf32>
    %54 = arith.addf %49, %53 : vector<448x128xf32>
    %c444_i32_46 = arith.constant 444 : i32
    %55 = tpu.dynamic_rotate %46 by %c444_i32_46 dim 0 : vector<448x64xf32>, i32 -> vector<448x64xf32>
    %c2_47 = arith.constant 2 : index
    %c0_48 = arith.constant 0 : index
    %c0_49 = arith.constant 0 : index
    %56 = vector.load %arg8[%c2_47, %c0_48, %c0_49] : memref<3x64x128xf32, #tpu.memory_space<vmem>>, vector<1x64x128xf32>
    %57 = vector.shape_cast %56 : vector<1x64x128xf32> to vector<64x128xf32>
    %cst_50 = arith.constant dense<0.000000e+00> : vector<448x128xf32>
    %58 = tpu.matmul %55, %57, %cst_50 {dimension_numbers = #tpu.dot_dimension_numbers<[1], [0], [0], [1], [0, 0, 1, 1], [], []>} : vector<448x64xf32>, vector<64x128xf32>, vector<448x128xf32> -> vector<448x128xf32>
    %59 = arith.addf %54, %58 : vector<448x128xf32>
    %c0_51 = arith.constant 0 : index
    %c0_52 = arith.constant 0 : index
    %60 = vector.load %arg9[%c0_51, %c0_52] : memref<1x128xf32, #tpu.memory_space<vmem>>, vector<1x128xf32>
    %61 = vector.broadcast %60 : vector<1x128xf32> to vector<448x128xf32>
    %62 = arith.addf %59, %61 : vector<448x128xf32>
    %cst_53 = arith.constant 0.000000e+00 : f32
    %63 = vector.broadcast %cst_53 : f32 to vector<448x128xf32>
    %64 = arith.maximumf %62, %63 : vector<448x128xf32>
    %65 = vector.shape_cast %64 : vector<448x128xf32> to vector<8x56x128xf32>
    %66 = tpu.iota {dimensions = array<i32: 1>} : vector<1x56x1xi32>
    %c2_i32 = arith.constant 2 : i32
    %c0_i32 = arith.constant 0 : i32
    %67 = arith.cmpi eq, %c2_i32, %c0_i32 : i32
    %c1_i32 = arith.constant 1 : i32
    %68 = arith.select %67, %c1_i32, %c2_i32 : i32
    %69 = vector.broadcast %68 : i32 to vector<1x56x1xi32>
    %70 = arith.remsi %66, %69 : vector<1x56x1xi32>
    %c0_i32_54 = arith.constant 0 : i32
    %71 = vector.broadcast %c0_i32_54 : i32 to vector<1x56x1xi32>
    %72 = arith.cmpi ne, %70, %71 : vector<1x56x1xi32>
    %c0_i32_55 = arith.constant 0 : i32
    %73 = vector.broadcast %c0_i32_55 : i32 to vector<1x56x1xi32>
    %74 = arith.cmpi slt, %70, %73 : vector<1x56x1xi32>
    %c0_i32_56 = arith.constant 0 : i32
    %75 = arith.cmpi slt, %68, %c0_i32_56 : i32
    %76 = vector.broadcast %75 : i1 to vector<1x56x1xi1>
    %77 = vector.broadcast %76 : vector<1x56x1xi1> to vector<1x56x1xi1>
    %78 = arith.xori %74, %77 : vector<1x56x1xi1>
    %79 = arith.andi %78, %72 : vector<1x56x1xi1>
    %80 = vector.broadcast %68 : i32 to vector<1x56x1xi32>
    %81 = arith.addi %70, %80 : vector<1x56x1xi32>
    %82 = arith.select %79, %81, %70 : vector<1x56x1xi1>, vector<1x56x1xi32>
    %c0_i32_57 = arith.constant 0 : i32
    %83 = vector.broadcast %c0_i32_57 : i32 to vector<1x56x1xi32>
    %84 = arith.cmpi eq, %82, %83 : vector<1x56x1xi32>
    %c0_i32_58 = arith.constant 0 : i32
    %85 = vector.broadcast %c0_i32_58 : i32 to vector<1x56x1xi32>
    %86 = arith.cmpi sge, %66, %85 : vector<1x56x1xi32>
    %87 = arith.andi %84, %86 : vector<1x56x1xi1>
    %c10_i32 = arith.constant 10 : i32
    %88 = vector.broadcast %c10_i32 : i32 to vector<1x56x1xi32>
    %89 = arith.cmpi slt, %66, %88 : vector<1x56x1xi32>
    %90 = arith.andi %87, %89 : vector<1x56x1xi1>
    %cst_59 = arith.constant 0xFF800000 : f32
    %91 = vector.shape_cast %90 : vector<1x56x1xi1> to vector<1x56x1xi1>
    %92 = vector.broadcast %91 : vector<1x56x1xi1> to vector<8x56x128xi1>
    %93 = vector.broadcast %cst_59 : f32 to vector<8x56x128xf32>
    %94 = arith.select %92, %65, %93 : vector<8x56x128xi1>, vector<8x56x128xf32>
    %cst_60 = arith.constant dense<0xFF800000> : vector<8x128xf32>
    %95 = vector.multi_reduction <maximumf>, %94, %cst_60 [1] : vector<8x56x128xf32> to vector<8x128xf32>
    %c2_i32_61 = arith.constant 2 : i32
    %c0_i32_62 = arith.constant 0 : i32
    %96 = arith.cmpi eq, %c2_i32_61, %c0_i32_62 : i32
    %c1_i32_63 = arith.constant 1 : i32
    %97 = arith.select %96, %c1_i32_63, %c2_i32_61 : i32
    %98 = vector.broadcast %97 : i32 to vector<1x56x1xi32>
    %99 = arith.remsi %66, %98 : vector<1x56x1xi32>
    %c0_i32_64 = arith.constant 0 : i32
    %100 = vector.broadcast %c0_i32_64 : i32 to vector<1x56x1xi32>
    %101 = arith.cmpi ne, %99, %100 : vector<1x56x1xi32>
    %c0_i32_65 = arith.constant 0 : i32
    %102 = vector.broadcast %c0_i32_65 : i32 to vector<1x56x1xi32>
    %103 = arith.cmpi slt, %99, %102 : vector<1x56x1xi32>
    %c0_i32_66 = arith.constant 0 : i32
    %104 = arith.cmpi slt, %97, %c0_i32_66 : i32
    %105 = vector.broadcast %104 : i1 to vector<1x56x1xi1>
    %106 = vector.broadcast %105 : vector<1x56x1xi1> to vector<1x56x1xi1>
    %107 = arith.xori %103, %106 : vector<1x56x1xi1>
    %108 = arith.andi %107, %101 : vector<1x56x1xi1>
    %109 = vector.broadcast %97 : i32 to vector<1x56x1xi32>
    %110 = arith.addi %99, %109 : vector<1x56x1xi32>
    %111 = arith.select %108, %110, %99 : vector<1x56x1xi1>, vector<1x56x1xi32>
    %c0_i32_67 = arith.constant 0 : i32
    %112 = vector.broadcast %c0_i32_67 : i32 to vector<1x56x1xi32>
    %113 = arith.cmpi eq, %111, %112 : vector<1x56x1xi32>
    %c10_i32_68 = arith.constant 10 : i32
    %114 = vector.broadcast %c10_i32_68 : i32 to vector<1x56x1xi32>
    %115 = arith.cmpi sge, %66, %114 : vector<1x56x1xi32>
    %116 = arith.andi %113, %115 : vector<1x56x1xi1>
    %c20_i32 = arith.constant 20 : i32
    %117 = vector.broadcast %c20_i32 : i32 to vector<1x56x1xi32>
    %118 = arith.cmpi slt, %66, %117 : vector<1x56x1xi32>
    %119 = arith.andi %116, %118 : vector<1x56x1xi1>
    %cst_69 = arith.constant 0xFF800000 : f32
    %120 = vector.shape_cast %119 : vector<1x56x1xi1> to vector<1x56x1xi1>
    %121 = vector.broadcast %120 : vector<1x56x1xi1> to vector<8x56x128xi1>
    %122 = vector.broadcast %cst_69 : f32 to vector<8x56x128xf32>
    %123 = arith.select %121, %65, %122 : vector<8x56x128xi1>, vector<8x56x128xf32>
    %cst_70 = arith.constant dense<0xFF800000> : vector<8x128xf32>
    %124 = vector.multi_reduction <maximumf>, %123, %cst_70 [1] : vector<8x56x128xf32> to vector<8x128xf32>
    %c2_i32_71 = arith.constant 2 : i32
    %c0_i32_72 = arith.constant 0 : i32
    %125 = arith.cmpi eq, %c2_i32_71, %c0_i32_72 : i32
    %c1_i32_73 = arith.constant 1 : i32
    %126 = arith.select %125, %c1_i32_73, %c2_i32_71 : i32
    %127 = vector.broadcast %126 : i32 to vector<1x56x1xi32>
    %128 = arith.remsi %66, %127 : vector<1x56x1xi32>
    %c0_i32_74 = arith.constant 0 : i32
    %129 = vector.broadcast %c0_i32_74 : i32 to vector<1x56x1xi32>
    %130 = arith.cmpi ne, %128, %129 : vector<1x56x1xi32>
    %c0_i32_75 = arith.constant 0 : i32
    %131 = vector.broadcast %c0_i32_75 : i32 to vector<1x56x1xi32>
    %132 = arith.cmpi slt, %128, %131 : vector<1x56x1xi32>
    %c0_i32_76 = arith.constant 0 : i32
    %133 = arith.cmpi slt, %126, %c0_i32_76 : i32
    %134 = vector.broadcast %133 : i1 to vector<1x56x1xi1>
    %135 = vector.broadcast %134 : vector<1x56x1xi1> to vector<1x56x1xi1>
    %136 = arith.xori %132, %135 : vector<1x56x1xi1>
    %137 = arith.andi %136, %130 : vector<1x56x1xi1>
    %138 = vector.broadcast %126 : i32 to vector<1x56x1xi32>
    %139 = arith.addi %128, %138 : vector<1x56x1xi32>
    %140 = arith.select %137, %139, %128 : vector<1x56x1xi1>, vector<1x56x1xi32>
    %c0_i32_77 = arith.constant 0 : i32
    %141 = vector.broadcast %c0_i32_77 : i32 to vector<1x56x1xi32>
    %142 = arith.cmpi eq, %140, %141 : vector<1x56x1xi32>
    %c20_i32_78 = arith.constant 20 : i32
    %143 = vector.broadcast %c20_i32_78 : i32 to vector<1x56x1xi32>
    %144 = arith.cmpi sge, %66, %143 : vector<1x56x1xi32>
    %145 = arith.andi %142, %144 : vector<1x56x1xi1>
    %c30_i32 = arith.constant 30 : i32
    %146 = vector.broadcast %c30_i32 : i32 to vector<1x56x1xi32>
    %147 = arith.cmpi slt, %66, %146 : vector<1x56x1xi32>
    %148 = arith.andi %145, %147 : vector<1x56x1xi1>
    %cst_79 = arith.constant 0xFF800000 : f32
    %149 = vector.shape_cast %148 : vector<1x56x1xi1> to vector<1x56x1xi1>
    %150 = vector.broadcast %149 : vector<1x56x1xi1> to vector<8x56x128xi1>
    %151 = vector.broadcast %cst_79 : f32 to vector<8x56x128xf32>
    %152 = arith.select %150, %65, %151 : vector<8x56x128xi1>, vector<8x56x128xf32>
    %cst_80 = arith.constant dense<0xFF800000> : vector<8x128xf32>
    %153 = vector.multi_reduction <maximumf>, %152, %cst_80 [1] : vector<8x56x128xf32> to vector<8x128xf32>
    %c2_i32_81 = arith.constant 2 : i32
    %c0_i32_82 = arith.constant 0 : i32
    %154 = arith.cmpi eq, %c2_i32_81, %c0_i32_82 : i32
    %c1_i32_83 = arith.constant 1 : i32
    %155 = arith.select %154, %c1_i32_83, %c2_i32_81 : i32
    %156 = vector.broadcast %155 : i32 to vector<1x56x1xi32>
    %157 = arith.remsi %66, %156 : vector<1x56x1xi32>
    %c0_i32_84 = arith.constant 0 : i32
    %158 = vector.broadcast %c0_i32_84 : i32 to vector<1x56x1xi32>
    %159 = arith.cmpi ne, %157, %158 : vector<1x56x1xi32>
    %c0_i32_85 = arith.constant 0 : i32
    %160 = vector.broadcast %c0_i32_85 : i32 to vector<1x56x1xi32>
    %161 = arith.cmpi slt, %157, %160 : vector<1x56x1xi32>
    %c0_i32_86 = arith.constant 0 : i32
    %162 = arith.cmpi slt, %155, %c0_i32_86 : i32
    %163 = vector.broadcast %162 : i1 to vector<1x56x1xi1>
    %164 = vector.broadcast %163 : vector<1x56x1xi1> to vector<1x56x1xi1>
    %165 = arith.xori %161, %164 : vector<1x56x1xi1>
    %166 = arith.andi %165, %159 : vector<1x56x1xi1>
    %167 = vector.broadcast %155 : i32 to vector<1x56x1xi32>
    %168 = arith.addi %157, %167 : vector<1x56x1xi32>
    %169 = arith.select %166, %168, %157 : vector<1x56x1xi1>, vector<1x56x1xi32>
    %c0_i32_87 = arith.constant 0 : i32
    %170 = vector.broadcast %c0_i32_87 : i32 to vector<1x56x1xi32>
    %171 = arith.cmpi eq, %169, %170 : vector<1x56x1xi32>
    %c30_i32_88 = arith.constant 30 : i32
    %172 = vector.broadcast %c30_i32_88 : i32 to vector<1x56x1xi32>
    %173 = arith.cmpi sge, %66, %172 : vector<1x56x1xi32>
    %174 = arith.andi %171, %173 : vector<1x56x1xi1>
    %c40_i32 = arith.constant 40 : i32
    %175 = vector.broadcast %c40_i32 : i32 to vector<1x56x1xi32>
    %176 = arith.cmpi slt, %66, %175 : vector<1x56x1xi32>
    %177 = arith.andi %174, %176 : vector<1x56x1xi1>
    %cst_89 = arith.constant 0xFF800000 : f32
    %178 = vector.shape_cast %177 : vector<1x56x1xi1> to vector<1x56x1xi1>
    %179 = vector.broadcast %178 : vector<1x56x1xi1> to vector<8x56x128xi1>
    %180 = vector.broadcast %cst_89 : f32 to vector<8x56x128xf32>
    %181 = arith.select %179, %65, %180 : vector<8x56x128xi1>, vector<8x56x128xf32>
    %cst_90 = arith.constant dense<0xFF800000> : vector<8x128xf32>
    %182 = vector.multi_reduction <maximumf>, %181, %cst_90 [1] : vector<8x56x128xf32> to vector<8x128xf32>
    %183 = tpu.concatenate %95, %124, %153, %182 in 1 : vector<8x128xf32>, vector<8x128xf32>, vector<8x128xf32>, vector<8x128xf32> -> vector<8x512xf32>
    %c0_91 = arith.constant 0 : index
    %c0_92 = arith.constant 0 : index
    %184 = vector.load %arg10[%c0_91, %c0_92] : memref<512x256xf32, #tpu.memory_space<vmem>>, vector<512x256xf32>
    %cst_93 = arith.constant dense<0.000000e+00> : vector<8x256xf32>
    %185 = tpu.matmul %183, %184, %cst_93 {dimension_numbers = #tpu.dot_dimension_numbers<[1], [0], [0], [1], [0, 0, 1, 1], [], []>} : vector<8x512xf32>, vector<512x256xf32>, vector<8x256xf32> -> vector<8x256xf32>
    %c0_94 = arith.constant 0 : index
    %c0_95 = arith.constant 0 : index
    %186 = vector.load %arg11[%c0_94, %c0_95] : memref<1x256xf32, #tpu.memory_space<vmem>>, vector<1x256xf32>
    %187 = vector.broadcast %186 : vector<1x256xf32> to vector<8x256xf32>
    %188 = arith.addf %185, %187 : vector<8x256xf32>
    %cst_96 = arith.constant 0.000000e+00 : f32
    %189 = vector.broadcast %cst_96 : f32 to vector<8x256xf32>
    %190 = arith.maximumf %188, %189 : vector<8x256xf32>
    %c0_97 = arith.constant 0 : index
    %c0_98 = arith.constant 0 : index
    %191 = vector.load %arg12[%c0_97, %c0_98] : memref<256x64xf32, #tpu.memory_space<vmem>>, vector<256x64xf32>
    %cst_99 = arith.constant dense<0.000000e+00> : vector<8x64xf32>
    %192 = tpu.matmul %190, %191, %cst_99 {dimension_numbers = #tpu.dot_dimension_numbers<[1], [0], [0], [1], [0, 0, 1, 1], [], []>} : vector<8x256xf32>, vector<256x64xf32>, vector<8x64xf32> -> vector<8x64xf32>
    %c0_100 = arith.constant 0 : index
    %c0_101 = arith.constant 0 : index
    %193 = vector.load %arg13[%c0_100, %c0_101] : memref<1x64xf32, #tpu.memory_space<vmem>>, vector<1x64xf32>
    %194 = vector.broadcast %193 : vector<1x64xf32> to vector<8x64xf32>
    %195 = arith.addf %192, %194 : vector<8x64xf32>
    %cst_102 = arith.constant 0.000000e+00 : f32
    %196 = vector.broadcast %cst_102 : f32 to vector<8x64xf32>
    %197 = arith.maximumf %195, %196 : vector<8x64xf32>
    %c0_103 = arith.constant 0 : index
    %c0_104 = arith.constant 0 : index
    %198 = vector.load %arg14[%c0_103, %c0_104] : memref<64x128xf32, #tpu.memory_space<vmem>>, vector<64x128xf32>
    %cst_105 = arith.constant dense<0.000000e+00> : vector<8x128xf32>
    %199 = tpu.matmul %197, %198, %cst_105 {dimension_numbers = #tpu.dot_dimension_numbers<[1], [0], [0], [1], [0, 0, 1, 1], [], []>} : vector<8x64xf32>, vector<64x128xf32>, vector<8x128xf32> -> vector<8x128xf32>
    %c0_106 = arith.constant 0 : index
    %c0_107 = arith.constant 0 : index
    %200 = vector.load %arg15[%c0_106, %c0_107] : memref<1x128xf32, #tpu.memory_space<vmem>>, vector<1x128xf32>
    %201 = vector.broadcast %200 : vector<1x128xf32> to vector<8x128xf32>
    %202 = arith.addf %199, %201 : vector<8x128xf32>
    %c0_108 = arith.constant 0 : index
    %c0_109 = arith.constant 0 : index
    %203 = vector.load %arg16[%c0_108, %c0_109] : memref<8x128xf32, #tpu.memory_space<vmem>>, vector<8x128xf32>
    tpu.vector_store %arg16[%c0_108, %c0_109], %202 {strides = array<i32>} : memref<8x128xf32, #tpu.memory_space<vmem>>, vector<8x128xf32>,
    return
  }
  func.func @transform_0(%arg0: i32) -> (i32, i32, i32) {
    %c0_i32 = arith.constant 0 : i32
    %c0_i32_0 = arith.constant 0 : i32
    %c0_i32_1 = arith.constant 0 : i32
    return %arg0, %c0_i32, %c0_i32_0 : i32, i32, i32
  }
  func.func @transform_1(%arg0: i32) -> (i32, i32) {
    %c0_i32 = arith.constant 0 : i32
    %c0_i32_0 = arith.constant 0 : i32
    %c0_i32_1 = arith.constant 0 : i32
    return %c0_i32, %c0_i32_0 : i32, i32
  }
  func.func @transform_2(%arg0: i32) -> (i32, i32) {
    %c0_i32 = arith.constant 0 : i32
    %c0_i32_0 = arith.constant 0 : i32
    %c0_i32_1 = arith.constant 0 : i32
    return %c0_i32, %c0_i32_0 : i32, i32
  }
  func.func @transform_3(%arg0: i32) -> (i32, i32, i32) {
    %c0_i32 = arith.constant 0 : i32
    %c0_i32_0 = arith.constant 0 : i32
    %c0_i32_1 = arith.constant 0 : i32
    %c0_i32_2 = arith.constant 0 : i32
    return %c0_i32, %c0_i32_0, %c0_i32_1 : i32, i32, i32
  }
  func.func @transform_4(%arg0: i32) -> (i32, i32) {
    %c0_i32 = arith.constant 0 : i32
    %c0_i32_0 = arith.constant 0 : i32
    %c0_i32_1 = arith.constant 0 : i32
    return %c0_i32, %c0_i32_0 : i32, i32
  }
  func.func @transform_5(%arg0: i32) -> (i32, i32, i32) {
    %c0_i32 = arith.constant 0 : i32
    %c0_i32_0 = arith.constant 0 : i32
    %c0_i32_1 = arith.constant 0 : i32
    %c0_i32_2 = arith.constant 0 : i32
    return %c0_i32, %c0_i32_0, %c0_i32_1 : i32, i32, i32
  }
  func.func @transform_6(%arg0: i32) -> (i32, i32) {
    %c0_i32 = arith.constant 0 : i32
    %c0_i32_0 = arith.constant 0 : i32
    %c0_i32_1 = arith.constant 0 : i32
    return %c0_i32, %c0_i32_0 : i32, i32
  }
  func.func @transform_7(%arg0: i32) -> (i32, i32, i32) {
    %c0_i32 = arith.constant 0 : i32
    %c0_i32_0 = arith.constant 0 : i32
    %c0_i32_1 = arith.constant 0 : i32
    %c0_i32_2 = arith.constant 0 : i32
    return %c0_i32, %c0_i32_0, %c0_i32_1 : i32, i32, i32
  }
  func.func @transform_8(%arg0: i32) -> (i32, i32) {
    %c0_i32 = arith.constant 0 : i32
    %c0_i32_0 = arith.constant 0 : i32
    %c0_i32_1 = arith.constant 0 : i32
    return %c0_i32, %c0_i32_0 : i32, i32
  }
  func.func @transform_9(%arg0: i32) -> (i32, i32) {
    %c0_i32 = arith.constant 0 : i32
    %c0_i32_0 = arith.constant 0 : i32
    %c0_i32_1 = arith.constant 0 : i32
    return %c0_i32, %c0_i32_0 : i32, i32
  }
  func.func @transform_10(%arg0: i32) -> (i32, i32) {
    %c0_i32 = arith.constant 0 : i32
    %c0_i32_0 = arith.constant 0 : i32
    %c0_i32_1 = arith.constant 0 : i32
    return %c0_i32, %c0_i32_0 : i32, i32
  }
  func.func @transform_11(%arg0: i32) -> (i32, i32) {
    %c0_i32 = arith.constant 0 : i32
    %c0_i32_0 = arith.constant 0 : i32
    %c0_i32_1 = arith.constant 0 : i32
    return %c0_i32, %c0_i32_0 : i32, i32
  }
  func.func @transform_12(%arg0: i32) -> (i32, i32) {
    %c0_i32 = arith.constant 0 : i32
    %c0_i32_0 = arith.constant 0 : i32
    %c0_i32_1 = arith.constant 0 : i32
    return %c0_i32, %c0_i32_0 : i32, i32
  }
  func.func @transform_13(%arg0: i32) -> (i32, i32) {
    %c0_i32 = arith.constant 0 : i32
    %c0_i32_0 = arith.constant 0 : i32
    %c0_i32_1 = arith.constant 0 : i32
    return %c0_i32, %c0_i32_0 : i32, i32
  }
  func.func @transform_14(%arg0: i32) -> (i32, i32) {
    %c0_i32 = arith.constant 0 : i32
    %c0_i32_0 = arith.constant 0 : i32
    %c0_i32_1 = arith.constant 0 : i32
    return %c0_i32, %c0_i32_0 : i32, i32
  }
  func.func @transform_15(%arg0: i32) -> (i32, i32) {
    %c0_i32 = arith.constant 0 : i32
    %c0_i32_0 = arith.constant 0 : i32
    return %arg0, %c0_i32 : i32, i32
  }
}

</mosaic_0001>

<bundles_post_ra>
// kernel: cnn_forward.1
= control target key start
LH: loop header
LB: loop body
LE: loop exit
PB: predicated region body
PF: predicated region fallthrough
CT: control target
= control target key end

     0   :  { %vm284_vm0 = vcmask 1046528   ;;  %vm115_vm1 = vcmask 121856   ;;  %vm809_vm2 = vcmask 130048   ;;  %vm2929_vm5 = vcmask 261120   ;;  %s15019_s1 = inlined_call_operand.vmem [shape: f32[15,16], index: 1, kind: input, shape index: {}]   ;;  %s15020_s0 = inlined_call_operand.vmem [shape: f32[8,56,15], index: 0, kind: input, shape index: {}]   ;;  %s15021_s3 = inlined_call_operand.vmem [shape: f32[3,16,32], index: 3, kind: input, shape index: {}]   ;;  %s15022_s2 = inlined_call_operand.vmem [shape: f32[1,16], index: 2, kind: input, shape index: {}]   ;;  %s15023_s5 = inlined_call_operand.vmem [shape: f32[3,32,64], index: 5, kind: input, shape index: {}]   ;;  %s15024_s4 = inlined_call_operand.vmem [shape: f32[1,32], index: 4, kind: input, shape index: {}]   ;;  %s15025_s7 = inlined_call_operand.vmem [shape: f32[3,64,128], index: 7, kind: input, shape index: {}]   ;;  %s15026_s6 = inlined_call_operand.vmem [shape: f32[1,64], index: 6, kind: input, shape index: {}]   ;;  %s15027_s9 = inlined_call_operand.vmem [shape: f32[512,256], index: 9, kind: input, shape index: {}]   ;;  %s15028_s8 = inlined_call_operand.vmem [shape: f32[1,128], index: 8, kind: input, shape index: {}]   ;;  %s15029_s11 = inlined_call_operand.vmem [shape: f32[256,64], index: 11, kind: input, shape index: {}]   ;;  %s15030_s13 = inlined_call_operand.vmem [shape: f32[64,128], index: 13, kind: input, shape index: {}]   ;;  %s15031_s10 = inlined_call_operand.vmem [shape: f32[1,256], index: 10, kind: input, shape index: {}]   ;;  %s15032_s12 = inlined_call_operand.vmem [shape: f32[1,64], index: 12, kind: input, shape index: {}]   ;;  %s15033_s14 = inlined_call_operand.vmem [shape: f32[1,128], index: 14, kind: input, shape index: {}]   ;;  %s15034_s15 = inlined_call_operand.vmem [shape: f32[8,128], index: 15, kind: output, shape index: {}]  }
   0x1   :  { %v107_v0 = vld [vmem:[%s15019_s1 + $0x8] sm:$0x7f]  ;;  %v106_v1 = vld [vmem:[%s15019_s1] sm:$0xff]  ;;  %v52_v6 = vld [vmem:[%s15020_s0 + $0x10] sm:$0xff]  ;;  %vm4891_vm7 = vcmask 523264  }
   0x2   :  { %9402 = vmatprep.subr.msk.mxu0 %vm284_vm0, %v107_v0  ;;  %10349 = vmatprep.subr.msk.mxu1 %vm284_vm0, %v107_v0  ;;  %v50_v2 = vld [vmem:[%s15020_s0] sm:$0xff]  ;;  %v51_v4 = vld [vmem:[%s15020_s0 + $0x8] sm:$0xff]  ;;  %v104_v7 = vld [vmem:[%s15020_s0 + $0x1b0] sm:$0xff] }
   0x3   :  { %9403 = vmatpush3.msk.msra.mxu0 %vm284_vm0, %v107_v0  ;;  %10351 = vmatpush3.msk.msra.mxu1 %vm284_vm0, %v107_v0  ;;  %v102_v3 = vld [vmem:[%s15020_s0 + $0x1a0] sm:$0xff]  ;;  %v103_v5 = vld [vmem:[%s15020_s0 + $0x1a8] sm:$0xff]  ;;  %v53_v8 = vld [vmem:[%s15020_s0 + $0x18] sm:$0xff]  ;;  %v747_v0 = vlaneseq }
   0x4   :  { %9404 = vmatprep.subr.mxu0 %v106_v1  ;;  %10350 = vmatprep.subr.mxu1 %v106_v1  ;;  %v105_v9 = vld [vmem:[%s15020_s0 + $0x1b8] sm:$0xff]  ;;  %v54_v10 = vld [vmem:[%s15020_s0 + $0x20] sm:$0xff]  ;;  %v55_v11 = vld [vmem:[%s15020_s0 + $0x28] sm:$0xff] }
   0x5   :  { %9405 = vmatpush3.msra.mxu0 %v106_v1  ;;  %10352 = vmatpush3.msra.mxu1 %v106_v1  ;;  %v56_v12 = vld [vmem:[%s15020_s0 + $0x30] sm:$0xff]  ;;  %v57_v13 = vld [vmem:[%s15020_s0 + $0x38] sm:$0xff]  ;;  %v58_v14 = vld [vmem:[%s15020_s0 + $0x40] sm:$0xff] }
   0x6   :  { %9406 = vmatprep.mubr.msk.f32.mxu0 %vm115_vm1, %v50_v2  ;;  %9484 = vmatprep.mubr.msk.f32.mxu1 %vm115_vm1, %v102_v3  ;;  %v59_v15 = vld [vmem:[%s15020_s0 + $0x48] sm:$0xff]  ;;  %v60_v16 = vld [vmem:[%s15020_s0 + $0x50] sm:$0xff]  ;;  %v61_v17 = vld [vmem:[%s15020_s0 + $0x58] sm:$0xff] }
   0x7   :  { %9407 = vmatmul.mubr.msk.f32.vlgmr.msra.gmra.mxu0 %vm115_vm1, %v51_v4  ;;  %9485 = vmatmul.mubr.msk.f32.vlgmr.msra.gmra.mxu1 %vm115_vm1, %v103_v5  ;;  %v62_v18 = vld [vmem:[%s15020_s0 + $0x60] sm:$0xff]  ;;  %v63_v19 = vld [vmem:[%s15020_s0 + $0x68] sm:$0xff]  ;;  %v64_v20 = vld [vmem:[%s15020_s0 + $0x70] sm:$0xff]  ;;  %v10695_v5 = vshrl.u32 %v747_v0, 7 }
   0x8   :  { %9409 = vmatprep.mubr.msk.f32.mxu0 %vm115_vm1, %v52_v6  ;;  %9487 = vmatprep.mubr.msk.f32.mxu1 %vm115_vm1, %v104_v7  ;;  %v65_v21 = vld [vmem:[%s15020_s0 + $0x78] sm:$0xff]  ;;  %v66_v22 = vld [vmem:[%s15020_s0 + $0x80] sm:$0xff]  ;;  %v67_v23 = vld [vmem:[%s15020_s0 + $0x88] sm:$0xff] }
   0x9   :  { %v68_v24 = vld [vmem:[%s15020_s0 + $0x90] sm:$0xff]  ;;  %v69_v25 = vld [vmem:[%s15020_s0 + $0x98] sm:$0xff]  ;;  %v70_v26 = vld [vmem:[%s15020_s0 + $0xa0] sm:$0xff]  ;;  %15065 = vst [vmem:[#allocation2_spill] sm:$0xff] %v10695_v5  ;;  %vm749_vm3 = vcmp.lt.s32.totalorder %v10695_v5, 7  ;;  %vm1892_vm4 = vcmp.lt.s32.totalorder %v10695_v5, 6 }
   0xa   :  { %v71_v27 = vld [vmem:[%s15020_s0 + $0xa8] sm:$0xff]  ;;  %v72_v28 = vld [vmem:[%s15020_s0 + $0xb0] sm:$0xff]  ;;  %v73_v29 = vld [vmem:[%s15020_s0 + $0xb8] sm:$0xff] }
   0xb   :  { %9410 = vmatmul.mubr.msk.f32.gmra.mxu0 %vm115_vm1, %v53_v8  ;;  %9488 = vmatmul.mubr.msk.f32.gmra.mxu1 %vm115_vm1, %v105_v9  ;;  %v74_v30 = vld [vmem:[%s15020_s0 + $0xc0] sm:$0xff]  ;;  %v75_v31 = vld [vmem:[%s15020_s0 + $0xc8] sm:$0xff]  ;;  %v76_v32 = vld [vmem:[%s15020_s0 + $0xd0] sm:$0xff] }
   0xc   :  { %9412 = vmatprep.mubr.msk.f32.mxu0 %vm115_vm1, %v54_v10  ;;  %v77_v33 = vld [vmem:[%s15020_s0 + $0xd8] sm:$0xff]  ;;  %v78_v34 = vld [vmem:[%s15020_s0 + $0xe0] sm:$0xff]  ;;  %v79_v35 = vld [vmem:[%s15020_s0 + $0xe8] sm:$0xff] }
   0xd   :  { %v80_v36 = vld [vmem:[%s15020_s0 + $0xf0] sm:$0xff]  ;;  %v81_v37 = vld [vmem:[%s15020_s0 + $0xf8] sm:$0xff]  ;;  %v82_v38 = vld [vmem:[%s15020_s0 + $0x100] sm:$0xff] }
   0xe   :  { %v83_v39 = vld [vmem:[%s15020_s0 + $0x108] sm:$0xff]  ;;  %v84_v40 = vld [vmem:[%s15020_s0 + $0x110] sm:$0xff]  ;;  %v85_v41 = vld [vmem:[%s15020_s0 + $0x118] sm:$0xff] }
   0xf   :  { %9413 = vmatmul.mubr.msk.f32.gmra.mxu0 %vm115_vm1, %v55_v11  ;;  %v86_v42 = vld [vmem:[%s15020_s0 + $0x120] sm:$0xff]  ;;  %v87_v43 = vld [vmem:[%s15020_s0 + $0x128] sm:$0xff]  ;;  %v88_v45 = vld [vmem:[%s15020_s0 + $0x130] sm:$0xff] }
  0x10   :  { %9415 = vmatprep.mubr.msk.f32.mxu0 %vm115_vm1, %v56_v12  ;;  %v690_v44 = vld [vmem:[%s15021_s3 + $0x8] sm:$0xff]  ;;  %v689_v46 = vld [vmem:[%s15021_s3] sm:$0xff]  ;;  %v89_v47 = vld [vmem:[%s15020_s0 + $0x138] sm:$0xff] }
  0x11   :  { %9578 = vmatprep.subr.mxu0 %v690_v44  ;;  %v90_v48 = vld [vmem:[%s15020_s0 + $0x140] sm:$0xff]  ;;  %v8217_v49 = vld [vmem:[%s15021_s3 + $0x18] sm:$0xff]  ;;  %v91_v50 = vld [vmem:[%s15020_s0 + $0x148] sm:$0xff] }
  0x12   :  { %9579 = vmatpush3.msra.mxu0 %v690_v44  ;;  %9490 = vmatprep.subr.mxu1 %v8217_v49  ;;  %v8216_v51 = vld [vmem:[%s15021_s3 + $0x10] sm:$0xff]  ;;  %v93_v53 = vld [vmem:[%s15020_s0 + $0x158] sm:$0xff]  ;;  %v10652_v54 = vld [vmem:[%s15021_s3 + $0x28] sm:$0xff] }
  0x13   :  { %9416 = vmatmul.mubr.msk.f32.gmra.mxu0 %vm115_vm1, %v57_v13  ;;  %9580 = vmatprep.subr.mxu0 %v689_v46  ;;  %v92_v52 = vld [vmem:[%s15020_s0 + $0x150] sm:$0xff]  ;;  %v94_v55 = vld [vmem:[%s15020_s0 + $0x160] sm:$0xff]  ;;  %v95_v56 = vld [vmem:[%s15020_s0 + $0x168] sm:$0xff] }
  0x14   :  { %9418 = vmatprep.mubr.msk.f32.mxu0 %vm115_vm1, %v58_v14  ;;  %9581 = vmatpush3.msra.mxu0 %v689_v46  ;;  %v96_v57 = vld [vmem:[%s15020_s0 + $0x170] sm:$0xff]  ;;  %v97_v58 = vld [vmem:[%s15020_s0 + $0x178] sm:$0xff]  ;;  %v98_v59 = vld [vmem:[%s15020_s0 + $0x180] sm:$0xff] }
  0x15   :  { %9491 = vmatpush3.msra.mxu1 %v8217_v49  ;;  %v99_v60 = vld [vmem:[%s15020_s0 + $0x188] sm:$0xff]  ;;  %v100_v61 = vld [vmem:[%s15020_s0 + $0x190] sm:$0xff]  ;;  %v101_v62 = vld [vmem:[%s15020_s0 + $0x198] sm:$0xff] }
  0x16   :  { %9492 = vmatprep.subr.mxu1 %v8216_v51  ;;  %v10691_v63 = vld [vmem:[%s15022_s2] ss:$0 sm:$0xff] }
  0x17   :  { %9419 = vmatmul.mubr.msk.f32.gmra.mxu0 %vm115_vm1, %v59_v15  ;;  %9493 = vmatpush3.msra.mxu1 %v8216_v51 }
  0x18   :  { %9421 = vmatprep.mubr.msk.f32.mxu0 %vm115_vm1, %v60_v16  ;;  %9666 = vmatprep.subr.mxu1 %v10652_v54 }
  0x1b   :  { %9422 = vmatmul.mubr.msk.f32.gmra.mxu0 %vm115_vm1, %v61_v17 }
  0x1c   :  { %9424 = vmatprep.mubr.msk.f32.mxu0 %vm115_vm1, %v62_v18 }
  0x1f   :  { %9425 = vmatmul.mubr.msk.f32.gmra.mxu0 %vm115_vm1, %v63_v19 }
  0x20   :  { %9427 = vmatprep.mubr.msk.f32.mxu0 %vm115_vm1, %v64_v20 }
  0x23   :  { %9428 = vmatmul.mubr.msk.f32.gmra.mxu0 %vm115_vm1, %v65_v21 }
  0x24   :  { %9430 = vmatprep.mubr.msk.f32.mxu0 %vm115_vm1, %v66_v22 }
  0x27   :  { %9431 = vmatmul.mubr.msk.f32.gmra.mxu0 %vm115_vm1, %v67_v23 }
  0x28   :  { %9433 = vmatprep.mubr.msk.f32.mxu0 %vm115_vm1, %v68_v24 }
  0x2b   :  { %9434 = vmatmul.mubr.msk.f32.gmra.mxu0 %vm115_vm1, %v69_v25 }
  0x2c   :  { %9436 = vmatprep.mubr.msk.f32.mxu0 %vm115_vm1, %v70_v26 }
  0x2f   :  { %9437 = vmatmul.mubr.msk.f32.gmra.mxu0 %vm115_vm1, %v71_v27 }
  0x30   :  { %9439 = vmatprep.mubr.msk.f32.mxu0 %vm115_vm1, %v72_v28 }
  0x33   :  { %9440 = vmatmul.mubr.msk.f32.gmra.mxu0 %vm115_vm1, %v73_v29 }
  0x34   :  { %9442 = vmatprep.mubr.msk.f32.mxu0 %vm115_vm1, %v74_v30 }
  0x37   :  { %9443 = vmatmul.mubr.msk.f32.gmra.mxu0 %vm115_vm1, %v75_v31 }
  0x38   :  { %9445 = vmatprep.mubr.msk.f32.mxu0 %vm115_vm1, %v76_v32 }
  0x3b   :  { %9446 = vmatmul.mubr.msk.f32.gmra.mxu0 %vm115_vm1, %v77_v33  ;;  %v8330_v33 = vld [vmem:[%s15021_s3 + $0x20] sm:$0xff] }
  0x3c   :  { %9448 = vmatprep.mubr.msk.f32.mxu0 %vm115_vm1, %v78_v34 }
  0x3f   :  { %9449 = vmatmul.mubr.msk.f32.gmra.mxu0 %vm115_vm1, %v79_v35 }
  0x40   :  { %9451 = vmatprep.mubr.msk.f32.mxu0 %vm115_vm1, %v80_v36 }
  0x43   :  { %9452 = vmatmul.mubr.msk.f32.gmra.mxu0 %vm115_vm1, %v81_v37 }
  0x44   :  { %9454 = vmatprep.mubr.msk.f32.mxu0 %vm115_vm1, %v82_v38 }
  0x47   :  { %9455 = vmatmul.mubr.msk.f32.gmra.mxu0 %vm115_vm1, %v83_v39 }
  0x48   :  { %9457 = vmatprep.mubr.msk.f32.mxu0 %vm115_vm1, %v84_v40 }
  0x4b   :  { %9458 = vmatmul.mubr.msk.f32.gmra.mxu0 %vm115_vm1, %v85_v41 }
  0x4c   :  { %9460 = vmatprep.mubr.msk.f32.mxu0 %vm115_vm1, %v86_v42 }
  0x4f   :  { %9461 = vmatmul.mubr.msk.f32.gmra.mxu0 %vm115_vm1, %v87_v43 }
  0x50   :  { %9463 = vmatprep.mubr.msk.f32.mxu0 %vm115_vm1, %v88_v45 }
  0x53   :  { %9464 = vmatmul.mubr.msk.f32.gmra.mxu0 %vm115_vm1, %v89_v47 }
  0x54   :  { %9466 = vmatprep.mubr.msk.f32.mxu0 %vm115_vm1, %v90_v48 }
  0x57   :  { %9467 = vmatmul.mubr.msk.f32.gmra.mxu0 %vm115_vm1, %v91_v50 }
  0x58   :  { %9469 = vmatprep.mubr.msk.f32.mxu0 %vm115_vm1, %v92_v52 }
  0x5b   :  { %9470 = vmatmul.mubr.msk.f32.gmra.mxu0 %vm115_vm1, %v93_v53 }
  0x5c   :  { %9472 = vmatprep.mubr.msk.f32.mxu0 %vm115_vm1, %v94_v55 }
  0x5f   :  { %9473 = vmatmul.mubr.msk.f32.gmra.mxu0 %vm115_vm1, %v95_v56 }
  0x60   :  { %9475 = vmatprep.mubr.msk.f32.mxu0 %vm115_vm1, %v96_v57 }
  0x63   :  { %9476 = vmatmul.mubr.msk.f32.gmra.mxu0 %vm115_vm1, %v97_v58 }
  0x64   :  { %9478 = vmatprep.mubr.msk.f32.mxu0 %vm115_vm1, %v98_v59 }
  0x67   :  { %9479 = vmatmul.mubr.msk.f32.gmra.mxu0 %vm115_vm1, %v99_v60 }
  0x68   :  { %9481 = vmatprep.mubr.msk.f32.mxu0 %vm115_vm1, %v100_v61 }
  0x6b   :  { %9482 = vmatmul.mubr.msk.f32.gmra.mxu0 %vm115_vm1, %v101_v62 }
  0xc7   :  { %v9408_v1 = vpop.f32.mrf.mxu0 }
  0xc8   :  { %v360_v2 = vadd.f32 %v9408_v1, %v10691_v63 }
  0xc9   :  { %v354_v3 = vpop.f32.mrf.mxu0 }
  0xca   :  { %v355_v4 = vadd.f32 %v10691_v63, %v354_v3  ;;  %v634_v6 = vmax.f32 %v360_v2, 0.0 }
  0xcb   :  { %v9411_v7 = vpop.f32.mrf.mxu0 }
  0xcc   :  { %v10697_v8 = vmax.f32 %v355_v4, 0.0  ;;  %v370_v9 = vadd.f32 %v9411_v7, %v10691_v63  ;;  %v692_v12 = vrot.slane %v634_v6, 1  ;;  %v1837_v13 = vrot.slane %v634_v6, 2 }
  0xcd   :  { %v364_v10 = vpop.f32.mrf.mxu0 }
  0xce   :  { %v365_v11 = vadd.f32 %v10691_v63, %v364_v10  ;;  %v15036_v14 = vrot.slane %v10697_v8, 1  ;;  %v15035_v15 = vrot.slane %v10697_v8, 2  ;;  %9582 = vmatprep.mubr.msk.f32.mxu0 %vm809_vm2, %v10697_v8  ;;  %v636_v17 = vmax.f32 %v370_v9, 0.0 }
  0xcf   :  { %v9414_v16 = vpop.f32.mrf.mxu0  ;;  %9583 = vmatmul.mubr.msk.f32.vlgmr.msra.gmra.mxu0 %vm809_vm2, %v634_v6 }
  0xd0   :  { %v635_v18 = vmax.f32 %v365_v11, 0.0  ;;  %v380_v19 = vadd.f32 %v9414_v16, %v10691_v63  ;;  %v804_v21 = vsel %vm749_vm3, %v15036_v14, %v692_v12  ;;  %v10717_v22 = vsel %vm1892_vm4, %v15035_v15, %v1837_v13 }
  0xd1   :  { %v374_v20 = vpop.f32.mrf.mxu0  ;;  %9494 = vmatprep.mubr.msk.f32.mxu1 %vm809_vm2, %v804_v21  ;;  %v694_v28 = vrot.slane %v636_v17, 1  ;;  %v1839_v34 = vrot.slane %v636_v17, 2 }
  0xd2   :  { %9585 = vmatprep.mubr.msk.f32.mxu0 %vm809_vm2, %v635_v18  ;;  %v693_v23 = vrot.slane %v635_v18, 1  ;;  %v1838_v24 = vrot.slane %v635_v18, 2  ;;  %v638_v25 = vmax.f32 %v380_v19, 0.0  ;;  %v375_v26 = vadd.f32 %v10691_v63, %v374_v20 }
  0xd3   :  { %v9417_v27 = vpop.f32.mrf.mxu0  ;;  %9586 = vmatmul.mubr.msk.f32.gmra.mxu0 %vm809_vm2, %v636_v17 }
  0xd4   :  { %v390_v29 = vadd.f32 %v9417_v27, %v10691_v63  ;;  %v637_v30 = vmax.f32 %v375_v26, 0.0  ;;  %v803_v32 = vsel %vm749_vm3, %v692_v12, %v693_v23  ;;  %v802_v37 = vsel %vm749_vm3, %v693_v23, %v694_v28 }
  0xd5   :  { %v384_v31 = vpop.f32.mrf.mxu0  ;;  %9495 = vmatmul.mubr.msk.f32.vlgmr.msra.gmra.mxu1 %vm809_vm2, %v803_v32  ;;  %v696_v38 = vrot.slane %v638_v25, 1  ;;  %v10737_v42 = vsel %vm1892_vm4, %v1837_v13, %v1838_v24  ;;  %v1841_v45 = vrot.slane %v638_v25, 2  ;;  %v10748_v49 = vsel %vm1892_vm4, %v1838_v24, %v1839_v34 }
  0xd6   :  { %v640_v35 = vmax.f32 %v390_v29, 0.0  ;;  %v385_v36 = vadd.f32 %v10691_v63, %v384_v31  ;;  %v695_v39 = vrot.slane %v637_v30, 1  ;;  %v1840_v40 = vrot.slane %v637_v30, 2  ;;  %9667 = vmatpush3.msra.mxu1 %v10652_v54  ;;  %9497 = vmatprep.mubr.msk.f32.mxu1 %vm809_vm2, %v802_v37 }
  0xd7   :  { %v9420_v41 = vpop.f32.mrf.mxu0  ;;  %9588 = vmatprep.mubr.msk.f32.mxu0 %vm809_vm2, %v637_v30  ;;  %9668 = vmatprep.subr.mxu1 %v8330_v33 }
  0xd8   :  { %v639_v43 = vmax.f32 %v385_v36, 0.0  ;;  %v400_v44 = vadd.f32 %v9420_v41, %v10691_v63  ;;  %9589 = vmatmul.mubr.msk.f32.gmra.mxu0 %vm809_vm2, %v638_v25  ;;  %v801_v47 = vsel %vm749_vm3, %v694_v28, %v695_v39  ;;  %v800_v48 = vsel %vm749_vm3, %v695_v39, %v696_v38  ;;  %9669 = vmatpush3.msra.mxu1 %v8330_v33 }
  0xd9   :  { %v394_v46 = vpop.f32.mrf.mxu0  ;;  %v698_v50 = vrot.slane %v640_v35, 1  ;;  %9498 = vmatmul.mubr.msk.f32.gmra.mxu1 %vm809_vm2, %v801_v47  ;;  %v1843_v54 = vrot.slane %v640_v35, 2  ;;  %v10756_v57 = vsel %vm1892_vm4, %v1839_v34, %v1840_v40  ;;  %v10760_v58 = vsel %vm1892_vm4, %v1840_v40, %v1841_v45 }
  0xda   :  { %v697_v51 = vrot.slane %v639_v43, 1  ;;  %v1842_v52 = vrot.slane %v639_v43, 2  ;;  %v395_v53 = vadd.f32 %v10691_v63, %v394_v46  ;;  %9591 = vmatprep.mubr.msk.f32.mxu0 %vm809_vm2, %v639_v43  ;;  %v642_v55 = vmax.f32 %v400_v44, 0.0  ;;  %9500 = vmatprep.mubr.msk.f32.mxu1 %vm809_vm2, %v800_v48 }
  0xdb   :  { %v9423_v56 = vpop.f32.mrf.mxu0 }
  0xdc   :  { %v641_v59 = vmax.f32 %v395_v53, 0.0  ;;  %v410_v60 = vadd.f32 %v9423_v56, %v10691_v63  ;;  %9592 = vmatmul.mubr.msk.f32.gmra.mxu0 %vm809_vm2, %v640_v35  ;;  %v799_v62 = vsel %vm749_vm3, %v696_v38, %v697_v51  ;;  %v798_v0 = vsel %vm749_vm3, %v697_v51, %v698_v50 }
  0xdd   :  { %v404_v61 = vpop.f32.mrf.mxu0  ;;  %v10770_v1 = vsel %vm1892_vm4, %v1841_v45, %v1842_v52  ;;  %v10774_v2 = vsel %vm1892_vm4, %v1842_v52, %v1843_v54  ;;  %9501 = vmatmul.mubr.msk.f32.gmra.mxu1 %vm809_vm2, %v799_v62  ;;  %v700_v7 = vrot.slane %v642_v55, 1  ;;  %v1845_v9 = vrot.slane %v642_v55, 2 }
  0xde   :  { %v699_v3 = vrot.slane %v641_v59, 1  ;;  %v1844_v4 = vrot.slane %v641_v59, 2  ;;  %v405_v6 = vadd.f32 %v10691_v63, %v404_v61  ;;  %9594 = vmatprep.mubr.msk.f32.mxu0 %vm809_vm2, %v641_v59  ;;  %v644_v10 = vmax.f32 %v410_v60, 0.0  ;;  %9503 = vmatprep.mubr.msk.f32.mxu1 %vm809_vm2, %v798_v0 }
  0xdf   :  { %v9426_v11 = vpop.f32.mrf.mxu0 }
  0xe0   :  { %v643_v12 = vmax.f32 %v405_v6, 0.0  ;;  %v420_v13 = vadd.f32 %v9426_v11, %v10691_v63  ;;  %9595 = vmatmul.mubr.msk.f32.gmra.mxu0 %vm809_vm2, %v642_v55  ;;  %v797_v17 = vsel %vm749_vm3, %v698_v50, %v699_v3  ;;  %v796_v18 = vsel %vm749_vm3, %v699_v3, %v700_v7 }
  0xe1   :  { %v414_v16 = vpop.f32.mrf.mxu0  ;;  %v10788_v19 = vsel %vm1892_vm4, %v1843_v54, %v1844_v4  ;;  %v10792_v20 = vsel %vm1892_vm4, %v1844_v4, %v1845_v9  ;;  %9504 = vmatmul.mubr.msk.f32.gmra.mxu1 %vm809_vm2, %v797_v17  ;;  %v702_v25 = vrot.slane %v644_v10, 1  ;;  %v1847_v26 = vrot.slane %v644_v10, 2 }
  0xe2   :  { %v701_v21 = vrot.slane %v643_v12, 1  ;;  %v1846_v23 = vrot.slane %v643_v12, 2  ;;  %v415_v24 = vadd.f32 %v10691_v63, %v414_v16  ;;  %9597 = vmatprep.mubr.msk.f32.mxu0 %vm809_vm2, %v643_v12  ;;  %v646_v27 = vmax.f32 %v420_v13, 0.0  ;;  %9506 = vmatprep.mubr.msk.f32.mxu1 %vm809_vm2, %v796_v18 }
  0xe3   :  { %v9429_v28 = vpop.f32.mrf.mxu0 }
  0xe4   :  { %v645_v29 = vmax.f32 %v415_v24, 0.0  ;;  %v430_v30 = vadd.f32 %v9429_v28, %v10691_v63  ;;  %9598 = vmatmul.mubr.msk.f32.gmra.mxu0 %vm809_vm2, %v644_v10  ;;  %v795_v32 = vsel %vm749_vm3, %v700_v7, %v701_v21  ;;  %v794_v33 = vsel %vm749_vm3, %v701_v21, %v702_v25 }
  0xe5   :  { %v424_v31 = vpop.f32.mrf.mxu0  ;;  %v10806_v34 = vsel %vm1892_vm4, %v1845_v9, %v1846_v23  ;;  %v10810_v35 = vsel %vm1892_vm4, %v1846_v23, %v1847_v26  ;;  %9507 = vmatmul.mubr.msk.f32.gmra.mxu1 %vm809_vm2, %v795_v32  ;;  %v704_v39 = vrot.slane %v646_v27, 1  ;;  %v1849_v40 = vrot.slane %v646_v27, 2 }
  0xe6   :  { %v703_v36 = vrot.slane %v645_v29, 1  ;;  %v1848_v37 = vrot.slane %v645_v29, 2  ;;  %v425_v38 = vadd.f32 %v10691_v63, %v424_v31  ;;  %9600 = vmatprep.mubr.msk.f32.mxu0 %vm809_vm2, %v645_v29  ;;  %v648_v41 = vmax.f32 %v430_v30, 0.0  ;;  %9509 = vmatprep.mubr.msk.f32.mxu1 %vm809_vm2, %v794_v33 }
  0xe7   :  { %v9432_v43 = vpop.f32.mrf.mxu0 }
  0xe8   :  { %v647_v44 = vmax.f32 %v425_v38, 0.0  ;;  %v440_v45 = vadd.f32 %v9432_v43, %v10691_v63  ;;  %9601 = vmatmul.mubr.msk.f32.gmra.mxu0 %vm809_vm2, %v646_v27  ;;  %v793_v47 = vsel %vm749_vm3, %v702_v25, %v703_v36  ;;  %v792_v48 = vsel %vm749_vm3, %v703_v36, %v704_v39 }
  0xe9   :  { %v434_v46 = vpop.f32.mrf.mxu0  ;;  %v10824_v50 = vsel %vm1892_vm4, %v1847_v26, %v1848_v37  ;;  %v10828_v51 = vsel %vm1892_vm4, %v1848_v37, %v1849_v40  ;;  %9510 = vmatmul.mubr.msk.f32.gmra.mxu1 %vm809_vm2, %v793_v47  ;;  %v706_v55 = vrot.slane %v648_v41, 1  ;;  %v1851_v56 = vrot.slane %v648_v41, 2 }
  0xea   :  { %v705_v52 = vrot.slane %v647_v44, 1  ;;  %v1850_v53 = vrot.slane %v647_v44, 2  ;;  %v435_v54 = vadd.f32 %v10691_v63, %v434_v46  ;;  %9603 = vmatprep.mubr.msk.f32.mxu0 %vm809_vm2, %v647_v44  ;;  %v650_v59 = vmax.f32 %v440_v45, 0.0  ;;  %9512 = vmatprep.mubr.msk.f32.mxu1 %vm809_vm2, %v792_v48 }
  0xeb   :  { %v9435_v60 = vpop.f32.mrf.mxu0 }
  0xec   :  { %v649_v61 = vmax.f32 %v435_v54, 0.0  ;;  %v450_v62 = vadd.f32 %v9435_v60, %v10691_v63  ;;  %9604 = vmatmul.mubr.msk.f32.gmra.mxu0 %vm809_vm2, %v648_v41  ;;  %v791_v3 = vsel %vm749_vm3, %v704_v39, %v705_v52  ;;  %v790_v4 = vsel %vm749_vm3, %v705_v52, %v706_v55 }
  0xed   :  { %v444_v0 = vpop.f32.mrf.mxu0  ;;  %v10842_v6 = vsel %vm1892_vm4, %v1849_v40, %v1850_v53  ;;  %v10846_v7 = vsel %vm1892_vm4, %v1850_v53, %v1851_v56  ;;  %9513 = vmatmul.mubr.msk.f32.gmra.mxu1 %vm809_vm2, %v791_v3  ;;  %v708_v12 = vrot.slane %v650_v59, 1  ;;  %v1853_v13 = vrot.slane %v650_v59, 2 }
  0xee   :  { %v707_v9 = vrot.slane %v649_v61, 1  ;;  %v1852_v10 = vrot.slane %v649_v61, 2  ;;  %v445_v11 = vadd.f32 %v10691_v63, %v444_v0  ;;  %9606 = vmatprep.mubr.msk.f32.mxu0 %vm809_vm2, %v649_v61  ;;  %v652_v16 = vmax.f32 %v450_v62, 0.0  ;;  %9515 = vmatprep.mubr.msk.f32.mxu1 %vm809_vm2, %v790_v4 }
  0xef   :  { %v9438_v17 = vpop.f32.mrf.mxu0 }
  0xf0   :  { %v651_v18 = vmax.f32 %v445_v11, 0.0  ;;  %v460_v21 = vadd.f32 %v9438_v17, %v10691_v63  ;;  %9607 = vmatmul.mubr.msk.f32.gmra.mxu0 %vm809_vm2, %v650_v59  ;;  %v789_v24 = vsel %vm749_vm3, %v706_v55, %v707_v9  ;;  %v788_v25 = vsel %vm749_vm3, %v707_v9, %v708_v12 }
  0xf1   :  { %v454_v23 = vpop.f32.mrf.mxu0  ;;  %v10860_v26 = vsel %vm1892_vm4, %v1851_v56, %v1852_v10  ;;  %v10864_v27 = vsel %vm1892_vm4, %v1852_v10, %v1853_v13  ;;  %9516 = vmatmul.mubr.msk.f32.gmra.mxu1 %vm809_vm2, %v789_v24  ;;  %v710_v31 = vrot.slane %v652_v16, 1  ;;  %v1855_v32 = vrot.slane %v652_v16, 2 }
  0xf2   :  { %v709_v28 = vrot.slane %v651_v18, 1  ;;  %v1854_v29 = vrot.slane %v651_v18, 2  ;;  %v455_v30 = vadd.f32 %v10691_v63, %v454_v23  ;;  %9609 = vmatprep.mubr.msk.f32.mxu0 %vm809_vm2, %v651_v18  ;;  %v654_v33 = vmax.f32 %v460_v21, 0.0  ;;  %9518 = vmatprep.mubr.msk.f32.mxu1 %vm809_vm2, %v788_v25 }
  0xf3   :  { %v9441_v36 = vpop.f32.mrf.mxu0 }
  0xf4   :  { %v653_v37 = vmax.f32 %v455_v30, 0.0  ;;  %v470_v38 = vadd.f32 %v9441_v36, %v10691_v63  ;;  %9610 = vmatmul.mubr.msk.f32.gmra.mxu0 %vm809_vm2, %v652_v16  ;;  %v787_v40 = vsel %vm749_vm3, %v708_v12, %v709_v28  ;;  %v786_v41 = vsel %vm749_vm3, %v709_v28, %v710_v31 }
  0xf5   :  { %v464_v39 = vpop.f32.mrf.mxu0  ;;  %v10878_v43 = vsel %vm1892_vm4, %v1853_v13, %v1854_v29  ;;  %v10882_v44 = vsel %vm1892_vm4, %v1854_v29, %v1855_v32  ;;  %9519 = vmatmul.mubr.msk.f32.gmra.mxu1 %vm809_vm2, %v787_v40  ;;  %v712_v48 = vrot.slane %v654_v33, 1  ;;  %v1857_v52 = vrot.slane %v654_v33, 2 }
  0xf6   :  { %v711_v45 = vrot.slane %v653_v37, 1  ;;  %v1856_v46 = vrot.slane %v653_v37, 2  ;;  %v465_v47 = vadd.f32 %v10691_v63, %v464_v39  ;;  %9612 = vmatprep.mubr.msk.f32.mxu0 %vm809_vm2, %v653_v37  ;;  %v656_v53 = vmax.f32 %v470_v38, 0.0  ;;  %9521 = vmatprep.mubr.msk.f32.mxu1 %vm809_vm2, %v786_v41 }
  0xf7   :  { %v9444_v54 = vpop.f32.mrf.mxu0 }
  0xf8   :  { %v655_v55 = vmax.f32 %v465_v47, 0.0  ;;  %v480_v56 = vadd.f32 %v9444_v54, %v10691_v63  ;;  %9613 = vmatmul.mubr.msk.f32.gmra.mxu0 %vm809_vm2, %v654_v33  ;;  %v785_v60 = vsel %vm749_vm3, %v710_v31, %v711_v45  ;;  %v784_v61 = vsel %vm749_vm3, %v711_v45, %v712_v48 }
  0xf9   :  { %v474_v59 = vpop.f32.mrf.mxu0  ;;  %v10896_v62 = vsel %vm1892_vm4, %v1855_v32, %v1856_v46  ;;  %v10900_v0 = vsel %vm1892_vm4, %v1856_v46, %v1857_v52  ;;  %9522 = vmatmul.mubr.msk.f32.gmra.mxu1 %vm809_vm2, %v785_v60  ;;  %v714_v10 = vrot.slane %v656_v53, 1  ;;  %v1859_v11 = vrot.slane %v656_v53, 2 }
  0xfa   :  { %v713_v3 = vrot.slane %v655_v55, 1  ;;  %v1858_v4 = vrot.slane %v655_v55, 2  ;;  %v475_v9 = vadd.f32 %v10691_v63, %v474_v59  ;;  %9615 = vmatprep.mubr.msk.f32.mxu0 %vm809_vm2, %v655_v55  ;;  %v658_v12 = vmax.f32 %v480_v56, 0.0  ;;  %9524 = vmatprep.mubr.msk.f32.mxu1 %vm809_vm2, %v784_v61 }
  0xfb   :  { %v9447_v13 = vpop.f32.mrf.mxu0 }
  0xfc   :  { %v657_v16 = vmax.f32 %v475_v9, 0.0  ;;  %v490_v17 = vadd.f32 %v9447_v13, %v10691_v63  ;;  %9616 = vmatmul.mubr.msk.f32.gmra.mxu0 %vm809_vm2, %v656_v53  ;;  %v783_v21 = vsel %vm749_vm3, %v712_v48, %v713_v3  ;;  %v782_v23 = vsel %vm749_vm3, %v713_v3, %v714_v10 }
  0xfd   :  { %v484_v18 = vpop.f32.mrf.mxu0  ;;  %v10914_v24 = vsel %vm1892_vm4, %v1857_v52, %v1858_v4  ;;  %v10918_v25 = vsel %vm1892_vm4, %v1858_v4, %v1859_v11  ;;  %9525 = vmatmul.mubr.msk.f32.gmra.mxu1 %vm809_vm2, %v783_v21  ;;  %v716_v31 = vrot.slane %v658_v12, 1  ;;  %v1861_v32 = vrot.slane %v658_v12, 2 }
  0xfe   :  { %v715_v28 = vrot.slane %v657_v16, 1  ;;  %v1860_v29 = vrot.slane %v657_v16, 2  ;;  %v485_v30 = vadd.f32 %v10691_v63, %v484_v18  ;;  %9618 = vmatprep.mubr.msk.f32.mxu0 %vm809_vm2, %v657_v16  ;;  %v660_v33 = vmax.f32 %v490_v17, 0.0  ;;  %9527 = vmatprep.mubr.msk.f32.mxu1 %vm809_vm2, %v782_v23 }
  0xff   :  { %v9450_v36 = vpop.f32.mrf.mxu0 }
 0x100   :  { %v659_v37 = vmax.f32 %v485_v30, 0.0  ;;  %v500_v38 = vadd.f32 %v9450_v36, %v10691_v63  ;;  %9619 = vmatmul.mubr.msk.f32.gmra.mxu0 %vm809_vm2, %v658_v12  ;;  %v781_v40 = vsel %vm749_vm3, %v714_v10, %v715_v28  ;;  %v780_v41 = vsel %vm749_vm3, %v715_v28, %v716_v31 }
 0x101   :  { %v494_v39 = vpop.f32.mrf.mxu0  ;;  %v10932_v45 = vsel %vm1892_vm4, %v1859_v11, %v1860_v29  ;;  %v10936_v46 = vsel %vm1892_vm4, %v1860_v29, %v1861_v32  ;;  %9528 = vmatmul.mubr.msk.f32.gmra.mxu1 %vm809_vm2, %v781_v40  ;;  %v718_v53 = vrot.slane %v660_v33, 1  ;;  %v1863_v54 = vrot.slane %v660_v33, 2 }
 0x102   :  { %v717_v47 = vrot.slane %v659_v37, 1  ;;  %v1862_v48 = vrot.slane %v659_v37, 2  ;;  %v495_v52 = vadd.f32 %v10691_v63, %v494_v39  ;;  %9621 = vmatprep.mubr.msk.f32.mxu0 %vm809_vm2, %v659_v37  ;;  %v662_v55 = vmax.f32 %v500_v38, 0.0  ;;  %9530 = vmatprep.mubr.msk.f32.mxu1 %vm809_vm2, %v780_v41 }
 0x103   :  { %v9453_v56 = vpop.f32.mrf.mxu0 }
 0x104   :  { %v661_v59 = vmax.f32 %v495_v52, 0.0  ;;  %v510_v60 = vadd.f32 %v9453_v56, %v10691_v63  ;;  %9622 = vmatmul.mubr.msk.f32.gmra.mxu0 %vm809_vm2, %v660_v33  ;;  %v779_v3 = vsel %vm749_vm3, %v716_v31, %v717_v47  ;;  %v778_v4 = vsel %vm749_vm3, %v717_v47, %v718_v53 }
 0x105   :  { %v504_v61 = vpop.f32.mrf.mxu0  ;;  %v10950_v9 = vsel %vm1892_vm4, %v1861_v32, %v1862_v48  ;;  %v10954_v10 = vsel %vm1892_vm4, %v1862_v48, %v1863_v54  ;;  %9531 = vmatmul.mubr.msk.f32.gmra.mxu1 %vm809_vm2, %v779_v3  ;;  %v720_v16 = vrot.slane %v662_v55, 1  ;;  %v1865_v17 = vrot.slane %v662_v55, 2 }
 0x106   :  { %v719_v11 = vrot.slane %v661_v59, 1  ;;  %v1864_v12 = vrot.slane %v661_v59, 2  ;;  %v505_v13 = vadd.f32 %v10691_v63, %v504_v61  ;;  %9624 = vmatprep.mubr.msk.f32.mxu0 %vm809_vm2, %v661_v59  ;;  %v664_v18 = vmax.f32 %v510_v60, 0.0  ;;  %9533 = vmatprep.mubr.msk.f32.mxu1 %vm809_vm2, %v778_v4 }
 0x107   :  { %v9456_v21 = vpop.f32.mrf.mxu0 }
 0x108   :  { %v663_v23 = vmax.f32 %v505_v13, 0.0  ;;  %v520_v28 = vadd.f32 %v9456_v21, %v10691_v63  ;;  %9625 = vmatmul.mubr.msk.f32.gmra.mxu0 %vm809_vm2, %v662_v55  ;;  %v777_v30 = vsel %vm749_vm3, %v718_v53, %v719_v11  ;;  %v776_v31 = vsel %vm749_vm3, %v719_v11, %v720_v16 }
 0x109   :  { %v514_v29 = vpop.f32.mrf.mxu0  ;;  %v10968_v32 = vsel %vm1892_vm4, %v1863_v54, %v1864_v12  ;;  %v10972_v33 = vsel %vm1892_vm4, %v1864_v12, %v1865_v17  ;;  %9534 = vmatmul.mubr.msk.f32.gmra.mxu1 %vm809_vm2, %v777_v30  ;;  %v722_v39 = vrot.slane %v664_v18, 1  ;;  %v1867_v40 = vrot.slane %v664_v18, 2 }
 0x10a   :  { %v721_v36 = vrot.slane %v663_v23, 1  ;;  %v1866_v37 = vrot.slane %v663_v23, 2  ;;  %v515_v38 = vadd.f32 %v10691_v63, %v514_v29  ;;  %9627 = vmatprep.mubr.msk.f32.mxu0 %vm809_vm2, %v663_v23  ;;  %v666_v41 = vmax.f32 %v520_v28, 0.0  ;;  %9536 = vmatprep.mubr.msk.f32.mxu1 %vm809_vm2, %v776_v31 }
 0x10b   :  { %v9459_v47 = vpop.f32.mrf.mxu0 }
 0x10c   :  { %v665_v48 = vmax.f32 %v515_v38, 0.0  ;;  %v530_v52 = vadd.f32 %v9459_v47, %v10691_v63  ;;  %9628 = vmatmul.mubr.msk.f32.gmra.mxu0 %vm809_vm2, %v664_v18  ;;  %v775_v54 = vsel %vm749_vm3, %v720_v16, %v721_v36  ;;  %v774_v55 = vsel %vm749_vm3, %v721_v36, %v722_v39 }
 0x10d   :  { %v524_v53 = vpop.f32.mrf.mxu0  ;;  %v10986_v56 = vsel %vm1892_vm4, %v1865_v17, %v1866_v37  ;;  %v10990_v59 = vsel %vm1892_vm4, %v1866_v37, %v1867_v40  ;;  %9537 = vmatmul.mubr.msk.f32.gmra.mxu1 %vm809_vm2, %v775_v54  ;;  %v724_v4 = vrot.slane %v666_v41, 1  ;;  %v1869_v11 = vrot.slane %v666_v41, 2 }
 0x10e   :  { %v723_v60 = vrot.slane %v665_v48, 1  ;;  %v1868_v61 = vrot.slane %v665_v48, 2  ;;  %v525_v3 = vadd.f32 %v10691_v63, %v524_v53  ;;  %9630 = vmatprep.mubr.msk.f32.mxu0 %vm809_vm2, %v665_v48  ;;  %v668_v12 = vmax.f32 %v530_v52, 0.0  ;;  %9539 = vmatprep.mubr.msk.f32.mxu1 %vm809_vm2, %v774_v55 }
 0x10f   :  { %v9462_v13 = vpop.f32.mrf.mxu0 }
 0x110   :  { %v667_v16 = vmax.f32 %v525_v3, 0.0  ;;  %v540_v17 = vadd.f32 %v9462_v13, %v10691_v63  ;;  %9631 = vmatmul.mubr.msk.f32.gmra.mxu0 %vm809_vm2, %v666_v41  ;;  %v773_v21 = vsel %vm749_vm3, %v722_v39, %v723_v60  ;;  %v772_v23 = vsel %vm749_vm3, %v723_v60, %v724_v4 }
 0x111   :  { %v534_v18 = vpop.f32.mrf.mxu0  ;;  %v11004_v28 = vsel %vm1892_vm4, %v1867_v40, %v1868_v61  ;;  %v11008_v29 = vsel %vm1892_vm4, %v1868_v61, %v1869_v11  ;;  %9540 = vmatmul.mubr.msk.f32.gmra.mxu1 %vm809_vm2, %v773_v21  ;;  %v726_v37 = vrot.slane %v668_v12, 1  ;;  %v1871_v38 = vrot.slane %v668_v12, 2 }
 0x112   :  { %v725_v30 = vrot.slane %v667_v16, 1  ;;  %v1870_v31 = vrot.slane %v667_v16, 2  ;;  %v535_v36 = vadd.f32 %v10691_v63, %v534_v18  ;;  %9633 = vmatprep.mubr.msk.f32.mxu0 %vm809_vm2, %v667_v16  ;;  %v670_v39 = vmax.f32 %v540_v17, 0.0  ;;  %9542 = vmatprep.mubr.msk.f32.mxu1 %vm809_vm2, %v772_v23 }
 0x113   :  { %v9465_v41 = vpop.f32.mrf.mxu0 }
 0x114   :  { %v669_v40 = vmax.f32 %v535_v36, 0.0  ;;  %v550_v47 = vadd.f32 %v9465_v41, %v10691_v63  ;;  %9634 = vmatmul.mubr.msk.f32.gmra.mxu0 %vm809_vm2, %v668_v12  ;;  %v771_v52 = vsel %vm749_vm3, %v724_v4, %v725_v30  ;;  %v770_v53 = vsel %vm749_vm3, %v725_v30, %v726_v37 }
 0x115   :  { %v544_v48 = vpop.f32.mrf.mxu0  ;;  %v11022_v54 = vsel %vm1892_vm4, %v1869_v11, %v1870_v31  ;;  %v11026_v55 = vsel %vm1892_vm4, %v1870_v31, %v1871_v38  ;;  %9543 = vmatmul.mubr.msk.f32.gmra.mxu1 %vm809_vm2, %v771_v52  ;;  %v728_v4 = vrot.slane %v670_v39, 1  ;;  %v1873_v12 = vrot.slane %v670_v39, 2 }
 0x116   :  { %v727_v60 = vrot.slane %v669_v40, 1  ;;  %v1872_v61 = vrot.slane %v669_v40, 2  ;;  %v545_v3 = vadd.f32 %v10691_v63, %v544_v48  ;;  %9636 = vmatprep.mubr.msk.f32.mxu0 %vm809_vm2, %v669_v40  ;;  %v672_v13 = vmax.f32 %v550_v47, 0.0  ;;  %9545 = vmatprep.mubr.msk.f32.mxu1 %vm809_vm2, %v770_v53 }
 0x117   :  { %v9468_v16 = vpop.f32.mrf.mxu0 }
 0x118   :  { %v671_v11 = vmax.f32 %v545_v3, 0.0  ;;  %v560_v17 = vadd.f32 %v9468_v16, %v10691_v63  ;;  %9637 = vmatmul.mubr.msk.f32.gmra.mxu0 %vm809_vm2, %v670_v39  ;;  %v769_v21 = vsel %vm749_vm3, %v726_v37, %v727_v60  ;;  %v768_v23 = vsel %vm749_vm3, %v727_v60, %v728_v4 }
 0x119   :  { %v554_v18 = vpop.f32.mrf.mxu0  ;;  %v11040_v30 = vsel %vm1892_vm4, %v1871_v38, %v1872_v61  ;;  %v11044_v31 = vsel %vm1892_vm4, %v1872_v61, %v1873_v12  ;;  %9546 = vmatmul.mubr.msk.f32.gmra.mxu1 %vm809_vm2, %v769_v21  ;;  %v730_v37 = vrot.slane %v672_v13, 1  ;;  %v1875_v39 = vrot.slane %v672_v13, 2 }
 0x11a   :  { %v729_v36 = vrot.slane %v671_v11, 1  ;;  %v1874_v41 = vrot.slane %v671_v11, 2  ;;  %v555_v40 = vadd.f32 %v10691_v63, %v554_v18  ;;  %9639 = vmatprep.mubr.msk.f32.mxu0 %vm809_vm2, %v671_v11  ;;  %v674_v47 = vmax.f32 %v560_v17, 0.0  ;;  %9548 = vmatprep.mubr.msk.f32.mxu1 %vm809_vm2, %v768_v23 }
 0x11b   :  { %v9471_v48 = vpop.f32.mrf.mxu0 }
 0x11c   :  { %v673_v38 = vmax.f32 %v555_v40, 0.0  ;;  %v570_v52 = vadd.f32 %v9471_v48, %v10691_v63  ;;  %9640 = vmatmul.mubr.msk.f32.gmra.mxu0 %vm809_vm2, %v672_v13  ;;  %v767_v60 = vsel %vm749_vm3, %v728_v4, %v729_v36  ;;  %v766_v61 = vsel %vm749_vm3, %v729_v36, %v730_v37 }
 0x11d   :  { %v564_v53 = vpop.f32.mrf.mxu0  ;;  %v11058_v3 = vsel %vm1892_vm4, %v1873_v12, %v1874_v41  ;;  %v11062_v16 = vsel %vm1892_vm4, %v1874_v41, %v1875_v39  ;;  %9549 = vmatmul.mubr.msk.f32.gmra.mxu1 %vm809_vm2, %v767_v60  ;;  %v732_v4 = vrot.slane %v674_v47, 1  ;;  %v1877_v13 = vrot.slane %v674_v47, 2 }
 0x11e   :  { %15066 = vst [vmem:[#allocation3_spill] sm:$0xff] %v11062_v16  ;;  %v731_v11 = vrot.slane %v673_v38, 1  ;;  %v1876_v17 = vrot.slane %v673_v38, 2  ;;  %v565_v18 = vadd.f32 %v10691_v63, %v564_v53  ;;  %9642 = vmatprep.mubr.msk.f32.mxu0 %vm809_vm2, %v673_v38  ;;  %v676_v21 = vmax.f32 %v570_v52, 0.0  ;;  %9551 = vmatprep.mubr.msk.f32.mxu1 %vm809_vm2, %v766_v61 }
 0x11f   :  { %v9474_v23 = vpop.f32.mrf.mxu0 }
 0x120   :  { %v675_v12 = vmax.f32 %v565_v18, 0.0  ;;  %v580_v36 = vadd.f32 %v9474_v23, %v10691_v63  ;;  %9643 = vmatmul.mubr.msk.f32.gmra.mxu0 %vm809_vm2, %v674_v47  ;;  %v765_v40 = vsel %vm749_vm3, %v730_v37, %v731_v11  ;;  %v764_v48 = vsel %vm749_vm3, %v731_v11, %v732_v4 }
 0x121   :  { %v574_v41 = vpop.f32.mrf.mxu0  ;;  %v11076_v38 = vsel %vm1892_vm4, %v1875_v39, %v1876_v17  ;;  %v11080_v52 = vsel %vm1892_vm4, %v1876_v17, %v1877_v13  ;;  %9552 = vmatmul.mubr.msk.f32.gmra.mxu1 %vm809_vm2, %v765_v40  ;;  %v734_v37 = vrot.slane %v676_v21, 1  ;;  %v1879_v47 = vrot.slane %v676_v21, 2  ;;  %v9486_v39 = vpop.f32.mrf.mxu1 }
 0x122   :  { %15067 = vst [vmem:[#allocation4_spill] sm:$0xff] %v11076_v38  ;;  %15068 = vst [vmem:[#allocation5_spill] sm:$0xff] %v11080_v52  ;;  %v733_v53 = vrot.slane %v675_v12, 1  ;;  %v1878_v60 = vrot.slane %v675_v12, 2  ;;  %v575_v61 = vadd.f32 %v10691_v63, %v574_v41  ;;  %9645 = vmatprep.mubr.msk.f32.mxu0 %vm809_vm2, %v675_v12  ;;  %v678_v18 = vmax.f32 %v580_v36, 0.0  ;;  %9554 = vmatprep.mubr.msk.f32.mxu1 %vm809_vm2, %v764_v48 }
 0x123   :  { %v9477_v11 = vpop.f32.mrf.mxu0 }
 0x124   :  { %v677_v23 = vmax.f32 %v575_v61, 0.0  ;;  %v590_v15 = vadd.f32 %v9477_v11, %v10691_v63  ;;  %9646 = vmatmul.mubr.msk.f32.gmra.mxu0 %vm809_vm2, %v676_v21  ;;  %v763_v41 = vsel %vm749_vm3, %v732_v4, %v733_v53  ;;  %v762_v40 = vsel %vm749_vm3, %v733_v53, %v734_v37 }
 0x125   :  { %v584_v17 = vpop.f32.mrf.mxu0  ;;  %v11094_v12 = vsel %vm1892_vm4, %v1877_v13, %v1878_v60  ;;  %v11098_v36 = vsel %vm1892_vm4, %v1878_v60, %v1879_v47  ;;  %9555 = vmatmul.mubr.msk.f32.gmra.mxu1 %vm809_vm2, %v763_v41  ;;  %v736_v4 = vrot.slane %v678_v18, 1  ;;  %v1881_v21 = vrot.slane %v678_v18, 2  ;;  %v614_v13 = vpop.f32.mrf.mxu1 }
 0x126   :  { %15069 = vst [vmem:[#allocation6_spill] sm:$0xff] %v11094_v12  ;;  %15070 = vst [vmem:[#allocation7_spill] sm:$0xff] %v11098_v36  ;;  %v735_v48 = vrot.slane %v677_v23, 1  ;;  %v1880_v61 = vrot.slane %v677_v23, 2  ;;  %v585_v11 = vadd.f32 %v10691_v63, %v584_v17  ;;  %9648 = vmatprep.mubr.msk.f32.mxu0 %vm809_vm2, %v677_v23  ;;  %v680_v14 = vmax.f32 %v590_v15, 0.0  ;;  %9557 = vmatprep.mubr.msk.f32.mxu1 %vm809_vm2, %v762_v40 }
 0x127   :  { %v9480_v53 = vpop.f32.mrf.mxu0 }
 0x128   :  { %v679_v12 = vmax.f32 %v585_v11, 0.0  ;;  %v600_v52 = vadd.f32 %v9480_v53, %v10691_v63  ;;  %9649 = vmatmul.mubr.msk.f32.gmra.mxu0 %vm809_vm2, %v678_v18  ;;  %v761_v17 = vsel %vm749_vm3, %v734_v37, %v735_v48  ;;  %v760_v41 = vsel %vm749_vm3, %v735_v48, %v736_v4 }
 0x129   :  { %v594_v60 = vpop.f32.mrf.mxu0  ;;  %v11112_v23 = vsel %vm1892_vm4, %v1879_v47, %v1880_v61  ;;  %v11116_v15 = vsel %vm1892_vm4, %v1880_v61, %v1881_v21  ;;  %9558 = vmatmul.mubr.msk.f32.gmra.mxu1 %vm809_vm2, %v761_v17  ;;  %v738_v37 = vrot.slane %v680_v14, 1  ;;  %v1883_v18 = vrot.slane %v680_v14, 2  ;;  %v9489_v61 = vpop.f32.mrf.mxu1 }
 0x12a   :  { %15071 = vst [vmem:[#allocation8_spill] sm:$0xff] %v11112_v23  ;;  %15072 = vst [vmem:[#allocation9_spill] sm:$0xff] %v11116_v15  ;;  %v737_v40 = vrot.slane %v679_v12, 1  ;;  %v1882_v11 = vrot.slane %v679_v12, 2  ;;  %v595_v53 = vadd.f32 %v10691_v63, %v594_v60  ;;  %9651 = vmatprep.mubr.msk.f32.mxu0 %vm809_vm2, %v679_v12  ;;  %v682_v36 = vmax.f32 %v600_v52, 0.0  ;;  %9560 = vmatprep.mubr.msk.f32.mxu1 %vm809_vm2, %v760_v41  ;;  %v8392_v60 = vld [vmem:[%s15023_s5 + $0x38] sm:$0xff] }
 0x12b   :  { %v9483_v48 = vpop.f32.mrf.mxu0  ;;  %v620_v47 = vadd.f32 %v9486_v39, %v10691_v63  ;;  %v615_v23 = vadd.f32 %v10691_v63, %v614_v13  ;;  %9754 = vmatprep.subr.mxu0 %v8392_v60 }
 0x12c   :  { %v681_v15 = vmax.f32 %v595_v53, 0.0  ;;  %v610_v38 = vadd.f32 %v9483_v48, %v10691_v63  ;;  %9652 = vmatmul.mubr.msk.f32.gmra.mxu0 %vm809_vm2, %v680_v14  ;;  %v759_v52 = vsel %vm749_vm3, %v736_v4, %v737_v40  ;;  %v758_v17 = vsel %vm749_vm3, %v737_v40, %v738_v37  ;;  %v624_v4 = vpop.f32.mrf.mxu1 }
 0x12d   :  { %v604_v12 = vpop.f32.mrf.mxu0  ;;  %v11135_v39 = vsel %vm1892_vm4, %v1881_v21, %v1882_v11  ;;  %v11139_v13 = vsel %vm1892_vm4, %v1882_v11, %v1883_v18  ;;  %9561 = vmatmul.mubr.msk.f32.gmra.mxu1 %vm809_vm2, %v759_v52  ;;  %v740_v40 = vrot.slane %v682_v36, 1  ;;  %v1885_v16 = vrot.slane %v682_v36, 2  ;;  %9755 = vmatpush3.msra.mxu0 %v8392_v60 }
 0x12e   :  { %15073 = vst [vmem:[#allocation10_spill] sm:$0xff] %v11139_v13  ;;  %v739_v41 = vrot.slane %v681_v15, 1  ;;  %v1884_v53 = vrot.slane %v681_v15, 2  ;;  %v11141_v48 = vmax.f32 %v610_v38, 0.0  ;;  %v605_v14 = vadd.f32 %v10691_v63, %v604_v12  ;;  %9654 = vmatprep.mubr.msk.f32.mxu0 %vm809_vm2, %v681_v15  ;;  %9563 = vmatprep.mubr.msk.f32.mxu1 %vm809_vm2, %v758_v17 }
 0x12f   :  { %v11147_v21 = vmax.f32 %v620_v47, 0.0  ;;  %v11149_v11 = vmax.f32 %v615_v23, 0.0  ;;  %v625_v12 = vadd.f32 %v10691_v63, %v624_v4 }
 0x130   :  { %v683_v13 = vmax.f32 %v605_v14, 0.0  ;;  %v757_v38 = vsel %vm749_vm3, %v738_v37, %v739_v41  ;;  %9655 = vmatmul.mubr.msk.f32.gmra.mxu0 %vm809_vm2, %v682_v36  ;;  %v756_v15 = vsel %vm749_vm3, %v739_v41, %v740_v40  ;;  %v11159_v52 = vsel %vm1892_vm4, %v1883_v18, %v1884_v53 }
 0x131   :  { %v11163_v23 = vsel %vm1892_vm4, %v1884_v53, %v1885_v16  ;;  %v742_v47 = vrot.slane %v11141_v48, 1  ;;  %v1887_v37 = vrot.slane %v11141_v48, 2  ;;  %9564 = vmatmul.mubr.msk.f32.gmra.mxu1 %vm809_vm2, %v757_v38  ;;  %v630_v36 = vadd.f32 %v9489_v61, %v10691_v63 }
 0x132   :  { %v741_v60 = vrot.slane %v683_v13, 1  ;;  %v1886_v17 = vrot.slane %v683_v13, 2  ;;  %9657 = vmatprep.mubr.msk.f32.mxu0 %vm809_vm2, %v683_v13  ;;  %9566 = vmatprep.mubr.msk.f32.mxu1 %vm809_vm2, %v756_v15  ;;  %v743_v63 = vrot.slane %v11149_v11, 1  ;;  %v11186_v61 = vmax.f32 %v625_v12, 0.0 }
 0x133   :  { %v744_v13 = vrot.slane %v11147_v21, 1 }
 0x134   :  { %v755_v18 = vsel %vm749_vm3, %v740_v40, %v741_v60  ;;  %v754_v41 = vsel %vm749_vm3, %v741_v60, %v742_v47  ;;  %v11177_v53 = vsel %vm1892_vm4, %v1885_v16, %v1886_v17  ;;  %v11183_v14 = vsel %vm1892_vm4, %v1886_v17, %v1887_v37  ;;  %9658 = vmatmul.mubr.msk.f32.gmra.mxu0 %vm809_vm2, %v11141_v48 }
 0x135   :  { %9660 = vmatprep.mubr.msk.f32.mxu0 %vm809_vm2, %v11149_v11  ;;  %9567 = vmatmul.mubr.msk.f32.gmra.mxu1 %vm809_vm2, %v755_v18  ;;  %v11195_v16 = vmax.f32 %v630_v36, 0.0  ;;  %v745_v4 = vrot.slane %v11186_v61, 1  ;;  %v753_v40 = vsel %vm749_vm3, %v742_v47, %v743_v63  ;;  %v752_v38 = vsel %vm749_vm3, %v743_v63, %v744_v13  ;;  %v8391_v36 = vld [vmem:[%s15023_s5 + $0x30] sm:$0xff] }
 0x136   :  { %9569 = vmatprep.mubr.msk.f32.mxu1 %vm809_vm2, %v754_v41  ;;  %v15074_v60 = vrot.slane %v10697_v8, 1  ;;  %9756 = vmatprep.subr.mxu0 %v8391_v36 }
 0x137   :  { %v746_v12 = vrot.slane %v11195_v16, 1  ;;  %v751_v15 = vsel %vm749_vm3, %v744_v13, %v745_v4  ;;  %9757 = vmatpush3.msra.mxu0 %v8391_v36 }
 0x138   :  { %9661 = vmatmul.mubr.msk.f32.gmra.mxu0 %vm809_vm2, %v11147_v21 }
 0x139   :  { %9663 = vmatprep.mubr.msk.f32.mxu0 %vm809_vm2, %v11186_v61  ;;  %9570 = vmatmul.mubr.msk.f32.gmra.mxu1 %vm809_vm2, %v753_v40  ;;  %v750_v47 = vsel %vm749_vm3, %v745_v4, %v746_v12  ;;  %v805_v17 = vsel %vm749_vm3, %v746_v12, %v15074_v60  ;;  %v15084_v40 = vrot.slane %v10697_v8, 2 }
 0x13a   :  { %9572 = vmatprep.mubr.msk.f32.mxu1 %vm809_vm2, %v752_v38 }
 0x13c   :  { %9664 = vmatmul.mubr.msk.f32.gmra.mxu0 %vm809_vm2, %v11195_v16 }
 0x13d   :  { %9573 = vmatmul.mubr.msk.f32.gmra.mxu1 %vm809_vm2, %v751_v15 }
 0x13e   :  { %9575 = vmatprep.mubr.msk.f32.mxu1 %vm809_vm2, %v750_v47 }
 0x141   :  { %9576 = vmatmul.mubr.msk.f32.gmra.mxu1 %vm809_vm2, %v805_v17 }
 0x142   :  { %9670 = vmatprep.mubr.msk.f32.mxu1 %vm809_vm2, %v10717_v22  ;;  %v8390_v22 = vld [vmem:[%s15023_s5 + $0x28] sm:$0xff] }
 0x143   :  { %9758 = vmatprep.subr.mxu0 %v8390_v22 }
 0x144   :  { %9759 = vmatpush3.msra.mxu0 %v8390_v22 }
 0x145   :  { %9671 = vmatmul.mubr.msk.f32.vlgmr.msra.gmra.mxu1 %vm809_vm2, %v10737_v42  ;;  %v8389_v42 = vld [vmem:[%s15023_s5 + $0x20] sm:$0xff] }
 0x146   :  { %9673 = vmatprep.mubr.msk.f32.mxu1 %vm809_vm2, %v10748_v49  ;;  %9760 = vmatprep.subr.mxu0 %v8389_v42  ;;  %v15075_v49 = vld [vmem:[#allocation3_spill] sm:$0xff] }
 0x147   :  { %9761 = vmatpush3.msra.mxu0 %v8389_v42 }
 0x149   :  { %9674 = vmatmul.mubr.msk.f32.gmra.mxu1 %vm809_vm2, %v10756_v57 }
 0x14a   :  { %9676 = vmatprep.mubr.msk.f32.mxu1 %vm809_vm2, %v10760_v58 }
 0x14d   :  { %9677 = vmatmul.mubr.msk.f32.gmra.mxu1 %vm809_vm2, %v10770_v1  ;;  %v15076_v1 = vld [vmem:[#allocation4_spill] sm:$0xff] }
 0x14e   :  { %9679 = vmatprep.mubr.msk.f32.mxu1 %vm809_vm2, %v10774_v2  ;;  %v15077_v2 = vld [vmem:[#allocation5_spill] sm:$0xff] }
 0x151   :  { %9680 = vmatmul.mubr.msk.f32.gmra.mxu1 %vm809_vm2, %v10788_v19 }
 0x152   :  { %9682 = vmatprep.mubr.msk.f32.mxu1 %vm809_vm2, %v10792_v20 }
 0x155   :  { %9683 = vmatmul.mubr.msk.f32.gmra.mxu1 %vm809_vm2, %v10806_v34 }
 0x156   :  { %9685 = vmatprep.mubr.msk.f32.mxu1 %vm809_vm2, %v10810_v35  ;;  %v15078_v35 = vld [vmem:[#allocation6_spill] sm:$0xff] }
 0x159   :  { %9686 = vmatmul.mubr.msk.f32.gmra.mxu1 %vm809_vm2, %v10824_v50  ;;  %v15079_v50 = vld [vmem:[#allocation7_spill] sm:$0xff] }
 0x15a   :  { %9688 = vmatprep.mubr.msk.f32.mxu1 %vm809_vm2, %v10828_v51 }
 0x15d   :  { %9689 = vmatmul.mubr.msk.f32.gmra.mxu1 %vm809_vm2, %v10842_v6 }
 0x15e   :  { %9691 = vmatprep.mubr.msk.f32.mxu1 %vm809_vm2, %v10846_v7 }
 0x161   :  { %9692 = vmatmul.mubr.msk.f32.gmra.mxu1 %vm809_vm2, %v10860_v26  ;;  %v15080_v26 = vld [vmem:[#allocation8_spill] sm:$0xff] }
 0x162   :  { %9694 = vmatprep.mubr.msk.f32.mxu1 %vm809_vm2, %v10864_v27 }
 0x165   :  { %9695 = vmatmul.mubr.msk.f32.gmra.mxu1 %vm809_vm2, %v10878_v43  ;;  %v15081_v43 = vld [vmem:[#allocation9_spill] sm:$0xff] }
 0x166   :  { %9697 = vmatprep.mubr.msk.f32.mxu1 %vm809_vm2, %v10882_v44  ;;  %v2811_v44 = vld [vmem:[%s15023_s5 + $0x18] sm:$0xff] }
 0x167   :  { %9846 = vmatprep.subr.mxu1 %v2811_v44 }
 0x168   :  { %9847 = vmatpush3.msra.mxu1 %v2811_v44 }
 0x169   :  { %9698 = vmatmul.mubr.msk.f32.gmra.mxu1 %vm809_vm2, %v10896_v62  ;;  %v2810_v62 = vld [vmem:[%s15023_s5 + $0x10] sm:$0xff] }
 0x16a   :  { %9700 = vmatprep.mubr.msk.f32.mxu1 %vm809_vm2, %v10900_v0  ;;  %9848 = vmatprep.subr.mxu1 %v2810_v62 }
 0x16b   :  { %9849 = vmatpush3.msra.mxu1 %v2810_v62 }
 0x16d   :  { %9701 = vmatmul.mubr.msk.f32.gmra.mxu1 %vm809_vm2, %v10914_v24 }
 0x16e   :  { %9703 = vmatprep.mubr.msk.f32.mxu1 %vm809_vm2, %v10918_v25 }
 0x171   :  { %9704 = vmatmul.mubr.msk.f32.gmra.mxu1 %vm809_vm2, %v10932_v45 }
 0x172   :  { %9706 = vmatprep.mubr.msk.f32.mxu1 %vm809_vm2, %v10936_v46  ;;  %v15082_v46 = vld [vmem:[#allocation10_spill] sm:$0xff] }
 0x175   :  { %9707 = vmatmul.mubr.msk.f32.gmra.mxu1 %vm809_vm2, %v10950_v9  ;;  %v2809_v9 = vld [vmem:[%s15023_s5 + $0x8] sm:$0xff] }
 0x176   :  { %9709 = vmatprep.mubr.msk.f32.mxu1 %vm809_vm2, %v10954_v10  ;;  %v2808_v10 = vld [vmem:[%s15023_s5] sm:$0xff]  ;;  %9850 = vmatprep.subr.mxu1 %v2809_v9 }
 0x177   :  { %9851 = vmatpush3.msra.mxu1 %v2809_v9 }
 0x178   :  { %9852 = vmatprep.subr.mxu1 %v2808_v10 }
 0x179   :  { %9710 = vmatmul.mubr.msk.f32.gmra.mxu1 %vm809_vm2, %v10968_v32 }
 0x17a   :  { %9712 = vmatprep.mubr.msk.f32.mxu1 %vm809_vm2, %v10972_v33  ;;  %9853 = vmatpush3.msra.mxu1 %v2808_v10 }
 0x17d   :  { %9713 = vmatmul.mubr.msk.f32.gmra.mxu1 %vm809_vm2, %v10986_v56 }
 0x17e   :  { %9715 = vmatprep.mubr.msk.f32.mxu1 %vm809_vm2, %v10990_v59  ;;  %v11374_v59 = vld [vmem:[%s15023_s5 + $0x58] sm:$0xff] }
 0x17f   :  { %15083 = vst [vmem:[#allocation3_spill] sm:$0xff] %v11374_v59  ;;  %9938 = vmatprep.subr.mxu0 %v11374_v59 }
 0x181   :  { %9716 = vmatmul.mubr.msk.f32.gmra.mxu1 %vm809_vm2, %v11004_v28 }
 0x182   :  { %9718 = vmatprep.mubr.msk.f32.mxu1 %vm809_vm2, %v11008_v29 }
 0x185   :  { %9719 = vmatmul.mubr.msk.f32.gmra.mxu1 %vm809_vm2, %v11022_v54  ;;  %v1888_v54 = vrot.slane %v11149_v11, 2 }
 0x186   :  { %9721 = vmatprep.mubr.msk.f32.mxu1 %vm809_vm2, %v11026_v55 }
 0x189   :  { %9722 = vmatmul.mubr.msk.f32.gmra.mxu1 %vm809_vm2, %v11040_v30  ;;  %v1889_v30 = vrot.slane %v11147_v21, 2  ;;  %v1896_v21 = vsel %vm1892_vm4, %v1887_v37, %v1888_v54 }
 0x18a   :  { %9724 = vmatprep.mubr.msk.f32.mxu1 %vm809_vm2, %v11044_v31 }
 0x18b   :  { %v1895_v18 = vsel %vm1892_vm4, %v1888_v54, %v1889_v30 }
 0x18d   :  { %9725 = vmatmul.mubr.msk.f32.gmra.mxu1 %vm809_vm2, %v11058_v3 }
 0x18e   :  { %9727 = vmatprep.mubr.msk.f32.mxu1 %vm809_vm2, %v15075_v49 }
 0x18f   :  { %v11309_v57 = vpop.f32.mrf.mxu0 }
 0x191   :  { %v11311_v58 = vpop.f32.mrf.mxu0  ;;  %9728 = vmatmul.mubr.msk.f32.gmra.mxu1 %vm809_vm2, %v15076_v1 }
 0x192   :  { %9730 = vmatprep.mubr.msk.f32.mxu1 %vm809_vm2, %v15077_v2 }
 0x193   :  { %v11317_v19 = vpop.f32.mrf.mxu0 }
 0x195   :  { %v11319_v20 = vpop.f32.mrf.mxu1  ;;  %v11321_v34 = vpop.f32.mrf.mxu0  ;;  %9731 = vmatmul.mubr.msk.f32.gmra.mxu1 %vm809_vm2, %v15078_v35 }
 0x196   :  { %9733 = vmatprep.mubr.msk.f32.mxu1 %vm809_vm2, %v15079_v50 }
 0x197   :  { %v11327_v51 = vpop.f32.mrf.mxu1 }
 0x198   :  { %v11329_v6 = vpop.f32.mrf.mxu0 }
 0x199   :  { %v11331_v7 = vpop.f32.mrf.mxu1  ;;  %9734 = vmatmul.mubr.msk.f32.gmra.mxu1 %vm809_vm2, %v15080_v26 }
 0x19a   :  { %v11335_v27 = vpop.f32.mrf.mxu0  ;;  %9736 = vmatprep.mubr.msk.f32.mxu1 %vm809_vm2, %v15081_v43 }
 0x19b   :  { %v11345_v0 = vpop.f32.mrf.mxu1 }
 0x19c   :  { %v11347_v24 = vpop.f32.mrf.mxu0 }
 0x19d   :  { %v11349_v25 = vpop.f32.mrf.mxu1  ;;  %9737 = vmatmul.mubr.msk.f32.gmra.mxu1 %vm809_vm2, %v11135_v39 }
 0x19e   :  { %v11353_v45 = vpop.f32.mrf.mxu0  ;;  %9739 = vmatprep.mubr.msk.f32.mxu1 %vm809_vm2, %v15082_v46 }
 0x19f   :  { %v11363_v32 = vpop.f32.mrf.mxu1 }
 0x1a0   :  { %v11365_v33 = vpop.f32.mrf.mxu0 }
 0x1a1   :  { %v11367_v56 = vpop.f32.mrf.mxu1  ;;  %9740 = vmatmul.mubr.msk.f32.gmra.mxu1 %vm809_vm2, %v11159_v52  ;;  %v1890_v52 = vrot.slane %v11186_v61, 2 }
 0x1a2   :  { %v11376_v28 = vpop.f32.mrf.mxu0  ;;  %9742 = vmatprep.mubr.msk.f32.mxu1 %vm809_vm2, %v11163_v23 }
 0x1a3   :  { %v11380_v29 = vpop.f32.mrf.mxu1  ;;  %v1894_v48 = vsel %vm1892_vm4, %v1889_v30, %v1890_v52 }
 0x1a4   :  { %v11384_v55 = vpop.f32.mrf.mxu0 }
 0x1a5   :  { %v11387_v31 = vpop.f32.mrf.mxu1  ;;  %9743 = vmatmul.mubr.msk.f32.gmra.mxu1 %vm809_vm2, %v11177_v53  ;;  %v1891_v53 = vrot.slane %v11195_v16, 2 }
 0x1a6   :  { %v11391_v3 = vpop.f32.mrf.mxu0  ;;  %9745 = vmatprep.mubr.msk.f32.mxu1 %vm809_vm2, %v11183_v14 }
 0x1a7   :  { %v11395_v39 = vpop.f32.mrf.mxu1  ;;  %v1893_v61 = vsel %vm1892_vm4, %v1890_v52, %v1891_v53  ;;  %v1948_v38 = vsel %vm1892_vm4, %v1891_v53, %v15084_v40 }
 0x1a8   :  { %v11398_v23 = vpop.f32.mrf.mxu0 }
 0x1a9   :  { %v11404_v11 = vpop.f32.mrf.mxu1  ;;  %9746 = vmatmul.mubr.msk.f32.gmra.mxu1 %vm809_vm2, %v1896_v21 }
 0x1aa   :  { %v11409_v41 = vpop.f32.mrf.mxu0  ;;  %9748 = vmatprep.mubr.msk.f32.mxu1 %vm809_vm2, %v1895_v18 }
 0x1ab   :  { %v11413_v14 = vpop.f32.mrf.mxu1 }
 0x1ac   :  { %v11415_v63 = vpop.f32.mrf.mxu0 }
 0x1ad   :  { %v11419_v37 = vpop.f32.mrf.mxu1  ;;  %9749 = vmatmul.mubr.msk.f32.gmra.mxu1 %vm809_vm2, %v1894_v48 }
 0x1ae   :  { %v11424_v13 = vpop.f32.mrf.mxu0  ;;  %9751 = vmatprep.mubr.msk.f32.mxu1 %vm809_vm2, %v1893_v61 }
 0x1af   :  { %v11427_v4 = vpop.f32.mrf.mxu1 }
 0x1b0   :  { %v11429_v16 = vpop.f32.mrf.mxu0 }
 0x1b1   :  { %v11435_v12 = vpop.f32.mrf.mxu1  ;;  %9752 = vmatmul.mubr.msk.f32.gmra.mxu1 %vm809_vm2, %v1948_v38 }
 0x1b2   :  { %v11438_v15 = vpop.f32.mrf.mxu0 }
 0x1b3   :  { %v11440_v47 = vpop.f32.mrf.mxu1 }
 0x1b4   :  { %v11442_v60 = vpop.f32.mrf.mxu0 }
 0x1b5   :  { %v11444_v17 = vpop.f32.mrf.mxu1 }
 0x1b6   :  { %v11446_v36 = vpop.f32.mrf.mxu0 }
 0x1b7   :  { %v11448_v22 = vpop.f32.mrf.mxu1 }
 0x1b8   :  { %v11450_v8 = vpop.f32.mrf.mxu0 }
 0x1b9   :  { %v11452_v42 = vpop.f32.mrf.mxu1 }
 0x1ba   :  { %v11454_v49 = vpop.f32.mrf.mxu0 }
 0x1bb   :  { %v11456_v1 = vpop.f32.mrf.mxu1 }
 0x1bc   :  { %v11458_v2 = vpop.f32.mrf.mxu0 }
 0x1bd   :  { %v11460_v35 = vpop.f32.mrf.mxu1 }
 0x1be   :  { %v11462_v50 = vpop.f32.mrf.mxu0 }
 0x1bf   :  { %v11464_v26 = vpop.f32.mrf.mxu1 }
 0x1c0   :  { %v11466_v43 = vpop.f32.mrf.mxu0 }
 0x1c1   :  { %v11468_v44 = vpop.f32.mrf.mxu1 }
 0x1c2   :  { %v11470_v62 = vpop.f32.mrf.mxu0 }
 0x1c3   :  { %v11472_v46 = vpop.f32.mrf.mxu1 }
 0x1c4   :  { %v11474_v9 = vpop.f32.mrf.mxu0 }
 0x1c5   :  { %15085 = vst [vmem:[#allocation4_spill] sm:$0xff] %v11474_v9  ;;  %v11476_v10 = vpop.f32.mrf.mxu1 }
 0x1c6   :  { %v11478_v54 = vpop.f32.mrf.mxu0 }
 0x1c7   :  { %15086 = vst [vmem:[#allocation5_spill] sm:$0xff] %v11478_v54  ;;  %v11480_v30 = vpop.f32.mrf.mxu1 }
 0x1c8   :  { %v11482_v52 = vpop.f32.mrf.mxu0 }
 0x1c9   :  { %15087 = vst [vmem:[#allocation6_spill] sm:$0xff] %v11482_v52  ;;  %v11484_v21 = vpop.f32.mrf.mxu1 }
 0x1ca   :  { %v11486_v18 = vpop.f32.mrf.mxu0 }
 0x1cb   :  { %15088 = vst [vmem:[#allocation7_spill] sm:$0xff] %v11486_v18  ;;  %v11488_v53 = vpop.f32.mrf.mxu1 }
 0x1cc   :  { %15089 = vst [vmem:[#allocation8_spill] sm:$0xff] %v11488_v53  ;;  %v11490_v48 = vpop.f32.mrf.mxu0 }
 0x1cd   :  { %15090 = vst [vmem:[#allocation9_spill] sm:$0xff] %v11490_v48  ;;  %v11492_v61 = vpop.f32.mrf.mxu1 }
 0x1ce   :  { %15091 = vst [vmem:[#allocation10_spill] sm:$0xff] %v11492_v61  ;;  %v11494_v40 = vpop.f32.mrf.mxu0 }
 0x1cf   :  { %15092 = vst [vmem:[#allocation11_spill] sm:$0xff] %v11494_v40  ;;  %v11496_v38 = vpop.f32.mrf.mxu1 }
 0x1d0   :  { %15093 = vst [vmem:[#allocation12_spill] sm:$0xff] %v11496_v38  ;;  %v11498_v59 = vpop.f32.mrf.mxu0 }
 0x1d1   :  { %15094 = vst [vmem:[#allocation13_spill] sm:$0xff] %v11498_v59  ;;  %v11500_v5 = vpop.f32.mrf.mxu1 }
 0x1d2   :  { %15095 = vst [vmem:[#allocation14_spill] sm:$0xff] %v11500_v5  ;;  %v11502_v54 = vpop.f32.mrf.mxu0 }
 0x1d3   :  { %15096 = vst [vmem:[#allocation15_spill] sm:$0xff] %v11502_v54  ;;  %v11504_v52 = vpop.f32.mrf.mxu1 }
 0x1d4   :  { %15097 = vst [vmem:[#allocation16_spill] sm:$0xff] %v11504_v52  ;;  %v11506_v9 = vpop.f32.mrf.mxu0 }
 0x1d5   :  { %15098 = vst [vmem:[#allocation17_spill] sm:$0xff] %v11506_v9  ;;  %v11508_v18 = vpop.f32.mrf.mxu1 }
 0x1d6   :  { %15099 = vst [vmem:[#allocation18_spill] sm:$0xff] %v11508_v18  ;;  %v11510_v53 = vpop.f32.mrf.mxu0 }
 0x1d7   :  { %15100 = vst [vmem:[#allocation19_spill] sm:$0xff] %v11510_v53  ;;  %v11512_v48 = vpop.f32.mrf.mxu1 }
 0x1d8   :  { %15101 = vst [vmem:[#allocation20_spill] sm:$0xff] %v11512_v48  ;;  %v11514_v61 = vpop.f32.mrf.mxu0 }
 0x1d9   :  { %15102 = vst [vmem:[#allocation21_spill] sm:$0xff] %v11514_v61  ;;  %v11516_v40 = vpop.f32.mrf.mxu1 }
 0x1da   :  { %15103 = vst [vmem:[#allocation22_spill] sm:$0xff] %v11516_v40  ;;  %v11518_v38 = vpop.f32.mrf.mxu0 }
 0x1db   :  { %15104 = vst [vmem:[#allocation23_spill] sm:$0xff] %v11518_v38  ;;  %v11520_v59 = vpop.f32.mrf.mxu1 }
 0x1dc   :  { %15105 = vst [vmem:[#allocation24_spill] sm:$0xff] %v11520_v59  ;;  %v11522_v5 = vpop.f32.mrf.mxu0 }
 0x1dd   :  { %15106 = vst [vmem:[#allocation25_spill] sm:$0xff] %v11522_v5  ;;  %v11524_v54 = vpop.f32.mrf.mxu1 }
 0x1de   :  { %15107 = vst [vmem:[#allocation26_spill] sm:$0xff] %v11524_v54  ;;  %v11526_v52 = vpop.f32.mrf.mxu0 }
 0x1df   :  { %15108 = vst [vmem:[#allocation27_spill] sm:$0xff] %v11526_v52  ;;  %v11528_v9 = vpop.f32.mrf.mxu1 }
 0x1e0   :  { %15109 = vst [vmem:[#allocation28_spill] sm:$0xff] %v11528_v9  ;;  %v11530_v18 = vpop.f32.mrf.mxu0 }
 0x1e1   :  { %15110 = vst [vmem:[#allocation29_spill] sm:$0xff] %v11530_v18  ;;  %v11532_v53 = vpop.f32.mrf.mxu1 }
 0x1e2   :  { %15111 = vst [vmem:[#allocation30_spill] sm:$0xff] %v11532_v53  ;;  %v11534_v48 = vpop.f32.mrf.mxu0 }
 0x1e3   :  { %15112 = vst [vmem:[#allocation31_spill] sm:$0xff] %v11534_v48  ;;  %v11536_v61 = vpop.f32.mrf.mxu1 }
 0x1e4   :  { %15113 = vst [vmem:[#allocation32_spill] sm:$0xff] %v11536_v61  ;;  %v11538_v40 = vpop.f32.mrf.mxu0 }
 0x1e5   :  { %15114 = vst [vmem:[#allocation33_spill] sm:$0xff] %v11538_v40  ;;  %v11540_v38 = vpop.f32.mrf.mxu1 }
 0x1e6   :  { %15115 = vst [vmem:[#allocation34_spill] sm:$0xff] %v11540_v38  ;;  %v11542_v59 = vpop.f32.mrf.mxu0 }
 0x1e7   :  { %15116 = vst [vmem:[#allocation35_spill] sm:$0xff] %v11542_v59  ;;  %v11544_v5 = vpop.f32.mrf.mxu1 }
 0x1e8   :  { %15117 = vst [vmem:[#allocation36_spill] sm:$0xff] %v11544_v5  ;;  %v11546_v54 = vpop.f32.mrf.mxu0 }
 0x1e9   :  { %15118 = vst [vmem:[#allocation37_spill] sm:$0xff] %v11546_v54  ;;  %v11548_v52 = vpop.f32.mrf.mxu1 }
 0x1ea   :  { %15119 = vst [vmem:[#allocation38_spill] sm:$0xff] %v11548_v52  ;;  %v11552_v18 = vpop.f32.mrf.mxu0 }
 0x1eb   :  { %v11550_v9 = vpop.f32.mrf.mxu1  ;;  %15121 = vst [vmem:[#allocation40_spill] sm:$0xff] %v11552_v18 }
 0x1ec   :  { %15120 = vst [vmem:[#allocation39_spill] sm:$0xff] %v11550_v9  ;;  %v11558_v61 = vpop.f32.mrf.mxu0 }
 0x1ed   :  { %v11554_v53 = vpop.f32.mrf.mxu1  ;;  %15124 = vst [vmem:[#allocation43_spill] sm:$0xff] %v11558_v61 }
 0x1ee   :  { %15122 = vst [vmem:[#allocation41_spill] sm:$0xff] %v11554_v53  ;;  %v11564_v59 = vpop.f32.mrf.mxu0 }
 0x1ef   :  { %v11556_v48 = vpop.f32.mrf.mxu1 }
 0x1f0   :  { %15123 = vst [vmem:[#allocation42_spill] sm:$0xff] %v11556_v48  ;;  %v11570_v52 = vpop.f32.mrf.mxu0 }
 0x1f1   :  { %v11560_v40 = vpop.f32.mrf.mxu1 }
 0x1f2   :  { %v11576_v53 = vpop.f32.mrf.mxu0 }
 0x1f3   :  { %v11562_v38 = vpop.f32.mrf.mxu1 }
 0x1f4   :  { %15125 = vst [vmem:[#allocation44_spill] sm:$0xff] %v11562_v38  ;;  %v1563_v38 = vadd.f32 %v11309_v57, %v11319_v20  ;;  %v11612_v20 = vadd.f32 %v11365_v33, %v11387_v31  ;;  %v11654_v33 = vadd.f32 %v11442_v60, %v11452_v42  ;;  %v15140_v42 = vld [vmem:[#allocation9_spill] sm:$0xff] }
 0x1f5   :  { %v11566_v5 = vpop.f32.mrf.mxu1 }
 0x1f6   :  { %15126 = vst [vmem:[#allocation45_spill] sm:$0xff] %v11566_v5  ;;  %v1558_v5 = vadd.f32 %v11311_v58, %v11327_v51  ;;  %v11604_v58 = vadd.f32 %v11347_v24, %v11367_v56  ;;  %v11620_v51 = vadd.f32 %v11384_v55, %v11404_v11  ;;  %v11638_v24 = vadd.f32 %v11415_v63, %v11435_v12  ;;  %v15132_v63 = vld [vmem:[#allocation4_spill] sm:$0xff]  ;;  %v15135_v12 = vld [vmem:[#allocation10_spill] sm:$0xff] }
 0x1f7   :  { %v11568_v54 = vpop.f32.mrf.mxu1  ;;  %v11658_v56 = vadd.f32 %v11446_v36, %v11456_v1  ;;  %v11683_v11 = vadd.f32 %v11466_v43, %v11476_v10  ;;  %v15138_v36 = vld [vmem:[#allocation7_spill] sm:$0xff]  ;;  %v15143_v43 = vld [vmem:[#allocation18_spill] sm:$0xff] }
 0x1f8   :  { %15127 = vst [vmem:[#allocation46_spill] sm:$0xff] %v11568_v54  ;;  %v1573_v54 = vadd.f32 %v11317_v19, %v11331_v7  ;;  %v11608_v19 = vadd.f32 %v11353_v45, %v11380_v29  ;;  %v11628_v7 = vadd.f32 %v11398_v23, %v11419_v37  ;;  %v11646_v45 = vadd.f32 %v11429_v16, %v11444_v17  ;;  %v15137_v17 = vld [vmem:[#allocation12_spill] sm:$0xff]  ;;  %v15146_v10 = vld [vmem:[#allocation15_spill] sm:$0xff] }
 0x1f9   :  { %v11572_v9 = vpop.f32.mrf.mxu1  ;;  %v11666_v29 = vadd.f32 %v11454_v49, %v11464_v26  ;;  %v11679_v23 = vadd.f32 %v11462_v50, %v11472_v46  ;;  %v11691_v37 = vadd.f32 %v15132_v63, %v11484_v21  ;;  %v15142_v50 = vld [vmem:[#allocation11_spill] sm:$0xff]  ;;  %v15145_v46 = vld [vmem:[#allocation20_spill] sm:$0xff]  ;;  %v15147_v21 = vld [vmem:[#allocation22_spill] sm:$0xff] }
 0x1fa   :  { %15128 = vst [vmem:[#allocation47_spill] sm:$0xff] %v11572_v9  ;;  %v1568_v9 = vadd.f32 %v11321_v34, %v11345_v0  ;;  %v11616_v34 = vadd.f32 %v11376_v28, %v11395_v39  ;;  %v11662_v28 = vadd.f32 %v11450_v8, %v11460_v35  ;;  %v11675_v39 = vadd.f32 %v11458_v2, %v11468_v44  ;;  %v15139_v8 = vld [vmem:[#allocation14_spill] sm:$0xff]  ;;  %v15141_v35 = vld [vmem:[#allocation16_spill] sm:$0xff]  ;;  %v15144_v44 = vld [vmem:[#allocation13_spill] sm:$0xff] }
 0x1fb   :  { %v11574_v18 = vpop.f32.mrf.mxu1  ;;  %v11707_v49 = vadd.f32 %v15140_v42, %v15139_v8  ;;  %v11714_v26 = vadd.f32 %v15142_v50, %v15141_v35  ;;  %v15153_v42 = vld [vmem:[#allocation28_spill] sm:$0xff]  ;;  %v15154_v35 = vld [vmem:[#allocation23_spill] sm:$0xff] }
 0x1fc   :  { %15129 = vst [vmem:[#allocation48_spill] sm:$0xff] %v11574_v18  ;;  %v11592_v18 = vadd.f32 %v11329_v6, %v11349_v25  ;;  %v11624_v6 = vadd.f32 %v11391_v3, %v11413_v14  ;;  %v11642_v25 = vadd.f32 %v11424_v13, %v11440_v47  ;;  %v11671_v3 = vld [vmem:[%s15024_s4] ss:$0 sm:$0xff]  ;;  %v11687_v14 = vadd.f32 %v11470_v62, %v11480_v30  ;;  %v15133_v13 = vld [vmem:[#allocation8_spill] sm:$0xff] }
 0x1fd   :  { %v11578_v48 = vpop.f32.mrf.mxu1  ;;  %v11718_v62 = vadd.f32 %v15144_v44, %v15143_v43  ;;  %v11722_v30 = vadd.f32 %v15146_v10, %v15145_v46  ;;  %v11740_v50 = vadd.f32 %v15154_v35, %v15153_v42  ;;  %v15156_v43 = vld [vmem:[#allocation30_spill] sm:$0xff]  ;;  %v15157_v44 = vld [vmem:[#allocation25_spill] sm:$0xff]  ;;  %v15159_v10 = vld [vmem:[#allocation32_spill] sm:$0xff] }
 0x1fe   :  { %15130 = vst [vmem:[#allocation49_spill] sm:$0xff] %v11578_v48  ;;  %v11596_v48 = vadd.f32 %v11335_v27, %v11363_v32  ;;  %v11632_v27 = vadd.f32 %v11409_v41, %v11427_v4  ;;  %v11650_v32 = vadd.f32 %v11438_v15, %v11448_v22  ;;  %v15134_v4 = vld [vmem:[#allocation5_spill] sm:$0xff]  ;;  %v15136_v15 = vld [vmem:[#allocation6_spill] sm:$0xff]  ;;  %v11703_v22 = vadd.f32 %v15138_v36, %v15137_v17  ;;  %v15166_v42 = vld [vmem:[#allocation31_spill] sm:$0xff] }
 0x1ff   :  { %v11580_v61 = vpop.f32.mrf.mxu1  ;;  %v11695_v16 = vadd.f32 %v15134_v4, %v15133_v13  ;;  %v11699_v47 = vadd.f32 %v15136_v15, %v15135_v12  ;;  %v15150_v13 = vld [vmem:[#allocation19_spill] sm:$0xff]  ;;  %v15151_v17 = vld [vmem:[#allocation26_spill] sm:$0xff]  ;;  %v15152_v36 = vld [vmem:[#allocation21_spill] sm:$0xff]  ;;  %15155 = vst [vmem:[#allocation4_spill] sm:$0xff] %v11740_v50  ;;  %v11744_v46 = vadd.f32 %v15157_v44, %v15156_v43 }
 0x200   :  { %15131 = vst [vmem:[#allocation50_spill] sm:$0xff] %v11580_v61  ;;  %v11598_v61 = vpop.f32.mrf.mxu0  ;;  %v11736_v8 = vadd.f32 %v15152_v36, %v15151_v17  ;;  %v15165_v36 = vld [vmem:[#allocation36_spill] sm:$0xff]  ;;  %v15168_v43 = vld [vmem:[#allocation38_spill] sm:$0xff]  ;;  %v15169_v44 = vld [vmem:[#allocation33_spill] sm:$0xff] }
 0x201   :  { %v11600_v57 = vpop.f32.mrf.mxu1  ;;  %15158 = vst [vmem:[#allocation8_spill] sm:$0xff] %v11744_v46  ;;  %v11759_v35 = vadd.f32 %v15166_v42, %v15165_v36  ;;  %v11763_v46 = vadd.f32 %v15169_v44, %v15168_v43  ;;  %v15175_v36 = vld [vmem:[#allocation41_spill] sm:$0xff]  ;;  %v15177_v43 = vld [vmem:[#allocation42_spill] sm:$0xff]  ;;  %v15178_v44 = vld [vmem:[#allocation40_spill] sm:$0xff] }
 0x202   :  { %v1807_v55 = vpop.f32.mrf.mxu0  ;;  %v15176_v42 = vld [vmem:[#allocation37_spill] sm:$0xff] }
 0x203   :  { %v11634_v0 = vpop.f32.mrf.mxu1  ;;  %15167 = vst [vmem:[#allocation6_spill] sm:$0xff] %v11759_v35  ;;  %15170 = vst [vmem:[#allocation12_spill] sm:$0xff] %v11763_v46  ;;  %v11776_v35 = vadd.f32 %v15176_v42, %v15175_v36  ;;  %v11780_v46 = vadd.f32 %v15178_v44, %v15177_v43  ;;  %v15187_v44 = vld [vmem:[#allocation46_spill] sm:$0xff] }
 0x205   :  { %v9672_v31 = vpop.f32.mrf.mxu1  ;;  %15179 = vst [vmem:[#allocation9_spill] sm:$0xff] %v11780_v46  ;;  %v15192_v46 = vld [vmem:[#allocation49_spill] sm:$0xff] }
 0x206   :  { %v2466_v41 = vadd.f32 %v9672_v31, %v1563_v38  ;;  %v15148_v38 = vld [vmem:[#allocation17_spill] sm:$0xff] }
 0x207   :  { %v2186_v60 = vpop.f32.mrf.mxu1  ;;  %v11726_v31 = vadd.f32 %v15148_v38, %v15147_v21  ;;  %v15160_v21 = vld [vmem:[#allocation27_spill] sm:$0xff] }
 0x208   :  { %v11710_v1 = vadd.f32 %v11671_v3, %v2466_v41  ;;  %v2465_v2 = vadd.f32 %v2186_v60, %v1558_v5  ;;  %v9662_v41 = vpop.f32.mrf.mxu0  ;;  %v15149_v5 = vld [vmem:[#allocation24_spill] sm:$0xff]  ;;  %v11748_v38 = vadd.f32 %v15160_v21, %v15159_v10  ;;  %v15171_v10 = vld [vmem:[#allocation39_spill] sm:$0xff] }
 0x209   :  { %v9675_v63 = vpop.f32.mrf.mxu1  ;;  %v11730_v4 = vadd.f32 %v15150_v13, %v15149_v5  ;;  %v15162_v5 = vld [vmem:[#allocation34_spill] sm:$0xff]  ;;  %v15172_v21 = vld [vmem:[#allocation35_spill] sm:$0xff] }
 0x20a   :  { %v2585_v12 = vmax.f32 %v11710_v1, 0.0  ;;  %v2528_v15 = vadd.f32 %v11671_v3, %v2465_v2  ;;  %v2468_v60 = vadd.f32 %v9675_v63, %v1573_v54  ;;  %15161 = vst [vmem:[#allocation5_spill] sm:$0xff] %v11748_v38  ;;  %v15163_v2 = vld [vmem:[#allocation29_spill] sm:$0xff]  ;;  %v11767_v38 = vadd.f32 %v15172_v21, %v15171_v10  ;;  %v1817_v50 = vpop.f32.mrf.mxu0  ;;  %v15180_v10 = vld [vmem:[#allocation43_spill] sm:$0xff] }
 0x20b   :  { %v2196_v1 = vpop.f32.mrf.mxu1  ;;  %v11752_v54 = vadd.f32 %v15163_v2, %v15162_v5  ;;  %v11784_v21 = vadd.f32 %v15180_v10, %v11560_v40  ;;  %v11802_v40 = vadd.f32 %v11576_v53, %v15187_v44  ;;  %v15189_v10 = vld [vmem:[#allocation47_spill] sm:$0xff]  ;;  %v11816_v53 = vadd.f32 %v9662_v41, %v15192_v46  ;;  %v15193_v44 = vld [vmem:[#allocation50_spill] sm:$0xff] }
 0x20c   :  { %v2584_v63 = vmax.f32 %v2528_v15, 0.0  ;;  %v11755_v13 = vadd.f32 %v11671_v3, %v2468_v60  ;;  %v2467_v17 = vadd.f32 %v2196_v1, %v1568_v9  ;;  %15173 = vst [vmem:[#allocation7_spill] sm:$0xff] %v11767_v38  ;;  %v2641_v5 = vrot.slane %v2585_v12, 1  ;;  %v15182_v38 = vld [vmem:[#allocation44_spill] sm:$0xff] }
 0x20d   :  { %15164 = vst [vmem:[#allocation10_spill] sm:$0xff] %v11752_v54  ;;  %v9678_v2 = vpop.f32.mrf.mxu1  ;;  %15181 = vst [vmem:[#allocation16_spill] sm:$0xff] %v11784_v21  ;;  %v11788_v54 = vadd.f32 %v11564_v59, %v15182_v38  ;;  %v11806_v59 = vadd.f32 %v11598_v61, %v15189_v10  ;;  %v9665_v38 = vpop.f32.mrf.mxu0 }
 0x20e   :  { %v11769_v15 = vrot.slane %v2584_v63, 1  ;;  %v2587_v60 = vmax.f32 %v11755_v13, 0.0  ;;  %v2530_v9 = vadd.f32 %v11671_v3, %v2467_v17  ;;  %v2470_v1 = vadd.f32 %v9678_v2, %v11592_v18  ;;  %v15184_v17 = vld [vmem:[#allocation45_spill] sm:$0xff]  ;;  %v15186_v2 = vld [vmem:[#allocation2_spill] sm:$0xff]  ;;  %15188 = vst [vmem:[#allocation13_spill] sm:$0xff] %v11802_v40 }
 0x20f   :  { %15183 = vst [vmem:[#allocation11_spill] sm:$0xff] %v11788_v54  ;;  %v2206_v13 = vpop.f32.mrf.mxu1  ;;  %v11792_v18 = vadd.f32 %v11570_v52, %v15184_v17  ;;  %v11819_v40 = vadd.f32 %v1817_v50, %v15193_v44  ;;  %v1827_v50 = vpop.f32.mrf.mxu0  ;;  %vm4012_vm6 = vcmp.lt.s32.totalorder %v15186_v2, 4 }
 0x210   :  { %15174 = vst [vmem:[#allocation14_spill] sm:$0xff] %v11769_v15  ;;  %v2750_v36 = vsel %vm749_vm3, %v11769_v15, %v2641_v5  ;;  %v2586_v42 = vmax.f32 %v2530_v9, 0.0  ;;  %v11798_v43 = vadd.f32 %v11671_v3, %v2470_v1  ;;  %v2469_v52 = vadd.f32 %v2206_v13, %v11596_v48 }
 0x211   :  { %15185 = vst [vmem:[#allocation18_spill] sm:$0xff] %v11792_v18  ;;  %v11808_v54 = vmax.f32 %v2584_v63, %v2750_v36  ;;  %v9681_v17 = vpop.f32.mrf.mxu1  ;;  %v15191_v18 = vld [vmem:[#allocation48_spill] sm:$0xff]  ;;  %v2643_v9 = vrot.slane %v2587_v60, 1  ;;  %v11826_v48 = vadd.f32 %v9665_v38, %v11600_v57  ;;  %v11841_v57 = vadd.f32 %v1827_v50, %v11634_v0 }
 0x212   :  { %v11812_v15 = vadd.f32 %v1807_v55, %v15191_v18  ;;  %v2642_v1 = vrot.slane %v2586_v42, 1  ;;  %v2472_v21 = vadd.f32 %v9681_v17, %v11604_v58  ;;  %v2589_v61 = vmax.f32 %v11798_v43, 0.0 }
 0x213   :  { %15190 = vst [vmem:[#allocation20_spill] sm:$0xff] %v11808_v54  ;;  %v2532_v63 = vadd.f32 %v11671_v3, %v2469_v52  ;;  %v2216_v36 = vpop.f32.mrf.mxu1  ;;  %9854 = vmatprep.mubr.msk.f32.mxu1 %vm2929_vm5, %v11808_v54 }
 0x214   :  { %v2748_v58 = vsel %vm749_vm3, %v2642_v1, %v2643_v9  ;;  %v2749_v55 = vsel %vm749_vm3, %v2641_v5, %v2642_v1  ;;  %v11833_v41 = vadd.f32 %v11671_v3, %v2472_v21  ;;  %v2471_v43 = vadd.f32 %v2216_v36, %v11608_v19 }
 0x215   :  { %v11835_v46 = vmax.f32 %v2585_v12, %v2749_v55  ;;  %v11837_v13 = vmax.f32 %v2586_v42, %v2748_v58  ;;  %v2588_v18 = vmax.f32 %v2532_v63, 0.0  ;;  %v9684_v10 = vpop.f32.mrf.mxu1  ;;  %v15041_v5 = vrot.slane %v11808_v54, 2 }
 0x216   :  { %v2591_v38 = vmax.f32 %v11833_v41, 0.0  ;;  %v2474_v52 = vadd.f32 %v9684_v10, %v11612_v20  ;;  %v2645_v17 = vrot.slane %v2589_v61, 1  ;;  %v2534_v42 = vadd.f32 %v11671_v3, %v2471_v43 }
 0x217   :  { %v2814_v21 = vrot.slane %v11837_v13, 2  ;;  %v2644_v12 = vrot.slane %v2588_v18, 1  ;;  %v2226_v1 = vpop.f32.mrf.mxu1  ;;  %9855 = vmatmul.mubr.msk.f32.vlgmr.msra.gmra.mxu1 %vm2929_vm5, %v11835_v46  ;;  %v2813_v20 = vrot.slane %v11835_v46, 2 }
 0x218   :  { %v11852_v0 = vadd.f32 %v11671_v3, %v2474_v52  ;;  %v2473_v44 = vadd.f32 %v2226_v1, %v11616_v34  ;;  %9857 = vmatprep.mubr.msk.f32.mxu1 %vm2929_vm5, %v11837_v13  ;;  %v2647_v58 = vrot.slane %v2591_v38, 1  ;;  %v2590_v55 = vmax.f32 %v2534_v42, 0.0 }
 0x219   :  { %v2746_v63 = vsel %vm749_vm3, %v2644_v12, %v2645_v17  ;;  %v2747_v36 = vsel %vm749_vm3, %v2643_v9, %v2644_v12  ;;  %v9687_v41 = vpop.f32.mrf.mxu1  ;;  %v2922_v19 = vsel %vm1892_vm4, %v15041_v5, %v2813_v20  ;;  %v2921_v12 = vsel %vm1892_vm4, %v2813_v20, %v2814_v21 }
 0x21a   :  { %v11862_v50 = vmax.f32 %v2587_v60, %v2747_v36  ;;  %v11864_v43 = vmax.f32 %v2588_v18, %v2746_v63  ;;  %v15042_v34 = vmax.f32 %v11852_v0, 0.0  ;;  %v2536_v10 = vadd.f32 %v11671_v3, %v2473_v44  ;;  %9762 = vmatprep.mubr.msk.f32.mxu0 %vm2929_vm5, %v2922_v19  ;;  %v8507_v44 = vld [vmem:[%s15023_s5 + $0x50] sm:$0xff] }
 0x21b   :  { %v2646_v52 = vrot.slane %v2590_v55, 1  ;;  %v2476_v1 = vadd.f32 %v9687_v41, %v11620_v51  ;;  %v2236_v9 = vpop.f32.mrf.mxu1  ;;  %9763 = vmatmul.mubr.msk.f32.vlgmr.msra.gmra.mxu0 %vm2929_vm5, %v2921_v12 }
 0x21c   :  { %v2649_v60 = vrot.slane %v15042_v34, 1  ;;  %v2592_v18 = vmax.f32 %v2536_v10, 0.0  ;;  %v2475_v42 = vadd.f32 %v2236_v9, %v11624_v6  ;;  %9858 = vmatmul.mubr.msk.f32.gmra.mxu1 %vm2929_vm5, %v11862_v50  ;;  %v2815_v51 = vrot.slane %v11862_v50, 2  ;;  %v15195_v34 = vld [vmem:[#allocation3_spill] sm:$0xff] }
 0x21d   :  { %v2744_v20 = vsel %vm749_vm3, %v2646_v52, %v2647_v58  ;;  %v2745_v63 = vsel %vm749_vm3, %v2645_v17, %v2646_v52  ;;  %v11890_v36 = vadd.f32 %v11671_v3, %v2476_v1  ;;  %9860 = vmatprep.mubr.msk.f32.mxu1 %vm2929_vm5, %v11864_v43  ;;  %v9690_v6 = vpop.f32.mrf.mxu1  ;;  %v2816_v19 = vrot.slane %v11864_v43, 2  ;;  %9939 = vmatpush3.msra.mxu0 %v15195_v34 }
 0x21e   :  { %v11896_v41 = vmax.f32 %v2589_v61, %v2745_v63  ;;  %v11898_v10 = vmax.f32 %v2590_v55, %v2744_v20  ;;  %v2648_v9 = vrot.slane %v2592_v18, 1  ;;  %v2538_v5 = vadd.f32 %v11671_v3, %v2475_v42  ;;  %9940 = vmatprep.subr.mxu0 %v8507_v44 }
 0x21f   :  { %v15045_v17 = vmax.f32 %v11890_v36, 0.0  ;;  %v2478_v52 = vadd.f32 %v9690_v6, %v11628_v7  ;;  %v2920_v1 = vsel %vm1892_vm4, %v2814_v21, %v2815_v51  ;;  %v2246_v12 = vpop.f32.mrf.mxu1  ;;  %v2919_v54 = vsel %vm1892_vm4, %v2815_v51, %v2816_v19  ;;  %v8506_v7 = vld [vmem:[%s15023_s5 + $0x48] sm:$0xff]  ;;  %9941 = vmatpush3.msra.mxu0 %v8507_v44  ;;  %v8505_v6 = vld [vmem:[%s15023_s5 + $0x40] sm:$0xff] }
 0x220   :  { %15194 = vst [vmem:[#allocation15_spill] sm:$0xff] %v11898_v10  ;;  %v2742_v61 = vsel %vm749_vm3, %v2648_v9, %v2649_v60  ;;  %v2743_v55 = vsel %vm749_vm3, %v2647_v58, %v2648_v9  ;;  %v2594_v42 = vmax.f32 %v2538_v5, 0.0  ;;  %9765 = vmatprep.mubr.msk.f32.mxu0 %vm2929_vm5, %v2920_v1  ;;  %v2477_v34 = vadd.f32 %v2246_v12, %v11632_v27 }
 0x221   :  { %9861 = vmatmul.mubr.msk.f32.gmra.mxu1 %vm2929_vm5, %v11896_v41  ;;  %v11919_v21 = vmax.f32 %v2591_v38, %v2743_v55  ;;  %v11921_v51 = vmax.f32 %v2592_v18, %v2742_v61  ;;  %v2651_v20 = vrot.slane %v15045_v17, 1  ;;  %v11926_v5 = vadd.f32 %v11671_v3, %v2478_v52  ;;  %9766 = vmatmul.mubr.msk.f32.gmra.mxu0 %vm2929_vm5, %v2919_v54  ;;  %v9693_v27 = vpop.f32.mrf.mxu1 }
 0x222   :  { %9863 = vmatprep.mubr.msk.f32.mxu1 %vm2929_vm5, %v11898_v10  ;;  %v2650_v58 = vrot.slane %v2594_v42, 1  ;;  %v2540_v63 = vadd.f32 %v11671_v3, %v2477_v34  ;;  %v2480_v38 = vadd.f32 %v9693_v27, %v11638_v24  ;;  %v2817_v18 = vrot.slane %v11896_v41, 2  ;;  %9942 = vmatprep.subr.mxu0 %v8506_v7 }
 0x223   :  { %v2597_v9 = vmax.f32 %v11926_v5, 0.0  ;;  %v2256_v52 = vpop.f32.mrf.mxu1  ;;  %v2818_v54 = vrot.slane %v11898_v10, 2  ;;  %v2819_v1 = vrot.slane %v11919_v21, 2  ;;  %v2820_v12 = vrot.slane %v11921_v51, 2  ;;  %9943 = vmatpush3.msra.mxu0 %v8506_v7 }
 0x224   :  { %v2740_v24 = vsel %vm749_vm3, %v2650_v58, %v2651_v20  ;;  %v2741_v44 = vsel %vm749_vm3, %v2649_v60, %v2650_v58  ;;  %v2596_v61 = vmax.f32 %v2540_v63, 0.0  ;;  %v11946_v55 = vadd.f32 %v11671_v3, %v2480_v38  ;;  %9944 = vmatprep.subr.mxu0 %v8505_v6 }
 0x225   :  { %9864 = vmatmul.mubr.msk.f32.gmra.mxu1 %vm2929_vm5, %v11919_v21  ;;  %v15196_v34 = vmax.f32 %v11852_v0, 0.0  ;;  %v11954_v17 = vmax.f32 %v2594_v42, %v2740_v24  ;;  %v2653_v10 = vrot.slane %v2597_v9, 1  ;;  %v2918_v60 = vsel %vm1892_vm4, %v2816_v19, %v2817_v18  ;;  %v9696_v58 = vpop.f32.mrf.mxu1  ;;  %9945 = vmatpush3.msra.mxu0 %v8505_v6 }
 0x226   :  { %9866 = vmatprep.mubr.msk.f32.mxu1 %vm2929_vm5, %v11921_v51  ;;  %v2652_v63 = vrot.slane %v2596_v61, 1  ;;  %v15047_v7 = vmax.f32 %v11946_v55, 0.0  ;;  %9768 = vmatprep.mubr.msk.f32.mxu0 %vm2929_vm5, %v2918_v60  ;;  %v2479_v0 = vadd.f32 %v2256_v52, %v11642_v25  ;;  %v2917_v42 = vsel %vm1892_vm4, %v2817_v18, %v2818_v54 }
 0x227   :  { %v11952_v27 = vmax.f32 %v15196_v34, %v2741_v44  ;;  %9769 = vmatmul.mubr.msk.f32.gmra.mxu0 %vm2929_vm5, %v2917_v42  ;;  %v2482_v19 = vadd.f32 %v9696_v58, %v11646_v45  ;;  %v2916_v38 = vsel %vm1892_vm4, %v2818_v54, %v2819_v1  ;;  %v2266_v24 = vpop.f32.mrf.mxu1  ;;  %v2915_v44 = vsel %vm1892_vm4, %v2819_v1, %v2820_v12 }
 0x228   :  { %v2738_v25 = vsel %vm749_vm3, %v2652_v63, %v2653_v10  ;;  %v2739_v18 = vsel %vm749_vm3, %v2651_v20, %v2652_v63  ;;  %v2655_v6 = vrot.slane %v15047_v7, 1  ;;  %v2542_v45 = vadd.f32 %v11671_v3, %v2479_v0  ;;  %9771 = vmatprep.mubr.msk.f32.mxu0 %vm2929_vm5, %v2916_v38 }
 0x229   :  { %v2821_v34 = vrot.slane %v11952_v27, 2  ;;  %9867 = vmatmul.mubr.msk.f32.gmra.mxu1 %vm2929_vm5, %v11952_v27  ;;  %v15197_v52 = vmax.f32 %v11890_v36, 0.0  ;;  %v11988_v1 = vmax.f32 %v2596_v61, %v2738_v25  ;;  %v11991_v60 = vadd.f32 %v11671_v3, %v2482_v19  ;;  %v9699_v58 = vpop.f32.mrf.mxu1 }
 0x22a   :  { %v2481_v20 = vadd.f32 %v2266_v24, %v11650_v32  ;;  %9869 = vmatprep.mubr.msk.f32.mxu1 %vm2929_vm5, %v11954_v17  ;;  %v2598_v63 = vmax.f32 %v2542_v45, 0.0  ;;  %v2484_v0 = vadd.f32 %v9699_v58, %v11654_v33  ;;  %v2822_v36 = vrot.slane %v11954_v17, 2 }
 0x22b   :  { %v11986_v54 = vmax.f32 %v15197_v52, %v2739_v18  ;;  %15198 = vst [vmem:[#allocation22_spill] sm:$0xff] %v11988_v1  ;;  %v2914_v42 = vsel %vm1892_vm4, %v2820_v12, %v2821_v34  ;;  %v2601_v61 = vmax.f32 %v11991_v60, 0.0  ;;  %9772 = vmatmul.mubr.msk.f32.gmra.mxu0 %vm2929_vm5, %v2915_v44  ;;  %v2276_v19 = vpop.f32.mrf.mxu1  ;;  %v2824_v24 = vrot.slane %v11988_v1, 2 }
 0x22c   :  { %v2544_v38 = vadd.f32 %v11671_v3, %v2481_v20  ;;  %v2654_v25 = vrot.slane %v2598_v63, 1  ;;  %v12006_v18 = vadd.f32 %v11671_v3, %v2484_v0  ;;  %9774 = vmatprep.mubr.msk.f32.mxu0 %vm2929_vm5, %v2914_v42  ;;  %v2483_v33 = vadd.f32 %v2276_v19, %v11658_v56 }
 0x22d   :  { %v2823_v32 = vrot.slane %v11986_v54, 2  ;;  %v2913_v12 = vsel %vm1892_vm4, %v2821_v34, %v2822_v36  ;;  %9870 = vmatmul.mubr.msk.f32.gmra.mxu1 %vm2929_vm5, %v11986_v54  ;;  %v2657_v44 = vrot.slane %v2601_v61, 1  ;;  %v9702_v52 = vpop.f32.mrf.mxu1 }
 0x22e   :  { %v2600_v45 = vmax.f32 %v2544_v38, 0.0  ;;  %9872 = vmatprep.mubr.msk.f32.mxu1 %vm2929_vm5, %v11988_v1  ;;  %v2736_v56 = vsel %vm749_vm3, %v2654_v25, %v2655_v6  ;;  %v2737_v34 = vsel %vm749_vm3, %v2653_v10, %v2654_v25  ;;  %v2603_v58 = vmax.f32 %v12006_v18, 0.0 }
 0x22f   :  { %v2912_v60 = vsel %vm1892_vm4, %v2822_v36, %v2823_v32  ;;  %v2546_v0 = vadd.f32 %v11671_v3, %v2483_v33  ;;  %v12027_v42 = vmax.f32 %v2597_v9, %v2737_v34  ;;  %v12029_v38 = vmax.f32 %v2598_v63, %v2736_v56  ;;  %9775 = vmatmul.mubr.msk.f32.gmra.mxu0 %vm2929_vm5, %v2913_v12  ;;  %v2286_v20 = vpop.f32.mrf.mxu1 }
 0x230   :  { %v2656_v19 = vrot.slane %v2600_v45, 1  ;;  %v2486_v36 = vadd.f32 %v9702_v52, %v11662_v28  ;;  %v2659_v7 = vrot.slane %v2603_v58, 1  ;;  %9777 = vmatprep.mubr.msk.f32.mxu0 %vm2929_vm5, %v2912_v60  ;;  %v2485_v10 = vadd.f32 %v2286_v20, %v11666_v29 }
 0x231   :  { %v2602_v1 = vmax.f32 %v2546_v0, 0.0  ;;  %v2911_v25 = vsel %vm1892_vm4, %v2823_v32, %v2824_v24  ;;  %9873 = vmatmul.mubr.msk.f32.gmra.mxu1 %vm2929_vm5, %v12027_v42  ;;  %v9705_v28 = vpop.f32.mrf.mxu1  ;;  %v2825_v18 = vrot.slane %v12027_v42, 2  ;;  %v15199_v29 = vmax.f32 %v11946_v55, 0.0 }
 0x232   :  { %v2734_v5 = vsel %vm749_vm3, %v2656_v19, %v2657_v44  ;;  %v2735_v9 = vsel %vm749_vm3, %v2655_v6, %v2656_v19  ;;  %v12042_v63 = vadd.f32 %v11671_v3, %v2486_v36  ;;  %v2548_v52 = vadd.f32 %v11671_v3, %v2485_v10  ;;  %9875 = vmatprep.mubr.msk.f32.mxu1 %vm2929_vm5, %v12029_v38 }
 0x233   :  { %v12049_v33 = vmax.f32 %v15199_v29, %v2735_v9  ;;  %v12051_v32 = vmax.f32 %v2600_v45, %v2734_v5  ;;  %v2658_v12 = vrot.slane %v2602_v1, 1  ;;  %9778 = vmatmul.mubr.msk.f32.gmra.mxu0 %vm2929_vm5, %v2911_v25  ;;  %v2488_v60 = vadd.f32 %v9705_v28, %v11675_v39  ;;  %v2296_v55 = vpop.f32.mrf.mxu1 }
 0x234   :  { %v2605_v6 = vmax.f32 %v12042_v63, 0.0  ;;  %v2910_v20 = vsel %vm1892_vm4, %v2824_v24, %v2825_v18  ;;  %v2826_v56 = vrot.slane %v12029_v38, 2  ;;  %v2604_v0 = vmax.f32 %v2548_v52, 0.0 }
 0x235   :  { %15200 = vst [vmem:[#allocation17_spill] sm:$0xff] %v12049_v33  ;;  %15201 = vst [vmem:[#allocation24_spill] sm:$0xff] %v12051_v32  ;;  %v2732_v45 = vsel %vm749_vm3, %v2658_v12, %v2659_v7  ;;  %v2733_v34 = vsel %vm749_vm3, %v2657_v44, %v2658_v12  ;;  %9780 = vmatprep.mubr.msk.f32.mxu0 %vm2929_vm5, %v2910_v20  ;;  %v2487_v19 = vadd.f32 %v2296_v55, %v11679_v23  ;;  %v9708_v25 = vpop.f32.mrf.mxu1 }
 0x236   :  { %v12068_v36 = vmax.f32 %v2601_v61, %v2733_v34  ;;  %v12070_v39 = vmax.f32 %v2602_v1, %v2732_v45  ;;  %v2661_v10 = vrot.slane %v2605_v6, 1  ;;  %v12073_v24 = vadd.f32 %v11671_v3, %v2488_v60  ;;  %9876 = vmatmul.mubr.msk.f32.gmra.mxu1 %vm2929_vm5, %v12049_v33 }
 0x237   :  { %v2660_v5 = vrot.slane %v2604_v0, 1  ;;  %v2550_v44 = vadd.f32 %v11671_v3, %v2487_v19  ;;  %v2909_v9 = vsel %vm1892_vm4, %v2825_v18, %v2826_v56  ;;  %9878 = vmatprep.mubr.msk.f32.mxu1 %vm2929_vm5, %v12051_v32  ;;  %v2490_v23 = vadd.f32 %v9708_v25, %v11683_v11  ;;  %v2306_v63 = vpop.f32.mrf.mxu1 }
 0x238   :  { %15202 = vst [vmem:[#allocation19_spill] sm:$0xff] %v12068_v36  ;;  %15203 = vst [vmem:[#allocation26_spill] sm:$0xff] %v12070_v39  ;;  %v2607_v1 = vmax.f32 %v12073_v24, 0.0  ;;  %9781 = vmatmul.mubr.msk.f32.gmra.mxu0 %vm2929_vm5, %v2909_v9  ;;  %v2827_v61 = vrot.slane %v12049_v33, 2  ;;  %v2828_v28 = vrot.slane %v12051_v32, 2  ;;  %v2829_v29 = vrot.slane %v12068_v36, 2 }
 0x239   :  { %v2730_v12 = vsel %vm749_vm3, %v2660_v5, %v2661_v10  ;;  %v2731_v18 = vsel %vm749_vm3, %v2659_v7, %v2660_v5  ;;  %v2606_v52 = vmax.f32 %v2550_v44, 0.0  ;;  %v12093_v11 = vadd.f32 %v11671_v3, %v2490_v23  ;;  %v9711_v34 = vpop.f32.mrf.mxu1 }
 0x23a   :  { %v12095_v60 = vmax.f32 %v2603_v58, %v2731_v18  ;;  %v12097_v20 = vmax.f32 %v2604_v0, %v2730_v12  ;;  %v2663_v55 = vrot.slane %v2607_v1, 1  ;;  %v2908_v45 = vsel %vm1892_vm4, %v2826_v56, %v2827_v61  ;;  %9879 = vmatmul.mubr.msk.f32.gmra.mxu1 %vm2929_vm5, %v12068_v36 }
 0x23b   :  { %v2662_v19 = vrot.slane %v2606_v52, 1  ;;  %v2609_v7 = vmax.f32 %v12093_v11, 0.0  ;;  %9783 = vmatprep.mubr.msk.f32.mxu0 %vm2929_vm5, %v2908_v45  ;;  %v2489_v58 = vadd.f32 %v2306_v63, %v11687_v14  ;;  %v2907_v0 = vsel %vm1892_vm4, %v2827_v61, %v2828_v28  ;;  %9881 = vmatprep.mubr.msk.f32.mxu1 %vm2929_vm5, %v12070_v39  ;;  %v2316_v5 = vpop.f32.mrf.mxu1 }
 0x23c   :  { %15204 = vst [vmem:[#allocation21_spill] sm:$0xff] %v12095_v60  ;;  %15205 = vst [vmem:[#allocation28_spill] sm:$0xff] %v12097_v20  ;;  %9784 = vmatmul.mubr.msk.f32.gmra.mxu0 %vm2929_vm5, %v2907_v0  ;;  %v2492_v56 = vadd.f32 %v9711_v34, %v11691_v37  ;;  %v2906_v25 = vsel %vm1892_vm4, %v2828_v28, %v2829_v29  ;;  %v2830_v44 = vrot.slane %v12070_v39, 2  ;;  %v2831_v9 = vrot.slane %v12095_v60, 2 }
 0x23d   :  { %v2728_v14 = vsel %vm749_vm3, %v2662_v19, %v2663_v55  ;;  %v2729_v23 = vsel %vm749_vm3, %v2661_v10, %v2662_v19  ;;  %v2665_v61 = vrot.slane %v2609_v7, 1  ;;  %v2552_v63 = vadd.f32 %v11671_v3, %v2489_v58  ;;  %9786 = vmatprep.mubr.msk.f32.mxu0 %vm2929_vm5, %v2906_v25  ;;  %v9714_v10 = vpop.f32.mrf.mxu1 }
 0x23e   :  { %v12126_v37 = vmax.f32 %v2605_v6, %v2729_v23  ;;  %v12128_v28 = vmax.f32 %v2606_v52, %v2728_v14  ;;  %v12131_v12 = vadd.f32 %v11671_v3, %v2492_v56  ;;  %v2491_v18 = vadd.f32 %v2316_v5, %v11695_v16  ;;  %9882 = vmatmul.mubr.msk.f32.gmra.mxu1 %vm2929_vm5, %v12095_v60 }
 0x23f   :  { %v2608_v45 = vmax.f32 %v2552_v63, 0.0  ;;  %v2905_v34 = vsel %vm1892_vm4, %v2829_v29, %v2830_v44  ;;  %9884 = vmatprep.mubr.msk.f32.mxu1 %vm2929_vm5, %v12097_v20  ;;  %v2494_v6 = vadd.f32 %v9714_v10, %v11699_v47  ;;  %v2904_v52 = vsel %vm1892_vm4, %v2830_v44, %v2831_v9  ;;  %v2326_v58 = vpop.f32.mrf.mxu1 }
 0x240   :  { %15206 = vst [vmem:[#allocation23_spill] sm:$0xff] %v12126_v37  ;;  %15207 = vst [vmem:[#allocation30_spill] sm:$0xff] %v12128_v28  ;;  %v2611_v19 = vmax.f32 %v12131_v12, 0.0  ;;  %v2554_v16 = vadd.f32 %v11671_v3, %v2491_v18  ;;  %9787 = vmatmul.mubr.msk.f32.gmra.mxu0 %vm2929_vm5, %v2905_v34  ;;  %v2832_v0 = vrot.slane %v12097_v20, 2  ;;  %v2833_v56 = vrot.slane %v12126_v37, 2 }
 0x241   :  { %v2664_v29 = vrot.slane %v2608_v45, 1  ;;  %v12149_v25 = vadd.f32 %v11671_v3, %v2494_v6  ;;  %9789 = vmatprep.mubr.msk.f32.mxu0 %vm2929_vm5, %v2904_v52  ;;  %v2493_v47 = vadd.f32 %v2326_v58, %v11703_v22  ;;  %v2834_v5 = vrot.slane %v12128_v28, 2  ;;  %v9717_v63 = vpop.f32.mrf.mxu1 }
 0x242   :  { %v2667_v44 = vrot.slane %v2611_v19, 1  ;;  %v2610_v14 = vmax.f32 %v2554_v16, 0.0  ;;  %v2903_v23 = vsel %vm1892_vm4, %v2831_v9, %v2832_v0  ;;  %9885 = vmatmul.mubr.msk.f32.gmra.mxu1 %vm2929_vm5, %v12126_v37  ;;  %v2902_v12 = vsel %vm1892_vm4, %v2832_v0, %v2833_v56 }
 0x243   :  { %v2726_v18 = vsel %vm749_vm3, %v2664_v29, %v2665_v61  ;;  %v2727_v22 = vsel %vm749_vm3, %v2663_v55, %v2664_v29  ;;  %v2613_v10 = vmax.f32 %v12149_v25, 0.0  ;;  %v2556_v34 = vadd.f32 %v11671_v3, %v2493_v47  ;;  %9887 = vmatprep.mubr.msk.f32.mxu1 %vm2929_vm5, %v12128_v28  ;;  %v2336_v58 = vpop.f32.mrf.mxu1 }
 0x244   :  { %v12170_v9 = vmax.f32 %v2607_v1, %v2727_v22  ;;  %v12172_v6 = vmax.f32 %v2608_v45, %v2726_v18  ;;  %v2666_v52 = vrot.slane %v2610_v14, 1  ;;  %9790 = vmatmul.mubr.msk.f32.gmra.mxu0 %vm2929_vm5, %v2903_v23  ;;  %v2496_v16 = vadd.f32 %v9717_v63, %v11707_v49 }
 0x245   :  { %v2669_v55 = vrot.slane %v2613_v10, 1  ;;  %v2612_v0 = vmax.f32 %v2556_v34, 0.0  ;;  %9792 = vmatprep.mubr.msk.f32.mxu0 %vm2929_vm5, %v2902_v12  ;;  %v2495_v29 = vadd.f32 %v2336_v58, %v11714_v26  ;;  %v2901_v25 = vsel %vm1892_vm4, %v2833_v56, %v2834_v5  ;;  %v9720_v49 = vpop.f32.mrf.mxu1 }
 0x246   :  { %15208 = vst [vmem:[#allocation25_spill] sm:$0xff] %v12170_v9  ;;  %15209 = vst [vmem:[#allocation32_spill] sm:$0xff] %v12172_v6  ;;  %v2724_v24 = vsel %vm749_vm3, %v2666_v52, %v2667_v44  ;;  %v2725_v1 = vsel %vm749_vm3, %v2665_v61, %v2666_v52  ;;  %v12185_v45 = vadd.f32 %v11671_v3, %v2496_v16  ;;  %9888 = vmatmul.mubr.msk.f32.gmra.mxu1 %vm2929_vm5, %v12170_v9 }
 0x247   :  { %v2835_v47 = vrot.slane %v12170_v9, 2  ;;  %v12192_v26 = vmax.f32 %v2609_v7, %v2725_v1  ;;  %v12194_v56 = vmax.f32 %v2610_v14, %v2724_v24  ;;  %v2668_v23 = vrot.slane %v2612_v0, 1  ;;  %9890 = vmatprep.mubr.msk.f32.mxu1 %vm2929_vm5, %v12172_v6  ;;  %v2346_v11 = vpop.f32.mrf.mxu1 }
 0x248   :  { %v2558_v63 = vadd.f32 %v11671_v3, %v2495_v29  ;;  %v2615_v61 = vmax.f32 %v12185_v45, 0.0  ;;  %9793 = vmatmul.mubr.msk.f32.gmra.mxu0 %vm2929_vm5, %v2901_v25  ;;  %v2498_v12 = vadd.f32 %v9720_v49, %v11718_v62  ;;  %v2836_v7 = vrot.slane %v12172_v6, 2 }
 0x249   :  { %v2900_v18 = vsel %vm1892_vm4, %v2834_v5, %v2835_v47  ;;  %v2722_v14 = vsel %vm749_vm3, %v2668_v23, %v2669_v55  ;;  %v2723_v22 = vsel %vm749_vm3, %v2667_v44, %v2668_v23  ;;  %v2497_v52 = vadd.f32 %v2346_v11, %v11722_v30  ;;  %v9723_v29 = vpop.f32.mrf.mxu1 }
 0x24a   :  { %v2614_v34 = vmax.f32 %v2558_v63, 0.0  ;;  %9795 = vmatprep.mubr.msk.f32.mxu0 %vm2929_vm5, %v2900_v18  ;;  %v12211_v16 = vmax.f32 %v2611_v19, %v2723_v22  ;;  %v12213_v62 = vmax.f32 %v2612_v0, %v2722_v14  ;;  %v2671_v58 = vrot.slane %v2615_v61, 1  ;;  %9891 = vmatmul.mubr.msk.f32.gmra.mxu1 %vm2929_vm5, %v12192_v26 }
 0x24b   :  { %v12216_v5 = vadd.f32 %v11671_v3, %v2498_v12  ;;  %v2560_v44 = vadd.f32 %v11671_v3, %v2497_v52  ;;  %v2899_v24 = vsel %vm1892_vm4, %v2835_v47, %v2836_v7  ;;  %9893 = vmatprep.mubr.msk.f32.mxu1 %vm2929_vm5, %v12194_v56  ;;  %v2500_v30 = vadd.f32 %v9723_v29, %v11726_v31  ;;  %v2356_v1 = vpop.f32.mrf.mxu1 }
 0x24c   :  { %v2670_v25 = vrot.slane %v2614_v34, 1  ;;  %9796 = vmatmul.mubr.msk.f32.gmra.mxu0 %vm2929_vm5, %v2899_v24  ;;  %v2837_v0 = vrot.slane %v12192_v26, 2  ;;  %v2838_v45 = vrot.slane %v12194_v56, 2  ;;  %v2839_v49 = vrot.slane %v12211_v16, 2 }
 0x24d   :  { %v2617_v19 = vmax.f32 %v12216_v5, 0.0  ;;  %v2616_v63 = vmax.f32 %v2560_v44, 0.0  ;;  %v12236_v31 = vadd.f32 %v11671_v3, %v2500_v30  ;;  %v9726_v22 = vpop.f32.mrf.mxu1  ;;  %v2840_v44 = vrot.slane %v12213_v62, 2 }
 0x24e   :  { %v2720_v23 = vsel %vm749_vm3, %v2670_v25, %v2671_v58  ;;  %v2721_v47 = vsel %vm749_vm3, %v2669_v55, %v2670_v25  ;;  %v2898_v14 = vsel %vm1892_vm4, %v2836_v7, %v2837_v0  ;;  %9894 = vmatmul.mubr.msk.f32.gmra.mxu1 %vm2929_vm5, %v12211_v16  ;;  %v2502_v7 = vadd.f32 %v9726_v22, %v11736_v8 }
 0x24f   :  { %v12238_v12 = vmax.f32 %v2613_v10, %v2721_v47  ;;  %v12240_v18 = vmax.f32 %v2614_v34, %v2720_v23  ;;  %v2673_v11 = vrot.slane %v2617_v19, 1  ;;  %v2672_v52 = vrot.slane %v2616_v63, 1  ;;  %9798 = vmatprep.mubr.msk.f32.mxu0 %vm2929_vm5, %v2898_v14  ;;  %9896 = vmatprep.mubr.msk.f32.mxu1 %vm2929_vm5, %v12213_v62  ;;  %v2366_v25 = vpop.f32.mrf.mxu1  ;;  %v15210_v47 = vld [vmem:[#allocation4_spill] sm:$0xff] }
 0x250   :  { %v15049_v55 = vmax.f32 %v12236_v31, 0.0  ;;  %v2499_v10 = vadd.f32 %v2356_v1, %v11730_v4  ;;  %v2897_v34 = vsel %vm1892_vm4, %v2837_v0, %v2838_v45  ;;  %v2896_v29 = vsel %vm1892_vm4, %v2838_v45, %v2839_v49 }
 0x251   :  { %9799 = vmatmul.mubr.msk.f32.gmra.mxu0 %vm2929_vm5, %v2897_v34  ;;  %v2841_v24 = vrot.slane %v12238_v12, 2  ;;  %v2718_v4 = vsel %vm749_vm3, %v2672_v52, %v2673_v11  ;;  %v2719_v30 = vsel %vm749_vm3, %v2671_v58, %v2672_v52  ;;  %v12274_v23 = vadd.f32 %v11671_v3, %v2502_v7  ;;  %v9729_v58 = vpop.f32.mrf.mxu1 }
 0x252   :  { %v2675_v0 = vrot.slane %v15049_v55, 1  ;;  %v2562_v1 = vadd.f32 %v11671_v3, %v2499_v10  ;;  %9801 = vmatprep.mubr.msk.f32.mxu0 %vm2929_vm5, %v2896_v29  ;;  %v12269_v8 = vmax.f32 %v2615_v61, %v2719_v30  ;;  %v12271_v45 = vmax.f32 %v2616_v63, %v2718_v4  ;;  %9897 = vmatmul.mubr.msk.f32.gmra.mxu1 %vm2929_vm5, %v12238_v12  ;;  %v15211_v61 = vld [vmem:[#allocation8_spill] sm:$0xff]  ;;  %v15213_v55 = vld [vmem:[#allocation10_spill] sm:$0xff] }
 0x253   :  { %v2501_v14 = vadd.f32 %v2366_v25, %v15210_v47  ;;  %v2895_v52 = vsel %vm1892_vm4, %v2839_v49, %v2840_v44  ;;  %9899 = vmatprep.mubr.msk.f32.mxu1 %vm2929_vm5, %v12240_v18  ;;  %v2504_v10 = vadd.f32 %v9729_v58, %v15211_v61  ;;  %v2894_v63 = vsel %vm1892_vm4, %v2840_v44, %v2841_v24  ;;  %v2376_v29 = vpop.f32.mrf.mxu1 }
 0x254   :  { %v2618_v22 = vmax.f32 %v2562_v1, 0.0  ;;  %v2621_v34 = vmax.f32 %v12274_v23, 0.0  ;;  %v2842_v25 = vrot.slane %v12240_v18, 2  ;;  %v2843_v4 = vrot.slane %v12269_v8, 2  ;;  %v15212_v1 = vld [vmem:[#allocation5_spill] sm:$0xff] }
 0x255   :  { %v2564_v7 = vadd.f32 %v11671_v3, %v2501_v14  ;;  %9802 = vmatmul.mubr.msk.f32.gmra.mxu0 %vm2929_vm5, %v2895_v52  ;;  %v12292_v30 = vadd.f32 %v11671_v3, %v2504_v10  ;;  %v2503_v47 = vadd.f32 %v2376_v29, %v15212_v1  ;;  %v2844_v44 = vrot.slane %v12271_v45, 2  ;;  %v9732_v52 = vpop.f32.mrf.mxu1 }
 0x256   :  { %v2674_v49 = vrot.slane %v2618_v22, 1  ;;  %9804 = vmatprep.mubr.msk.f32.mxu0 %vm2929_vm5, %v2894_v63  ;;  %v2677_v23 = vrot.slane %v2621_v34, 1  ;;  %v2893_v14 = vsel %vm1892_vm4, %v2841_v24, %v2842_v25  ;;  %9900 = vmatmul.mubr.msk.f32.gmra.mxu1 %vm2929_vm5, %v12269_v8  ;;  %v2892_v61 = vsel %vm1892_vm4, %v2842_v25, %v2843_v4 }
 0x257   :  { %v2620_v58 = vmax.f32 %v2564_v7, 0.0  ;;  %v2623_v29 = vmax.f32 %v12292_v30, 0.0  ;;  %v2566_v7 = vadd.f32 %v11671_v3, %v2503_v47  ;;  %9902 = vmatprep.mubr.msk.f32.mxu1 %vm2929_vm5, %v12271_v45  ;;  %v2506_v6 = vadd.f32 %v9732_v52, %v15213_v55  ;;  %v2386_v9 = vpop.f32.mrf.mxu1  ;;  %v15214_v30 = vld [vmem:[#allocation6_spill] sm:$0xff] }
 0x258   :  { %v2716_v10 = vsel %vm749_vm3, %v2674_v49, %v2675_v0  ;;  %v2717_v63 = vsel %vm749_vm3, %v2673_v11, %v2674_v49  ;;  %v2505_v47 = vadd.f32 %v2386_v9, %v15214_v30  ;;  %v2891_v28 = vsel %vm1892_vm4, %v2843_v4, %v2844_v44 }
 0x259   :  { %v12313_v24 = vmax.f32 %v2617_v19, %v2717_v63  ;;  %v12315_v1 = vmax.f32 %v2618_v22, %v2716_v10  ;;  %v2676_v25 = vrot.slane %v2620_v58, 1  ;;  %9805 = vmatmul.mubr.msk.f32.gmra.mxu0 %vm2929_vm5, %v2893_v14  ;;  %v2679_v11 = vrot.slane %v2623_v29, 1  ;;  %v9735_v55 = vpop.f32.mrf.mxu1 }
 0x25a   :  { %v2622_v49 = vmax.f32 %v2566_v7, 0.0  ;;  %9807 = vmatprep.mubr.msk.f32.mxu0 %vm2929_vm5, %v2892_v61  ;;  %v12328_v22 = vadd.f32 %v11671_v3, %v2506_v6  ;;  %v15215_v9 = vmax.f32 %v12236_v31, 0.0  ;;  %v2568_v10 = vadd.f32 %v11671_v3, %v2505_v47 }
 0x25b   :  { %v2714_v5 = vsel %vm749_vm3, %v2676_v25, %v2677_v23  ;;  %v2715_v19 = vsel %vm749_vm3, %v2675_v0, %v2676_v25  ;;  %9903 = vmatmul.mubr.msk.f32.gmra.mxu1 %vm2929_vm5, %v12313_v24  ;;  %v2845_v14 = vrot.slane %v12313_v24, 2  ;;  %v15216_v0 = vld [vmem:[#allocation12_spill] sm:$0xff]  ;;  %v2396_v31 = vpop.f32.mrf.mxu1  ;;  %v2846_v25 = vrot.slane %v12315_v1, 2 }
 0x25c   :  { %v12335_v52 = vmax.f32 %v15215_v9, %v2715_v19  ;;  %v12337_v4 = vmax.f32 %v2620_v58, %v2714_v5  ;;  %v2678_v61 = vrot.slane %v2622_v49, 1  ;;  %9905 = vmatprep.mubr.msk.f32.mxu1 %vm2929_vm5, %v12315_v1  ;;  %v2625_v6 = vmax.f32 %v12328_v22, 0.0  ;;  %v15217_v5 = vld [vmem:[#allocation7_spill] sm:$0xff] }
 0x25d   :  { %9808 = vmatmul.mubr.msk.f32.gmra.mxu0 %vm2929_vm5, %v2891_v28  ;;  %v2508_v63 = vadd.f32 %v9735_v55, %v15216_v0  ;;  %v2890_v7 = vsel %vm1892_vm4, %v2844_v44, %v2845_v14  ;;  %v2624_v47 = vmax.f32 %v2568_v10, 0.0  ;;  %v2507_v19 = vadd.f32 %v2396_v31, %v15217_v5  ;;  %v9738_v9 = vpop.f32.mrf.mxu1 }
 0x25e   :  { %v2712_v58 = vsel %vm749_vm3, %v2678_v61, %v2679_v11  ;;  %v2713_v30 = vsel %vm749_vm3, %v2677_v23, %v2678_v61  ;;  %9810 = vmatprep.mubr.msk.f32.mxu0 %vm2929_vm5, %v2890_v7  ;;  %v2681_v55 = vrot.slane %v2625_v6, 1  ;;  %v2889_v61 = vsel %vm1892_vm4, %v2845_v14, %v2846_v25 }
 0x25f   :  { %v12354_v28 = vmax.f32 %v2621_v34, %v2713_v30  ;;  %v12356_v22 = vmax.f32 %v2622_v49, %v2712_v58  ;;  %v12359_v44 = vadd.f32 %v11671_v3, %v2508_v63  ;;  %9906 = vmatmul.mubr.msk.f32.gmra.mxu1 %vm2929_vm5, %v12335_v52  ;;  %v2680_v0 = vrot.slane %v2624_v47, 1  ;;  %v2406_v63 = vpop.f32.mrf.mxu1 }
 0x260   :  { %v2570_v23 = vadd.f32 %v11671_v3, %v2507_v19  ;;  %9908 = vmatprep.mubr.msk.f32.mxu1 %vm2929_vm5, %v12337_v4  ;;  %v2510_v34 = vadd.f32 %v9738_v9, %v11776_v35  ;;  %v2847_v10 = vrot.slane %v12335_v52, 2  ;;  %v2848_v7 = vrot.slane %v12337_v4, 2 }
 0x261   :  { %v15056_v49 = vmax.f32 %v12359_v44, 0.0  ;;  %9811 = vmatmul.mubr.msk.f32.gmra.mxu0 %vm2929_vm5, %v2889_v61  ;;  %v2849_v31 = vrot.slane %v12354_v28, 2  ;;  %v2710_v58 = vsel %vm749_vm3, %v2680_v0, %v2681_v55  ;;  %v2711_v14 = vsel %vm749_vm3, %v2679_v11, %v2680_v0  ;;  %v9741_v37 = vpop.f32.mrf.mxu1 }
 0x262   :  { %v2626_v30 = vmax.f32 %v2570_v23, 0.0  ;;  %v12379_v35 = vadd.f32 %v11671_v3, %v2510_v34  ;;  %v12381_v5 = vmax.f32 %v2623_v29, %v2711_v14  ;;  %v12383_v19 = vmax.f32 %v2624_v47, %v2710_v58  ;;  %v15218_v3 = vld [vmem:[#allocation9_spill] sm:$0xff] }
 0x263   :  { %v2683_v9 = vrot.slane %v15056_v49, 1  ;;  %v2888_v61 = vsel %vm1892_vm4, %v2846_v25, %v2847_v10  ;;  %9909 = vmatmul.mubr.msk.f32.gmra.mxu1 %vm2929_vm5, %v12354_v28  ;;  %v2509_v29 = vadd.f32 %v2406_v63, %v15218_v3  ;;  %v2887_v47 = vsel %vm1892_vm4, %v2847_v10, %v2848_v7  ;;  %v15219_v25 = vld [vmem:[#allocation16_spill] sm:$0xff]  ;;  %v2416_v34 = vpop.f32.mrf.mxu1 }
 0x264   :  { %v2682_v20 = vrot.slane %v2626_v30, 1  ;;  %v15055_v11 = vmax.f32 %v12379_v35, 0.0  ;;  %9813 = vmatprep.mubr.msk.f32.mxu0 %vm2929_vm5, %v2888_v61  ;;  %9911 = vmatprep.mubr.msk.f32.mxu1 %vm2929_vm5, %v12356_v22  ;;  %v2512_v0 = vadd.f32 %v9741_v37, %v15219_v25  ;;  %v2886_v23 = vsel %vm1892_vm4, %v2848_v7, %v2849_v31  ;;  %v12413_v37 = vld [vmem:[%s15024_s4] ss:$0 sm:$0xff] }
 0x265   :  { %9814 = vmatmul.mubr.msk.f32.gmra.mxu0 %vm2929_vm5, %v2887_v47  ;;  %v2850_v58 = vrot.slane %v12356_v22, 2  ;;  %v2851_v14 = vrot.slane %v12381_v5, 2  ;;  %v2572_v7 = vadd.f32 %v12413_v37, %v2509_v29 }
 0x266   :  { %v2708_v63 = vsel %vm749_vm3, %v2682_v20, %v2683_v9  ;;  %v2709_v10 = vsel %vm749_vm3, %v2681_v55, %v2682_v20  ;;  %v2685_v61 = vrot.slane %v15055_v11, 1  ;;  %9816 = vmatprep.mubr.msk.f32.mxu0 %vm2929_vm5, %v2886_v23  ;;  %v12422_v25 = vadd.f32 %v12413_v37, %v2512_v0  ;;  %v15220_v20 = vld [vmem:[#allocation11_spill] sm:$0xff]  ;;  %v9744_v11 = vpop.f32.mrf.mxu1 }
 0x267   :  { %v12417_v3 = vmax.f32 %v2625_v6, %v2709_v10  ;;  %v12419_v47 = vmax.f32 %v2626_v30, %v2708_v63  ;;  %v2511_v55 = vadd.f32 %v2416_v34, %v15220_v20  ;;  %9912 = vmatmul.mubr.msk.f32.gmra.mxu1 %vm2929_vm5, %v12381_v5  ;;  %v2628_v49 = vmax.f32 %v2572_v7, 0.0  ;;  %v15221_v6 = vld [vmem:[#allocation18_spill] sm:$0xff] }
 0x268   :  { %v2885_v60 = vsel %vm1892_vm4, %v2849_v31, %v2850_v58  ;;  %9914 = vmatprep.mubr.msk.f32.mxu1 %vm2929_vm5, %v12383_v19  ;;  %v2514_v29 = vadd.f32 %v9744_v11, %v15221_v6  ;;  %v2884_v30 = vsel %vm1892_vm4, %v2850_v58, %v2851_v14  ;;  %v2631_v0 = vmax.f32 %v12422_v25, 0.0  ;;  %v2426_v34 = vpop.f32.mrf.mxu1  ;;  %v15222_v11 = vld [vmem:[#allocation13_spill] sm:$0xff] }
 0x269   :  { %v2574_v23 = vadd.f32 %v12413_v37, %v2511_v55  ;;  %9817 = vmatmul.mubr.msk.f32.gmra.mxu0 %vm2929_vm5, %v2885_v60  ;;  %v2852_v63 = vrot.slane %v12383_v19, 2  ;;  %v2853_v10 = vrot.slane %v12417_v3, 2  ;;  %v2684_v31 = vrot.slane %v2628_v49, 1 }
 0x26a   :  { %v12440_v7 = vadd.f32 %v12413_v37, %v2514_v29  ;;  %9819 = vmatprep.mubr.msk.f32.mxu0 %vm2929_vm5, %v2884_v30  ;;  %v2513_v20 = vadd.f32 %v2426_v34, %v15222_v11  ;;  %v2854_v58 = vrot.slane %v12419_v47, 2  ;;  %v2687_v25 = vrot.slane %v2631_v0, 1  ;;  %v9747_v55 = vpop.f32.mrf.mxu1 }
 0x26b   :  { %v2630_v6 = vmax.f32 %v2574_v23, 0.0  ;;  %v2883_v60 = vsel %vm1892_vm4, %v2851_v14, %v2852_v63  ;;  %9915 = vmatmul.mubr.msk.f32.gmra.mxu1 %vm2929_vm5, %v12417_v3  ;;  %v2882_v39 = vsel %vm1892_vm4, %v2852_v63, %v2853_v10  ;;  %v2706_v29 = vsel %vm749_vm3, %v2684_v31, %v2685_v61 }
 0x26c   :  { %v2707_v30 = vsel %vm749_vm3, %v2683_v9, %v2684_v31  ;;  %v2633_v34 = vmax.f32 %v12440_v7, 0.0  ;;  %v2576_v23 = vadd.f32 %v12413_v37, %v2513_v20  ;;  %9917 = vmatprep.mubr.msk.f32.mxu1 %vm2929_vm5, %v12419_v47  ;;  %v15223_v14 = vmax.f32 %v12359_v44, 0.0  ;;  %v2436_v33 = vpop.f32.mrf.mxu1 }
 0x26d   :  { %v12463_v36 = vmax.f32 %v2628_v49, %v2706_v29  ;;  %v2686_v63 = vrot.slane %v2630_v6, 1  ;;  %9820 = vmatmul.mubr.msk.f32.gmra.mxu0 %vm2929_vm5, %v2883_v60  ;;  %v2516_v32 = vadd.f32 %v9747_v55, %v11806_v59  ;;  %v2515_v7 = vadd.f32 %v2436_v33, %v11812_v15 }
 0x26e   :  { %v12461_v11 = vmax.f32 %v15223_v14, %v2707_v30  ;;  %v2689_v9 = vrot.slane %v2633_v34, 1  ;;  %v2632_v31 = vmax.f32 %v2576_v23, 0.0  ;;  %9822 = vmatprep.mubr.msk.f32.mxu0 %vm2929_vm5, %v2882_v39  ;;  %v2881_v20 = vsel %vm1892_vm4, %v2853_v10, %v2854_v58  ;;  %v9750_v59 = vpop.f32.mrf.mxu1 }
 0x26f   :  { %v2704_v44 = vsel %vm749_vm3, %v2686_v63, %v2687_v25  ;;  %v2705_v49 = vsel %vm749_vm3, %v2685_v61, %v2686_v63  ;;  %v12476_v60 = vadd.f32 %v12413_v37, %v2516_v32  ;;  %v15224_v15 = vmax.f32 %v12379_v35, 0.0 }
 0x270   :  { %9918 = vmatmul.mubr.msk.f32.gmra.mxu1 %vm2929_vm5, %v12461_v11  ;;  %v2855_v39 = vrot.slane %v12461_v11, 2  ;;  %v12485_v10 = vmax.f32 %v2630_v6, %v2704_v44  ;;  %v2688_v55 = vrot.slane %v2632_v31, 1  ;;  %v2578_v29 = vadd.f32 %v12413_v37, %v2515_v7  ;;  %v2446_v35 = vpop.f32.mrf.mxu1  ;;  %v8573_v6 = vld [vmem:[%s15025_s7 + $0x78] sm:$0xff] }
 0x271   :  { %v12483_v33 = vmax.f32 %v15224_v15, %v2705_v49  ;;  %9920 = vmatprep.mubr.msk.f32.mxu1 %vm2929_vm5, %v12463_v36  ;;  %v2635_v32 = vmax.f32 %v12476_v60, 0.0  ;;  %9823 = vmatmul.mubr.msk.f32.gmra.mxu0 %vm2929_vm5, %v2881_v20  ;;  %v2518_v61 = vadd.f32 %v9750_v59, %v11816_v53  ;;  %v2856_v23 = vrot.slane %v12463_v36, 2 }
 0x272   :  { %v2880_v30 = vsel %vm1892_vm4, %v2854_v58, %v2855_v39  ;;  %v2702_v14 = vsel %vm749_vm3, %v2688_v55, %v2689_v9  ;;  %v2703_v63 = vsel %vm749_vm3, %v2687_v25, %v2688_v55  ;;  %v2634_v7 = vmax.f32 %v2578_v29, 0.0  ;;  %10030 = vmatprep.subr.mxu1 %v8573_v6  ;;  %v9753_v60 = vpop.f32.mrf.mxu1 }
 0x273   :  { %9825 = vmatprep.mubr.msk.f32.mxu0 %vm2929_vm5, %v2880_v30  ;;  %v2517_v53 = vadd.f32 %v2446_v35, %v11819_v40  ;;  %v12506_v58 = vmax.f32 %v2631_v0, %v2703_v63  ;;  %v12508_v20 = vmax.f32 %v2632_v31, %v2702_v14  ;;  %v2691_v44 = vrot.slane %v2635_v32, 1  ;;  %10031 = vmatpush3.msra.mxu1 %v8573_v6 }
 0x274   :  { %v12511_v49 = vadd.f32 %v12413_v37, %v2518_v61  ;;  %9921 = vmatmul.mubr.msk.f32.gmra.mxu1 %vm2929_vm5, %v12483_v33  ;;  %v2690_v59 = vrot.slane %v2634_v7, 1  ;;  %v2879_v15 = vsel %vm1892_vm4, %v2855_v39, %v2856_v23  ;;  %v2520_v40 = vadd.f32 %v9753_v60, %v11826_v48  ;;  %v2456_v55 = vpop.f32.mrf.mxu1 }
 0x275   :  { %v2580_v25 = vadd.f32 %v12413_v37, %v2517_v53  ;;  %9923 = vmatprep.mubr.msk.f32.mxu1 %vm2929_vm5, %v12485_v10  ;;  %9826 = vmatmul.mubr.msk.f32.gmra.mxu0 %vm2929_vm5, %v2879_v15  ;;  %v2857_v31 = vrot.slane %v12483_v33, 2  ;;  %v2858_v29 = vrot.slane %v12485_v10, 2  ;;  %v2859_v61 = vrot.slane %v12506_v58, 2 }
 0x276   :  { %v2637_v0 = vmax.f32 %v12511_v49, 0.0  ;;  %v2700_v39 = vsel %vm749_vm3, %v2690_v59, %v2691_v44  ;;  %v2701_v30 = vsel %vm749_vm3, %v2689_v9, %v2690_v59  ;;  %v2583_v48 = vadd.f32 %v12413_v37, %v2520_v40 }
 0x277   :  { %v2636_v35 = vmax.f32 %v2580_v25, 0.0  ;;  %v12531_v6 = vmax.f32 %v2633_v34, %v2701_v30  ;;  %v12533_v14 = vmax.f32 %v2634_v7, %v2700_v39  ;;  %v2878_v53 = vsel %vm1892_vm4, %v2856_v23, %v2857_v31 }
 0x278   :  { %v2693_v63 = vrot.slane %v2637_v0, 1  ;;  %9924 = vmatmul.mubr.msk.f32.gmra.mxu1 %vm2929_vm5, %v12506_v58  ;;  %v2639_v60 = vmax.f32 %v2583_v48, 0.0  ;;  %9828 = vmatprep.mubr.msk.f32.mxu0 %vm2929_vm5, %v2878_v53  ;;  %v2519_v9 = vadd.f32 %v2456_v55, %v11841_v57  ;;  %v2877_v59 = vsel %vm1892_vm4, %v2857_v31, %v2858_v29 }
 0x279   :  { %v2692_v49 = vrot.slane %v2636_v35, 1  ;;  %9926 = vmatprep.mubr.msk.f32.mxu1 %vm2929_vm5, %v12508_v20  ;;  %9829 = vmatmul.mubr.msk.f32.gmra.mxu0 %vm2929_vm5, %v2877_v59  ;;  %v2876_v34 = vsel %vm1892_vm4, %v2858_v29, %v2859_v61  ;;  %v2860_v23 = vrot.slane %v12508_v20, 2  ;;  %v2861_v7 = vrot.slane %v12531_v6, 2 }
 0x27a   :  { %v2862_v25 = vrot.slane %v12533_v14, 2  ;;  %v2582_v40 = vadd.f32 %v12413_v37, %v2519_v9  ;;  %9831 = vmatprep.mubr.msk.f32.mxu0 %vm2929_vm5, %v2876_v34  ;;  %v2695_v30 = vrot.slane %v2639_v60, 1  ;;  %v8572_v9 = vld [vmem:[%s15025_s7 + $0x70] sm:$0xff] }
 0x27b   :  { %v2698_v57 = vsel %vm749_vm3, %v2692_v49, %v2693_v63  ;;  %v2699_v15 = vsel %vm749_vm3, %v2691_v44, %v2692_v49  ;;  %v2875_v29 = vsel %vm1892_vm4, %v2859_v61, %v2860_v23  ;;  %v2874_v39 = vsel %vm1892_vm4, %v2860_v23, %v2861_v7  ;;  %10032 = vmatprep.subr.mxu1 %v8572_v9  ;;  %v15227_v23 = vld [vmem:[#allocation14_spill] sm:$0xff] }
 0x27c   :  { %v12557_v31 = vmax.f32 %v2635_v32, %v2699_v15  ;;  %v12559_v55 = vmax.f32 %v2636_v35, %v2698_v57  ;;  %9927 = vmatmul.mubr.msk.f32.gmra.mxu1 %vm2929_vm5, %v12531_v6  ;;  %v2638_v48 = vmax.f32 %v2582_v40, 0.0  ;;  %v2873_v37 = vsel %vm1892_vm4, %v2861_v7, %v2862_v25 }
 0x27d   :  { %9929 = vmatprep.mubr.msk.f32.mxu1 %vm2929_vm5, %v12533_v14  ;;  %v15225_v32 = vrot.slane %v11837_v13, 4  ;;  %v15226_v44 = vrot.slane %v11835_v46, 4  ;;  %9832 = vmatmul.mubr.msk.f32.gmra.mxu0 %vm2929_vm5, %v2875_v29  ;;  %v2751_v7 = vsel %vm749_vm3, %v2695_v30, %v15227_v23 }
 0x27e   :  { %v2863_v35 = vrot.slane %v12557_v31, 2  ;;  %v2864_v53 = vrot.slane %v12559_v55, 2  ;;  %v2694_v49 = vrot.slane %v2638_v48, 1  ;;  %9834 = vmatprep.mubr.msk.f32.mxu0 %vm2929_vm5, %v2874_v39  ;;  %10033 = vmatpush3.msra.mxu1 %v8572_v9  ;;  %v12607_v29 = vmax.f32 %v2639_v60, %v2751_v7 }
 0x27f   :  { %v12577_v61 = vsel %vm4012_vm6, %v15226_v44, %v15225_v32  ;;  %v3959_v60 = vrot.slane %v11862_v50, 4  ;;  %v3961_v32 = vrot.slane %v11896_v41, 4  ;;  %v15228_v44 = vld [vmem:[#allocation20_spill] sm:$0xff]  ;;  %v3963_v50 = vrot.slane %v11919_v21, 4 }
 0x280   :  { %9930 = vmatmul.mubr.msk.f32.gmra.mxu1 %vm2929_vm5, %v12557_v31  ;;  %v2872_v59 = vsel %vm1892_vm4, %v2862_v25, %v2863_v35  ;;  %v2871_v34 = vsel %vm1892_vm4, %v2863_v35, %v2864_v53  ;;  %v2696_v57 = vsel %vm749_vm3, %v2694_v49, %v2695_v30  ;;  %v2697_v15 = vsel %vm749_vm3, %v2693_v63, %v2694_v49  ;;  %v15229_v49 = vld [vmem:[#allocation15_spill] sm:$0xff] }
 0x281   :  { %9932 = vmatprep.mubr.msk.f32.mxu1 %vm2929_vm5, %v12559_v55  ;;  %v12601_v40 = vmax.f32 %v2637_v0, %v2697_v15  ;;  %v12603_v25 = vmax.f32 %v2638_v48, %v2696_v57  ;;  %9835 = vmatmul.mubr.msk.f32.gmra.mxu0 %vm2929_vm5, %v2873_v37  ;;  %v3960_v48 = vrot.slane %v11864_v43, 4  ;;  %v2867_v37 = vrot.slane %v12607_v29, 2 }
 0x282   :  { %9837 = vmatprep.mubr.msk.f32.mxu0 %vm2929_vm5, %v2872_v59  ;;  %v3956_v35 = vrot.slane %v15228_v44, 4  ;;  %v15230_v43 = vrot.slane %v11835_v46, 4  ;;  %v15231_v59 = vrot.slane %v11837_v13, 4  ;;  %v3981_v57 = vrot.slane %v12192_v26, 4  ;;  %v4769_v26 = vld [vmem:[%s15025_s7 + $0x38] sm:$0xff] }
 0x283   :  { %v2865_v39 = vrot.slane %v12601_v40, 2  ;;  %v2866_v63 = vrot.slane %v12603_v25, 2  ;;  %v4064_v23 = vsel %vm4012_vm6, %v3959_v60, %v3960_v48  ;;  %v4063_v7 = vsel %vm4012_vm6, %v3960_v48, %v3961_v32  ;;  %10130 = vmatprep.subr.mxu0 %v4769_v26 }
 0x284   :  { %9933 = vmatmul.mubr.msk.f32.gmra.mxu1 %vm2929_vm5, %v12601_v40  ;;  %v4067_v41 = vsel %vm4012_vm6, %v3956_v35, %v15230_v43  ;;  %v3982_v46 = vrot.slane %v12194_v56, 4  ;;  %v3983_v15 = vrot.slane %v12211_v16, 4  ;;  %v3965_v16 = vrot.slane %v11952_v27, 4 }
 0x285   :  { %9935 = vmatprep.mubr.msk.f32.mxu1 %vm2929_vm5, %v12603_v25  ;;  %9838 = vmatmul.mubr.msk.f32.gmra.mxu0 %vm2929_vm5, %v2871_v34  ;;  %v2870_v0 = vsel %vm1892_vm4, %v2864_v53, %v2865_v39  ;;  %v2869_v30 = vsel %vm1892_vm4, %v2865_v39, %v2866_v63  ;;  %v3962_v53 = vrot.slane %v15229_v49, 4  ;;  %v2868_v9 = vsel %vm1892_vm4, %v2866_v63, %v2867_v37 }
 0x286   :  { %9840 = vmatprep.mubr.msk.f32.mxu0 %vm2929_vm5, %v2870_v0  ;;  %v4065_v34 = vsel %vm4012_vm6, %v15231_v59, %v3959_v60  ;;  %v15232_v39 = vrot.slane %v15228_v44, 2  ;;  %v3964_v0 = vrot.slane %v11921_v51, 4  ;;  %v8571_v60 = vld [vmem:[%s15025_s7 + $0x68] sm:$0xff]  ;;  %v12672_v48 = vsel %vm4012_vm6, %v3981_v57, %v3982_v46 }
 0x287   :  { %v4062_v63 = vsel %vm4012_vm6, %v3961_v32, %v3962_v53  ;;  %v4061_v56 = vsel %vm4012_vm6, %v3962_v53, %v3963_v50  ;;  %v3985_v32 = vrot.slane %v12238_v12, 4  ;;  %v3986_v49 = vrot.slane %v12240_v18, 4  ;;  %10034 = vmatprep.subr.mxu1 %v8571_v60 }
 0x288   :  { %9936 = vmatmul.mubr.msk.f32.gmra.mxu1 %vm2929_vm5, %v12607_v29  ;;  %v2923_v13 = vsel %vm1892_vm4, %v2867_v37, %v15232_v39  ;;  %v3987_v53 = vrot.slane %v12269_v8, 4  ;;  %v3989_v43 = vrot.slane %v12313_v24, 4  ;;  %v3990_v59 = vrot.slane %v12315_v1, 4 }
 0x289   :  { %9841 = vmatmul.mubr.msk.f32.gmra.mxu0 %vm2929_vm5, %v2869_v30  ;;  %v3984_v30 = vrot.slane %v12213_v62, 4  ;;  %v12676_v62 = vsel %vm4012_vm6, %v3982_v46, %v3983_v15  ;;  %v3991_v46 = vrot.slane %v12335_v52, 4  ;;  %10035 = vmatpush3.msra.mxu1 %v8571_v60  ;;  %v12696_v12 = vsel %vm4012_vm6, %v3985_v32, %v3986_v49 }
 0x28a   :  { %9843 = vmatprep.mubr.msk.f32.mxu0 %vm2929_vm5, %v2868_v9  ;;  %v3988_v9 = vrot.slane %v12271_v45, 4  ;;  %v12700_v18 = vsel %vm4012_vm6, %v3986_v49, %v3987_v53  ;;  %v3992_v8 = vrot.slane %v12337_v4, 4  ;;  %v12715_v1 = vsel %vm4012_vm6, %v3989_v43, %v3990_v59 }
 0x28b   :  { %v12681_v37 = vsel %vm4012_vm6, %v3983_v15, %v3984_v30  ;;  %v12719_v52 = vsel %vm4012_vm6, %v3990_v59, %v3991_v46  ;;  %v3994_v15 = vrot.slane %v12356_v22, 4  ;;  %v3995_v39 = vrot.slane %v12381_v5, 4 }
 0x28c   :  { %v12707_v45 = vsel %vm4012_vm6, %v3987_v53, %v3988_v9  ;;  %v12711_v24 = vsel %vm4012_vm6, %v3988_v9, %v3989_v43  ;;  %v12724_v4 = vsel %vm4012_vm6, %v3991_v46, %v3992_v8  ;;  %v3998_v60 = vrot.slane %v12419_v47, 4 }
 0x28d   :  { %9844 = vmatmul.mubr.msk.f32.gmra.mxu0 %vm2929_vm5, %v2923_v13  ;;  %v3996_v13 = vrot.slane %v12383_v19, 4  ;;  %v4000_v22 = vrot.slane %v12463_v36, 4  ;;  %v4003_v53 = vrot.slane %v12506_v58, 4  ;;  %v4004_v9 = vrot.slane %v12508_v20, 4 }
 0x28e   :  { %9946 = vmatprep.mubr.msk.f32.mxu0 %vm2929_vm5, %v4067_v41  ;;  %v12692_v41 = vsel %vm4012_vm6, %v3984_v30, %v3985_v32  ;;  %v3997_v30 = vrot.slane %v12417_v3, 4  ;;  %v3999_v32 = vrot.slane %v12461_v11, 4  ;;  %v4001_v11 = vrot.slane %v12483_v33, 4 }
 0x28f   :  { %v12749_v5 = vsel %vm4012_vm6, %v3995_v39, %v3996_v13  ;;  %v4005_v43 = vrot.slane %v12531_v6, 4  ;;  %v4006_v59 = vrot.slane %v12533_v14, 4  ;;  %v4007_v46 = vrot.slane %v12557_v31, 4 }
 0x290   :  { %v12753_v19 = vsel %vm4012_vm6, %v3996_v13, %v3997_v30  ;;  %v12757_v3 = vsel %vm4012_vm6, %v3997_v30, %v3998_v60  ;;  %v12761_v47 = vsel %vm4012_vm6, %v3998_v60, %v3999_v32  ;;  %v12766_v36 = vsel %vm4012_vm6, %v3999_v32, %v4000_v22  ;;  %v15233_v30 = vld [vmem:[#allocation22_spill] sm:$0xff] }
 0x291   :  { %9947 = vmatmul.mubr.msk.f32.vlgmr.msra.gmra.mxu0 %vm2929_vm5, %v12577_v61  ;;  %v3993_v61 = vrot.slane %v12354_v28, 4  ;;  %v12743_v28 = vsel %vm4012_vm6, %v3994_v15, %v3995_v39  ;;  %v12791_v58 = vsel %vm4012_vm6, %v4003_v53, %v4004_v9  ;;  %v12795_v20 = vsel %vm4012_vm6, %v4004_v9, %v4005_v43  ;;  %v15236_v9 = vld [vmem:[#allocation19_spill] sm:$0xff] }
 0x292   :  { %9949 = vmatprep.mubr.msk.f32.mxu0 %vm2929_vm5, %v4065_v34  ;;  %v12799_v6 = vsel %vm4012_vm6, %v4005_v43, %v4006_v59  ;;  %v12803_v14 = vsel %vm4012_vm6, %v4006_v59, %v4007_v46  ;;  %v3966_v39 = vrot.slane %v11954_v17, 4  ;;  %v4059_v21 = vsel %vm4012_vm6, %v3964_v0, %v3965_v16  ;;  %10131 = vmatpush3.msra.mxu0 %v4769_v26 }
 0x293   :  { %v12735_v34 = vsel %vm4012_vm6, %v3992_v8, %v3993_v61  ;;  %v12739_v49 = vsel %vm4012_vm6, %v3993_v61, %v3994_v15  ;;  %v4011_v61 = vrot.slane %v12607_v29, 4  ;;  %v8570_v15 = vld [vmem:[%s15025_s7 + $0x60] sm:$0xff]  ;;  %v3968_v60 = vrot.slane %v15233_v30, 4 }
 0x294   :  { %10036 = vmatprep.subr.mxu1 %v8570_v15  ;;  %v4058_v13 = vsel %vm4012_vm6, %v3965_v16, %v3966_v39  ;;  %v3969_v51 = vrot.slane %v12027_v42, 4  ;;  %v15234_v16 = vld [vmem:[#allocation17_spill] sm:$0xff]  ;;  %v15235_v42 = vld [vmem:[#allocation24_spill] sm:$0xff]  ;;  %v3973_v43 = vrot.slane %v15236_v9, 4  ;;  %v8567_v9 = vld [vmem:[%s15025_s7 + $0x48] sm:$0xff] }
 0x295   :  { %9950 = vmatmul.mubr.msk.f32.gmra.mxu0 %vm2929_vm5, %v4064_v23  ;;  %v4002_v23 = vrot.slane %v12485_v10, 4  ;;  %v4008_v10 = vrot.slane %v12559_v55, 4  ;;  %v4009_v55 = vrot.slane %v12601_v40, 4  ;;  %10037 = vmatpush3.msra.mxu1 %v8570_v15 }
 0x296   :  { %9952 = vmatprep.mubr.msk.f32.mxu0 %vm2929_vm5, %v4063_v7  ;;  %v12777_v7 = vsel %vm4012_vm6, %v4000_v22, %v4001_v11  ;;  %v4055_v27 = vsel %vm4012_vm6, %v3968_v60, %v3969_v51  ;;  %v3971_v22 = vrot.slane %v15234_v16, 4  ;;  %v8568_v16 = vld [vmem:[%s15025_s7 + $0x50] sm:$0xff] }
 0x297   :  { %v12781_v8 = vsel %vm4012_vm6, %v4001_v11, %v4002_v23  ;;  %v12785_v33 = vsel %vm4012_vm6, %v4002_v23, %v4003_v53  ;;  %v12808_v31 = vsel %vm4012_vm6, %v4007_v46, %v4008_v10  ;;  %v12825_v40 = vsel %vm4012_vm6, %v4008_v10, %v4009_v55  ;;  %v8569_v53 = vld [vmem:[%s15025_s7 + $0x58] sm:$0xff]  ;;  %v15237_v46 = vld [vmem:[#allocation26_spill] sm:$0xff] }
 0x298   :  { %v3972_v23 = vrot.slane %v15235_v42, 4  ;;  %10038 = vmatprep.subr.mxu1 %v8569_v53  ;;  %v3974_v10 = vrot.slane %v15237_v46, 4 }
 0x299   :  { %9953 = vmatmul.mubr.msk.f32.gmra.mxu0 %vm2929_vm5, %v4062_v63  ;;  %v4010_v63 = vrot.slane %v12603_v25, 4  ;;  %10039 = vmatpush3.msra.mxu1 %v8569_v53 }
 0x29a   :  { %9955 = vmatprep.mubr.msk.f32.mxu0 %vm2929_vm5, %v4061_v56  ;;  %v4060_v56 = vsel %vm4012_vm6, %v3963_v50, %v3964_v0  ;;  %v3967_v50 = vrot.slane %v11986_v54, 4  ;;  %v3970_v0 = vrot.slane %v12029_v38, 4  ;;  %v4052_v59 = vsel %vm4012_vm6, %v3971_v22, %v3972_v23  ;;  %10040 = vmatprep.subr.mxu1 %v8568_v16 }
 0x29b   :  { %v12829_v25 = vsel %vm4012_vm6, %v4009_v55, %v4010_v63  ;;  %v12835_v17 = vsel %vm4012_vm6, %v4010_v63, %v4011_v61  ;;  %v4051_v55 = vsel %vm4012_vm6, %v3972_v23, %v3973_v43  ;;  %v15238_v63 = vld [vmem:[#allocation21_spill] sm:$0xff]  ;;  %10041 = vmatpush3.msra.mxu1 %v8568_v16 }
 0x29c   :  { %v4057_v32 = vsel %vm4012_vm6, %v3966_v39, %v3967_v50  ;;  %v4056_v54 = vsel %vm4012_vm6, %v3967_v50, %v3968_v60  ;;  %v4054_v11 = vsel %vm4012_vm6, %v3969_v51, %v3970_v0  ;;  %v4053_v38 = vsel %vm4012_vm6, %v3970_v0, %v3971_v22  ;;  %v15242_v0 = vld [vmem:[#allocation25_spill] sm:$0xff]  ;;  %10042 = vmatprep.subr.mxu1 %v8567_v9 }
 0x29d   :  { %9956 = vmatmul.mubr.msk.f32.gmra.mxu0 %vm2929_vm5, %v4060_v56  ;;  %v3975_v15 = vrot.slane %v15238_v63, 4  ;;  %v4050_v39 = vsel %vm4012_vm6, %v3973_v43, %v3974_v10  ;;  %v15239_v56 = vld [vmem:[#allocation28_spill] sm:$0xff]  ;;  %10043 = vmatpush3.msra.mxu1 %v8567_v9 }
 0x29e   :  { %9958 = vmatprep.mubr.msk.f32.mxu0 %vm2929_vm5, %v4059_v21  ;;  %v3976_v21 = vrot.slane %v15239_v56, 4 }
 0x29f   :  { %v4049_v50 = vsel %vm4012_vm6, %v3974_v10, %v3975_v15 }
 0x2a0   :  { %v4048_v60 = vsel %vm4012_vm6, %v3975_v15, %v3976_v21 }
 0x2a1   :  { %9959 = vmatmul.mubr.msk.f32.gmra.mxu0 %vm2929_vm5, %v4058_v13  ;;  %v15240_v13 = vld [vmem:[#allocation23_spill] sm:$0xff] }
 0x2a2   :  { %9961 = vmatprep.mubr.msk.f32.mxu0 %vm2929_vm5, %v4057_v32  ;;  %v3977_v30 = vrot.slane %v15240_v13, 4  ;;  %v15241_v32 = vld [vmem:[#allocation30_spill] sm:$0xff] }
 0x2a3   :  { %v3978_v51 = vrot.slane %v15241_v32, 4 }
 0x2a5   :  { %9962 = vmatmul.mubr.msk.f32.gmra.mxu0 %vm2929_vm5, %v4056_v54  ;;  %v4047_v54 = vsel %vm4012_vm6, %v3976_v21, %v3977_v30  ;;  %v4046_v22 = vsel %vm4012_vm6, %v3977_v30, %v3978_v51 }
 0x2a6   :  { %9964 = vmatprep.mubr.msk.f32.mxu0 %vm2929_vm5, %v4055_v27  ;;  %v3979_v27 = vrot.slane %v15242_v0, 4 }
 0x2a8   :  { %v4045_v23 = vsel %vm4012_vm6, %v3978_v51, %v3979_v27 }
 0x2a9   :  { %9965 = vmatmul.mubr.msk.f32.gmra.mxu0 %vm2929_vm5, %v4054_v11  ;;  %v15243_v11 = vld [vmem:[#allocation32_spill] sm:$0xff] }
 0x2aa   :  { %9967 = vmatprep.mubr.msk.f32.mxu0 %vm2929_vm5, %v4053_v38  ;;  %v3980_v42 = vrot.slane %v15243_v11, 4 }
 0x2ac   :  { %v4044_v53 = vsel %vm4012_vm6, %v3979_v27, %v3980_v42  ;;  %v4043_v38 = vsel %vm4012_vm6, %v3980_v42, %v3981_v57  ;;  %v4768_v57 = vld [vmem:[%s15025_s7 + $0x30] sm:$0xff] }
 0x2ad   :  { %9968 = vmatmul.mubr.msk.f32.gmra.mxu0 %vm2929_vm5, %v4052_v59  ;;  %10132 = vmatprep.subr.mxu0 %v4768_v57 }
 0x2ae   :  { %9970 = vmatprep.mubr.msk.f32.mxu0 %vm2929_vm5, %v4051_v55  ;;  %10133 = vmatpush3.msra.mxu0 %v4768_v57 }
 0x2b1   :  { %9971 = vmatmul.mubr.msk.f32.gmra.mxu0 %vm2929_vm5, %v4050_v39 }
 0x2b2   :  { %9973 = vmatprep.mubr.msk.f32.mxu0 %vm2929_vm5, %v4049_v50 }
 0x2b5   :  { %9974 = vmatmul.mubr.msk.f32.gmra.mxu0 %vm2929_vm5, %v4048_v60 }
 0x2b6   :  { %9976 = vmatprep.mubr.msk.f32.mxu0 %vm2929_vm5, %v4047_v54 }
 0x2b9   :  { %9977 = vmatmul.mubr.msk.f32.gmra.mxu0 %vm2929_vm5, %v4046_v22 }
 0x2ba   :  { %9979 = vmatprep.mubr.msk.f32.mxu0 %vm2929_vm5, %v4045_v23 }
 0x2bd   :  { %9980 = vmatmul.mubr.msk.f32.gmra.mxu0 %vm2929_vm5, %v4044_v53 }
 0x2be   :  { %9982 = vmatprep.mubr.msk.f32.mxu0 %vm2929_vm5, %v4043_v38 }
 0x2c1   :  { %9983 = vmatmul.mubr.msk.f32.gmra.mxu0 %vm2929_vm5, %v12672_v48  ;;  %v4767_v48 = vld [vmem:[%s15025_s7 + $0x28] sm:$0xff] }
 0x2c2   :  { %9985 = vmatprep.mubr.msk.f32.mxu0 %vm2929_vm5, %v12676_v62  ;;  %10134 = vmatprep.subr.mxu0 %v4767_v48  ;;  %v4766_v62 = vld [vmem:[%s15025_s7 + $0x20] sm:$0xff] }
 0x2c3   :  { %10135 = vmatpush3.msra.mxu0 %v4767_v48 }
 0x2c4   :  { %10136 = vmatprep.subr.mxu0 %v4766_v62 }
 0x2c5   :  { %9986 = vmatmul.mubr.msk.f32.gmra.mxu0 %vm2929_vm5, %v12681_v37  ;;  %v8566_v37 = vld [vmem:[%s15025_s7 + $0x40] sm:$0xff] }
 0x2c6   :  { %9988 = vmatprep.mubr.msk.f32.mxu0 %vm2929_vm5, %v12692_v41  ;;  %v4765_v41 = vld [vmem:[%s15025_s7 + $0x18] sm:$0xff]  ;;  %10044 = vmatprep.subr.mxu1 %v8566_v37 }
 0x2c7   :  { %10137 = vmatpush3.msra.mxu0 %v4766_v62  ;;  %10045 = vmatpush3.msra.mxu1 %v8566_v37 }
 0x2c8   :  { %10138 = vmatprep.subr.mxu0 %v4765_v41 }
 0x2c9   :  { %9989 = vmatmul.mubr.msk.f32.gmra.mxu0 %vm2929_vm5, %v12696_v12  ;;  %v4764_v12 = vld [vmem:[%s15025_s7 + $0x10] sm:$0xff] }
 0x2ca   :  { %9991 = vmatprep.mubr.msk.f32.mxu0 %vm2929_vm5, %v12700_v18  ;;  %10139 = vmatpush3.msra.mxu0 %v4765_v41 }
 0x2cb   :  { %10140 = vmatprep.subr.mxu0 %v4764_v12 }
 0x2cc   :  { %10141 = vmatpush3.msra.mxu0 %v4764_v12 }
 0x2cd   :  { %9992 = vmatmul.mubr.msk.f32.gmra.mxu0 %vm2929_vm5, %v12707_v45  ;;  %v4763_v45 = vld [vmem:[%s15025_s7 + $0x8] sm:$0xff] }
 0x2ce   :  { %9994 = vmatprep.mubr.msk.f32.mxu0 %vm2929_vm5, %v12711_v24  ;;  %v4762_v24 = vld [vmem:[%s15025_s7] sm:$0xff]  ;;  %10142 = vmatprep.subr.mxu0 %v4763_v45 }
 0x2cf   :  { %10143 = vmatpush3.msra.mxu0 %v4763_v45 }
 0x2d0   :  { %10144 = vmatprep.subr.mxu0 %v4762_v24 }
 0x2d1   :  { %9995 = vmatmul.mubr.msk.f32.gmra.mxu0 %vm2929_vm5, %v12715_v1 }
 0x2d2   :  { %9997 = vmatprep.mubr.msk.f32.mxu0 %vm2929_vm5, %v12719_v52  ;;  %10145 = vmatpush3.msra.mxu0 %v4762_v24 }
 0x2d5   :  { %9998 = vmatmul.mubr.msk.f32.gmra.mxu0 %vm2929_vm5, %v12724_v4 }
 0x2d6   :  { %10000 = vmatprep.mubr.msk.f32.mxu0 %vm2929_vm5, %v12735_v34 }
 0x2d7   :  { %v12985_v52 = vpop.f32.mrf.mxu1 }
 0x2d9   :  { %10001 = vmatmul.mubr.msk.f32.gmra.mxu0 %vm2929_vm5, %v12739_v49  ;;  %v12995_v49 = vpop.f32.mrf.mxu1 }
 0x2da   :  { %10003 = vmatprep.mubr.msk.f32.mxu0 %vm2929_vm5, %v12743_v28  ;;  %v13002_v28 = vld [vmem:[%s15025_s7 + $0xb8] sm:$0xff] }
 0x2db   :  { %v12973_v18 = vpop.f32.mrf.mxu0  ;;  %10230 = vmatprep.subr.mxu1 %v13002_v28 }
 0x2dd   :  { %10004 = vmatmul.mubr.msk.f32.gmra.mxu0 %vm2929_vm5, %v12749_v5  ;;  %v12983_v1 = vpop.f32.mrf.mxu0 }
 0x2de   :  { %10006 = vmatprep.mubr.msk.f32.mxu0 %vm2929_vm5, %v12753_v19  ;;  %v13009_v19 = vpop.f32.mrf.mxu1 }
 0x2e1   :  { %10007 = vmatmul.mubr.msk.f32.gmra.mxu0 %vm2929_vm5, %v12757_v3  ;;  %v12989_v4 = vpop.f32.mrf.mxu0 }
 0x2e2   :  { %10009 = vmatprep.mubr.msk.f32.mxu0 %vm2929_vm5, %v12761_v47 }
 0x2e3   :  { %v12993_v34 = vpop.f32.mrf.mxu0 }
 0x2e5   :  { %10010 = vmatmul.mubr.msk.f32.gmra.mxu0 %vm2929_vm5, %v12766_v36  ;;  %v13019_v36 = vpop.f32.mrf.mxu1 }
 0x2e6   :  { %10012 = vmatprep.mubr.msk.f32.mxu0 %vm2929_vm5, %v12777_v7 }
 0x2e7   :  { %v13005_v5 = vpop.f32.mrf.mxu0 }
 0x2e9   :  { %10013 = vmatmul.mubr.msk.f32.gmra.mxu0 %vm2929_vm5, %v12781_v8  ;;  %v13013_v3 = vpop.f32.mrf.mxu0 }
 0x2ea   :  { %10015 = vmatprep.mubr.msk.f32.mxu0 %vm2929_vm5, %v12785_v33  ;;  %v13029_v33 = vpop.f32.mrf.mxu1 }
 0x2eb   :  { %v13015_v47 = vpop.f32.mrf.mxu0 }
 0x2ed   :  { %10016 = vmatmul.mubr.msk.f32.gmra.mxu0 %vm2929_vm5, %v12791_v58  ;;  %v13023_v7 = vpop.f32.mrf.mxu0 }
 0x2ee   :  { %10018 = vmatprep.mubr.msk.f32.mxu0 %vm2929_vm5, %v12795_v20  ;;  %v13039_v20 = vpop.f32.mrf.mxu1 }
 0x2ef   :  { %v13025_v8 = vpop.f32.mrf.mxu0 }
 0x2f1   :  { %10019 = vmatmul.mubr.msk.f32.gmra.mxu0 %vm2929_vm5, %v12799_v6  ;;  %v13033_v43 = vpop.f32.mrf.mxu0 }
 0x2f2   :  { %10021 = vmatprep.mubr.msk.f32.mxu0 %vm2929_vm5, %v12803_v14  ;;  %v13049_v14 = vpop.f32.mrf.mxu1 }
 0x2f3   :  { %v13035_v58 = vpop.f32.mrf.mxu0 }
 0x2f4   :  { %v13064_v10 = vpop.f32.mrf.mxu1 }
 0x2f5   :  { %10022 = vmatmul.mubr.msk.f32.gmra.mxu0 %vm2929_vm5, %v12808_v31  ;;  %v13043_v59 = vpop.f32.mrf.mxu0  ;;  %v4068_v31 = vsel %vm4012_vm6, %v4011_v61, %v3956_v35 }
 0x2f6   :  { %10024 = vmatprep.mubr.msk.f32.mxu0 %vm2929_vm5, %v12825_v40 }
 0x2f8   :  { %v13045_v6 = vpop.f32.mrf.mxu0 }
 0x2f9   :  { %10025 = vmatmul.mubr.msk.f32.gmra.mxu0 %vm2929_vm5, %v12829_v25 }
 0x2fa   :  { %10027 = vmatprep.mubr.msk.f32.mxu0 %vm2929_vm5, %v12835_v17  ;;  %v13053_v46 = vpop.f32.mrf.mxu0  ;;  %v13070_v17 = vpop.f32.mrf.mxu1 }
 0x2fc   :  { %v13061_v40 = vpop.f32.mrf.mxu0  ;;  %v13076_v29 = vpop.f32.mrf.mxu1 }
 0x2fd   :  { %10028 = vmatmul.mubr.msk.f32.gmra.mxu0 %vm2929_vm5, %v4068_v31 }
 0x2fe   :  { %v13066_v25 = vpop.f32.mrf.mxu0  ;;  %v13082_v61 = vpop.f32.mrf.mxu1 }
 0x300   :  { %v13068_v55 = vpop.f32.mrf.mxu0  ;;  %v13088_v21 = vpop.f32.mrf.mxu1 }
 0x302   :  { %v13072_v63 = vpop.f32.mrf.mxu0  ;;  %v13094_v30 = vpop.f32.mrf.mxu1 }
 0x304   :  { %v13074_v44 = vpop.f32.mrf.mxu0  ;;  %v13100_v51 = vpop.f32.mrf.mxu1 }
 0x306   :  { %v13078_v15 = vpop.f32.mrf.mxu0  ;;  %v13106_v27 = vpop.f32.mrf.mxu1 }
 0x308   :  { %v13080_v35 = vpop.f32.mrf.mxu0  ;;  %v13112_v11 = vpop.f32.mrf.mxu1 }
 0x30a   :  { %v13084_v39 = vpop.f32.mrf.mxu0  ;;  %v13118_v53 = vpop.f32.mrf.mxu1 }
 0x30c   :  { %v13086_v56 = vpop.f32.mrf.mxu0  ;;  %v13124_v26 = vpop.f32.mrf.mxu1 }
 0x30e   :  { %v13090_v50 = vpop.f32.mrf.mxu0  ;;  %v13130_v62 = vpop.f32.mrf.mxu1 }
 0x310   :  { %v13136_v12 = vpop.f32.mrf.mxu1 }
 0x311   :  { %v13092_v13 = vpop.f32.mrf.mxu0 }
 0x312   :  { %v13142_v31 = vpop.f32.mrf.mxu1 }
 0x313   :  { %v13096_v60 = vpop.f32.mrf.mxu0 }
 0x314   :  { %15244 = vst [vmem:[#allocation27_spill] sm:$0xff] %v13096_v60 }
 0x315   :  { %v13098_v32 = vpop.f32.mrf.mxu0 }
 0x316   :  { %15245 = vst [vmem:[#allocation34_spill] sm:$0xff] %v13098_v32 }
 0x317   :  { %v13102_v54 = vpop.f32.mrf.mxu0 }
 0x318   :  { %15246 = vst [vmem:[#allocation29_spill] sm:$0xff] %v13102_v54 }
 0x319   :  { %v13104_v0 = vpop.f32.mrf.mxu0 }
 0x31a   :  { %15247 = vst [vmem:[#allocation36_spill] sm:$0xff] %v13104_v0 }
 0x31b   :  { %v13108_v16 = vpop.f32.mrf.mxu0 }
 0x31c   :  { %15248 = vst [vmem:[#allocation31_spill] sm:$0xff] %v13108_v16 }
 0x31d   :  { %v13110_v22 = vpop.f32.mrf.mxu0 }
 0x31e   :  { %15249 = vst [vmem:[#allocation38_spill] sm:$0xff] %v13110_v22 }
 0x31f   :  { %v13114_v42 = vpop.f32.mrf.mxu0 }
 0x320   :  { %15250 = vst [vmem:[#allocation33_spill] sm:$0xff] %v13114_v42 }
 0x321   :  { %v13116_v23 = vpop.f32.mrf.mxu0 }
 0x322   :  { %15251 = vst [vmem:[#allocation39_spill] sm:$0xff] %v13116_v23 }
 0x323   :  { %v13120_v38 = vpop.f32.mrf.mxu0 }
 0x324   :  { %15252 = vst [vmem:[#allocation35_spill] sm:$0xff] %v13120_v38 }
 0x325   :  { %v13122_v9 = vpop.f32.mrf.mxu0 }
 0x326   :  { %15253 = vst [vmem:[#allocation41_spill] sm:$0xff] %v13122_v9 }
 0x327   :  { %v13126_v57 = vpop.f32.mrf.mxu0 }
 0x328   :  { %15254 = vst [vmem:[#allocation37_spill] sm:$0xff] %v13126_v57  ;;  %v13148_v57 = vpop.f32.mrf.mxu1 }
 0x329   :  { %v13128_v48 = vpop.f32.mrf.mxu0 }
 0x32a   :  { %15255 = vst [vmem:[#allocation42_spill] sm:$0xff] %v13128_v48 }
 0x32b   :  { %v13132_v37 = vpop.f32.mrf.mxu0 }
 0x32c   :  { %15256 = vst [vmem:[#allocation40_spill] sm:$0xff] %v13132_v37  ;;  %v13154_v37 = vpop.f32.mrf.mxu1 }
 0x32d   :  { %v13134_v41 = vpop.f32.mrf.mxu0 }
 0x32e   :  { %15257 = vst [vmem:[#allocation43_spill] sm:$0xff] %v13134_v41 }
 0x32f   :  { %v13138_v45 = vpop.f32.mrf.mxu0 }
 0x330   :  { %15258 = vst [vmem:[#allocation44_spill] sm:$0xff] %v13138_v45  ;;  %v13160_v45 = vpop.f32.mrf.mxu1 }
 0x331   :  { %v13140_v24 = vpop.f32.mrf.mxu0 }
 0x332   :  { %15259 = vst [vmem:[#allocation45_spill] sm:$0xff] %v13140_v24 }
 0x333   :  { %v13144_v9 = vpop.f32.mrf.mxu0 }
 0x334   :  { %15260 = vst [vmem:[#allocation46_spill] sm:$0xff] %v13144_v9  ;;  %v13166_v9 = vpop.f32.mrf.mxu1 }
 0x335   :  { %v13146_v38 = vpop.f32.mrf.mxu0  ;;  %15268 = vst [vmem:[#allocation5_spill] sm:$0xff] %v13166_v9  ;;  %v3688_v9 = vadd.f32 %v13019_v36, %v12993_v34 }
 0x336   :  { %15261 = vst [vmem:[#allocation47_spill] sm:$0xff] %v13146_v38 }
 0x337   :  { %v13150_v48 = vpop.f32.mrf.mxu0 }
 0x338   :  { %15262 = vst [vmem:[#allocation48_spill] sm:$0xff] %v13150_v48  ;;  %v13172_v48 = vpop.f32.mrf.mxu1 }
 0x339   :  { %v13152_v23 = vpop.f32.mrf.mxu0  ;;  %15271 = vst [vmem:[#allocation12_spill] sm:$0xff] %v13172_v48 }
 0x33a   :  { %15263 = vst [vmem:[#allocation49_spill] sm:$0xff] %v13152_v23 }
 0x33b   :  { %v13156_v41 = vpop.f32.mrf.mxu0 }
 0x33c   :  { %15264 = vst [vmem:[#allocation50_spill] sm:$0xff] %v13156_v41  ;;  %v13178_v41 = vpop.f32.mrf.mxu1 }
 0x33d   :  { %v13158_v42 = vpop.f32.mrf.mxu0  ;;  %15274 = vst [vmem:[#allocation16_spill] sm:$0xff] %v13178_v41 }
 0x33e   :  { %15265 = vst [vmem:[#allocation3_spill] sm:$0xff] %v13158_v42 }
 0x33f   :  { %v13162_v24 = vpop.f32.mrf.mxu0 }
 0x340   :  { %15266 = vst [vmem:[#allocation4_spill] sm:$0xff] %v13162_v24  ;;  %v13184_v24 = vpop.f32.mrf.mxu1 }
 0x341   :  { %v13164_v22 = vpop.f32.mrf.mxu0  ;;  %15277 = vst [vmem:[#allocation13_spill] sm:$0xff] %v13184_v24  ;;  %v3693_v24 = vadd.f32 %v13009_v19, %v12989_v4 }
 0x342   :  { %15267 = vst [vmem:[#allocation8_spill] sm:$0xff] %v13164_v22  ;;  %v13197_v41 = vpop.f32.mrf.mxu1 }
 0x343   :  { %v13168_v38 = vpop.f32.mrf.mxu0 }
 0x344   :  { %15269 = vst [vmem:[#allocation10_spill] sm:$0xff] %v13168_v38  ;;  %v3683_v38 = vadd.f32 %v12985_v52, %v12973_v18  ;;  %v13202_v52 = vpop.f32.mrf.mxu1 }
 0x345   :  { %v13170_v16 = vpop.f32.mrf.mxu0 }
 0x346   :  { %15270 = vst [vmem:[#allocation6_spill] sm:$0xff] %v13170_v16 }
 0x347   :  { %v13174_v23 = vpop.f32.mrf.mxu0 }
 0x348   :  { %15272 = vst [vmem:[#allocation7_spill] sm:$0xff] %v13174_v23  ;;  %v13193_v23 = vld [vmem:[%s15026_s6] ss:$0 sm:$0xff] }
 0x349   :  { %v13176_v0 = vpop.f32.mrf.mxu0 }
 0x34a   :  { %15273 = vst [vmem:[#allocation9_spill] sm:$0xff] %v13176_v0  ;;  %v3678_v0 = vadd.f32 %v12995_v49, %v12983_v1 }
 0x34b   :  { %v13180_v42 = vpop.f32.mrf.mxu0 }
 0x34c   :  { %15275 = vst [vmem:[#allocation11_spill] sm:$0xff] %v13180_v42 }
 0x34d   :  { %v13182_v54 = vpop.f32.mrf.mxu0 }
 0x34e   :  { %15276 = vst [vmem:[#allocation18_spill] sm:$0xff] %v13182_v54 }
 0x34f   :  { %v13186_v22 = vpop.f32.mrf.mxu0 }
 0x350   :  { %15278 = vst [vmem:[#allocation14_spill] sm:$0xff] %v13186_v22 }
 0x351   :  { %v9948_v16 = vpop.f32.mrf.mxu0 }
 0x352   :  { %v4588_v42 = vadd.f32 %v9948_v16, %v3683_v38  ;;  %v3703_v16 = vadd.f32 %v13029_v33, %v13005_v5 }
 0x353   :  { %v4308_v54 = vpop.f32.mrf.mxu0 }
 0x354   :  { %v4651_v22 = vadd.f32 %v13193_v23, %v4588_v42  ;;  %v4587_v32 = vadd.f32 %v4308_v54, %v3678_v0  ;;  %v13216_v42 = vpop.f32.mrf.mxu1 }
 0x355   :  { %v9951_v18 = vpop.f32.mrf.mxu0 }
 0x356   :  { %v4650_v48 = vadd.f32 %v13193_v23, %v4587_v32  ;;  %v4590_v60 = vadd.f32 %v9951_v18, %v3693_v24  ;;  %v13207_v1 = vmax.f32 %v4651_v22, 0.0  ;;  %v3698_v32 = vadd.f32 %v13039_v20, %v13013_v3 }
 0x357   :  { %v4318_v49 = vpop.f32.mrf.mxu0  ;;  %v3713_v3 = vadd.f32 %v13049_v14, %v13015_v47  ;;  %v13240_v47 = vpop.f32.mrf.mxu1 }
 0x358   :  { %v13211_v4 = vmax.f32 %v4650_v48, 0.0  ;;  %v4653_v19 = vadd.f32 %v13193_v23, %v4590_v60  ;;  %v4589_v54 = vadd.f32 %v4318_v49, %v3688_v9  ;;  %v4771_v36 = vrot.slane %v13207_v1, 2 }
 0x359   :  { %v9954_v0 = vpop.f32.mrf.mxu0  ;;  %v3708_v9 = vadd.f32 %v13064_v10, %v13023_v7  ;;  %v3723_v48 = vadd.f32 %v13070_v17, %v13025_v8  ;;  %v15062_v14 = vrot.slane %v13207_v1, 4 }
 0x35a   :  { %v4592_v38 = vadd.f32 %v9954_v0, %v3703_v16  ;;  %10146 = vmatprep.mubr.msk.f32.mxu0 %vm4891_vm7, %v13211_v4  ;;  %v15063_v34 = vrot.slane %v13211_v4, 2  ;;  %v13222_v5 = vmax.f32 %v4653_v19, 0.0  ;;  %v4652_v33 = vadd.f32 %v13193_v23, %v4589_v54 }
 0x35b   :  { %v4328_v60 = vpop.f32.mrf.mxu0  ;;  %10147 = vmatmul.mubr.msk.f32.vlgmr.msra.gmra.mxu0 %vm4891_vm7, %v13207_v1  ;;  %v3718_v16 = vadd.f32 %v13076_v29, %v13033_v43  ;;  %v3733_v43 = vadd.f32 %v13082_v61, %v13035_v58  ;;  %v8692_v58 = vld [vmem:[%s15025_s7 + $0xb0] sm:$0xff] }
 0x35c   :  { %v4655_v20 = vadd.f32 %v13193_v23, %v4592_v38  ;;  %v4591_v22 = vadd.f32 %v4328_v60, %v3698_v32  ;;  %v4708_v24 = vmax.f32 %v4652_v33, 0.0  ;;  %v4880_v49 = vsel %vm1892_vm4, %v15063_v34, %v4771_v36 }
 0x35d   :  { %v9957_v18 = vpop.f32.mrf.mxu0  ;;  %10046 = vmatprep.mubr.msk.f32.mxu1 %vm4891_vm7, %v4880_v49  ;;  %v4773_v8 = vrot.slane %v13222_v5, 2  ;;  %v5921_v29 = vrot.slane %v13222_v5, 4 }
 0x35e   :  { %v4654_v19 = vadd.f32 %v13193_v23, %v4591_v22  ;;  %v4594_v7 = vadd.f32 %v9957_v18, %v3713_v3  ;;  %v4772_v10 = vrot.slane %v4708_v24, 2  ;;  %v5920_v17 = vrot.slane %v4708_v24, 4  ;;  %10149 = vmatprep.mubr.msk.f32.mxu0 %vm4891_vm7, %v4708_v24  ;;  %v13270_v22 = vpop.f32.mrf.mxu1 }
 0x35f   :  { %v13246_v54 = vmax.f32 %v4655_v20, 0.0  ;;  %v4338_v0 = vpop.f32.mrf.mxu0  ;;  %10150 = vmatmul.mubr.msk.f32.gmra.mxu0 %vm4891_vm7, %v13222_v5  ;;  %v3728_v5 = vadd.f32 %v13088_v21, %v13043_v59  ;;  %v8691_v21 = vld [vmem:[%s15025_s7 + $0xa8] sm:$0xff] }
 0x360   :  { %v4710_v32 = vmax.f32 %v4654_v19, 0.0  ;;  %v4657_v38 = vadd.f32 %v13193_v23, %v4594_v7  ;;  %v4593_v33 = vadd.f32 %v4338_v0, %v3708_v9  ;;  %v4879_v3 = vsel %vm1892_vm4, %v4771_v36, %v4772_v10 }
 0x361   :  { %v9960_v60 = vpop.f32.mrf.mxu0  ;;  %v4878_v20 = vsel %vm1892_vm4, %v4772_v10, %v4773_v8  ;;  %v13266_v61 = vsel %vm4012_vm6, %v15062_v14, %v5920_v17  ;;  %10047 = vmatmul.mubr.msk.f32.vlgmr.msra.gmra.mxu1 %vm4891_vm7, %v4879_v3  ;;  %v4775_v18 = vrot.slane %v13246_v54, 2  ;;  %v3743_v7 = vadd.f32 %v13094_v30, %v13045_v6  ;;  %v13301_v30 = vpop.f32.mrf.mxu1 }
 0x362   :  { %v4774_v9 = vrot.slane %v4710_v32, 2  ;;  %v5922_v36 = vrot.slane %v4710_v32, 4  ;;  %v4596_v24 = vadd.f32 %v9960_v60, %v3723_v48  ;;  %10152 = vmatprep.mubr.msk.f32.mxu0 %vm4891_vm7, %v4710_v32  ;;  %v13275_v49 = vmax.f32 %v4657_v38, 0.0  ;;  %10231 = vmatpush3.msra.mxu1 %v13002_v28 }
 0x363   :  { %v4656_v19 = vadd.f32 %v13193_v23, %v4593_v33  ;;  %10049 = vmatprep.mubr.msk.f32.mxu1 %vm4891_vm7, %v4878_v20  ;;  %v4348_v59 = vpop.f32.mrf.mxu0  ;;  %v13285_v48 = vsel %vm4012_vm6, %v5920_v17, %v5921_v29  ;;  %v5923_v10 = vrot.slane %v13246_v54, 4  ;;  %10153 = vmatmul.mubr.msk.f32.gmra.mxu0 %vm4891_vm7, %v13246_v54 }
 0x364   :  { %v4659_v0 = vadd.f32 %v13193_v23, %v4596_v24  ;;  %v4595_v32 = vadd.f32 %v4348_v59, %v3718_v16  ;;  %10232 = vmatprep.subr.mxu1 %v8692_v58  ;;  %v4877_v33 = vsel %vm1892_vm4, %v4773_v8, %v4774_v9  ;;  %v4876_v17 = vsel %vm1892_vm4, %v4774_v9, %v4775_v18  ;;  %v8690_v8 = vld [vmem:[%s15025_s7 + $0xa0] sm:$0xff] }
 0x365   :  { %v4712_v28 = vmax.f32 %v4656_v19, 0.0  ;;  %v9963_v38 = vpop.f32.mrf.mxu0  ;;  %10233 = vmatpush3.msra.mxu1 %v8692_v58  ;;  %v13299_v6 = vsel %vm4012_vm6, %v5921_v29, %v5922_v36  ;;  %v13310_v54 = vsel %vm4012_vm6, %v5922_v36, %v5923_v10  ;;  %v4777_v3 = vrot.slane %v13275_v49, 2 }
 0x366   :  { %v4658_v16 = vadd.f32 %v13193_v23, %v4595_v32  ;;  %v4598_v60 = vadd.f32 %v9963_v38, %v3733_v43  ;;  %10050 = vmatmul.mubr.msk.f32.gmra.mxu1 %vm4891_vm7, %v4877_v33  ;;  %10234 = vmatprep.subr.mxu1 %v8691_v21  ;;  %v13313_v58 = vmax.f32 %v4659_v0, 0.0  ;;  %v3738_v9 = vadd.f32 %v13100_v51, %v13053_v46  ;;  %v8689_v46 = vld [vmem:[%s15025_s7 + $0x98] sm:$0xff] }
 0x367   :  { %v4776_v29 = vrot.slane %v4712_v28, 2  ;;  %v5924_v20 = vrot.slane %v4712_v28, 4  ;;  %10052 = vmatprep.mubr.msk.f32.mxu1 %vm4891_vm7, %v4876_v17  ;;  %10155 = vmatprep.mubr.msk.f32.mxu0 %vm4891_vm7, %v4712_v28  ;;  %v4358_v43 = vpop.f32.mrf.mxu0  ;;  %v5925_v24 = vrot.slane %v13275_v49, 4 }
 0x368   :  { %v4714_v19 = vmax.f32 %v4658_v16, 0.0  ;;  %v4661_v36 = vadd.f32 %v13193_v23, %v4598_v60  ;;  %10156 = vmatmul.mubr.msk.f32.gmra.mxu0 %vm4891_vm7, %v13275_v49  ;;  %10235 = vmatpush3.msra.mxu1 %v8691_v21  ;;  %v4597_v59 = vadd.f32 %v4358_v43, %v3728_v5  ;;  %v3753_v49 = vadd.f32 %v13106_v27, %v13061_v40  ;;  %v13336_v5 = vpop.f32.mrf.mxu1  ;;  %v8688_v40 = vld [vmem:[%s15025_s7 + $0x90] sm:$0xff] }
 0x369   :  { %v9966_v0 = vpop.f32.mrf.mxu0  ;;  %v4875_v32 = vsel %vm1892_vm4, %v4775_v18, %v4776_v29  ;;  %v4874_v28 = vsel %vm1892_vm4, %v4776_v29, %v4777_v3  ;;  %10236 = vmatprep.subr.mxu1 %v8690_v8  ;;  %v13332_v51 = vsel %vm4012_vm6, %v5923_v10, %v5924_v20  ;;  %v4779_v33 = vrot.slane %v13313_v58, 2 }
 0x36a   :  { %v4778_v21 = vrot.slane %v4714_v19, 2  ;;  %v5926_v38 = vrot.slane %v4714_v19, 4  ;;  %v4600_v18 = vadd.f32 %v9966_v0, %v3743_v7  ;;  %10053 = vmatmul.mubr.msk.f32.gmra.mxu1 %vm4891_vm7, %v4875_v32  ;;  %10158 = vmatprep.mubr.msk.f32.mxu0 %vm4891_vm7, %v4714_v19  ;;  %v13341_v17 = vmax.f32 %v4661_v36, 0.0 }
 0x36b   :  { %v4660_v16 = vadd.f32 %v13193_v23, %v4597_v59  ;;  %10055 = vmatprep.mubr.msk.f32.mxu1 %vm4891_vm7, %v4874_v28  ;;  %v4368_v10 = vpop.f32.mrf.mxu0  ;;  %10237 = vmatpush3.msra.mxu1 %v8690_v8  ;;  %v13350_v27 = vsel %vm4012_vm6, %v5924_v20, %v5925_v24  ;;  %v3748_v7 = vadd.f32 %v13112_v11, %v13066_v25  ;;  %v5927_v60 = vrot.slane %v13313_v58, 4  ;;  %v13366_v11 = vpop.f32.mrf.mxu1 }
 0x36c   :  { %v4663_v29 = vadd.f32 %v13193_v23, %v4600_v18  ;;  %v4599_v43 = vadd.f32 %v4368_v10, %v3738_v9  ;;  %10159 = vmatmul.mubr.msk.f32.gmra.mxu0 %vm4891_vm7, %v13313_v58  ;;  %10238 = vmatprep.subr.mxu1 %v8689_v46  ;;  %v4873_v36 = vsel %vm1892_vm4, %v4777_v3, %v4778_v21  ;;  %v8687_v3 = vld [vmem:[%s15025_s7 + $0x88] sm:$0xff]  ;;  %v4781_v0 = vrot.slane %v13341_v17, 2 }
 0x36d   :  { %v4716_v8 = vmax.f32 %v4660_v16, 0.0  ;;  %v9969_v19 = vpop.f32.mrf.mxu0  ;;  %v4872_v20 = vsel %vm1892_vm4, %v4778_v21, %v4779_v33  ;;  %10239 = vmatpush3.msra.mxu1 %v8689_v46  ;;  %v13364_v25 = vsel %vm4012_vm6, %v5925_v24, %v5926_v38  ;;  %v13375_v58 = vsel %vm4012_vm6, %v5926_v38, %v5927_v60 }
 0x36e   :  { %v4662_v9 = vadd.f32 %v13193_v23, %v4599_v43  ;;  %v4602_v59 = vadd.f32 %v9969_v19, %v3753_v49  ;;  %10056 = vmatmul.mubr.msk.f32.gmra.mxu1 %vm4891_vm7, %v4873_v36  ;;  %10240 = vmatprep.subr.mxu1 %v8688_v40  ;;  %v13378_v28 = vmax.f32 %v4663_v29, 0.0  ;;  %v3763_v49 = vadd.f32 %v13118_v53, %v13068_v55  ;;  %v8686_v55 = vld [vmem:[%s15025_s7 + $0x80] sm:$0xff] }
 0x36f   :  { %v4780_v24 = vrot.slane %v4716_v8, 2  ;;  %v5928_v32 = vrot.slane %v4716_v8, 4  ;;  %10058 = vmatprep.mubr.msk.f32.mxu1 %vm4891_vm7, %v4872_v20  ;;  %10161 = vmatprep.mubr.msk.f32.mxu0 %vm4891_vm7, %v4716_v8  ;;  %v4378_v46 = vpop.f32.mrf.mxu0  ;;  %v5929_v21 = vrot.slane %v13341_v17, 4 }
 0x370   :  { %v4718_v18 = vmax.f32 %v4662_v9, 0.0  ;;  %v4665_v38 = vadd.f32 %v13193_v23, %v4602_v59  ;;  %10162 = vmatmul.mubr.msk.f32.gmra.mxu0 %vm4891_vm7, %v13341_v17  ;;  %10241 = vmatpush3.msra.mxu1 %v8688_v40  ;;  %v4601_v16 = vadd.f32 %v4378_v46, %v3748_v7  ;;  %v3758_v17 = vadd.f32 %v13124_v26, %v13072_v63  ;;  %v13401_v40 = vpop.f32.mrf.mxu1 }
 0x371   :  { %v9972_v10 = vpop.f32.mrf.mxu0  ;;  %v4871_v29 = vsel %vm1892_vm4, %v4779_v33, %v4780_v24  ;;  %v4870_v43 = vsel %vm1892_vm4, %v4780_v24, %v4781_v0  ;;  %10242 = vmatprep.subr.mxu1 %v8687_v3  ;;  %v13397_v53 = vsel %vm4012_vm6, %v5927_v60, %v5928_v32  ;;  %v4783_v19 = vrot.slane %v13378_v28, 2 }
 0x372   :  { %v4782_v7 = vrot.slane %v4718_v18, 2  ;;  %v5930_v8 = vrot.slane %v4718_v18, 4  ;;  %v4604_v33 = vadd.f32 %v9972_v10, %v3763_v49  ;;  %10059 = vmatmul.mubr.msk.f32.gmra.mxu1 %vm4891_vm7, %v4871_v29  ;;  %10164 = vmatprep.mubr.msk.f32.mxu0 %vm4891_vm7, %v4718_v18  ;;  %v13406_v36 = vmax.f32 %v4665_v38, 0.0  ;;  %v13430_v18 = vpop.f32.mrf.mxu1 }
 0x373   :  { %v4664_v20 = vadd.f32 %v13193_v23, %v4601_v16  ;;  %10061 = vmatprep.mubr.msk.f32.mxu1 %vm4891_vm7, %v4870_v43  ;;  %v4388_v60 = vpop.f32.mrf.mxu0  ;;  %10243 = vmatpush3.msra.mxu1 %v8687_v3  ;;  %v13412_v63 = vsel %vm4012_vm6, %v5928_v32, %v5929_v21  ;;  %v3773_v26 = vadd.f32 %v13130_v62, %v13074_v44  ;;  %v5931_v9 = vrot.slane %v13378_v28, 4 }
 0x374   :  { %v4667_v59 = vadd.f32 %v13193_v23, %v4604_v33  ;;  %v4603_v24 = vadd.f32 %v4388_v60, %v3758_v17  ;;  %10165 = vmatmul.mubr.msk.f32.gmra.mxu0 %vm4891_vm7, %v13378_v28  ;;  %10244 = vmatprep.subr.mxu1 %v8686_v55  ;;  %v4869_v3 = vsel %vm1892_vm4, %v4781_v0, %v4782_v7  ;;  %v4785_v16 = vrot.slane %v13406_v36, 2 }
 0x375   :  { %v4720_v46 = vmax.f32 %v4664_v20, 0.0  ;;  %v9975_v49 = vpop.f32.mrf.mxu0  ;;  %v4868_v32 = vsel %vm1892_vm4, %v4782_v7, %v4783_v19  ;;  %10245 = vmatpush3.msra.mxu1 %v8686_v55  ;;  %v13426_v44 = vsel %vm4012_vm6, %v5929_v21, %v5930_v8  ;;  %v3768_v62 = vadd.f32 %v13136_v12, %v13078_v15 }
 0x376   :  { %v4666_v28 = vadd.f32 %v13193_v23, %v4603_v24  ;;  %v4606_v38 = vadd.f32 %v9975_v49, %v3773_v26  ;;  %10062 = vmatmul.mubr.msk.f32.gmra.mxu1 %vm4891_vm7, %v4869_v3  ;;  %v13436_v0 = vsel %vm4012_vm6, %v5930_v8, %v5931_v9  ;;  %v4723_v21 = vmax.f32 %v4667_v59, 0.0 }
 0x377   :  { %v4784_v10 = vrot.slane %v4720_v46, 2  ;;  %v5932_v29 = vrot.slane %v4720_v46, 4  ;;  %10064 = vmatprep.mubr.msk.f32.mxu1 %vm4891_vm7, %v4868_v32  ;;  %10167 = vmatprep.mubr.msk.f32.mxu0 %vm4891_vm7, %v4720_v46  ;;  %v4398_v15 = vpop.f32.mrf.mxu0  ;;  %v3783_v12 = vadd.f32 %v13142_v31, %v13080_v35  ;;  %v5933_v43 = vrot.slane %v13406_v36, 4  ;;  %v13457_v31 = vpop.f32.mrf.mxu1 }
 0x378   :  { %v4722_v55 = vmax.f32 %v4666_v28, 0.0  ;;  %v4669_v17 = vadd.f32 %v13193_v23, %v4606_v38  ;;  %10168 = vmatmul.mubr.msk.f32.gmra.mxu0 %vm4891_vm7, %v13406_v36  ;;  %v4605_v7 = vadd.f32 %v4398_v15, %v3768_v62  ;;  %v3778_v35 = vadd.f32 %v13148_v57, %v13084_v39 }
 0x379   :  { %v9978_v8 = vpop.f32.mrf.mxu0  ;;  %v4867_v33 = vsel %vm1892_vm4, %v4783_v19, %v4784_v10  ;;  %v4866_v20 = vsel %vm1892_vm4, %v4784_v10, %v4785_v16  ;;  %v13453_v60 = vsel %vm4012_vm6, %v5931_v9, %v5932_v29  ;;  %v4787_v19 = vrot.slane %v4723_v21, 2 }
 0x37a   :  { %v4786_v26 = vrot.slane %v4722_v55, 2  ;;  %v5934_v59 = vrot.slane %v4722_v55, 4  ;;  %v4608_v36 = vadd.f32 %v9978_v8, %v3783_v12  ;;  %10065 = vmatmul.mubr.msk.f32.gmra.mxu1 %vm4891_vm7, %v4867_v33  ;;  %10170 = vmatprep.mubr.msk.f32.mxu0 %vm4891_vm7, %v4722_v55  ;;  %v4725_v24 = vmax.f32 %v4669_v17, 0.0 }
 0x37b   :  { %v4668_v46 = vadd.f32 %v13193_v23, %v4605_v7  ;;  %10067 = vmatprep.mubr.msk.f32.mxu1 %vm4891_vm7, %v4866_v20  ;;  %v4408_v9 = vpop.f32.mrf.mxu0  ;;  %v13465_v49 = vsel %vm4012_vm6, %v5932_v29, %v5933_v43  ;;  %v3793_v39 = vadd.f32 %v13154_v37, %v13086_v56  ;;  %v5935_v57 = vrot.slane %v4723_v21, 4  ;;  %v13481_v37 = vpop.f32.mrf.mxu1 }
 0x37c   :  { %v4671_v3 = vadd.f32 %v13193_v23, %v4608_v36  ;;  %v4607_v32 = vadd.f32 %v4408_v9, %v3778_v35  ;;  %10171 = vmatmul.mubr.msk.f32.gmra.mxu0 %vm4891_vm7, %v4723_v21  ;;  %v4865_v38 = vsel %vm1892_vm4, %v4785_v16, %v4786_v26  ;;  %v4864_v10 = vsel %vm1892_vm4, %v4786_v26, %v4787_v19  ;;  %v15280_v9 = vld [vmem:[#allocation27_spill] sm:$0xff] }
 0x37d   :  { %v4724_v62 = vmax.f32 %v4668_v46, 0.0  ;;  %v9981_v28 = vpop.f32.mrf.mxu0  ;;  %v13477_v29 = vsel %vm4012_vm6, %v5933_v43, %v5934_v59  ;;  %v3788_v56 = vadd.f32 %v13160_v45, %v13090_v50  ;;  %v13487_v16 = vsel %vm4012_vm6, %v5934_v59, %v5935_v57  ;;  %v15279_v45 = vld [vmem:[#allocation5_spill] sm:$0xff] }
 0x37e   :  { %v4670_v15 = vadd.f32 %v13193_v23, %v4607_v32  ;;  %v4610_v21 = vadd.f32 %v9981_v28, %v3793_v39  ;;  %10068 = vmatmul.mubr.msk.f32.gmra.mxu1 %vm4891_vm7, %v4865_v38  ;;  %v4789_v12 = vrot.slane %v4725_v24, 2  ;;  %v4727_v7 = vmax.f32 %v4671_v3, 0.0  ;;  %v13505_v3 = vpop.f32.mrf.mxu1 }
 0x37f   :  { %v4788_v55 = vrot.slane %v4724_v62, 2  ;;  %v5936_v17 = vrot.slane %v4724_v62, 4  ;;  %10070 = vmatprep.mubr.msk.f32.mxu1 %vm4891_vm7, %v4864_v10  ;;  %10173 = vmatprep.mubr.msk.f32.mxu0 %vm4891_vm7, %v4724_v62  ;;  %v4418_v50 = vpop.f32.mrf.mxu0  ;;  %v3803_v43 = vadd.f32 %v15279_v45, %v13092_v13  ;;  %v5937_v8 = vrot.slane %v4725_v24, 4  ;;  %v15281_v13 = vld [vmem:[#allocation12_spill] sm:$0xff] }
 0x380   :  { %v4726_v33 = vmax.f32 %v4670_v15, 0.0  ;;  %v4673_v20 = vadd.f32 %v13193_v23, %v4610_v21  ;;  %10174 = vmatmul.mubr.msk.f32.gmra.mxu0 %vm4891_vm7, %v4725_v24  ;;  %v4609_v35 = vadd.f32 %v4418_v50, %v3788_v56  ;;  %v3798_v39 = vadd.f32 %v15281_v13, %v15280_v9  ;;  %v15282_v56 = vld [vmem:[#allocation34_spill] sm:$0xff]  ;;  %v15283_v15 = vld [vmem:[#allocation16_spill] sm:$0xff]  ;;  %v13529_v9 = vpop.f32.mrf.mxu1 }
 0x381   :  { %v9984_v26 = vpop.f32.mrf.mxu0  ;;  %v4863_v59 = vsel %vm1892_vm4, %v4787_v19, %v4788_v55  ;;  %v4862_v36 = vsel %vm1892_vm4, %v4788_v55, %v4789_v12  ;;  %v13501_v46 = vsel %vm4012_vm6, %v5935_v57, %v5936_v17  ;;  %v4791_v19 = vrot.slane %v4727_v7, 2 }
 0x382   :  { %v4790_v32 = vrot.slane %v4726_v33, 2  ;;  %v5938_v62 = vrot.slane %v4726_v33, 4  ;;  %v4612_v24 = vadd.f32 %v9984_v26, %v3803_v43  ;;  %10071 = vmatmul.mubr.msk.f32.gmra.mxu1 %vm4891_vm7, %v4863_v59  ;;  %10176 = vmatprep.mubr.msk.f32.mxu0 %vm4891_vm7, %v4726_v33  ;;  %v4729_v28 = vmax.f32 %v4673_v20, 0.0  ;;  %v15284_v26 = vld [vmem:[#allocation29_spill] sm:$0xff] }
 0x383   :  { %v4672_v38 = vadd.f32 %v13193_v23, %v4609_v35  ;;  %10073 = vmatprep.mubr.msk.f32.mxu1 %vm4891_vm7, %v4862_v36  ;;  %v4428_v57 = vpop.f32.mrf.mxu0  ;;  %v13513_v10 = vsel %vm4012_vm6, %v5936_v17, %v5937_v8  ;;  %v3813_v21 = vadd.f32 %v15283_v15, %v15282_v56  ;;  %v5939_v55 = vrot.slane %v4727_v7, 4  ;;  %v15285_v59 = vld [vmem:[#allocation13_spill] sm:$0xff] }
 0x384   :  { %v4675_v50 = vadd.f32 %v13193_v23, %v4612_v24  ;;  %v4611_v45 = vadd.f32 %v4428_v57, %v3798_v39  ;;  %10177 = vmatmul.mubr.msk.f32.gmra.mxu0 %vm4891_vm7, %v4727_v7  ;;  %v4861_v20 = vsel %vm1892_vm4, %v4789_v12, %v4790_v32  ;;  %v4860_v35 = vsel %vm1892_vm4, %v4790_v32, %v4791_v19  ;;  %v15286_v57 = vld [vmem:[#allocation36_spill] sm:$0xff] }
 0x385   :  { %v4728_v43 = vmax.f32 %v4672_v38, 0.0  ;;  %v9987_v33 = vpop.f32.mrf.mxu0  ;;  %v13525_v17 = vsel %vm4012_vm6, %v5937_v8, %v5938_v62  ;;  %v3808_v36 = vadd.f32 %v15285_v59, %v15284_v26  ;;  %v13535_v12 = vsel %vm4012_vm6, %v5938_v62, %v5939_v55  ;;  %v13553_v26 = vpop.f32.mrf.mxu1 }
 0x386   :  { %v4674_v13 = vadd.f32 %v13193_v23, %v4611_v45  ;;  %v4614_v7 = vadd.f32 %v9987_v33, %v3813_v21  ;;  %10074 = vmatmul.mubr.msk.f32.gmra.mxu1 %vm4891_vm7, %v4861_v20  ;;  %v4793_v39 = vrot.slane %v4729_v28, 2  ;;  %v4731_v38 = vmax.f32 %v4675_v50, 0.0 }
 0x387   :  { %v4792_v32 = vrot.slane %v4728_v43, 2  ;;  %v5940_v24 = vrot.slane %v4728_v43, 4  ;;  %10076 = vmatprep.mubr.msk.f32.mxu1 %vm4891_vm7, %v4860_v35  ;;  %10179 = vmatprep.mubr.msk.f32.mxu0 %vm4891_vm7, %v4728_v43  ;;  %v4438_v8 = vpop.f32.mrf.mxu0  ;;  %v3823_v56 = vadd.f32 %v13197_v41, %v15286_v57  ;;  %v5941_v15 = vrot.slane %v4729_v28, 4  ;;  %v15287_v35 = vld [vmem:[#allocation31_spill] sm:$0xff] }
 0x388   :  { %v4730_v21 = vmax.f32 %v4674_v13, 0.0  ;;  %v4677_v45 = vadd.f32 %v13193_v23, %v4614_v7  ;;  %10180 = vmatmul.mubr.msk.f32.gmra.mxu0 %vm4891_vm7, %v4729_v28  ;;  %v4613_v62 = vadd.f32 %v4438_v8, %v3808_v36  ;;  %v3818_v41 = vadd.f32 %v13202_v52, %v15287_v35  ;;  %v15288_v52 = vld [vmem:[#allocation38_spill] sm:$0xff]  ;;  %v13577_v35 = vpop.f32.mrf.mxu1 }
 0x389   :  { %v9990_v33 = vpop.f32.mrf.mxu0  ;;  %v4859_v20 = vsel %vm1892_vm4, %v4791_v19, %v4792_v32  ;;  %v4858_v50 = vsel %vm1892_vm4, %v4792_v32, %v4793_v39  ;;  %v13549_v43 = vsel %vm4012_vm6, %v5939_v55, %v5940_v24  ;;  %v4795_v19 = vrot.slane %v4731_v38, 2 }
 0x38a   :  { %v4794_v59 = vrot.slane %v4730_v21, 2  ;;  %v5942_v13 = vrot.slane %v4730_v21, 4  ;;  %v4616_v28 = vadd.f32 %v9990_v33, %v3823_v56  ;;  %10077 = vmatmul.mubr.msk.f32.gmra.mxu1 %vm4891_vm7, %v4859_v20  ;;  %10182 = vmatprep.mubr.msk.f32.mxu0 %vm4891_vm7, %v4730_v21  ;;  %v4733_v36 = vmax.f32 %v4677_v45, 0.0 }
 0x38b   :  { %v4676_v7 = vadd.f32 %v13193_v23, %v4613_v62  ;;  %10079 = vmatprep.mubr.msk.f32.mxu1 %vm4891_vm7, %v4858_v50  ;;  %v4448_v55 = vpop.f32.mrf.mxu0  ;;  %v13561_v32 = vsel %vm4012_vm6, %v5940_v24, %v5941_v15  ;;  %v3833_v8 = vadd.f32 %v13216_v42, %v15288_v52  ;;  %v5943_v57 = vrot.slane %v4731_v38, 4  ;;  %v15289_v50 = vld [vmem:[#allocation33_spill] sm:$0xff] }
 0x38c   :  { %v4679_v56 = vadd.f32 %v13193_v23, %v4616_v28  ;;  %v4615_v33 = vadd.f32 %v4448_v55, %v3818_v41  ;;  %10183 = vmatmul.mubr.msk.f32.gmra.mxu0 %vm4891_vm7, %v4731_v38  ;;  %v4857_v62 = vsel %vm1892_vm4, %v4793_v39, %v4794_v59  ;;  %v4856_v20 = vsel %vm1892_vm4, %v4794_v59, %v4795_v19 }
 0x38d   :  { %v4732_v21 = vmax.f32 %v4676_v7, 0.0  ;;  %v9993_v45 = vpop.f32.mrf.mxu0  ;;  %v13573_v24 = vsel %vm4012_vm6, %v5941_v15, %v5942_v13  ;;  %v3828_v42 = vadd.f32 %v13240_v47, %v15289_v50  ;;  %v13583_v39 = vsel %vm4012_vm6, %v5942_v13, %v5943_v57  ;;  %v15290_v15 = vld [vmem:[#allocation39_spill] sm:$0xff] }
 0x38e   :  { %v4678_v41 = vadd.f32 %v13193_v23, %v4615_v33  ;;  %v4618_v38 = vadd.f32 %v9993_v45, %v3833_v8  ;;  %10080 = vmatmul.mubr.msk.f32.gmra.mxu1 %vm4891_vm7, %v4857_v62  ;;  %v4797_v28 = vrot.slane %v4733_v36, 2  ;;  %v4735_v55 = vmax.f32 %v4679_v56, 0.0 }
 0x38f   :  { %v4796_v59 = vrot.slane %v4732_v21, 2  ;;  %v5944_v7 = vrot.slane %v4732_v21, 4  ;;  %10082 = vmatprep.mubr.msk.f32.mxu1 %vm4891_vm7, %v4856_v20  ;;  %10185 = vmatprep.mubr.msk.f32.mxu0 %vm4891_vm7, %v4732_v21  ;;  %v4458_v47 = vpop.f32.mrf.mxu0  ;;  %v3843_v52 = vadd.f32 %v13270_v22, %v15290_v15  ;;  %v5945_v33 = vrot.slane %v4733_v36, 4  ;;  %v15291_v20 = vld [vmem:[#allocation35_spill] sm:$0xff] }
 0x390   :  { %v4734_v8 = vmax.f32 %v4678_v41, 0.0  ;;  %v4681_v45 = vadd.f32 %v13193_v23, %v4618_v38  ;;  %10186 = vmatmul.mubr.msk.f32.gmra.mxu0 %vm4891_vm7, %v4733_v36  ;;  %v4617_v13 = vadd.f32 %v4458_v47, %v3828_v42  ;;  %v3838_v22 = vadd.f32 %v13301_v30, %v15291_v20  ;;  %v13601_v41 = vpop.f32.mrf.mxu1  ;;  %v15292_v30 = vld [vmem:[#allocation41_spill] sm:$0xff] }
 0x391   :  { %v9996_v62 = vpop.f32.mrf.mxu0  ;;  %v4855_v50 = vsel %vm1892_vm4, %v4795_v19, %v4796_v59  ;;  %v4854_v56 = vsel %vm1892_vm4, %v4796_v59, %v4797_v28  ;;  %v13597_v21 = vsel %vm4012_vm6, %v5943_v57, %v5944_v7  ;;  %v4799_v19 = vrot.slane %v4735_v55, 2 }
 0x392   :  { %v4798_v38 = vrot.slane %v4734_v8, 2  ;;  %v5946_v15 = vrot.slane %v4734_v8, 4  ;;  %v4620_v36 = vadd.f32 %v9996_v62, %v3843_v52  ;;  %10083 = vmatmul.mubr.msk.f32.gmra.mxu1 %vm4891_vm7, %v4855_v50  ;;  %10188 = vmatprep.mubr.msk.f32.mxu0 %vm4891_vm7, %v4734_v8  ;;  %v4737_v42 = vmax.f32 %v4681_v45, 0.0 }
 0x393   :  { %v4680_v59 = vadd.f32 %v13193_v23, %v4617_v13  ;;  %10085 = vmatprep.mubr.msk.f32.mxu1 %vm4891_vm7, %v4854_v56  ;;  %v4468_v57 = vpop.f32.mrf.mxu0  ;;  %v13609_v47 = vsel %vm4012_vm6, %v5944_v7, %v5945_v33  ;;  %v3853_v20 = vadd.f32 %v13336_v5, %v15292_v30  ;;  %v5947_v14 = vrot.slane %v4735_v55, 4  ;;  %v15293_v56 = vld [vmem:[#allocation37_spill] sm:$0xff]  ;;  %v13625_v30 = vpop.f32.mrf.mxu1 }
 0x394   :  { %v4683_v52 = vadd.f32 %v13193_v23, %v4620_v36  ;;  %v4619_v62 = vadd.f32 %v4468_v57, %v3838_v22  ;;  %10189 = vmatmul.mubr.msk.f32.gmra.mxu0 %vm4891_vm7, %v4735_v55  ;;  %v4853_v13 = vsel %vm1892_vm4, %v4797_v28, %v4798_v38  ;;  %v4852_v50 = vsel %vm1892_vm4, %v4798_v38, %v4799_v19 }
 0x395   :  { %v4736_v8 = vmax.f32 %v4680_v59, 0.0  ;;  %v9999_v45 = vpop.f32.mrf.mxu0  ;;  %v13621_v7 = vsel %vm4012_vm6, %v5945_v33, %v5946_v15  ;;  %v3848_v5 = vadd.f32 %v13366_v11, %v15293_v56  ;;  %v13631_v28 = vsel %vm4012_vm6, %v5946_v15, %v5947_v14  ;;  %v15294_v33 = vld [vmem:[#allocation42_spill] sm:$0xff] }
 0x396   :  { %v4682_v22 = vadd.f32 %v13193_v23, %v4619_v62  ;;  %v4622_v55 = vadd.f32 %v9999_v45, %v3853_v20  ;;  %10086 = vmatmul.mubr.msk.f32.gmra.mxu1 %vm4891_vm7, %v4853_v13  ;;  %v4801_v36 = vrot.slane %v4737_v42, 2  ;;  %v4739_v57 = vmax.f32 %v4683_v52, 0.0 }
 0x397   :  { %v4800_v38 = vrot.slane %v4736_v8, 2  ;;  %v5948_v59 = vrot.slane %v4736_v8, 4  ;;  %10088 = vmatprep.mubr.msk.f32.mxu1 %vm4891_vm7, %v4852_v50  ;;  %10191 = vmatprep.mubr.msk.f32.mxu0 %vm4891_vm7, %v4736_v8  ;;  %v4478_v11 = vpop.f32.mrf.mxu0  ;;  %v3863_v56 = vadd.f32 %v13401_v40, %v15294_v33  ;;  %v5949_v62 = vrot.slane %v4737_v42, 4  ;;  %v15296_v50 = vld [vmem:[#allocation40_spill] sm:$0xff] }
 0x398   :  { %v4738_v20 = vmax.f32 %v4682_v22, 0.0  ;;  %v4685_v45 = vadd.f32 %v13193_v23, %v4622_v55  ;;  %10192 = vmatmul.mubr.msk.f32.gmra.mxu0 %vm4891_vm7, %v4737_v42  ;;  %v4621_v15 = vadd.f32 %v4478_v11, %v3848_v5  ;;  %v3858_v40 = vadd.f32 %v13430_v18, %v15296_v50  ;;  %v13649_v22 = vpop.f32.mrf.mxu1  ;;  %v15297_v18 = vld [vmem:[#allocation43_spill] sm:$0xff] }
 0x399   :  { %v10002_v13 = vpop.f32.mrf.mxu0  ;;  %v4851_v34 = vsel %vm1892_vm4, %v4799_v19, %v4800_v38  ;;  %v4850_v52 = vsel %vm1892_vm4, %v4800_v38, %v4801_v36  ;;  %v13645_v8 = vsel %vm4012_vm6, %v5947_v14, %v5948_v59  ;;  %v4803_v19 = vrot.slane %v4739_v57, 2 }
 0x39a   :  { %15295 = vst [vmem:[#allocation20_spill] sm:$0xff] %v13645_v8  ;;  %v4802_v55 = vrot.slane %v4738_v20, 2  ;;  %v5950_v33 = vrot.slane %v4738_v20, 4  ;;  %v4624_v42 = vadd.f32 %v10002_v13, %v3863_v56  ;;  %10089 = vmatmul.mubr.msk.f32.gmra.mxu1 %vm4891_vm7, %v4851_v34  ;;  %10194 = vmatprep.mubr.msk.f32.mxu0 %vm4891_vm7, %v4738_v20  ;;  %v4741_v5 = vmax.f32 %v4685_v45, 0.0 }
 0x39b   :  { %v4684_v38 = vadd.f32 %v13193_v23, %v4621_v15  ;;  %10091 = vmatprep.mubr.msk.f32.mxu1 %vm4891_vm7, %v4850_v52  ;;  %v4488_v14 = vpop.f32.mrf.mxu0  ;;  %v13657_v11 = vsel %vm4012_vm6, %v5948_v59, %v5949_v62  ;;  %v3873_v50 = vadd.f32 %v13457_v31, %v15297_v18  ;;  %v5951_v8 = vrot.slane %v4739_v57, 4  ;;  %v15298_v52 = vld [vmem:[#allocation44_spill] sm:$0xff]  ;;  %v13673_v18 = vpop.f32.mrf.mxu1 }
 0x39c   :  { %v4687_v56 = vadd.f32 %v13193_v23, %v4624_v42  ;;  %v4623_v34 = vadd.f32 %v4488_v14, %v3858_v40  ;;  %10195 = vmatmul.mubr.msk.f32.gmra.mxu0 %vm4891_vm7, %v4739_v57  ;;  %v4849_v15 = vsel %vm1892_vm4, %v4801_v36, %v4802_v55  ;;  %v4848_v13 = vsel %vm1892_vm4, %v4802_v55, %v4803_v19 }
 0x39d   :  { %v4740_v20 = vmax.f32 %v4684_v38, 0.0  ;;  %v10005_v45 = vpop.f32.mrf.mxu0  ;;  %v13669_v59 = vsel %vm4012_vm6, %v5949_v62, %v5950_v33  ;;  %v3868_v31 = vadd.f32 %v13481_v37, %v15298_v52  ;;  %v13679_v36 = vsel %vm4012_vm6, %v5950_v33, %v5951_v8  ;;  %v15300_v62 = vld [vmem:[#allocation45_spill] sm:$0xff] }
 0x39e   :  { %v4686_v40 = vadd.f32 %v13193_v23, %v4623_v34  ;;  %v4626_v57 = vadd.f32 %v10005_v45, %v3873_v50  ;;  %10092 = vmatmul.mubr.msk.f32.gmra.mxu1 %vm4891_vm7, %v4849_v15  ;;  %15299 = vst [vmem:[#allocation15_spill] sm:$0xff] %v13679_v36  ;;  %v4805_v42 = vrot.slane %v4741_v5, 2  ;;  %v4743_v14 = vmax.f32 %v4687_v56, 0.0 }
 0x39f   :  { %v4804_v55 = vrot.slane %v4740_v20, 2  ;;  %v5952_v38 = vrot.slane %v4740_v20, 4  ;;  %10094 = vmatprep.mubr.msk.f32.mxu1 %vm4891_vm7, %v4848_v13  ;;  %10197 = vmatprep.mubr.msk.f32.mxu0 %vm4891_vm7, %v4740_v20  ;;  %v4498_v37 = vpop.f32.mrf.mxu0  ;;  %v3883_v52 = vadd.f32 %v13505_v3, %v15300_v62  ;;  %v5953_v34 = vrot.slane %v4741_v5, 4  ;;  %v15302_v13 = vld [vmem:[#allocation46_spill] sm:$0xff] }
 0x3a0   :  { %v4742_v50 = vmax.f32 %v4686_v40, 0.0  ;;  %v4689_v45 = vadd.f32 %v13193_v23, %v4626_v57  ;;  %10198 = vmatmul.mubr.msk.f32.gmra.mxu0 %vm4891_vm7, %v4741_v5  ;;  %v4625_v33 = vadd.f32 %v4498_v37, %v3868_v31  ;;  %v3878_v3 = vadd.f32 %v13529_v9, %v15302_v13  ;;  %v13697_v40 = vpop.f32.mrf.mxu1  ;;  %v15303_v9 = vld [vmem:[#allocation47_spill] sm:$0xff] }
 0x3a1   :  { %v10008_v15 = vpop.f32.mrf.mxu0  ;;  %v4847_v36 = vsel %vm1892_vm4, %v4803_v19, %v4804_v55  ;;  %v4846_v56 = vsel %vm1892_vm4, %v4804_v55, %v4805_v42  ;;  %v13693_v20 = vsel %vm4012_vm6, %v5951_v8, %v5952_v38  ;;  %v4807_v19 = vrot.slane %v4743_v14, 2 }
 0x3a2   :  { %15301 = vst [vmem:[#allocation22_spill] sm:$0xff] %v13693_v20  ;;  %v4806_v57 = vrot.slane %v4742_v50, 2  ;;  %v5954_v62 = vrot.slane %v4742_v50, 4  ;;  %v4628_v5 = vadd.f32 %v10008_v15, %v3883_v52  ;;  %10095 = vmatmul.mubr.msk.f32.gmra.mxu1 %vm4891_vm7, %v4847_v36  ;;  %10200 = vmatprep.mubr.msk.f32.mxu0 %vm4891_vm7, %v4742_v50  ;;  %v4745_v31 = vmax.f32 %v4689_v45, 0.0 }
 0x3a3   :  { %v4688_v55 = vadd.f32 %v13193_v23, %v4625_v33  ;;  %10097 = vmatprep.mubr.msk.f32.mxu1 %vm4891_vm7, %v4846_v56  ;;  %v4508_v8 = vpop.f32.mrf.mxu0  ;;  %v13705_v37 = vsel %vm4012_vm6, %v5952_v38, %v5953_v34  ;;  %v3893_v13 = vadd.f32 %v13553_v26, %v15303_v9  ;;  %v5955_v20 = vrot.slane %v4743_v14, 4  ;;  %v15305_v56 = vld [vmem:[#allocation48_spill] sm:$0xff]  ;;  %v13721_v9 = vpop.f32.mrf.mxu1 }
 0x3a4   :  { %v4691_v52 = vadd.f32 %v13193_v23, %v4628_v5  ;;  %v4627_v36 = vadd.f32 %v4508_v8, %v3878_v3  ;;  %10201 = vmatmul.mubr.msk.f32.gmra.mxu0 %vm4891_vm7, %v4743_v14  ;;  %v4845_v33 = vsel %vm1892_vm4, %v4805_v42, %v4806_v57  ;;  %v4844_v15 = vsel %vm1892_vm4, %v4806_v57, %v4807_v19 }
 0x3a5   :  { %v4744_v50 = vmax.f32 %v4688_v55, 0.0  ;;  %v10011_v45 = vpop.f32.mrf.mxu0  ;;  %v13717_v38 = vsel %vm4012_vm6, %v5953_v34, %v5954_v62  ;;  %v3888_v26 = vadd.f32 %v13577_v35, %v15305_v56  ;;  %v13727_v42 = vsel %vm4012_vm6, %v5954_v62, %v5955_v20  ;;  %v15307_v34 = vld [vmem:[#allocation49_spill] sm:$0xff] }
 0x3a6   :  { %15304 = vst [vmem:[#allocation17_spill] sm:$0xff] %v13717_v38  ;;  %v4690_v3 = vadd.f32 %v13193_v23, %v4627_v36  ;;  %v4630_v14 = vadd.f32 %v10011_v45, %v3893_v13  ;;  %10098 = vmatmul.mubr.msk.f32.gmra.mxu1 %vm4891_vm7, %v4845_v33  ;;  %15306 = vst [vmem:[#allocation24_spill] sm:$0xff] %v13727_v42  ;;  %v4809_v5 = vrot.slane %v4745_v31, 2  ;;  %v4747_v8 = vmax.f32 %v4691_v52, 0.0 }
 0x3a7   :  { %v4808_v57 = vrot.slane %v4744_v50, 2  ;;  %v5956_v55 = vrot.slane %v4744_v50, 4  ;;  %10100 = vmatprep.mubr.msk.f32.mxu1 %vm4891_vm7, %v4844_v15  ;;  %10203 = vmatprep.mubr.msk.f32.mxu0 %vm4891_vm7, %v4744_v50  ;;  %v4518_v35 = vpop.f32.mrf.mxu0  ;;  %v3903_v56 = vadd.f32 %v13601_v41, %v15307_v34  ;;  %v5957_v36 = vrot.slane %v4745_v31, 4  ;;  %v15308_v15 = vld [vmem:[#allocation50_spill] sm:$0xff] }
 0x3a8   :  { %v4746_v13 = vmax.f32 %v4690_v3, 0.0  ;;  %v4693_v45 = vadd.f32 %v13193_v23, %v4630_v14  ;;  %10204 = vmatmul.mubr.msk.f32.gmra.mxu0 %vm4891_vm7, %v4745_v31  ;;  %v4629_v62 = vadd.f32 %v4518_v35, %v3888_v26  ;;  %v3898_v41 = vadd.f32 %v13625_v30, %v15308_v15  ;;  %v9931_v3 = vpop.f32.mrf.mxu1  ;;  %v15309_v30 = vld [vmem:[#allocation3_spill] sm:$0xff]  ;;  %v15311_v15 = vld [vmem:[#allocation4_spill] sm:$0xff] }
 0x3a9   :  { %v10014_v33 = vpop.f32.mrf.mxu0  ;;  %v4843_v42 = vsel %vm1892_vm4, %v4807_v19, %v4808_v57  ;;  %v4842_v52 = vsel %vm1892_vm4, %v4808_v57, %v4809_v5  ;;  %v13741_v50 = vsel %vm4012_vm6, %v5955_v20, %v5956_v55  ;;  %v4811_v31 = vrot.slane %v4747_v8, 2 }
 0x3aa   :  { %v4810_v34 = vrot.slane %v4746_v13, 2  ;;  %v5958_v14 = vrot.slane %v4746_v13, 4  ;;  %v4632_v38 = vadd.f32 %v10014_v33, %v3903_v56  ;;  %10101 = vmatmul.mubr.msk.f32.gmra.mxu1 %vm4891_vm7, %v4843_v42  ;;  %10206 = vmatprep.mubr.msk.f32.mxu0 %vm4891_vm7, %v4746_v13  ;;  %v13747_v19 = vmax.f32 %v4693_v45, 0.0 }
 0x3ab   :  { %v4692_v26 = vadd.f32 %v13193_v23, %v4629_v62  ;;  %10103 = vmatprep.mubr.msk.f32.mxu1 %vm4891_vm7, %v4842_v52  ;;  %v4528_v20 = vpop.f32.mrf.mxu0  ;;  %v13753_v57 = vsel %vm4012_vm6, %v5956_v55, %v5957_v36  ;;  %v3913_v35 = vadd.f32 %v13649_v22, %v15309_v30  ;;  %v5959_v56 = vrot.slane %v4747_v8, 4  ;;  %v3927_v30 = vpop.f32.mrf.mxu1 }
 0x3ac   :  { %v4695_v42 = vadd.f32 %v13193_v23, %v4632_v38  ;;  %v4631_v33 = vadd.f32 %v4528_v20, %v3898_v41  ;;  %10207 = vmatmul.mubr.msk.f32.gmra.mxu0 %vm4891_vm7, %v4747_v8  ;;  %v4841_v62 = vsel %vm1892_vm4, %v4809_v5, %v4810_v34  ;;  %v4840_v52 = vsel %vm1892_vm4, %v4810_v34, %v4811_v31  ;;  %v13772_v23 = vld [vmem:[%s15026_s6] ss:$0 sm:$0xff]  ;;  %v15313_v20 = vld [vmem:[#allocation8_spill] sm:$0xff] }
 0x3ad   :  { %v4748_v13 = vmax.f32 %v4692_v26, 0.0  ;;  %v10017_v45 = vpop.f32.mrf.mxu0  ;;  %v13765_v55 = vsel %vm4012_vm6, %v5957_v36, %v5958_v14  ;;  %v3908_v22 = vadd.f32 %v13673_v18, %v15311_v15  ;;  %v13778_v5 = vsel %vm4012_vm6, %v5958_v14, %v5959_v56 }
 0x3ae   :  { %15310 = vst [vmem:[#allocation19_spill] sm:$0xff] %v13765_v55  ;;  %v4694_v38 = vadd.f32 %v13772_v23, %v4631_v33  ;;  %v4634_v8 = vadd.f32 %v10017_v45, %v3913_v35  ;;  %10104 = vmatmul.mubr.msk.f32.gmra.mxu1 %vm4891_vm7, %v4841_v62  ;;  %15312 = vst [vmem:[#allocation26_spill] sm:$0xff] %v13778_v5  ;;  %v4813_v36 = vrot.slane %v13747_v19, 2  ;;  %v4751_v18 = vmax.f32 %v4695_v42, 0.0 }
 0x3af   :  { %v4812_v41 = vrot.slane %v4748_v13, 2  ;;  %v5960_v34 = vrot.slane %v4748_v13, 4  ;;  %10106 = vmatprep.mubr.msk.f32.mxu1 %vm4891_vm7, %v4840_v52  ;;  %10209 = vmatprep.mubr.msk.f32.mxu0 %vm4891_vm7, %v4748_v13  ;;  %v4538_v26 = vpop.f32.mrf.mxu0  ;;  %v3923_v33 = vadd.f32 %v13697_v40, %v15313_v20  ;;  %v5961_v35 = vrot.slane %v13747_v19, 4  ;;  %v15314_v40 = vld [vmem:[#allocation10_spill] sm:$0xff]  ;;  %v9934_v20 = vpop.f32.mrf.mxu1 }
 0x3b0   :  { %v4750_v45 = vmax.f32 %v4694_v38, 0.0  ;;  %v4697_v62 = vadd.f32 %v13772_v23, %v4634_v8  ;;  %10210 = vmatmul.mubr.msk.f32.gmra.mxu0 %vm4891_vm7, %v13747_v19  ;;  %v4633_v14 = vadd.f32 %v4538_v26, %v3908_v22  ;;  %v3918_v38 = vadd.f32 %v13721_v9, %v15314_v40  ;;  %v15315_v9 = vld [vmem:[#allocation6_spill] sm:$0xff] }
 0x3b1   :  { %v10020_v15 = vpop.f32.mrf.mxu0  ;;  %v4839_v42 = vsel %vm1892_vm4, %v4811_v31, %v4812_v41  ;;  %v4838_v13 = vsel %vm1892_vm4, %v4812_v41, %v4813_v36  ;;  %v13795_v52 = vsel %vm4012_vm6, %v5959_v56, %v5960_v34  ;;  %v4815_v19 = vrot.slane %v4751_v18, 2 }
 0x3b2   :  { %v4814_v8 = vrot.slane %v4750_v45, 2  ;;  %v5962_v5 = vrot.slane %v4750_v45, 4  ;;  %v4636_v55 = vadd.f32 %v10020_v15, %v3923_v33  ;;  %10107 = vmatmul.mubr.msk.f32.gmra.mxu1 %vm4891_vm7, %v4839_v42  ;;  %10212 = vmatprep.mubr.msk.f32.mxu0 %vm4891_vm7, %v4750_v45  ;;  %v4753_v31 = vmax.f32 %v4697_v62, 0.0 }
 0x3b3   :  { %v4696_v22 = vadd.f32 %v13772_v23, %v4633_v14  ;;  %10109 = vmatprep.mubr.msk.f32.mxu1 %vm4891_vm7, %v4838_v13  ;;  %v4548_v41 = vpop.f32.mrf.mxu0  ;;  %v13805_v56 = vsel %vm4012_vm6, %v5960_v34, %v5961_v35  ;;  %v3933_v26 = vadd.f32 %v9931_v3, %v15315_v9  ;;  %v5963_v40 = vrot.slane %v4751_v18, 4  ;;  %v15317_v13 = vld [vmem:[#allocation7_spill] sm:$0xff]  ;;  %v3937_v9 = vpop.f32.mrf.mxu1 }
 0x3b4   :  { %v4699_v33 = vadd.f32 %v13772_v23, %v4636_v55  ;;  %v4635_v15 = vadd.f32 %v4548_v41, %v3918_v38  ;;  %10213 = vmatmul.mubr.msk.f32.gmra.mxu0 %vm4891_vm7, %v4751_v18  ;;  %v4837_v62 = vsel %vm1892_vm4, %v4813_v36, %v4814_v8  ;;  %v4836_v14 = vsel %vm1892_vm4, %v4814_v8, %v4815_v19 }
 0x3b5   :  { %v4752_v45 = vmax.f32 %v4696_v22, 0.0  ;;  %v10023_v42 = vpop.f32.mrf.mxu0  ;;  %v13816_v34 = vsel %vm4012_vm6, %v5961_v35, %v5962_v5  ;;  %v3928_v3 = vadd.f32 %v3927_v30, %v15317_v13  ;;  %v13823_v18 = vsel %vm4012_vm6, %v5962_v5, %v5963_v40  ;;  %v15319_v30 = vld [vmem:[#allocation9_spill] sm:$0xff] }
 0x3b6   :  { %15316 = vst [vmem:[#allocation21_spill] sm:$0xff] %v13816_v34  ;;  %v4698_v55 = vadd.f32 %v13772_v23, %v4635_v15  ;;  %v4638_v38 = vadd.f32 %v10023_v42, %v3933_v26  ;;  %10110 = vmatmul.mubr.msk.f32.gmra.mxu1 %vm4891_vm7, %v4837_v62  ;;  %15318 = vst [vmem:[#allocation28_spill] sm:$0xff] %v13823_v18  ;;  %v4817_v36 = vrot.slane %v4753_v31, 2  ;;  %v4755_v8 = vmax.f32 %v4699_v33, 0.0 }
 0x3b7   :  { %v4816_v22 = vrot.slane %v4752_v45, 2  ;;  %v5964_v41 = vrot.slane %v4752_v45, 4  ;;  %10112 = vmatprep.mubr.msk.f32.mxu1 %vm4891_vm7, %v4836_v14  ;;  %10215 = vmatprep.mubr.msk.f32.mxu0 %vm4891_vm7, %v4752_v45  ;;  %v4558_v35 = vpop.f32.mrf.mxu0  ;;  %v3943_v13 = vadd.f32 %v9934_v20, %v15319_v30  ;;  %v5965_v34 = vrot.slane %v4753_v31, 4  ;;  %v9937_v14 = vpop.f32.mrf.mxu1  ;;  %v15320_v20 = vld [vmem:[#allocation11_spill] sm:$0xff] }
 0x3b8   :  { %v4754_v15 = vmax.f32 %v4698_v55, 0.0  ;;  %v4701_v26 = vadd.f32 %v13772_v23, %v4638_v38  ;;  %10216 = vmatmul.mubr.msk.f32.gmra.mxu0 %vm4891_vm7, %v4753_v31  ;;  %v4637_v42 = vadd.f32 %v4558_v35, %v3928_v3  ;;  %v3938_v30 = vadd.f32 %v3937_v9, %v15320_v20  ;;  %v15321_v35 = vld [vmem:[#allocation18_spill] sm:$0xff] }
 0x3b9   :  { %v10026_v5 = vpop.f32.mrf.mxu0  ;;  %v4835_v62 = vsel %vm1892_vm4, %v4815_v19, %v4816_v22  ;;  %v4834_v33 = vsel %vm1892_vm4, %v4816_v22, %v4817_v36  ;;  %v13836_v45 = vsel %vm4012_vm6, %v5963_v40, %v5964_v41  ;;  %v4819_v31 = vrot.slane %v4755_v8, 2 }
 0x3ba   :  { %v4818_v55 = vrot.slane %v4754_v15, 2  ;;  %v5966_v18 = vrot.slane %v4754_v15, 4  ;;  %v4640_v38 = vadd.f32 %v10026_v5, %v3943_v13  ;;  %10113 = vmatmul.mubr.msk.f32.gmra.mxu1 %vm4891_vm7, %v4835_v62  ;;  %10218 = vmatprep.mubr.msk.f32.mxu0 %vm4891_vm7, %v4754_v15  ;;  %v4757_v3 = vmax.f32 %v4701_v26, 0.0 }
 0x3bb   :  { %v4700_v19 = vadd.f32 %v13772_v23, %v4637_v42  ;;  %10115 = vmatprep.mubr.msk.f32.mxu1 %vm4891_vm7, %v4834_v33  ;;  %v4568_v22 = vpop.f32.mrf.mxu0  ;;  %v13845_v40 = vsel %vm4012_vm6, %v5964_v41, %v5965_v34  ;;  %v3953_v9 = vadd.f32 %v9937_v14, %v15321_v35  ;;  %v5967_v20 = vrot.slane %v4755_v8, 4  ;;  %v3947_v33 = vpop.f32.mrf.mxu1 }
 0x3bc   :  { %v4703_v13 = vadd.f32 %v13772_v23, %v4640_v38  ;;  %v4639_v5 = vadd.f32 %v4568_v22, %v3938_v30  ;;  %10219 = vmatmul.mubr.msk.f32.gmra.mxu0 %vm4891_vm7, %v4755_v8  ;;  %v4833_v26 = vsel %vm1892_vm4, %v4817_v36, %v4818_v55  ;;  %v4832_v42 = vsel %vm1892_vm4, %v4818_v55, %v4819_v31  ;;  %v15323_v30 = vld [vmem:[#allocation14_spill] sm:$0xff] }
 0x3bd   :  { %v4756_v15 = vmax.f32 %v4700_v19, 0.0  ;;  %v10029_v62 = vpop.f32.mrf.mxu0  ;;  %v13856_v41 = vsel %vm4012_vm6, %v5965_v34, %v5966_v18  ;;  %v13862_v8 = vsel %vm4012_vm6, %v5966_v18, %v5967_v20  ;;  %v3948_v36 = vadd.f32 %v3947_v33, %v15323_v30 }
 0x3be   :  { %15322 = vst [vmem:[#allocation23_spill] sm:$0xff] %v13856_v41  ;;  %v4759_v14 = vmax.f32 %v4703_v13, 0.0  ;;  %v4702_v35 = vadd.f32 %v13772_v23, %v4639_v5  ;;  %v4642_v38 = vadd.f32 %v10029_v62, %v3953_v9  ;;  %10116 = vmatmul.mubr.msk.f32.gmra.mxu1 %vm4891_vm7, %v4833_v26  ;;  %v4821_v19 = vrot.slane %v4757_v3, 2 }
 0x3bf   :  { %v4820_v22 = vrot.slane %v4756_v15, 2  ;;  %v5968_v55 = vrot.slane %v4756_v15, 4  ;;  %10118 = vmatprep.mubr.msk.f32.mxu1 %vm4891_vm7, %v4832_v42  ;;  %10221 = vmatprep.mubr.msk.f32.mxu0 %vm4891_vm7, %v4756_v15  ;;  %v4578_v34 = vpop.f32.mrf.mxu0  ;;  %v5969_v13 = vrot.slane %v4757_v3, 4 }
 0x3c0   :  { %v4758_v41 = vmax.f32 %v4702_v35, 0.0  ;;  %v4705_v9 = vadd.f32 %v13772_v23, %v4642_v38  ;;  %10222 = vmatmul.mubr.msk.f32.gmra.mxu0 %vm4891_vm7, %v4757_v3  ;;  %v4641_v5 = vadd.f32 %v4578_v34, %v3948_v36  ;;  %v4823_v42 = vrot.slane %v4759_v14, 2 }
 0x3c1   :  { %v4831_v18 = vsel %vm1892_vm4, %v4819_v31, %v4820_v22  ;;  %v4830_v62 = vsel %vm1892_vm4, %v4820_v22, %v4821_v19  ;;  %v13875_v26 = vsel %vm4012_vm6, %v5967_v20, %v5968_v55  ;;  %v13881_v3 = vsel %vm4012_vm6, %v5968_v55, %v5969_v13 }
 0x3c2   :  { %v4822_v15 = vrot.slane %v4758_v41, 2  ;;  %v5970_v33 = vrot.slane %v4758_v41, 4  ;;  %10119 = vmatmul.mubr.msk.f32.gmra.mxu1 %vm4891_vm7, %v4831_v18  ;;  %10224 = vmatprep.mubr.msk.f32.mxu0 %vm4891_vm7, %v4758_v41  ;;  %v5971_v35 = vrot.slane %v4759_v14, 4  ;;  %v13883_v31 = vmax.f32 %v4705_v9, 0.0 }
 0x3c3   :  { %v4704_v38 = vadd.f32 %v13772_v23, %v4641_v5  ;;  %10121 = vmatprep.mubr.msk.f32.mxu1 %vm4891_vm7, %v4830_v62  ;;  %v5918_v18 = vrot.slane %v13211_v4, 4  ;;  %v15324_v62 = vrot.slane %v13211_v4, 2  ;;  %v7763_v4 = vld [vmem:[%s15027_s9 + $0x2e0] sm:$0xff] }
 0x3c4   :  { %10225 = vmatmul.mubr.msk.f32.gmra.mxu0 %vm4891_vm7, %v4759_v14  ;;  %v4829_v20 = vsel %vm1892_vm4, %v4821_v19, %v4822_v15  ;;  %v4828_v30 = vsel %vm1892_vm4, %v4822_v15, %v4823_v42  ;;  %v13894_v36 = vsel %vm4012_vm6, %v5969_v13, %v5970_v33  ;;  %v13898_v22 = vsel %vm4012_vm6, %v5970_v33, %v5971_v35 }
 0x3c5   :  { %v4760_v41 = vmax.f32 %v4704_v38, 0.0  ;;  %v4825_v23 = vrot.slane %v13883_v31, 2  ;;  %v5973_v14 = vrot.slane %v13883_v31, 4  ;;  %v15325_v15 = vrot.slane %v13207_v1, 4  ;;  %v15326_v1 = vld [vmem:[#allocation20_spill] sm:$0xff] }
 0x3c6   :  { %10122 = vmatmul.mubr.msk.f32.gmra.mxu1 %vm4891_vm7, %v4829_v20 }
 0x3c7   :  { %v4824_v55 = vrot.slane %v4760_v41, 2  ;;  %v5972_v19 = vrot.slane %v4760_v41, 4  ;;  %10124 = vmatprep.mubr.msk.f32.mxu1 %vm4891_vm7, %v4828_v30  ;;  %10227 = vmatprep.mubr.msk.f32.mxu0 %vm4891_vm7, %v4760_v41  ;;  %v6028_v33 = vsel %vm4012_vm6, %v5918_v18, %v15325_v15  ;;  %v6029_v15 = vsel %vm4012_vm6, %v5973_v14, %v5918_v18  ;;  %v7762_v18 = vld [vmem:[%s15027_s9 + $0x2d8] sm:$0xff] }
 0x3c8   :  { %10228 = vmatmul.mubr.msk.f32.gmra.mxu0 %vm4891_vm7, %v13883_v31  ;;  %v7697_v31 = vld [vmem:[%s15027_s9 + $0xd0] sm:$0xff] }
 0x3c9   :  { %v4827_v34 = vsel %vm1892_vm4, %v4823_v42, %v4824_v55  ;;  %v4826_v13 = vsel %vm1892_vm4, %v4824_v55, %v4825_v23  ;;  %v13913_v9 = vsel %vm4012_vm6, %v5971_v35, %v5972_v19  ;;  %v13919_v5 = vsel %vm4012_vm6, %v5972_v19, %v5973_v14 }
 0x3ca   :  { %10125 = vmatmul.mubr.msk.f32.gmra.mxu1 %vm4891_vm7, %v4827_v34  ;;  %v4881_v42 = vsel %vm1892_vm4, %v4825_v23, %v15324_v62 }
 0x3cb   :  { %10127 = vmatprep.mubr.msk.f32.mxu1 %vm4891_vm7, %v4826_v13  ;;  %v7765_v13 = vld [vmem:[%s15027_s9 + $0x2f0] sm:$0xff] }
 0x3ce   :  { %10128 = vmatmul.mubr.msk.f32.gmra.mxu1 %vm4891_vm7, %v4881_v42 }
 0x3cf   :  { %10246 = vmatprep.mubr.msk.f32.mxu1 %vm4891_vm7, %v6028_v33 }
 0x3d2   :  { %10247 = vmatmul.mubr.msk.f32.vlgmr.msra.gmra.mxu1 %vm4891_vm7, %v13266_v61  ;;  %v15327_v61 = vld [vmem:[#allocation15_spill] sm:$0xff] }
 0x3d3   :  { %10249 = vmatprep.mubr.msk.f32.mxu1 %vm4891_vm7, %v13285_v48  ;;  %v15328_v48 = vld [vmem:[#allocation22_spill] sm:$0xff] }
 0x3d6   :  { %10250 = vmatmul.mubr.msk.f32.gmra.mxu1 %vm4891_vm7, %v13299_v6  ;;  %v15329_v6 = vld [vmem:[#allocation17_spill] sm:$0xff] }
 0x3d7   :  { %10252 = vmatprep.mubr.msk.f32.mxu1 %vm4891_vm7, %v13310_v54  ;;  %v15330_v54 = vld [vmem:[#allocation24_spill] sm:$0xff] }
 0x3da   :  { %10253 = vmatmul.mubr.msk.f32.gmra.mxu1 %vm4891_vm7, %v13332_v51 }
 0x3db   :  { %10255 = vmatprep.mubr.msk.f32.mxu1 %vm4891_vm7, %v13350_v27 }
 0x3de   :  { %10256 = vmatmul.mubr.msk.f32.gmra.mxu1 %vm4891_vm7, %v13364_v25  ;;  %v15331_v25 = vld [vmem:[#allocation19_spill] sm:$0xff] }
 0x3df   :  { %10258 = vmatprep.mubr.msk.f32.mxu1 %vm4891_vm7, %v13375_v58  ;;  %v15332_v58 = vld [vmem:[#allocation26_spill] sm:$0xff] }
 0x3e2   :  { %10259 = vmatmul.mubr.msk.f32.gmra.mxu1 %vm4891_vm7, %v13397_v53 }
 0x3e3   :  { %10261 = vmatprep.mubr.msk.f32.mxu1 %vm4891_vm7, %v13412_v63 }
 0x3e6   :  { %10262 = vmatmul.mubr.msk.f32.gmra.mxu1 %vm4891_vm7, %v13426_v44 }
 0x3e7   :  { %10264 = vmatprep.mubr.msk.f32.mxu1 %vm4891_vm7, %v13436_v0 }
 0x3ea   :  { %10265 = vmatmul.mubr.msk.f32.gmra.mxu1 %vm4891_vm7, %v13453_v60 }
 0x3eb   :  { %10267 = vmatprep.mubr.msk.f32.mxu1 %vm4891_vm7, %v13465_v49 }
 0x3ee   :  { %10268 = vmatmul.mubr.msk.f32.gmra.mxu1 %vm4891_vm7, %v13477_v29 }
 0x3ef   :  { %10270 = vmatprep.mubr.msk.f32.mxu1 %vm4891_vm7, %v13487_v16 }
 0x3f2   :  { %10271 = vmatmul.mubr.msk.f32.gmra.mxu1 %vm4891_vm7, %v13501_v46  ;;  %v15333_v46 = vld [vmem:[#allocation21_spill] sm:$0xff] }
 0x3f3   :  { %10273 = vmatprep.mubr.msk.f32.mxu1 %vm4891_vm7, %v13513_v10 }
 0x3f6   :  { %10274 = vmatmul.mubr.msk.f32.gmra.mxu1 %vm4891_vm7, %v13525_v17  ;;  %v15334_v17 = vld [vmem:[#allocation28_spill] sm:$0xff] }
 0x3f7   :  { %10276 = vmatprep.mubr.msk.f32.mxu1 %vm4891_vm7, %v13535_v12 }
 0x3fa   :  { %10277 = vmatmul.mubr.msk.f32.gmra.mxu1 %vm4891_vm7, %v13549_v43 }
 0x3fb   :  { %10279 = vmatprep.mubr.msk.f32.mxu1 %vm4891_vm7, %v13561_v32 }
 0x3fe   :  { %10280 = vmatmul.mubr.msk.f32.gmra.mxu1 %vm4891_vm7, %v13573_v24 }
 0x3ff   :  { %10282 = vmatprep.mubr.msk.f32.mxu1 %vm4891_vm7, %v13583_v39 }
 0x402   :  { %10283 = vmatmul.mubr.msk.f32.gmra.mxu1 %vm4891_vm7, %v13597_v21 }
 0x403   :  { %10285 = vmatprep.mubr.msk.f32.mxu1 %vm4891_vm7, %v13609_v47 }
 0x406   :  { %10286 = vmatmul.mubr.msk.f32.gmra.mxu1 %vm4891_vm7, %v13621_v7 }
 0x407   :  { %10288 = vmatprep.mubr.msk.f32.mxu1 %vm4891_vm7, %v13631_v28 }
 0x40a   :  { %10289 = vmatmul.mubr.msk.f32.gmra.mxu1 %vm4891_vm7, %v15326_v1 }
 0x40b   :  { %10291 = vmatprep.mubr.msk.f32.mxu1 %vm4891_vm7, %v13657_v11  ;;  %v15335_v11 = vld [vmem:[#allocation23_spill] sm:$0xff] }
 0x40e   :  { %10292 = vmatmul.mubr.msk.f32.gmra.mxu1 %vm4891_vm7, %v13669_v59 }
 0x40f   :  { %10294 = vmatprep.mubr.msk.f32.mxu1 %vm4891_vm7, %v15327_v61 }
 0x412   :  { %10295 = vmatmul.mubr.msk.f32.gmra.mxu1 %vm4891_vm7, %v15328_v48 }
 0x413   :  { %10297 = vmatprep.mubr.msk.f32.mxu1 %vm4891_vm7, %v13705_v37 }
 0x416   :  { %10298 = vmatmul.mubr.msk.f32.gmra.mxu1 %vm4891_vm7, %v15329_v6  ;;  %v7698_v6 = vld [vmem:[%s15027_s9 + $0xd8] sm:$0xff] }
 0x417   :  { %10300 = vmatprep.mubr.msk.f32.mxu1 %vm4891_vm7, %v15330_v54  ;;  %v7761_v54 = vld [vmem:[%s15027_s9 + $0x2d0] sm:$0xff] }
 0x41a   :  { %10301 = vmatmul.mubr.msk.f32.gmra.mxu1 %vm4891_vm7, %v13741_v50 }
 0x41b   :  { %10303 = vmatprep.mubr.msk.f32.mxu1 %vm4891_vm7, %v13753_v57  ;;  %v10148_v51 = vpop.f32.mrf.mxu0  ;;  %v7702_v57 = vld [vmem:[%s15027_s9 + $0xf8] sm:$0xff] }
 0x41c   :  { %7811 = vmatprep.subr.mxu0 %v7702_v57 }
 0x41d   :  { %v14012_v27 = vpop.f32.mrf.mxu0 }
 0x41e   :  { %10304 = vmatmul.mubr.msk.f32.gmra.mxu1 %vm4891_vm7, %v15331_v25 }
 0x41f   :  { %10306 = vmatprep.mubr.msk.f32.mxu1 %vm4891_vm7, %v15332_v58  ;;  %v10151_v53 = vpop.f32.mrf.mxu0 }
 0x421   :  { %v10048_v63 = vpop.f32.mrf.mxu1  ;;  %v14018_v44 = vpop.f32.mrf.mxu0 }
 0x422   :  { %10307 = vmatmul.mubr.msk.f32.gmra.mxu1 %vm4891_vm7, %v13795_v52  ;;  %v14022_v0 = vadd.f32 %v10148_v51, %v10048_v63  ;;  %v7701_v52 = vld [vmem:[%s15027_s9 + $0xf0] sm:$0xff]  ;;  %v7696_v51 = vld [vmem:[%s15027_s9 + $0xc8] sm:$0xff] }
 0x423   :  { %10309 = vmatprep.mubr.msk.f32.mxu1 %vm4891_vm7, %v13805_v56  ;;  %v14026_v60 = vpop.f32.mrf.mxu1  ;;  %v10154_v49 = vpop.f32.mrf.mxu0  ;;  %v7766_v56 = vld [vmem:[%s15027_s9 + $0x2f8] sm:$0xff]  ;;  %7812 = vmatpush1.msra.mxu0 %v7701_v52  ;;  %v7760_v63 = vld [vmem:[%s15027_s9 + $0x2c8] sm:$0xff] }
 0x424   :  { %7882 = vmatprep.subr.mxu1 %v7766_v56  ;;  %v7694_v49 = vld [vmem:[%s15027_s9 + $0xb8] sm:$0xff] }
 0x425   :  { %v5659_v16 = vpop.f32.mrf.mxu0  ;;  %7883 = vmatpush1.msra.mxu1 %v7765_v13  ;;  %v7753_v13 = vld [vmem:[%s15027_s9 + $0x290] sm:$0xff] }
 0x426   :  { %v10051_v29 = vpop.f32.mrf.mxu1  ;;  %10310 = vmatmul.mubr.msk.f32.gmra.mxu1 %vm4891_vm7, %v15333_v46 }
 0x427   :  { %v14030_v10 = vadd.f32 %v10151_v53, %v10051_v29  ;;  %10312 = vmatprep.mubr.msk.f32.mxu1 %vm4891_vm7, %v15334_v17  ;;  %v7695_v53 = vld [vmem:[%s15027_s9 + $0xc0] sm:$0xff] }
 0x428   :  { %v14034_v12 = vpop.f32.mrf.mxu1  ;;  %v10157_v43 = vpop.f32.mrf.mxu0 }
 0x42a   :  { %v10054_v32 = vpop.f32.mrf.mxu1  ;;  %v5669_v24 = vpop.f32.mrf.mxu0  ;;  %10313 = vmatmul.mubr.msk.f32.gmra.mxu1 %vm4891_vm7, %v13836_v45 }
 0x42b   :  { %10315 = vmatprep.mubr.msk.f32.mxu1 %vm4891_vm7, %v13845_v40 }
 0x42c   :  { %v5146_v39 = vpop.f32.mrf.mxu1  ;;  %v10160_v21 = vpop.f32.mrf.mxu0 }
 0x42d   :  { %v14040_v47 = vadd.f32 %v5659_v16, %v5146_v39  ;;  %v7759_v16 = vld [vmem:[%s15027_s9 + $0x2c0] sm:$0xff]  ;;  %v7693_v39 = vld [vmem:[%s15027_s9 + $0xb0] sm:$0xff] }
 0x42e   :  { %v10057_v7 = vpop.f32.mrf.mxu1  ;;  %v5679_v28 = vpop.f32.mrf.mxu0  ;;  %10316 = vmatmul.mubr.msk.f32.gmra.mxu1 %vm4891_vm7, %v15335_v11 }
 0x42f   :  { %v14044_v59 = vadd.f32 %v10157_v43, %v10057_v7  ;;  %10318 = vmatprep.mubr.msk.f32.mxu1 %vm4891_vm7, %v13862_v8  ;;  %v7757_v7 = vld [vmem:[%s15027_s9 + $0x2b0] sm:$0xff] }
 0x430   :  { %v5156_v37 = vpop.f32.mrf.mxu1  ;;  %v10163_v50 = vpop.f32.mrf.mxu0 }
 0x431   :  { %v7692_v37 = vld [vmem:[%s15027_s9 + $0xa8] sm:$0xff] }
 0x432   :  { %v10060_v45 = vpop.f32.mrf.mxu1  ;;  %v5689_v40 = vpop.f32.mrf.mxu0  ;;  %10319 = vmatmul.mubr.msk.f32.gmra.mxu1 %vm4891_vm7, %v13875_v26 }
 0x433   :  { %v14059_v8 = vadd.f32 %v10160_v21, %v10060_v45  ;;  %10321 = vmatprep.mubr.msk.f32.mxu1 %vm4891_vm7, %v13881_v3  ;;  %v7758_v21 = vld [vmem:[%s15027_s9 + $0x2b8] sm:$0xff] }
 0x434   :  { %v5166_v35 = vpop.f32.mrf.mxu1  ;;  %v10166_v38 = vpop.f32.mrf.mxu0 }
 0x435   :  { %v14063_v20 = vadd.f32 %v5679_v28, %v5166_v35  ;;  %v7691_v35 = vld [vmem:[%s15027_s9 + $0xa0] sm:$0xff]  ;;  %v7756_v38 = vld [vmem:[%s15027_s9 + $0x2a8] sm:$0xff] }
 0x436   :  { %v10063_v30 = vpop.f32.mrf.mxu1  ;;  %v5699_v41 = vpop.f32.mrf.mxu0  ;;  %10322 = vmatmul.mubr.msk.f32.gmra.mxu1 %vm4891_vm7, %v13894_v36  ;;  %v7700_v36 = vld [vmem:[%s15027_s9 + $0xe8] sm:$0xff] }
 0x437   :  { %v14067_v23 = vadd.f32 %v10163_v50, %v10063_v30  ;;  %10324 = vmatprep.mubr.msk.f32.mxu1 %vm4891_vm7, %v13898_v22  ;;  %v7699_v22 = vld [vmem:[%s15027_s9 + $0xe0] sm:$0xff]  ;;  %7813 = vmatprep.subr.mxu0 %v7700_v36  ;;  %v7690_v30 = vld [vmem:[%s15027_s9 + $0x98] sm:$0xff]  ;;  %v7688_v36 = vld [vmem:[%s15027_s9 + $0x88] sm:$0xff] }
 0x438   :  { %v5176_v26 = vpop.f32.mrf.mxu1  ;;  %v10169_v55 = vpop.f32.mrf.mxu0  ;;  %7814 = vmatpush1.msra.mxu0 %v7699_v22  ;;  %v7755_v41 = vld [vmem:[%s15027_s9 + $0x2a0] sm:$0xff] }
 0x439   :  { %v14071_v19 = vadd.f32 %v5689_v40, %v5176_v26  ;;  %7815 = vmatprep.subr.mxu0 %v7698_v6  ;;  %v7689_v26 = vld [vmem:[%s15027_s9 + $0x90] sm:$0xff] }
 0x43a   :  { %v10066_v3 = vpop.f32.mrf.mxu1  ;;  %v5709_v34 = vpop.f32.mrf.mxu0  ;;  %10325 = vmatmul.mubr.msk.f32.gmra.mxu1 %vm4891_vm7, %v13913_v9  ;;  %v7764_v9 = vld [vmem:[%s15027_s9 + $0x2e8] sm:$0xff]  ;;  %7816 = vmatpush1.msra.mxu0 %v7697_v31 }
 0x43b   :  { %10327 = vmatprep.mubr.msk.f32.mxu1 %vm4891_vm7, %v13919_v5  ;;  %7884 = vmatprep.subr.mxu1 %v7764_v9  ;;  %v7687_v9 = vld [vmem:[%s15027_s9 + $0x80] sm:$0xff] }
 0x43c   :  { %v5186_v62 = vpop.f32.mrf.mxu1  ;;  %v10172_v42 = vpop.f32.mrf.mxu0  ;;  %7885 = vmatpush1.msra.mxu1 %v7763_v4  ;;  %7817 = vmatprep.subr.mxu0 %v7696_v51 }
 0x43d   :  { %7886 = vmatprep.subr.mxu1 %v7762_v18  ;;  %7818 = vmatpush1.msra.mxu0 %v7695_v53  ;;  %v7752_v62 = vld [vmem:[%s15027_s9 + $0x288] sm:$0xff] }
 0x43e   :  { %v10069_v33 = vpop.f32.mrf.mxu1  ;;  %v5719_v1 = vpop.f32.mrf.mxu0  ;;  %10328 = vmatmul.mubr.msk.f32.gmra.mxu1 %vm4891_vm7, %v6029_v15  ;;  %7819 = vmatprep.subr.mxu0 %v7694_v49  ;;  %v7684_v49 = vld [vmem:[%s15027_s9 + $0x68] sm:$0xff] }
 0x43f   :  { %v14096_v5 = vadd.f32 %v10169_v55, %v10069_v33  ;;  %7887 = vmatpush1.msra.mxu1 %v7761_v54  ;;  %7820 = vmatpush1.msra.mxu0 %v7693_v39 }
 0x440   :  { %v5196_v61 = vpop.f32.mrf.mxu1  ;;  %v10175_v48 = vpop.f32.mrf.mxu0  ;;  %7888 = vmatprep.subr.mxu1 %v7760_v63  ;;  %7821 = vmatprep.subr.mxu0 %v7692_v37  ;;  %v7749_v63 = vld [vmem:[%s15027_s9 + $0x270] sm:$0xff]  ;;  %v7746_v37 = vld [vmem:[%s15027_s9 + $0x258] sm:$0xff] }
 0x441   :  { %v14107_v14 = vadd.f32 %v5709_v34, %v5196_v61  ;;  %7889 = vmatpush1.msra.mxu1 %v7759_v16  ;;  %7822 = vmatpush1.msra.mxu0 %v7691_v35  ;;  %v7754_v34 = vld [vmem:[%s15027_s9 + $0x298] sm:$0xff]  ;;  %v7685_v61 = vld [vmem:[%s15027_s9 + $0x70] sm:$0xff]  ;;  %v7683_v16 = vld [vmem:[%s15027_s9 + $0x60] sm:$0xff] }
 0x442   :  { %v10072_v25 = vpop.f32.mrf.mxu1  ;;  %v5729_v58 = vpop.f32.mrf.mxu0  ;;  %7890 = vmatprep.subr.mxu1 %v7758_v21  ;;  %7823 = vmatprep.subr.mxu0 %v7690_v30  ;;  %v7750_v48 = vld [vmem:[%s15027_s9 + $0x278] sm:$0xff]  ;;  %v7679_v35 = vld [vmem:[%s15027_s9 + $0x40] sm:$0xff] }
 0x443   :  { %v14127_v29 = vadd.f32 %v10172_v42, %v10072_v25  ;;  %7891 = vmatpush1.msra.mxu1 %v7757_v7  ;;  %7824 = vmatpush1.msra.mxu0 %v7689_v26  ;;  %v7686_v42 = vld [vmem:[%s15027_s9 + $0x78] sm:$0xff]  ;;  %v7747_v7 = vld [vmem:[%s15027_s9 + $0x260] sm:$0xff] }
 0x444   :  { %v5206_v46 = vpop.f32.mrf.mxu1  ;;  %v10178_v17 = vpop.f32.mrf.mxu0  ;;  %7892 = vmatprep.subr.mxu1 %v7756_v38  ;;  %7825 = vmatprep.subr.mxu0 %v7688_v36  ;;  %v7682_v21 = vld [vmem:[%s15027_s9 + $0x58] sm:$0xff]  ;;  %v7744_v38 = vld [vmem:[%s15027_s9 + $0x248] sm:$0xff]  ;;  %v7743_v26 = vld [vmem:[%s15027_s9 + $0x240] sm:$0xff] }
 0x445   :  { %v14132_v43 = vadd.f32 %v5719_v1, %v5206_v46  ;;  %7893 = vmatpush1.msra.mxu1 %v7755_v41  ;;  %v7751_v1 = vld [vmem:[%s15027_s9 + $0x280] sm:$0xff]  ;;  %7826 = vmatpush1.msra.mxu0 %v7687_v9  ;;  %v7748_v46 = vld [vmem:[%s15027_s9 + $0x268] sm:$0xff]  ;;  %v7678_v30 = vld [vmem:[%s15027_s9 + $0x38] sm:$0xff] }
 0x446   :  { %v10075_v32 = vpop.f32.mrf.mxu1  ;;  %v5739_v24 = vpop.f32.mrf.mxu0  ;;  %7894 = vmatprep.subr.mxu1 %v7754_v34  ;;  %7827 = vmatprep.subr.mxu0 %v7686_v42 }
 0x447   :  { %7895 = vmatpush1.msra.mxu1 %v7753_v13  ;;  %7828 = vmatpush1.msra.mxu0 %v7685_v61  ;;  %v7676_v61 = vld [vmem:[%s15027_s9 + $0x28] sm:$0xff] }
 0x448   :  { %v5216_v28 = vpop.f32.mrf.mxu1  ;;  %v10181_v11 = vpop.f32.mrf.mxu0  ;;  %7896 = vmatprep.subr.mxu1 %v7752_v62  ;;  %7829 = vmatprep.subr.mxu0 %v7684_v49  ;;  %v7674_v49 = vld [vmem:[%s15027_s9 + $0x18] sm:$0xff] }
 0x449   :  { %v14146_v50 = vadd.f32 %v5729_v58, %v5216_v28  ;;  %7897 = vmatpush1.msra.mxu1 %v7751_v1  ;;  %7830 = vmatpush1.msra.mxu0 %v7683_v16  ;;  %v7681_v28 = vld [vmem:[%s15027_s9 + $0x50] sm:$0xff] }
 0x44a   :  { %v10078_v57 = vpop.f32.mrf.mxu1  ;;  %v5749_v52 = vpop.f32.mrf.mxu0  ;;  %7898 = vmatprep.subr.mxu1 %v7750_v48  ;;  %7831 = vmatprep.subr.mxu0 %v7682_v21  ;;  %v7741_v1 = vld [vmem:[%s15027_s9 + $0x230] sm:$0xff]  ;;  %v7672_v21 = vld [vmem:[%s15027_s9 + $0x8] sm:$0xff] }
 0x44b   :  { %v14148_v56 = vadd.f32 %v10178_v17, %v10078_v57  ;;  %7899 = vmatpush1.msra.mxu1 %v7749_v63  ;;  %v7745_v57 = vld [vmem:[%s15027_s9 + $0x250] sm:$0xff]  ;;  %7832 = vmatpush1.msra.mxu0 %v7681_v28  ;;  %v7740_v63 = vld [vmem:[%s15027_s9 + $0x228] sm:$0xff] }
 0x44c   :  { %v5226_v45 = vpop.f32.mrf.mxu1  ;;  %v10184_v40 = vpop.f32.mrf.mxu0  ;;  %7900 = vmatprep.subr.mxu1 %v7748_v46 }
 0x44d   :  { %7901 = vmatpush1.msra.mxu1 %v7747_v7  ;;  %v7671_v7 = vld [vmem:[%s15027_s9] sm:$0xff] }
 0x44e   :  { %v10081_v55 = vpop.f32.mrf.mxu1  ;;  %v5759_v3 = vpop.f32.mrf.mxu0  ;;  %7902 = vmatprep.subr.mxu1 %v7746_v37 }
 0x44f   :  { %v14174_v22 = vadd.f32 %v10181_v11, %v10081_v55  ;;  %7903 = vmatpush1.msra.mxu1 %v7745_v57  ;;  %v7736_v57 = vld [vmem:[%s15027_s9 + $0x208] sm:$0xff] }
 0x450   :  { %v5236_v15 = vpop.f32.mrf.mxu1  ;;  %v10187_v33 = vpop.f32.mrf.mxu0  ;;  %7904 = vmatprep.subr.mxu1 %v7744_v38  ;;  %v7798_v38 = vld [vmem:[%s15027_s9 + $0x3f8] sm:$0xff] }
 0x451   :  { %v14194_v6 = vadd.f32 %v5749_v52, %v5236_v15  ;;  %v7680_v52 = vld [vmem:[%s15027_s9 + $0x48] sm:$0xff]  ;;  %7905 = vmatpush1.msra.mxu1 %v7743_v26  ;;  %v7677_v15 = vld [vmem:[%s15027_s9 + $0x30] sm:$0xff]  ;;  %v7742_v33 = vld [vmem:[%s15027_s9 + $0x238] sm:$0xff] }
 0x452   :  { %v10084_v4 = vpop.f32.mrf.mxu1  ;;  %v5769_v31 = vpop.f32.mrf.mxu0  ;;  %7833 = vmatprep.subr.mxu0 %v7680_v52  ;;  %7906 = vmatprep.subr.mxu1 %v7742_v33  ;;  %v7734_v52 = vld [vmem:[%s15027_s9 + $0x1f8] sm:$0xff]  ;;  %v7732_v33 = vld [vmem:[%s15027_s9 + $0x1e8] sm:$0xff] }
 0x453   :  { %v14196_v18 = vadd.f32 %v10184_v40, %v10084_v4  ;;  %7834 = vmatpush1.msra.mxu0 %v7679_v35  ;;  %7907 = vmatpush1.msra.mxu1 %v7741_v1  ;;  %v7733_v35 = vld [vmem:[%s15027_s9 + $0x1f0] sm:$0xff]  ;;  %v7731_v1 = vld [vmem:[%s15027_s9 + $0x1e0] sm:$0xff] }
 0x454   :  { %v5246_v54 = vpop.f32.mrf.mxu1  ;;  %v10190_v51 = vpop.f32.mrf.mxu0  ;;  %7835 = vmatprep.subr.mxu0 %v7678_v30  ;;  %7908 = vmatprep.subr.mxu1 %v7740_v63 }
 0x455   :  { %v14198_v25 = vadd.f32 %v5759_v3, %v5246_v54  ;;  %7836 = vmatpush1.msra.mxu0 %v7677_v15  ;;  %v7797_v15 = vld [vmem:[%s15027_s9 + $0x3f0] sm:$0xff] }
 0x456   :  { %v10087_v58 = vpop.f32.mrf.mxu1  ;;  %v5779_v53 = vpop.f32.mrf.mxu0  ;;  %7837 = vmatprep.subr.mxu0 %v7676_v61 }
 0x458   :  { %v5256_v17 = vpop.f32.mrf.mxu1  ;;  %v10193_v32 = vpop.f32.mrf.mxu0 }
 0x459   :  { %v7739_v17 = vld [vmem:[%s15027_s9 + $0x220] sm:$0xff] }
 0x45a   :  { %v10090_v24 = vpop.f32.mrf.mxu1  ;;  %v5789_v39 = vpop.f32.mrf.mxu0  ;;  %7909 = vmatpush1.msra.mxu1 %v7739_v17  ;;  %v7729_v17 = vld [vmem:[%s15027_s9 + $0x1d0] sm:$0xff] }
 0x45b   :  { %v14221_v11 = vadd.f32 %v10190_v51, %v10090_v24  ;;  %v7738_v24 = vld [vmem:[%s15027_s9 + $0x218] sm:$0xff] }
 0x45c   :  { %v5266_v45 = vpop.f32.mrf.mxu1  ;;  %v10196_v40 = vpop.f32.mrf.mxu0  ;;  %7910 = vmatprep.subr.mxu1 %v7738_v24  ;;  %v7794_v24 = vld [vmem:[%s15027_s9 + $0x3d8] sm:$0xff] }
 0x45d   :  { %v14241_v41 = vadd.f32 %v5779_v53, %v5266_v45  ;;  %v7675_v53 = vld [vmem:[%s15027_s9 + $0x20] sm:$0xff] }
 0x45e   :  { %v10093_v55 = vpop.f32.mrf.mxu1  ;;  %v5799_v3 = vpop.f32.mrf.mxu0  ;;  %7838 = vmatpush1.msra.mxu0 %v7675_v53  ;;  %v7735_v45 = vld [vmem:[%s15027_s9 + $0x200] sm:$0xff] }
 0x45f   :  { %v14246_v34 = vadd.f32 %v10193_v32, %v10093_v55  ;;  %v7673_v32 = vld [vmem:[%s15027_s9 + $0x10] sm:$0xff]  ;;  %7839 = vmatprep.subr.mxu0 %v7674_v49 }
 0x460   :  { %v5276_v13 = vpop.f32.mrf.mxu1  ;;  %v10199_v36 = vpop.f32.mrf.mxu0  ;;  %7840 = vmatpush1.msra.mxu0 %v7673_v32 }
 0x461   :  { %v14248_v9 = vadd.f32 %v5789_v39, %v5276_v13  ;;  %v7737_v39 = vld [vmem:[%s15027_s9 + $0x210] sm:$0xff]  ;;  %7841 = vmatprep.subr.mxu0 %v7672_v21  ;;  %v7728_v21 = vld [vmem:[%s15027_s9 + $0x1c8] sm:$0xff] }
 0x462   :  { %v10096_v62 = vpop.f32.mrf.mxu1  ;;  %v5809_v42 = vpop.f32.mrf.mxu0  ;;  %7911 = vmatpush1.msra.mxu1 %v7737_v39  ;;  %7842 = vmatpush1.msra.mxu0 %v7671_v7  ;;  %v7793_v39 = vld [vmem:[%s15027_s9 + $0x3d0] sm:$0xff] }
 0x463   :  { %7912 = vmatprep.subr.mxu1 %v7736_v57  ;;  %7843 = vmatprep.subr.mxu0 %v7734_v52  ;;  %v7792_v57 = vld [vmem:[%s15027_s9 + $0x3c8] sm:$0xff]  ;;  %v7726_v52 = vld [vmem:[%s15027_s9 + $0x1b8] sm:$0xff] }
 0x464   :  { %v5286_v48 = vpop.f32.mrf.mxu1  ;;  %v10202_v4 = vpop.f32.mrf.mxu0  ;;  %7913 = vmatpush1.msra.mxu1 %v7735_v45  ;;  %7844 = vmatpush2.msra.mxu0 %v7733_v35  ;;  %v7791_v35 = vld [vmem:[%s15027_s9 + $0x3c0] sm:$0xff] }
 0x465   :  { %v14262_v31 = vadd.f32 %v5799_v3, %v5286_v48  ;;  %7914 = vmatprep.subr.mxu1 %v7798_v38  ;;  %7845 = vmatprep.subr.mxu0 %v7732_v33  ;;  %v7796_v48 = vld [vmem:[%s15027_s9 + $0x3e8] sm:$0xff] }
 0x466   :  { %v10099_v54 = vpop.f32.mrf.mxu1  ;;  %v5819_v51 = vpop.f32.mrf.mxu0  ;;  %7915 = vmatpush2.msra.mxu1 %v7797_v15  ;;  %7846 = vmatpush2.msra.mxu0 %v7731_v1  ;;  %v7789_v15 = vld [vmem:[%s15027_s9 + $0x3b0] sm:$0xff]  ;;  %v7724_v1 = vld [vmem:[%s15027_s9 + $0x1a8] sm:$0xff] }
 0x467   :  { %v14264_v58 = vadd.f32 %v10199_v36, %v10099_v54  ;;  %7916 = vmatprep.subr.mxu1 %v7796_v48 }
 0x468   :  { %v5296_v16 = vpop.f32.mrf.mxu1  ;;  %v10205_v46 = vpop.f32.mrf.mxu0 }
 0x469   :  { %v7730_v16 = vld [vmem:[%s15027_s9 + $0x1d8] sm:$0xff] }
 0x46a   :  { %v10102_v28 = vpop.f32.mrf.mxu1  ;;  %v5829_v37 = vpop.f32.mrf.mxu0  ;;  %7847 = vmatprep.subr.mxu0 %v7730_v16 }
 0x46b   :  { %v14302_v40 = vadd.f32 %v10202_v4, %v10102_v28  ;;  %7848 = vmatpush2.msra.mxu0 %v7729_v17  ;;  %v7722_v17 = vld [vmem:[%s15027_s9 + $0x198] sm:$0xff] }
 0x46c   :  { %v5306_v30 = vpop.f32.mrf.mxu1  ;;  %v10208_v26 = vpop.f32.mrf.mxu0  ;;  %7849 = vmatprep.subr.mxu0 %v7728_v21  ;;  %v7721_v21 = vld [vmem:[%s15027_s9 + $0x190] sm:$0xff] }
 0x46d   :  { %v14310_v55 = vadd.f32 %v5819_v51, %v5306_v30 }
 0x46e   :  { %v10105_v3 = vpop.f32.mrf.mxu1  ;;  %v5839_v13 = vpop.f32.mrf.mxu0 }
 0x46f   :  { %v14312_v36 = vadd.f32 %v10205_v46, %v10105_v3  ;;  %v7795_v46 = vld [vmem:[%s15027_s9 + $0x3e0] sm:$0xff] }
 0x470   :  { %v5316_v62 = vpop.f32.mrf.mxu1  ;;  %v10211_v42 = vpop.f32.mrf.mxu0  ;;  %7917 = vmatpush2.msra.mxu1 %v7795_v46  ;;  %v7788_v46 = vld [vmem:[%s15027_s9 + $0x3a8] sm:$0xff] }
 0x471   :  { %v14323_v61 = vadd.f32 %v5829_v37, %v5316_v62  ;;  %7918 = vmatprep.subr.mxu1 %v7794_v24  ;;  %v7727_v37 = vld [vmem:[%s15027_s9 + $0x1c0] sm:$0xff]  ;;  %v7725_v62 = vld [vmem:[%s15027_s9 + $0x1b0] sm:$0xff] }
 0x472   :  { %v10108_v4 = vpop.f32.mrf.mxu1  ;;  %v5849_v54 = vpop.f32.mrf.mxu0  ;;  %7919 = vmatpush2.msra.mxu1 %v7793_v39  ;;  %7850 = vmatpush2.msra.mxu0 %v7727_v37  ;;  %v7787_v39 = vld [vmem:[%s15027_s9 + $0x3a0] sm:$0xff] }
 0x473   :  { %7920 = vmatprep.subr.mxu1 %v7792_v57  ;;  %7851 = vmatprep.subr.mxu0 %v7726_v52  ;;  %v7785_v57 = vld [vmem:[%s15027_s9 + $0x390] sm:$0xff]  ;;  %v7720_v52 = vld [vmem:[%s15027_s9 + $0x188] sm:$0xff] }
 0x474   :  { %v5326_v51 = vpop.f32.mrf.mxu1  ;;  %v10214_v53 = vpop.f32.mrf.mxu0  ;;  %7921 = vmatpush2.msra.mxu1 %v7791_v35  ;;  %7852 = vmatpush2.msra.mxu0 %v7725_v62  ;;  %v7719_v35 = vld [vmem:[%s15027_s9 + $0x180] sm:$0xff] }
 0x475   :  { %7853 = vmatprep.subr.mxu0 %v7724_v1 }
 0x476   :  { %v10111_v63 = vpop.f32.mrf.mxu1  ;;  %v5859_v49 = vpop.f32.mrf.mxu0 }
 0x477   :  { %v14337_v32 = vadd.f32 %v10211_v42, %v10111_v63  ;;  %v7790_v42 = vld [vmem:[%s15027_s9 + $0x3b8] sm:$0xff] }
 0x478   :  { %v5336_v7 = vpop.f32.mrf.mxu1  ;;  %v10217_v28 = vpop.f32.mrf.mxu0  ;;  %7922 = vmatprep.subr.mxu1 %v7790_v42  ;;  %v7717_v42 = vld [vmem:[%s15027_s9 + $0x170] sm:$0xff] }
 0x479   :  { %v14357_v45 = vadd.f32 %v5849_v54, %v5336_v7  ;;  %7923 = vmatpush2.msra.mxu1 %v7789_v15  ;;  %v7786_v7 = vld [vmem:[%s15027_s9 + $0x398] sm:$0xff] }
 0x47a   :  { %v10114_v38 = vpop.f32.mrf.mxu1  ;;  %v5869_v30 = vpop.f32.mrf.mxu0  ;;  %7924 = vmatprep.subr.mxu1 %v7788_v46  ;;  %v7782_v15 = vld [vmem:[%s15027_s9 + $0x378] sm:$0xff] }
 0x47b   :  { %v14362_v26 = vadd.f32 %v10214_v53, %v10114_v38  ;;  %7925 = vmatpush2.msra.mxu1 %v7787_v39  ;;  %v7784_v38 = vld [vmem:[%s15027_s9 + $0x388] sm:$0xff] }
 0x47c   :  { %v5346_v3 = vpop.f32.mrf.mxu1  ;;  %v10220_v13 = vpop.f32.mrf.mxu0  ;;  %7926 = vmatprep.subr.mxu1 %v7786_v7  ;;  %v7716_v39 = vld [vmem:[%s15027_s9 + $0x168] sm:$0xff]  ;;  %v14442_v7 = vadd.s32 8, %v15186_v2 }
 0x47d   :  { %v14373_v33 = vadd.f32 %v5859_v49, %v5346_v3  ;;  %v7723_v49 = vld [vmem:[%s15027_s9 + $0x1a0] sm:$0xff]  ;;  %7927 = vmatpush2.msra.mxu1 %v7785_v57 }
 0x47e   :  { %v10117_v48 = vpop.f32.mrf.mxu1  ;;  %v5879_v4 = vpop.f32.mrf.mxu0  ;;  %7854 = vmatpush2.msra.mxu0 %v7723_v49  ;;  %v7783_v3 = vld [vmem:[%s15027_s9 + $0x380] sm:$0xff]  ;;  %7928 = vmatprep.subr.mxu1 %v7784_v38  ;;  %v6744_v38 = vand.u32 1, %v14442_v7  ;;  %vm6839_vm8 = vcmp.lt.s32.totalorder %v14442_v7, 10  ;;  %vm7019_vm10 = vcmp.ge.s32.totalorder %v14442_v7, 10  ;;  %v7704_v7 = vld [vmem:[%s15027_s9 + $0x108] sm:$0xff] }
 0x47f   :  { %7855 = vmatprep.subr.mxu0 %v7722_v17  ;;  %7929 = vmatpush2.msra.mxu1 %v7783_v3 }
 0x480   :  { %v5356_v54 = vpop.f32.mrf.mxu1  ;;  %v10223_v51 = vpop.f32.mrf.mxu0  ;;  %7856 = vmatpush2.msra.mxu0 %v7721_v21  ;;  %7930 = vmatprep.subr.mxu1 %v7782_v15  ;;  %v5640_v15 = vadd.f32 %v14012_v27, %v14026_v60  ;;  %v6737_v27 = vand.u32 1, %v15186_v2  ;;  %v7711_v60 = vld [vmem:[%s15027_s9 + $0x140] sm:$0xff]  ;;  %vm14495_vm9 = vcmp.eq.s32.totalorder %v6744_v38, 0  ;;  %v7774_v38 = vld [vmem:[%s15027_s9 + $0x338] sm:$0xff] }
 0x481   :  { %v14378_v53 = vadd.f32 %v5869_v30, %v5356_v54  ;;  %v7718_v30 = vld [vmem:[%s15027_s9 + $0x178] sm:$0xff]  ;;  %7857 = vmatprep.subr.mxu0 %v7720_v52  ;;  %v14448_v52 = vadd.s32 24, %v15186_v2  ;;  %vm14532_vm11 = vmand %vm14495_vm9, %vm6839_vm8 }
 0x482   :  { %v10120_v63 = vpop.f32.mrf.mxu1  ;;  %v5889_v16 = vpop.f32.mrf.mxu0  ;;  %7858 = vmatpush2.msra.mxu0 %v7719_v35  ;;  %v14453_v35 = vld [vmem:[%s15028_s8] ss:$0 sm:$0xff]  ;;  %vm14536_vm12 = vcmp.eq.s32.totalorder %v6737_v27, 0  ;;  %vm14567_vm1 = vmand %vm14495_vm9, %vm7019_vm10  ;;  %vm7608_vm10 = vcmask 1041409  }
 0x483   :  { %15336 = vst [vmem:[#allocation30_spill] sm:$0xff] %v14378_v53  ;;  %v14389_v24 = vadd.f32 %v10220_v13, %v10120_v63  ;;  %7859 = vmatprep.subr.mxu0 %v7718_v30  ;;  %v14457_v30 = vadd.s32 16, %v15186_v2  ;;  %vm7229_vm14 = vcmp.lt.s32.totalorder %v14448_v52, 30  ;;  %vm7409_vm5 = vcmp.ge.s32.totalorder %v14448_v52, 30 }
 0x484   :  { %v5366_v28 = vpop.f32.mrf.mxu1  ;;  %v10226_v37 = vpop.f32.mrf.mxu0  ;;  %7860 = vmatpush2.msra.mxu0 %v7717_v42  ;;  %v7713_v42 = vld [vmem:[%s15027_s9 + $0x150] sm:$0xff] }
 0x485   :  { %15337 = vst [vmem:[#allocation25_spill] sm:$0xff] %v14389_v24  ;;  %7861 = vmatprep.subr.mxu0 %v7716_v39  ;;  %v7780_v28 = vld [vmem:[%s15027_s9 + $0x368] sm:$0xff]  ;;  %v7710_v39 = vld [vmem:[%s15027_s9 + $0x138] sm:$0xff]  ;;  %vm7034_vm0 = vcmp.lt.s32.totalorder %v14457_v30, 20  ;;  %vm7214_vm2 = vcmp.ge.s32.totalorder %v14457_v30, 20 }
 0x486   :  { %v10123_v13 = vpop.f32.mrf.mxu1  ;;  %v5899_v62 = vpop.f32.mrf.mxu0 }
 0x487   :  { %v14424_v1 = vadd.f32 %v10223_v51, %v10123_v13  ;;  %v7781_v51 = vld [vmem:[%s15027_s9 + $0x370] sm:$0xff]  ;;  %v7714_v13 = vld [vmem:[%s15027_s9 + $0x158] sm:$0xff] }
 0x488   :  { %v5376_v48 = vpop.f32.mrf.mxu1  ;;  %v10229_v4 = vpop.f32.mrf.mxu0  ;;  %7931 = vmatpush2.msra.mxu1 %v7781_v51  ;;  %v7776_v51 = vld [vmem:[%s15027_s9 + $0x348] sm:$0xff] }
 0x489   :  { %15338 = vst [vmem:[#allocation32_spill] sm:$0xff] %v14424_v1  ;;  %v14426_v54 = vadd.f32 %v5889_v16, %v5376_v48  ;;  %v7715_v16 = vld [vmem:[%s15027_s9 + $0x160] sm:$0xff]  ;;  %7932 = vmatprep.subr.mxu1 %v7780_v28  ;;  %v7778_v4 = vld [vmem:[%s15027_s9 + $0x358] sm:$0xff] }
 0x48a   :  { %v10126_v63 = vpop.f32.mrf.mxu1  ;;  %v5909_v49 = vpop.f32.mrf.mxu0  ;;  %7862 = vmatpush2.msra.mxu0 %v7715_v16 }
 0x48b   :  { %15339 = vst [vmem:[#allocation5_spill] sm:$0xff] %v14426_v54  ;;  %v14428_v46 = vadd.f32 %v10226_v37, %v10126_v63  ;;  %7863 = vmatprep.subr.mxu0 %v7714_v13  ;;  %v7777_v63 = vld [vmem:[%s15027_s9 + $0x350] sm:$0xff]  ;;  %v7712_v49 = vld [vmem:[%s15027_s9 + $0x148] sm:$0xff] }
 0x48c   :  { %v5386_v17 = vpop.f32.mrf.mxu1  ;;  %7864 = vmatpush2.msra.mxu0 %v7713_v42  ;;  %v7709_v13 = vld [vmem:[%s15027_s9 + $0x130] sm:$0xff] }
 0x48d   :  { %15340 = vst [vmem:[#allocation27_spill] sm:$0xff] %v14428_v46  ;;  %v14439_v21 = vadd.f32 %v5899_v62, %v5386_v17  ;;  %v7779_v62 = vld [vmem:[%s15027_s9 + $0x360] sm:$0xff]  ;;  %7865 = vmatprep.subr.mxu0 %v7712_v49  ;;  %v7773_v42 = vld [vmem:[%s15027_s9 + $0x330] sm:$0xff]  ;;  %v6730_v49 = vadd.s32 32, %v15186_v2 }
 0x48e   :  { %v10129_v37 = vpop.f32.mrf.mxu1  ;;  %7933 = vmatpush2.msra.mxu1 %v7779_v62  ;;  %7866 = vmatpush2.msra.mxu0 %v7711_v60  ;;  %v7772_v60 = vld [vmem:[%s15027_s9 + $0x328] sm:$0xff] }
 0x48f   :  { %15341 = vst [vmem:[#allocation12_spill] sm:$0xff] %v14439_v21  ;;  %7934 = vmatprep.subr.mxu1 %v7778_v4  ;;  %7867 = vmatprep.subr.mxu0 %v7710_v39 }
 0x490   :  { %v5396_v57 = vpop.f32.mrf.mxu1  ;;  %7935 = vmatpush2.msra.mxu1 %v7777_v63  ;;  %7868 = vmatpush2.msra.mxu0 %v7709_v13  ;;  %v7705_v13 = vld [vmem:[%s15027_s9 + $0x110] sm:$0xff] }
 0x491   :  { %v6751_v57 = vand.u32 1, %v14457_v30  ;;  %7936 = vmatprep.subr.mxu1 %v7776_v51  ;;  %v5650_v51 = vadd.f32 %v14018_v44, %v14034_v12  ;;  %v7706_v44 = vld [vmem:[%s15027_s9 + $0x118] sm:$0xff]  ;;  %v7771_v12 = vld [vmem:[%s15027_s9 + $0x320] sm:$0xff] }
 0x492   :  { %v10248_v3 = vpop.f32.mrf.mxu1 }
 0x493   :  { %v6553_v48 = vadd.f32 %v10248_v3, %v14022_v0  ;;  %v6758_v0 = vand.u32 1, %v14448_v52  ;;  %v7775_v3 = vld [vmem:[%s15027_s9 + $0x340] sm:$0xff]  ;;  %vm14552_vm15 = vcmp.eq.s32.totalorder %v6751_v57, 0 }
 0x494   :  { %v6273_v17 = vpop.f32.mrf.mxu1  ;;  %7937 = vmatpush2.msra.mxu1 %v7775_v3  ;;  %vm14601_vm4 = vmand %vm14552_vm15, %vm7034_vm0  ;;  %vm7616_vm0 = vcmask 1045509  }
 0x495   :  { %v14493_v16 = vadd.f32 %v14453_v35, %v6553_v48  ;;  %v6552_v37 = vadd.f32 %v6273_v17, %v5640_v15  ;;  %v7708_v15 = vld [vmem:[%s15027_s9 + $0x128] sm:$0xff]  ;;  %v7707_v17 = vld [vmem:[%s15027_s9 + $0x120] sm:$0xff]  ;;  %vm14540_vm13 = vcmp.eq.s32.totalorder %v6758_v0, 0  ;;  %7938 = vmatprep.subr.mxu1 %v7774_v38  ;;  %v7770_v38 = vld [vmem:[%s15027_s9 + $0x318] sm:$0xff] }
 0x496   :  { %v10251_v62 = vpop.f32.mrf.mxu1  ;;  %7939 = vmatpush2.msra.mxu1 %v7773_v42  ;;  %7869 = vmatprep.subr.mxu0 %v7708_v15  ;;  %v7769_v15 = vld [vmem:[%s15027_s9 + $0x310] sm:$0xff]  ;;  %vm14586_vm3 = vmand %vm14540_vm13, %vm7229_vm14  ;;  %vm7612_vm14 = vcmask 1043459  }
 0x497   :  { %v6672_v48 = vmax.f32 %v14493_v16, 0.0  ;;  %v6615_v4 = vadd.f32 %v14453_v35, %v6552_v37  ;;  %v6555_v63 = vadd.f32 %v10251_v62, %v14030_v10  ;;  %7870 = vmatpush2.msra.mxu0 %v7707_v17  ;;  %7940 = vmatprep.subr.mxu1 %v7772_v60  ;;  %v6765_v17 = vand.u32 1, %v6730_v49  ;;  %v7703_v60 = vld [vmem:[%s15027_s9 + $0x100] sm:$0xff]  ;;  %vm14616_vm6 = vmand %vm14552_vm15, %vm7214_vm2 }
 0x498   :  { %v6283_v37 = vpop.f32.mrf.mxu1  ;;  %7871 = vmatprep.subr.mxu0 %v7706_v44  ;;  %7941 = vmatpush2.msra.mxu1 %v7771_v12  ;;  %v7767_v12 = vld [vmem:[%s15027_s9 + $0x300] sm:$0xff]  ;;  %vm14635_vm9 = vmand %vm14540_vm13, %vm7409_vm5  ;;  %vm7610_vm13 = vcmask 1042434   ;;  %vm7614_vm15 = vcmask 1044484   ;;  %vm7618_vm2 = vcmask 1046534  }
 0x499   :  { %v6671_v27 = vmax.f32 %v6615_v4, 0.0  ;;  %v6618_v3 = vadd.f32 %v14453_v35, %v6555_v63  ;;  %v6554_v62 = vadd.f32 %v6283_v37, %v5650_v51  ;;  %v6867_v28 = vsel %vm14532_vm11, %v6672_v48, -inf  ;;  %v7768_v51 = vld [vmem:[%s15027_s9 + $0x308] sm:$0xff]  ;;  %7872 = vmatpush2.msra.mxu0 %v7705_v13  ;;  %7942 = vmatprep.subr.mxu1 %v7770_v38 }
 0x49a   :  { %v10254_v42 = vpop.f32.mrf.mxu1  ;;  %7943 = vmatpush2.msra.mxu1 %v7769_v15  ;;  %7873 = vmatprep.subr.mxu0 %v7704_v7  ;;  %v7061_v2 = vsel %vm14567_vm1, %v6672_v48, -inf  ;;  %vm14624_vm8 = vcmp.eq.s32.totalorder %v6765_v17, 0 }
 0x49b   :  { %v6866_v4 = vsel %vm14536_vm12, %v6671_v27, -inf  ;;  %v6674_v27 = vmax.f32 %v6618_v3, 0.0  ;;  %v6617_v42 = vadd.f32 %v14453_v35, %v6554_v62  ;;  %v7986_v3 = vld [vmem:[%s15029_s11 + $0xf8] sm:$0xff]  ;;  %7874 = vmatpush2.msra.mxu0 %v7703_v60  ;;  %7944 = vmatprep.subr.mxu1 %v7768_v51 }
 0x49c   :  { %v6922_v37 = vmax.f32 %v6866_v4, %v6867_v28  ;;  %v6293_v44 = vpop.f32.mrf.mxu1  ;;  %7945 = vmatpush2.msra.mxu1 %v7767_v12  ;;  %9358 = vmatprep.subr.mxu0 %v7986_v3 }
 0x49d   :  { %v6556_v13 = vadd.f32 %v6293_v44, %v14040_v47  ;;  %v6673_v28 = vmax.f32 %v6617_v42, 0.0  ;;  %v7257_v15 = vsel %vm14586_vm3, %v6674_v27, -inf  ;;  %v7451_v16 = vsel %vm14635_vm9, %v6674_v27, -inf }
 0x49e   :  { %v6928_v38 = vrot.slane %v6922_v37, 4  ;;  %v10257_v4 = vpop.f32.mrf.mxu1 }
 0x49f   :  { %v6619_v30 = vadd.f32 %v14453_v35, %v6556_v13  ;;  %v6559_v21 = vadd.f32 %v10257_v4, %v14044_v59  ;;  %v7062_v7 = vsel %vm14601_vm4, %v6673_v28, -inf  ;;  %v7256_v59 = vsel %vm14616_vm6, %v6673_v28, -inf }
 0x4a0   :  { %v6929_v47 = vmax.f32 %v6922_v37, %v6928_v38  ;;  %v6303_v17 = vpop.f32.mrf.mxu1  ;;  %v7117_v60 = vmax.f32 %v7061_v2, %v7062_v7  ;;  %v7312_v51 = vmax.f32 %v7256_v59, %v7257_v15 }
 0x4a1   :  { %v6675_v37 = vmax.f32 %v6619_v30, 0.0  ;;  %v6622_v44 = vadd.f32 %v14453_v35, %v6559_v21 }
 0x4a2   :  { %v6930_v42 = vrot.slane %v6929_v47, 2  ;;  %v10260_v52 = vpop.f32.mrf.mxu1  ;;  %v7122_v12 = vrot.slane %v7117_v60, 4  ;;  %v7316_v3 = vrot.slane %v7312_v51, 4 }
 0x4a3   :  { %v7452_v13 = vsel %vm14624_vm8, %v6675_v37, -inf  ;;  %v6561_v4 = vadd.f32 %v10260_v52, %v14059_v8  ;;  %v6678_v21 = vmax.f32 %v6622_v44, 0.0 }
 0x4a4   :  { %v7507_v38 = vmax.f32 %v7451_v16, %v7452_v13  ;;  %v6313_v28 = vpop.f32.mrf.mxu1  ;;  %v7123_v17 = vmax.f32 %v7117_v60, %v7122_v12  ;;  %v7317_v2 = vmax.f32 %v7312_v51, %v7316_v3  ;;  %v6931_v15 = vmax.f32 %v6929_v47, %v6930_v42 }
 0x4a5   :  { %v6560_v30 = vadd.f32 %v6313_v28, %v14063_v20  ;;  %v6624_v59 = vadd.f32 %v14453_v35, %v6561_v4  ;;  %v6873_v47 = vsel %vm14536_vm12, %v6678_v21, -inf }
 0x4a6   :  { %v7510_v7 = vrot.slane %v7507_v38, 4  ;;  %v10263_v46 = vpop.f32.mrf.mxu1  ;;  %v7124_v27 = vrot.slane %v7123_v17, 2  ;;  %v7318_v54 = vrot.slane %v7317_v2, 2  ;;  %v6932_v51 = vrot.slane %v6931_v15, 1 }
 0x4a7   :  { %v6623_v1 = vadd.f32 %v14453_v35, %v6560_v30  ;;  %v6563_v37 = vadd.f32 %v10263_v46, %v14067_v23  ;;  %v6680_v13 = vmax.f32 %v6624_v59, 0.0 }
 0x4a8   :  { %v7511_v16 = vmax.f32 %v7507_v38, %v7510_v7  ;;  %v6323_v8 = vpop.f32.mrf.mxu1  ;;  %v7125_v20 = vmax.f32 %v7123_v17, %v7124_v27  ;;  %v7319_v12 = vmax.f32 %v7317_v2, %v7318_v54  ;;  %v6933_v7 = vmax.f32 %v6931_v15, %v6932_v51 }
 0x4a9   :  { %v6679_v52 = vmax.f32 %v6623_v1, 0.0  ;;  %v6626_v60 = vadd.f32 %v14453_v35, %v6563_v37  ;;  %v6562_v42 = vadd.f32 %v6323_v8, %v14071_v19  ;;  %v7069_v3 = vsel %vm14601_vm4, %v6680_v13, -inf }
 0x4aa   :  { %v10266_v44 = vpop.f32.mrf.mxu1  ;;  %v7512_v46 = vrot.slane %v7511_v16, 2  ;;  %v7263_v19 = vsel %vm14616_vm6, %v6680_v13, -inf  ;;  %v7126_v59 = vrot.slane %v7125_v20, 1  ;;  %v7320_v27 = vrot.slane %v7319_v12, 1 }
 0x4ab   :  { %v6874_v23 = vsel %vm14532_vm11, %v6679_v52, -inf  ;;  %v7068_v1 = vsel %vm14567_vm1, %v6679_v52, -inf  ;;  %v6682_v28 = vmax.f32 %v6626_v60, 0.0  ;;  %v6625_v30 = vadd.f32 %v14453_v35, %v6562_v42 }
 0x4ac   :  { %v6934_v38 = vmax.f32 %v6873_v47, %v6874_v23  ;;  %v7129_v4 = vmax.f32 %v7068_v1, %v7069_v3  ;;  %v6333_v17 = vpop.f32.mrf.mxu1  ;;  %v7513_v52 = vmax.f32 %v7511_v16, %v7512_v46  ;;  %v7321_v24 = vmax.f32 %v7319_v12, %v7320_v27 }
 0x4ad   :  { %v6681_v37 = vmax.f32 %v6625_v30, 0.0  ;;  %v7459_v60 = vsel %vm14624_vm8, %v6682_v28, -inf }
 0x4ae   :  { %v6940_v54 = vrot.slane %v6934_v38, 4  ;;  %v7134_v2 = vrot.slane %v7129_v4, 4  ;;  %v10269_v21 = vpop.f32.mrf.mxu1 }
 0x4af   :  { %v6567_v8 = vadd.f32 %v10269_v21, %v14096_v5  ;;  %v7264_v15 = vsel %vm14586_vm3, %v6681_v37, -inf  ;;  %v7458_v13 = vsel %vm14635_vm9, %v6681_v37, -inf }
 0x4b0   :  { %v6941_v47 = vmax.f32 %v6934_v38, %v6940_v54  ;;  %v7135_v44 = vmax.f32 %v7129_v4, %v7134_v2  ;;  %v6343_v42 = vpop.f32.mrf.mxu1  ;;  %v7324_v5 = vmax.f32 %v7263_v19, %v7264_v15  ;;  %v7519_v16 = vmax.f32 %v7458_v13, %v7459_v60 }
 0x4b1   :  { %v6630_v51 = vadd.f32 %v14453_v35, %v6567_v8  ;;  %v6566_v3 = vadd.f32 %v6343_v42, %v14107_v14  ;;  %v7127_v38 = vmax.f32 %v7125_v20, %v7126_v59  ;;  %v7514_v8 = vrot.slane %v7513_v52, 1 }
 0x4b2   :  { %v6942_v23 = vrot.slane %v6941_v47, 2  ;;  %v7136_v1 = vrot.slane %v7135_v44, 2  ;;  %v10272_v46 = vpop.f32.mrf.mxu1  ;;  %v7328_v2 = vrot.slane %v7324_v5, 4  ;;  %v7522_v21 = vrot.slane %v7519_v16, 4 }
 0x4b3   :  { %v6686_v4 = vmax.f32 %v6630_v51, 0.0  ;;  %v6629_v28 = vadd.f32 %v14453_v35, %v6566_v3  ;;  %v6569_v17 = vadd.f32 %v10272_v46, %v14127_v29 }
 0x4b4   :  { %v6943_v30 = vmax.f32 %v6941_v47, %v6942_v23  ;;  %v7137_v54 = vmax.f32 %v7135_v44, %v7136_v1  ;;  %v6353_v37 = vpop.f32.mrf.mxu1  ;;  %v7329_v60 = vmax.f32 %v7324_v5, %v7328_v2  ;;  %v7523_v15 = vmax.f32 %v7519_v16, %v7522_v21 }
 0x4b5   :  { %v6685_v53 = vmax.f32 %v6629_v28, 0.0  ;;  %v6632_v14 = vadd.f32 %v14453_v35, %v6569_v17  ;;  %v6881_v59 = vsel %vm14532_vm11, %v6686_v4, -inf  ;;  %v6568_v44 = vadd.f32 %v6353_v37, %v14132_v43 }
 0x4b6   :  { %v6944_v42 = vrot.slane %v6943_v30, 1  ;;  %v7138_v19 = vrot.slane %v7137_v54, 1  ;;  %v10275_v20 = vpop.f32.mrf.mxu1  ;;  %v7330_v27 = vrot.slane %v7329_v60, 2  ;;  %v7524_v51 = vrot.slane %v7523_v15, 2 }
 0x4b7   :  { %v6880_v29 = vsel %vm14536_vm12, %v6685_v53, -inf  ;;  %v6688_v47 = vmax.f32 %v6632_v14, 0.0  ;;  %v7515_v23 = vmax.f32 %v7513_v52, %v7514_v8  ;;  %v7075_v1 = vsel %vm14567_vm1, %v6686_v4, -inf }
 0x4b8   :  { %v6945_v13 = vmax.f32 %v6943_v30, %v6944_v42  ;;  %v7139_v12 = vmax.f32 %v7137_v54, %v7138_v19  ;;  %v6363_v3 = vpop.f32.mrf.mxu1  ;;  %v6946_v5 = vmax.f32 %v6880_v29, %v6881_v59  ;;  %v6631_v16 = vadd.f32 %v14453_v35, %v6568_v44 }
 0x4b9   :  { %v7331_v28 = vmax.f32 %v7329_v60, %v7330_v27  ;;  %v7525_v17 = vmax.f32 %v7523_v15, %v7524_v51  ;;  %v6570_v53 = vadd.f32 %v6363_v3, %v14146_v50  ;;  %v7271_v4 = vsel %vm14586_vm3, %v6688_v47, -inf }
 0x4ba   :  { %v7609_v46 = vsel %vm7608_vm10, %v6945_v13, %v6933_v7  ;;  %v10278_v2 = vpop.f32.mrf.mxu1  ;;  %v6952_v43 = vrot.slane %v6946_v5, 4  ;;  %v6687_v30 = vmax.f32 %v6631_v16, 0.0  ;;  %v14690_v21 = vsel %vm7608_vm10, %v7139_v12, %v7127_v38 }
 0x4bb   :  { %v6573_v54 = vadd.f32 %v10278_v2, %v14148_v56  ;;  %v7332_v52 = vrot.slane %v7331_v28, 1  ;;  %v7526_v37 = vrot.slane %v7525_v17, 1  ;;  %v6633_v8 = vadd.f32 %v14453_v35, %v6570_v53 }
 0x4bc   :  { %v6373_v7 = vpop.f32.mrf.mxu1  ;;  %v6953_v14 = vmax.f32 %v6946_v5, %v6952_v43  ;;  %v7076_v50 = vsel %vm14601_vm4, %v6687_v30, -inf  ;;  %v7270_v42 = vsel %vm14616_vm6, %v6687_v30, -inf  ;;  %v7465_v29 = vsel %vm14635_vm9, %v6688_v47, -inf }
 0x4bd   :  { %v6636_v56 = vadd.f32 %v14453_v35, %v6573_v54  ;;  %v7333_v19 = vmax.f32 %v7331_v28, %v7332_v52  ;;  %v7527_v38 = vmax.f32 %v7525_v17, %v7526_v37  ;;  %v7141_v60 = vmax.f32 %v7075_v1, %v7076_v50 }
 0x4be   :  { %v7336_v15 = vmax.f32 %v7270_v42, %v7271_v4  ;;  %v10281_v20 = vpop.f32.mrf.mxu1  ;;  %v6954_v59 = vrot.slane %v6953_v14, 2  ;;  %v6689_v44 = vmax.f32 %v6633_v8, 0.0 }
 0x4bf   :  { %v6575_v13 = vadd.f32 %v10281_v20, %v14174_v22  ;;  %v7647_v12 = vsel %vm7608_vm10, %v7333_v19, %v7321_v24  ;;  %v7146_v27 = vrot.slane %v7141_v60, 4  ;;  %v14705_v5 = vsel %vm7608_vm10, %v7527_v38, %v7515_v23 }
 0x4c0   :  { %v7340_v51 = vrot.slane %v7336_v15, 4  ;;  %v6383_v3 = vpop.f32.mrf.mxu1  ;;  %v6955_v16 = vmax.f32 %v6953_v14, %v6954_v59  ;;  %v7466_v1 = vsel %vm14624_vm8, %v6689_v44, -inf  ;;  %v6692_v28 = vmax.f32 %v6636_v56, 0.0 }
 0x4c1   :  { %v6638_v17 = vadd.f32 %v14453_v35, %v6575_v13  ;;  %v7147_v53 = vmax.f32 %v7141_v60, %v7146_v27  ;;  %v7531_v2 = vmax.f32 %v7465_v29, %v7466_v1  ;;  %v6574_v22 = vadd.f32 %v6383_v3, %v14194_v6 }
 0x4c2   :  { %v7341_v47 = vmax.f32 %v7336_v15, %v7340_v51  ;;  %v10284_v43 = vpop.f32.mrf.mxu1  ;;  %v6956_v24 = vrot.slane %v6955_v16, 1  ;;  %v6887_v14 = vsel %vm14536_vm12, %v6692_v28, -inf }
 0x4c3   :  { %v6694_v30 = vmax.f32 %v6638_v17, 0.0  ;;  %v6577_v54 = vadd.f32 %v10284_v43, %v14196_v18  ;;  %v7148_v23 = vrot.slane %v7147_v53, 2  ;;  %v7534_v37 = vrot.slane %v7531_v2, 4 }
 0x4c4   :  { %v7342_v52 = vrot.slane %v7341_v47, 2  ;;  %v6637_v4 = vadd.f32 %v14453_v35, %v6574_v22  ;;  %v6393_v8 = vpop.f32.mrf.mxu1  ;;  %v6957_v7 = vmax.f32 %v6955_v16, %v6956_v24 }
 0x4c5   :  { %v6640_v50 = vadd.f32 %v14453_v35, %v6577_v54  ;;  %v7149_v42 = vmax.f32 %v7147_v53, %v7148_v23  ;;  %v7535_v56 = vmax.f32 %v7531_v2, %v7534_v37  ;;  %v7083_v18 = vsel %vm14601_vm4, %v6694_v30, -inf }
 0x4c6   :  { %v7343_v6 = vmax.f32 %v7341_v47, %v7342_v52  ;;  %v6693_v19 = vmax.f32 %v6637_v4, 0.0  ;;  %v10287_v38 = vpop.f32.mrf.mxu1  ;;  %v14717_v60 = vsel %vm7610_vm13, %v6957_v7, %v7609_v46  ;;  %v6576_v20 = vadd.f32 %v6393_v8, %v14198_v25 }
 0x4c7   :  { %v6696_v15 = vmax.f32 %v6640_v50, 0.0  ;;  %v7150_v59 = vrot.slane %v7149_v42, 1  ;;  %v7536_v44 = vrot.slane %v7535_v56, 2  ;;  %v7277_v51 = vsel %vm14616_vm6, %v6694_v30, -inf }
 0x4c8   :  { %v7344_v29 = vrot.slane %v7343_v6, 1  ;;  %v6888_v13 = vsel %vm14532_vm11, %v6693_v19, -inf  ;;  %v6403_v27 = vpop.f32.mrf.mxu1  ;;  %v7082_v46 = vsel %vm14567_vm1, %v6693_v19, -inf  ;;  %v6639_v16 = vadd.f32 %v14453_v35, %v6576_v20 }
 0x4c9   :  { %v6958_v3 = vmax.f32 %v6887_v14, %v6888_v13  ;;  %v7151_v1 = vmax.f32 %v7149_v42, %v7150_v59  ;;  %v7537_v17 = vmax.f32 %v7535_v56, %v7536_v44  ;;  %v7153_v25 = vmax.f32 %v7082_v46, %v7083_v18 }
 0x4ca   :  { %v7345_v28 = vmax.f32 %v7343_v6, %v7344_v29  ;;  %v10290_v53 = vpop.f32.mrf.mxu1  ;;  %v7473_v2 = vsel %vm14624_vm8, %v6696_v15, -inf  ;;  %v6695_v22 = vmax.f32 %v6639_v16, 0.0 }
 0x4cb   :  { %v6964_v47 = vrot.slane %v6958_v3, 4  ;;  %v6581_v43 = vadd.f32 %v10290_v53, %v14221_v11  ;;  %v7538_v30 = vrot.slane %v7537_v17, 1  ;;  %v7158_v54 = vrot.slane %v7153_v25, 4 }
 0x4cc   :  { %v14733_v24 = vsel %vm7610_vm13, %v7345_v28, %v7647_v12  ;;  %v6413_v23 = vpop.f32.mrf.mxu1  ;;  %v7632_v52 = vsel %vm7610_vm13, %v7151_v1, %v14690_v21  ;;  %v7278_v4 = vsel %vm14586_vm3, %v6695_v22, -inf  ;;  %v7472_v8 = vsel %vm14635_vm9, %v6695_v22, -inf }
 0x4cd   :  { %v6965_v37 = vmax.f32 %v6958_v3, %v6964_v47  ;;  %v6644_v7 = vadd.f32 %v14453_v35, %v6581_v43  ;;  %v7539_v14 = vmax.f32 %v7537_v17, %v7538_v30  ;;  %v7159_v11 = vmax.f32 %v7153_v25, %v7158_v54 }
 0x4ce   :  { %v7348_v50 = vmax.f32 %v7277_v51, %v7278_v4  ;;  %v7543_v12 = vmax.f32 %v7472_v8, %v7473_v2  ;;  %v10293_v42 = vpop.f32.mrf.mxu1  ;;  %v6580_v19 = vadd.f32 %v6413_v23, %v14241_v41 }
 0x4cf   :  { %v6966_v6 = vrot.slane %v6965_v37, 2  ;;  %v6700_v56 = vmax.f32 %v6644_v7, 0.0  ;;  %v6583_v21 = vadd.f32 %v10293_v42, %v14246_v34  ;;  %v7160_v38 = vrot.slane %v7159_v11, 2 }
 0x4d0   :  { %v7352_v18 = vrot.slane %v7348_v50, 4  ;;  %v7546_v15 = vrot.slane %v7543_v12, 4  ;;  %v6423_v20 = vpop.f32.mrf.mxu1  ;;  %v14746_v59 = vsel %vm7610_vm13, %v7539_v14, %v14705_v5  ;;  %v6643_v44 = vadd.f32 %v14453_v35, %v6580_v19 }
 0x4d1   :  { %v6967_v29 = vmax.f32 %v6965_v37, %v6966_v6  ;;  %v7161_v13 = vmax.f32 %v7159_v11, %v7160_v38  ;;  %v6646_v3 = vadd.f32 %v14453_v35, %v6583_v21  ;;  %v6895_v34 = vsel %vm14532_vm11, %v6700_v56, -inf }
 0x4d2   :  { %v7353_v27 = vmax.f32 %v7348_v50, %v7352_v18  ;;  %v7547_v51 = vmax.f32 %v7543_v12, %v7546_v15  ;;  %v10296_v41 = vpop.f32.mrf.mxu1  ;;  %v6699_v16 = vmax.f32 %v6643_v44, 0.0  ;;  %v6582_v1 = vadd.f32 %v6423_v20, %v14248_v9 }
 0x4d3   :  { %v6968_v46 = vrot.slane %v6967_v29, 1  ;;  %v7162_v28 = vrot.slane %v7161_v13, 1  ;;  %v6702_v25 = vmax.f32 %v6646_v3, 0.0  ;;  %v7089_v47 = vsel %vm14567_vm1, %v6700_v56, -inf }
 0x4d4   :  { %v7354_v5 = vrot.slane %v7353_v27, 2  ;;  %v7548_v17 = vrot.slane %v7547_v51, 2  ;;  %v6433_v53 = vpop.f32.mrf.mxu1  ;;  %v6894_v2 = vsel %vm14536_vm12, %v6699_v16, -inf  ;;  %v6645_v22 = vadd.f32 %v14453_v35, %v6582_v1 }
 0x4d5   :  { %v6584_v43 = vadd.f32 %v6433_v53, %v14262_v31  ;;  %v7163_v30 = vmax.f32 %v7161_v13, %v7162_v28  ;;  %v6970_v37 = vmax.f32 %v6894_v2, %v6895_v34  ;;  %v6969_v4 = vmax.f32 %v6967_v29, %v6968_v46 }
 0x4d6   :  { %v7355_v54 = vmax.f32 %v7353_v27, %v7354_v5  ;;  %v7549_v23 = vmax.f32 %v7547_v51, %v7548_v17  ;;  %v10299_v9 = vpop.f32.mrf.mxu1  ;;  %v7285_v8 = vsel %vm14586_vm3, %v6702_v25, -inf  ;;  %v6701_v7 = vmax.f32 %v6645_v22, 0.0 }
 0x4d7   :  { %v6647_v14 = vadd.f32 %v14453_v35, %v6584_v43  ;;  %v6976_v50 = vrot.slane %v6970_v37, 4  ;;  %v7479_v12 = vsel %vm14635_vm9, %v6702_v25, -inf  ;;  %v6587_v42 = vadd.f32 %v10299_v9, %v14264_v58 }
 0x4d8   :  { %v7550_v11 = vrot.slane %v7549_v23, 1  ;;  %v6443_v31 = vpop.f32.mrf.mxu1  ;;  %v7090_v6 = vsel %vm14601_vm4, %v6701_v7, -inf  ;;  %v7284_v56 = vsel %vm14616_vm6, %v6701_v7, -inf  ;;  %v14770_v21 = vsel %vm7612_vm14, %v7163_v30, %v7632_v52 }
 0x4d9   :  { %v6703_v19 = vmax.f32 %v6647_v14, 0.0  ;;  %v7356_v38 = vrot.slane %v7355_v54, 1  ;;  %v6977_v15 = vmax.f32 %v6970_v37, %v6976_v50  ;;  %v7165_v20 = vmax.f32 %v7089_v47, %v7090_v6 }
 0x4da   :  { %v7551_v18 = vmax.f32 %v7549_v23, %v7550_v11  ;;  %v10302_v29 = vpop.f32.mrf.mxu1  ;;  %v7360_v44 = vmax.f32 %v7284_v56, %v7285_v8  ;;  %v6650_v13 = vadd.f32 %v14453_v35, %v6587_v42  ;;  %v7613_v52 = vsel %vm7612_vm14, %v6969_v4, %v14717_v60 }
 0x4db   :  { %v7480_v58 = vsel %vm14624_vm8, %v6703_v19, -inf  ;;  %v6589_v27 = vadd.f32 %v10302_v29, %v14302_v40  ;;  %v6978_v51 = vrot.slane %v6977_v15, 2  ;;  %v7170_v3 = vrot.slane %v7165_v20, 4 }
 0x4dc   :  { %v7555_v41 = vmax.f32 %v7479_v12, %v7480_v58  ;;  %v6453_v46 = vpop.f32.mrf.mxu1  ;;  %v7364_v34 = vrot.slane %v7360_v44, 4  ;;  %v6706_v16 = vmax.f32 %v6650_v13, 0.0  ;;  %v7665_v40 = vsel %vm7612_vm14, %v7551_v18, %v14746_v59 }
 0x4dd   :  { %v6652_v1 = vadd.f32 %v14453_v35, %v6589_v27  ;;  %v6588_v28 = vadd.f32 %v6453_v46, %v14310_v55  ;;  %v6979_v5 = vmax.f32 %v6977_v15, %v6978_v51  ;;  %v7171_v17 = vmax.f32 %v7165_v20, %v7170_v3 }
 0x4de   :  { %v7558_v25 = vrot.slane %v7555_v41, 4  ;;  %v10305_v53 = vpop.f32.mrf.mxu1  ;;  %v7365_v47 = vmax.f32 %v7360_v44, %v7364_v34  ;;  %v14784_v9 = vmax.f32 %v7355_v54, %v7356_v38  ;;  %v6901_v4 = vsel %vm14536_vm12, %v6706_v16, -inf }
 0x4df   :  { %v6708_v2 = vmax.f32 %v6652_v1, 0.0  ;;  %v6651_v22 = vadd.f32 %v14453_v35, %v6588_v28  ;;  %v6980_v43 = vrot.slane %v6979_v5, 1  ;;  %v7172_v60 = vrot.slane %v7171_v17, 2 }
 0x4e0   :  { %v7559_v30 = vmax.f32 %v7555_v41, %v7558_v25  ;;  %v6591_v23 = vadd.f32 %v10305_v53, %v14312_v36  ;;  %v6463_v37 = vpop.f32.mrf.mxu1  ;;  %v7366_v55 = vrot.slane %v7365_v47, 2 }
 0x4e1   :  { %v6707_v8 = vmax.f32 %v6651_v22, 0.0  ;;  %v6981_v7 = vmax.f32 %v6979_v5, %v6980_v43  ;;  %v7173_v59 = vmax.f32 %v7171_v17, %v7172_v60  ;;  %v7097_v12 = vsel %vm14601_vm4, %v6708_v2, -inf }
 0x4e2   :  { %v7560_v14 = vrot.slane %v7559_v30, 2  ;;  %v6654_v11 = vadd.f32 %v14453_v35, %v6591_v23  ;;  %v10308_v50 = vpop.f32.mrf.mxu1  ;;  %v6590_v42 = vadd.f32 %v6463_v37, %v14323_v61  ;;  %v7291_v18 = vsel %vm14616_vm6, %v6708_v2, -inf }
 0x4e3   :  { %v6902_v36 = vsel %vm14532_vm11, %v6707_v8, -inf  ;;  %v7096_v54 = vsel %vm14567_vm1, %v6707_v8, -inf  ;;  %v7174_v31 = vrot.slane %v7173_v59, 1  ;;  %v14800_v29 = vsel %vm7614_vm15, %v6981_v7, %v7613_v52 }
 0x4e4   :  { %v7561_v6 = vmax.f32 %v7559_v30, %v7560_v14  ;;  %v6982_v56 = vmax.f32 %v6901_v4, %v6902_v36  ;;  %v7177_v19 = vmax.f32 %v7096_v54, %v7097_v12  ;;  %v6473_v38 = vpop.f32.mrf.mxu1  ;;  %v6710_v15 = vmax.f32 %v6654_v11, 0.0 }
 0x4e5   :  { %v6653_v20 = vadd.f32 %v14453_v35, %v6590_v42  ;;  %v7175_v44 = vmax.f32 %v7173_v59, %v7174_v31  ;;  %v7367_v61 = vmax.f32 %v7365_v47, %v7366_v55 }
 0x4e6   :  { %v7562_v58 = vrot.slane %v7561_v6, 1  ;;  %v6988_v13 = vrot.slane %v6982_v56, 4  ;;  %v7182_v27 = vrot.slane %v7177_v19, 4  ;;  %v10311_v51 = vpop.f32.mrf.mxu1  ;;  %v7487_v3 = vsel %vm14624_vm8, %v6710_v15, -inf }
 0x4e7   :  { %v6709_v41 = vmax.f32 %v6653_v20, 0.0  ;;  %v6595_v46 = vadd.f32 %v10311_v51, %v14337_v32  ;;  %v7634_v52 = vsel %vm7614_vm15, %v7175_v44, %v14770_v21  ;;  %v7368_v59 = vrot.slane %v7367_v61, 1 }
 0x4e8   :  { %v7563_v34 = vmax.f32 %v7561_v6, %v7562_v58  ;;  %v6989_v16 = vmax.f32 %v6982_v56, %v6988_v13  ;;  %v7183_v1 = vmax.f32 %v7177_v19, %v7182_v27  ;;  %v6483_v28 = vpop.f32.mrf.mxu1  ;;  %v7649_v6 = vsel %vm7612_vm14, %v14784_v9, %v14733_v24  ;;  %v15364_v13 = vld [vmem:[#allocation30_spill] sm:$0xff]  ;;  %v15365_v9 = vld [vmem:[#allocation25_spill] sm:$0xff] }
 0x4e9   :  { %v7292_v5 = vsel %vm14586_vm3, %v6709_v41, -inf  ;;  %v7486_v17 = vsel %vm14635_vm9, %v6709_v41, -inf  ;;  %v6658_v25 = vadd.f32 %v14453_v35, %v6595_v46  ;;  %v6594_v53 = vadd.f32 %v6483_v28, %v14357_v45 }
 0x4ea   :  { %v6990_v47 = vrot.slane %v6989_v16, 2  ;;  %v7184_v32 = vrot.slane %v7183_v1, 2  ;;  %v7372_v2 = vmax.f32 %v7291_v18, %v7292_v5  ;;  %v7567_v22 = vmax.f32 %v7486_v17, %v7487_v3  ;;  %v10314_v43 = vpop.f32.mrf.mxu1 }
 0x4eb   :  { %v6714_v60 = vmax.f32 %v6658_v25, 0.0  ;;  %v6657_v30 = vadd.f32 %v14453_v35, %v6594_v53  ;;  %v6597_v21 = vadd.f32 %v10314_v43, %v14362_v26  ;;  %v14816_v23 = vsel %vm7614_vm15, %v7563_v34, %v7665_v40 }
 0x4ec   :  { %v6991_v37 = vmax.f32 %v6989_v16, %v6990_v47  ;;  %v7185_v55 = vmax.f32 %v7183_v1, %v7184_v32  ;;  %v7376_v4 = vrot.slane %v7372_v2, 4  ;;  %v7570_v8 = vrot.slane %v7567_v22, 4  ;;  %v6493_v7 = vpop.f32.mrf.mxu1 }
 0x4ed   :  { %v6909_v45 = vsel %vm14532_vm11, %v6714_v60, -inf  ;;  %v6713_v14 = vmax.f32 %v6657_v30, 0.0  ;;  %v6660_v11 = vadd.f32 %v14453_v35, %v6597_v21  ;;  %v6596_v31 = vadd.f32 %v6493_v7, %v14373_v33 }
 0x4ee   :  { %v6992_v50 = vrot.slane %v6991_v37, 1  ;;  %v7186_v12 = vrot.slane %v7185_v55, 1  ;;  %v7377_v36 = vmax.f32 %v7372_v2, %v7376_v4  ;;  %v7571_v54 = vmax.f32 %v7567_v22, %v7570_v8  ;;  %v10317_v26 = vpop.f32.mrf.mxu1 }
 0x4ef   :  { %v6908_v40 = vsel %vm14536_vm12, %v6713_v14, -inf  ;;  %v6716_v42 = vmax.f32 %v6660_v11, 0.0  ;;  %v7369_v20 = vmax.f32 %v7367_v61, %v7368_v59  ;;  %v7103_v44 = vsel %vm14567_vm1, %v6714_v60, -inf }
 0x4f0   :  { %v6993_v56 = vmax.f32 %v6991_v37, %v6992_v50  ;;  %v7378_v19 = vrot.slane %v7377_v36, 2  ;;  %v7572_v38 = vrot.slane %v7571_v54, 2  ;;  %v6994_v18 = vmax.f32 %v6908_v40, %v6909_v45  ;;  %v6503_v15 = vpop.f32.mrf.mxu1  ;;  %v15366_v37 = vld [vmem:[#allocation32_spill] sm:$0xff] }
 0x4f1   :  { %v6659_v58 = vadd.f32 %v14453_v35, %v6596_v31  ;;  %v6598_v27 = vadd.f32 %v6503_v15, %v15364_v13  ;;  %v7187_v46 = vmax.f32 %v7185_v55, %v7186_v12  ;;  %v7299_v5 = vsel %vm14586_vm3, %v6716_v42, -inf  ;;  %v15367_v12 = vld [vmem:[#allocation5_spill] sm:$0xff] }
 0x4f2   :  { %v7379_v51 = vmax.f32 %v7377_v36, %v7378_v19  ;;  %v7573_v3 = vmax.f32 %v7571_v54, %v7572_v38  ;;  %v7000_v33 = vrot.slane %v6994_v18, 4  ;;  %v10320_v41 = vpop.f32.mrf.mxu1  ;;  %v7617_v61 = vsel %vm7616_vm0, %v6993_v56, %v14800_v29 }
 0x4f3   :  { %v6715_v34 = vmax.f32 %v6659_v58, 0.0  ;;  %v6661_v24 = vadd.f32 %v14453_v35, %v6598_v27  ;;  %v6601_v16 = vadd.f32 %v10320_v41, %v15365_v9  ;;  %v14838_v25 = vsel %vm7616_vm0, %v7187_v46, %v7634_v52 }
 0x4f4   :  { %v7574_v1 = vrot.slane %v7573_v3, 1  ;;  %v7001_v28 = vmax.f32 %v6994_v18, %v7000_v33  ;;  %v6513_v17 = vpop.f32.mrf.mxu1  ;;  %v7493_v22 = vsel %vm14635_vm9, %v6716_v42, -inf  ;;  %v7380_v21 = vrot.slane %v7379_v51, 1  ;;  %v15368_v18 = vld [vmem:[#allocation27_spill] sm:$0xff] }
 0x4f5   :  { %v7104_v53 = vsel %vm14601_vm4, %v6715_v34, -inf  ;;  %v7298_v47 = vsel %vm14616_vm6, %v6715_v34, -inf  ;;  %v6717_v32 = vmax.f32 %v6661_v24, 0.0  ;;  %v6664_v2 = vadd.f32 %v14453_v35, %v6601_v16  ;;  %v10357_v34 = vld [vmem:[%s15028_s8] ss:$0 sm:$0xff] }
 0x4f6   :  { %v7002_v29 = vrot.slane %v7001_v28, 2  ;;  %v7189_v43 = vmax.f32 %v7103_v44, %v7104_v53  ;;  %v7384_v60 = vmax.f32 %v7298_v47, %v7299_v5  ;;  %v10323_v30 = vpop.f32.mrf.mxu1  ;;  %v7575_v4 = vmax.f32 %v7573_v3, %v7574_v1  ;;  %v15369_v1 = vld [vmem:[#allocation12_spill] sm:$0xff] }
 0x4f7   :  { %v7494_v52 = vsel %vm14624_vm8, %v6717_v32, -inf  ;;  %v6603_v55 = vadd.f32 %v10323_v30, %v15366_v37  ;;  %v6720_v11 = vmax.f32 %v6664_v2, 0.0  ;;  %v7650_v44 = vsel %vm7614_vm15, %v7369_v20, %v7649_v6 }
 0x4f8   :  { %v7003_v8 = vmax.f32 %v7001_v28, %v7002_v29  ;;  %v7194_v7 = vrot.slane %v7189_v43, 4  ;;  %v7388_v59 = vrot.slane %v7384_v60, 4  ;;  %v7579_v45 = vmax.f32 %v7493_v22, %v7494_v52  ;;  %v6523_v14 = vpop.f32.mrf.mxu1 }
 0x4f9   :  { %v6666_v50 = vadd.f32 %v14453_v35, %v6603_v55  ;;  %v6602_v36 = vadd.f32 %v6523_v14, %v15367_v12  ;;  %v7667_v54 = vsel %vm7616_vm0, %v7575_v4, %v14816_v23  ;;  %v7381_v41 = vmax.f32 %v7379_v51, %v7380_v21 }
 0x4fa   :  { %v7004_v26 = vrot.slane %v7003_v8, 1  ;;  %v7195_v40 = vmax.f32 %v7189_v43, %v7194_v7  ;;  %v7389_v42 = vmax.f32 %v7384_v60, %v7388_v59  ;;  %v7582_v31 = vrot.slane %v7579_v45, 4  ;;  %v10326_v56 = vpop.f32.mrf.mxu1 }
 0x4fb   :  { %v6722_v19 = vmax.f32 %v6666_v50, 0.0  ;;  %v6665_v38 = vadd.f32 %v14453_v35, %v6602_v36  ;;  %v6605_v15 = vadd.f32 %v10326_v56, %v15368_v18  ;;  %v6915_v23 = vsel %vm14536_vm12, %v6720_v11, -inf }
 0x4fc   :  { %v7005_v58 = vmax.f32 %v7003_v8, %v7004_v26  ;;  %v7196_v13 = vrot.slane %v7195_v40, 2  ;;  %v7390_v27 = vrot.slane %v7389_v42, 2  ;;  %v7583_v3 = vmax.f32 %v7579_v45, %v7582_v31  ;;  %v6533_v33 = vpop.f32.mrf.mxu1 }
 0x4fd   :  { %v6721_v46 = vmax.f32 %v6665_v38, 0.0  ;;  %v6668_v24 = vadd.f32 %v10357_v34, %v6605_v15  ;;  %v6604_v6 = vadd.f32 %v6533_v33, %v15369_v1  ;;  %v7111_v28 = vsel %vm14601_vm4, %v6722_v19, -inf  ;;  %v7967_v1 = vld [vmem:[%s15029_s11 + $0x60] sm:$0xff] }
 0x4fe   :  { %v7197_v35 = vmax.f32 %v7195_v40, %v7196_v13  ;;  %v7391_v9 = vmax.f32 %v7389_v42, %v7390_v27  ;;  %v7584_v16 = vrot.slane %v7583_v3, 2  ;;  %v10329_v20 = vpop.f32.mrf.mxu1  ;;  %v7619_v5 = vsel %vm7618_vm2, %v7005_v58, %v7617_v61  ;;  %v7985_v27 = vld [vmem:[%s15029_s11 + $0xf0] sm:$0xff] }
 0x4ff   :  { %v6916_v51 = vsel %vm14532_vm11, %v6721_v46, -inf  ;;  %v7110_v39 = vsel %vm14567_vm1, %v6721_v46, -inf  ;;  %v6724_v29 = vmax.f32 %v6668_v24, 0.0  ;;  %v6667_v22 = vadd.f32 %v10357_v34, %v6604_v6  ;;  %v7968_v24 = vld [vmem:[%s15029_s11 + $0x68] sm:$0xff]  ;;  %v7982_v6 = vld [vmem:[%s15029_s11 + $0xd8] sm:$0xff] }
 0x500   :  { %v7392_v17 = vrot.slane %v7391_v9, 1  ;;  %v7585_v53 = vmax.f32 %v7583_v3, %v7584_v16  ;;  %v7006_v47 = vmax.f32 %v6915_v23, %v6916_v51  ;;  %v7201_v32 = vmax.f32 %v7110_v39, %v7111_v28  ;;  %v6543_v2 = vpop.f32.mrf.mxu1  ;;  %v7984_v23 = vld [vmem:[%s15029_s11 + $0xe8] sm:$0xff]  ;;  %v7966_v20 = vld [vmem:[%s15029_s11 + $0x58] sm:$0xff]  ;;  %v7981_v28 = vld [vmem:[%s15029_s11 + $0xd0] sm:$0xff] }
 0x501   :  { %v7198_v43 = vrot.slane %v7197_v35, 1  ;;  %v7651_v60 = vsel %vm7616_vm0, %v7381_v41, %v7650_v44  ;;  %v7305_v57 = vsel %vm14616_vm6, %v6722_v19, -inf  ;;  %v6723_v52 = vmax.f32 %v6667_v22, 0.0  ;;  %v7969_v41 = vld [vmem:[%s15029_s11 + $0x70] sm:$0xff]  ;;  %v7980_v39 = vld [vmem:[%s15029_s11 + $0xc8] sm:$0xff] }
 0x502   :  { %v7393_v49 = vmax.f32 %v7391_v9, %v7392_v17  ;;  %v7012_v30 = vrot.slane %v7006_v47, 4  ;;  %v7206_v21 = vrot.slane %v7201_v32, 4  ;;  %v7586_v10 = vrot.slane %v7585_v53, 1  ;;  %v7965_v51 = vld [vmem:[%s15029_s11 + $0x50] sm:$0xff]  ;;  %v7979_v17 = vld [vmem:[%s15029_s11 + $0xc0] sm:$0xff]  ;;  %v7976_v22 = vld [vmem:[%s15029_s11 + $0xa8] sm:$0xff] }
 0x503   :  { %v7199_v37 = vmax.f32 %v7197_v35, %v7198_v43  ;;  %v7501_v7 = vsel %vm14624_vm8, %v6724_v29, -inf  ;;  %v7306_v59 = vsel %vm14586_vm3, %v6723_v52, -inf  ;;  %v7500_v45 = vsel %vm14635_vm9, %v6723_v52, -inf  ;;  %v7983_v35 = vld [vmem:[%s15029_s11 + $0xe0] sm:$0xff]  ;;  %v7977_v2 = vld [vmem:[%s15029_s11 + $0xb0] sm:$0xff]  ;;  %v7960_v43 = vld [vmem:[%s15029_s11 + $0x28] sm:$0xff] }
 0x504   :  { %v7013_v61 = vmax.f32 %v7006_v47, %v7012_v30  ;;  %v7207_v55 = vmax.f32 %v7201_v32, %v7206_v21  ;;  %v7587_v4 = vmax.f32 %v7585_v53, %v7586_v10  ;;  %v7652_v8 = vsel %vm7618_vm2, %v7393_v49, %v7651_v60  ;;  %v7963_v53 = vld [vmem:[%s15029_s11 + $0x40] sm:$0xff]  ;;  %v7978_v47 = vld [vmem:[%s15029_s11 + $0xb8] sm:$0xff]  ;;  %v7961_v29 = vld [vmem:[%s15029_s11 + $0x30] sm:$0xff] }
 0x505   :  { %v7636_v62 = vsel %vm7618_vm2, %v7199_v37, %v14838_v25  ;;  %v7396_v50 = vmax.f32 %v7305_v57, %v7306_v59  ;;  %v7591_v12 = vmax.f32 %v7500_v45, %v7501_v7  ;;  %vm7620_vm11 = vcmask 1047559   ;;  %v7962_v32 = vld [vmem:[%s15029_s11 + $0x38] sm:$0xff]  ;;  %v7975_v60 = vld [vmem:[%s15029_s11 + $0xa0] sm:$0xff]  ;;  %v7973_v10 = vld [vmem:[%s15029_s11 + $0x90] sm:$0xff] }
 0x506   :  { %v7014_v14 = vrot.slane %v7013_v61, 2  ;;  %v7208_v11 = vrot.slane %v7207_v55, 2  ;;  %v7668_v36 = vsel %vm7618_vm2, %v7587_v4, %v7667_v54  ;;  %v7970_v54 = vld [vmem:[%s15029_s11 + $0x78] sm:$0xff]  ;;  %v7959_v49 = vld [vmem:[%s15029_s11 + $0x20] sm:$0xff]  ;;  %v7957_v57 = vld [vmem:[%s15029_s11 + $0x10] sm:$0xff]  ;;  %v10358_v4 = vmov 0.0  }
 0x507   :  { %v7400_v40 = vrot.slane %v7396_v50, 4  ;;  %v7594_v42 = vrot.slane %v7591_v12, 4  ;;  %v7974_v30 = vld [vmem:[%s15029_s11 + $0x98] sm:$0xff]  ;;  %v7972_v52 = vld [vmem:[%s15029_s11 + $0x88] sm:$0xff]  ;;  %10330 = vmatprep.subr.mxu1 %v10358_v4  ;;  %v8071_v7 = vld [vmem:[%s15030_s13 + $0x30] sm:$0xff]  ;;  %vm10359_vm12 = vmmov 0  }
 0x508   :  { %v7015_v26 = vmax.f32 %v7013_v61, %v7014_v14  ;;  %v7209_v0 = vmax.f32 %v7207_v55, %v7208_v11  ;;  %v7958_v21 = vld [vmem:[%s15029_s11 + $0x18] sm:$0xff]  ;;  %v7956_v37 = vld [vmem:[%s15029_s11 + $0x8] sm:$0xff]  ;;  %v7971_v61 = vld [vmem:[%s15029_s11 + $0x80] sm:$0xff] }
 0x509   :  { %v7401_v56 = vmax.f32 %v7396_v50, %v7400_v40  ;;  %v7595_v63 = vmax.f32 %v7591_v12, %v7594_v42  ;;  %v7955_v55 = vld [vmem:[%s15029_s11] sm:$0xff]  ;;  %v8070_v59 = vld [vmem:[%s15030_s13 + $0x28] sm:$0xff] }
 0x50a   :  { %v7016_v31 = vrot.slane %v7015_v26, 1  ;;  %v7210_v19 = vrot.slane %v7209_v0, 1  ;;  %v15370_v45 = vld [vmem:[#allocation2_spill] sm:$0xff] }
 0x50b   :  { %v7402_v38 = vrot.slane %v7401_v56, 2  ;;  %v7596_v18 = vrot.slane %v7595_v63, 2  ;;  %v7799_v14 = vld [vmem:[%s15031_s10] sm:$0x3]  ;;  %v7807_v11 = vsub.s32 1, %v15370_v45 }
 0x50c   :  { %v7017_v48 = vmax.f32 %v7015_v26, %v7016_v31  ;;  %v7211_v15 = vmax.f32 %v7209_v0, %v7210_v19 }
 0x50d   :  { %v7403_v25 = vmax.f32 %v7401_v56, %v7402_v38  ;;  %v7597_v13 = vmax.f32 %v7595_v63, %v7596_v18  ;;  %v8069_v38 = vld [vmem:[%s15030_s13 + $0x20] sm:$0xff]  ;;  %v8068_v18 = vld [vmem:[%s15030_s13 + $0x18] sm:$0xff] }
 0x50e   :  { %v7637_v44 = vsel %vm7620_vm11, %v7211_v15, %v7636_v62  ;;  %v7621_v58 = vsel %vm7620_vm11, %v7017_v48, %v7619_v5  ;;  %v7964_v5 = vld [vmem:[%s15029_s11 + $0x48] sm:$0xff]  ;;  %v7803_v62 = vsub.s32 0, %v15370_v45  ;;  %v8067_v15 = vld [vmem:[%s15030_s13 + $0x10] sm:$0xff] }
 0x50f   :  { %7875 = vmatprep.mubr.f32.mxu0 %v7637_v44  ;;  %v7404_v3 = vrot.slane %v7403_v25, 1  ;;  %v7598_v33 = vrot.slane %v7597_v13, 1  ;;  %v8065_v44 = vld [vmem:[%s15030_s13] sm:$0xff] }
 0x510   :  { %7876 = vmatmul.mubr.f32.vlgmr.msra.gmra.mxu0 %v7621_v58  ;;  %v7804_v12 = vrot.slane %v7799_v14, %v7803_v62 }
 0x511   :  { %9359 = vmatpush3.msra.mxu0 %v7970_v54  ;;  %v7405_v46 = vmax.f32 %v7403_v25, %v7404_v3  ;;  %v7599_v34 = vmax.f32 %v7597_v13, %v7598_v33  ;;  %v8066_v25 = vld [vmem:[%s15030_s13 + $0x8] sm:$0xff]  ;;  %v8751_v13 = vld [vmem:[%s15032_s12] ss:$0 sm:$0xff] }
 0x512   :  { %9360 = vmatprep.subr.mxu0 %v7985_v27 }
 0x513   :  { %9361 = vmatpush3.msra.mxu0 %v7969_v41  ;;  %v7669_v9 = vsel %vm7620_vm11, %v7599_v34, %v7668_v36  ;;  %v7653_v16 = vsel %vm7620_vm11, %v7405_v46, %v7652_v8  ;;  %v8072_v8 = vld [vmem:[%s15030_s13 + $0x38] sm:$0xff]  ;;  %v7808_v36 = vrot.slane %v7799_v14, %v7807_v11  ;;  %v8752_v41 = vld [vmem:[%s15033_s14] ss:$0 sm:$0xff] }
 0x514   :  { %9362 = vmatprep.subr.mxu0 %v7984_v23  ;;  %7946 = vmatprep.mubr.f32.mxu1 %v7669_v9 }
 0x515   :  { %9363 = vmatpush3.msra.mxu0 %v7968_v24  ;;  %7947 = vmatmul.mubr.f32.vlgmr.msra.gmra.mxu1 %v7653_v16 }
 0x516   :  { %9364 = vmatprep.subr.mxu0 %v7983_v35  ;;  %10331 = vmatpush3.msra.mxu1 %v8072_v8 }
 0x517   :  { %9365 = vmatpush3.msra.mxu0 %v7967_v1  ;;  %10332 = vmatprep.subr.mxu1 %v10358_v4 }
 0x518   :  { %9366 = vmatprep.subr.mxu0 %v7982_v6  ;;  %10333 = vmatpush3.msra.mxu1 %v8071_v7 }
 0x519   :  { %9367 = vmatpush3.msra.mxu0 %v7966_v20  ;;  %10334 = vmatprep.subr.mxu1 %v10358_v4 }
 0x51a   :  { %9368 = vmatprep.subr.mxu0 %v7981_v28  ;;  %10335 = vmatpush3.msra.mxu1 %v8070_v59 }
 0x51b   :  { %9369 = vmatpush3.msra.mxu0 %v7965_v51  ;;  %10336 = vmatprep.subr.mxu1 %v10358_v4 }
 0x51c   :  { %9370 = vmatprep.subr.mxu0 %v7980_v39  ;;  %10337 = vmatpush3.msra.mxu1 %v8069_v38 }
 0x51d   :  { %9371 = vmatpush3.msra.mxu0 %v7964_v5  ;;  %10338 = vmatprep.subr.mxu1 %v10358_v4 }
 0x51e   :  { %9372 = vmatprep.subr.mxu0 %v7979_v17  ;;  %10339 = vmatpush3.msra.mxu1 %v8068_v18 }
 0x51f   :  { %9373 = vmatpush3.msra.mxu0 %v7963_v53  ;;  %10346 = vmatprep.mubr.msk.f32.mxu1 %vm10359_vm12, %v10358_v4 }
 0x520   :  { %9374 = vmatprep.subr.mxu0 %v7978_v47  ;;  %10340 = vmatprep.subr.mxu1 %v10358_v4 }
 0x521   :  { %9375 = vmatpush3.msra.mxu0 %v7962_v32  ;;  %10341 = vmatpush3.msra.mxu1 %v8067_v15 }
 0x522   :  { %9376 = vmatprep.subr.mxu0 %v7977_v2  ;;  %10342 = vmatprep.subr.mxu1 %v10358_v4 }
 0x523   :  { %9377 = vmatpush3.msra.mxu0 %v7961_v29  ;;  %10343 = vmatpush3.msra.mxu1 %v8066_v25 }
 0x524   :  { %9378 = vmatprep.subr.mxu0 %v7976_v22  ;;  %10344 = vmatprep.subr.mxu1 %v10358_v4 }
 0x525   :  { %9379 = vmatpush3.msra.mxu0 %v7960_v43  ;;  %10345 = vmatpush3.msra.mxu1 %v8065_v44 }
 0x526   :  { %9380 = vmatprep.subr.mxu0 %v7975_v60 }
 0x527   :  { %9381 = vmatpush3.msra.mxu0 %v7959_v49 }
 0x528   :  { %9382 = vmatprep.subr.mxu0 %v7974_v30 }
 0x529   :  { %9383 = vmatpush3.msra.mxu0 %v7958_v21 }
 0x52a   :  { %9384 = vmatprep.subr.mxu0 %v7973_v10 }
 0x52b   :  { %9385 = vmatpush3.msra.mxu0 %v7957_v57 }
 0x52c   :  { %9386 = vmatprep.subr.mxu0 %v7972_v52 }
 0x52d   :  { %9387 = vmatpush3.msra.mxu0 %v7956_v37 }
 0x52e   :  { %9388 = vmatprep.subr.mxu0 %v7971_v61 }
 0x52f   :  { %9389 = vmatpush3.msra.mxu0 %v7955_v55 }
 0x5d0   :  { %v7877_v50 = vpop.f32.mrf.mxu0 }
 0x5d1   :  { %v7878_v40 = vadd.f32 %v7877_v50, %v7804_v12 }
 0x5d2   :  { %v7879_v26 = vpop.f32.mrf.mxu0 }
 0x5d3   :  { %v7880_v0 = vadd.f32 %v7879_v26, %v7808_v36 }
 0x5d5   :  { %v7948_v42 = vpop.f32.mrf.mxu1 }
 0x5d6   :  { %v7949_v31 = vadd.f32 %v7948_v42, %v7878_v40 }
 0x5d7   :  { %v7950_v56 = vpop.f32.mrf.mxu1 }
 0x5d8   :  { %v7951_v63 = vadd.f32 %v7950_v56, %v7880_v0  ;;  %v7953_v48 = vmax.f32 %v7949_v31, 0.0 }
 0x5da   :  { %v7954_v19 = vmax.f32 %v7951_v63, 0.0 }
 0x5dc   :  { %8058 = vmatprep.mubr.f32.mxu0 %v7954_v19 }
 0x5dd   :  { %8059 = vmatmul.mubr.f32.vlgmr.msra.gmra.mxu0 %v7953_v48 }
 0x69d   :  { %v9390_v58 = vpop.f32.mrf.mxu0 }
 0x69f   :  { %v9391_v54 = vpop.f32.mrf.mxu0 }
 0x6a0   :  { %v9392_v27 = vadd.f32 %v9391_v54, %v9390_v58 }
 0x6a2   :  { %v8061_v3 = vadd.f32 %v9392_v27, %v8751_v13 }
 0x6a4   :  { %v8064_v33 = vmax.f32 %v8061_v3, 0.0 }
 0x6a6   :  { %10347 = vmatmul.mubr.msk.f32.vlgmr.msra.gmra.mxu1 %vm4891_vm7, %v8064_v33 }
 0x766   :  { %v8149_v23 = vpop.f32.mrf.mxu1 }
 0x767   :  { %v8150_v46 = vadd.f32 %v8752_v41, %v8149_v23 }
 0x768   :  { %v10348_v34 = vpop.f32.mrf.mxu1 }
 0x769   :  { %8153 = vst [vmem:[%s15034_s15] sm:$0xff] %v8150_v46 }

</bundles_post_ra>
